<compile_context>
chip_gen: v5e
topology: v5e:2x2
jax: 0.10.0
libtpu: 0.0.40
codegen_flags: <defaults>
</compile_context>

<pallas_src>
import jax
import jax.numpy as jnp
from jax.experimental import pallas as pl
from jax.experimental.pallas import tpu as pltpu

EPS = 1e-5  # nn.BatchNorm2d default


def _round_up(v, m):
    return ((v + m - 1) // m) * m


# --------------------------- in-kernel helpers -------------------------------
def _pad_into(pad_ref, x, N, H, W, C):
    """Write x (N,H,W,C) into pad_ref (N,H+2,W+2,C) with a zero 1-px border.
    Only the border is zero-filled (no full-tensor memset)."""
    zrow = jnp.zeros((N, 1, W + 2, C), jnp.float32)
    pad_ref[:, 0:1, :, :] = zrow
    pad_ref[:, H + 1:H + 2, :, :] = zrow
    zcol = jnp.zeros((N, H, 1, C), jnp.float32)
    pad_ref[:, 1:H + 1, 0:1, :] = zcol
    pad_ref[:, 1:H + 1, W + 1:W + 2, :] = zcol
    pad_ref[:, 1:H + 1, 1:W + 1, :] = x


def _conv3x3(xpad, wc, H, W):
    """3x3 'same' conv as ONE im2col matmul.
    xpad: (N, H+2, W+2, Cin) f32, wc: (9*Cin, Cout) f32 (HWIO flattened).
    Returns (N*H*W, Cout) f32 accumulated on the MXU."""
    N = xpad.shape[0]
    Cin = xpad.shape[-1]
    # tap order (dy, dx, cin) matches w.reshape(9*Cin, Cout) row order
    cols = [xpad[:, dy:dy + H, dx:dx + W, :]
            for dy in range(3) for dx in range(3)]
    patches = jnp.concatenate(cols, axis=-1).reshape(N * H * W, 9 * Cin)
    return jnp.dot(patches, wc, preferred_element_type=jnp.float32)


def _bn_relu(y, gamma, beta):
    """Train-mode BatchNorm (biased batch stats over rows) + ReLU, one-pass
    statistics. y: (M, C), gamma/beta: (1, C)."""
    m = y.shape[0]
    s = jnp.sum(y, axis=0, keepdims=True)
    ss = jnp.sum(y * y, axis=0, keepdims=True)
    mean = s * (1.0 / m)
    var = ss * (1.0 / m) - mean * mean            # biased, like torch
    scale = jax.lax.rsqrt(var + EPS) * gamma
    return jnp.maximum((y - mean) * scale + beta, 0.0)


# -------------------------------- kernel -------------------------------------
def double_conv_kernel(x_ref, w1_ref, g1_ref, bt1_ref, w2_ref, g2_ref, bt2_ref,
                       out_ref, xpad_ref, midpad_ref):
    N, H, W, Cin = x_ref.shape
    Cp = out_ref.shape[-1]                        # lane-padded channel count

    # pad input inside the kernel (border-only zero + interior copy)
    _pad_into(xpad_ref, x_ref[...], N, H, W, Cin)

    # conv1 (single im2col matmul, bias omitted: cancelled by BN mean-sub)
    y1 = _conv3x3(xpad_ref[...], w1_ref[...], H, W)
    y1 = _bn_relu(y1, g1_ref[...], bt1_ref[...])

    # pad intermediate for conv2
    _pad_into(midpad_ref, y1.reshape(N, H, W, Cp), N, H, W, Cp)

    # conv2 + BN2 + ReLU
    y2 = _conv3x3(midpad_ref[...], w2_ref[...], H, W)
    y2 = _bn_relu(y2, g2_ref[...], bt2_ref[...])

    out_ref[...] = y2.reshape(N, H, W, Cp).astype(out_ref.dtype)


# ------------------------------- wrappers -------------------------------------
def double_conv_nhwc(x_nhwc, w1, b1, g1, be1, w2, b2, g2, be2):
    """Production entry point: NHWC activations end-to-end.
    Conv weights in HWIO. The conv biases b1/b2 are accepted for interface
    parity but intentionally NOT used: train-mode BN removes the batch mean
    immediately after each conv, so a per-channel bias is a no-op."""
    del b1, b2
    N, H, W, Cin = x_nhwc.shape
    Cout = w1.shape[-1]
    Cp = _round_up(Cout, 128)                     # lane-dense channel padding
    pc = Cp - Cout

    # combined / lane-padded parameters (tiny, one-time work)
    w1c = jnp.pad(w1, ((0, 0), (0, 0), (0, 0), (0, pc))).reshape(9 * Cin, Cp)
    w2c = jnp.pad(w2, ((0, 0), (0, 0), (0, pc), (0, pc))).reshape(9 * Cp, Cp)
    g1p = jnp.pad(g1, (0, pc)).reshape(1, Cp)
    be1p = jnp.pad(be1, (0, pc)).reshape(1, Cp)
    g2p = jnp.pad(g2, (0, pc)).reshape(1, Cp)
    be2p = jnp.pad(be2, (0, pc)).reshape(1, Cp)

    vmem = pl.BlockSpec(memory_space=pltpu.MemorySpace.VMEM)
    out_p = pl.pallas_call(
        double_conv_kernel,
        out_shape=jax.ShapeDtypeStruct((N, H, W, Cp), jnp.float32),
        in_specs=[vmem] * 7,
        out_specs=vmem,
        scratch_shapes=[
            pltpu.VMEM((N, H + 2, W + 2, Cin), jnp.float32),   # padded input
            pltpu.VMEM((N, H + 2, W + 2, Cp), jnp.float32),    # padded mid
        ],
        compiler_params=pltpu.CompilerParams(
            vmem_limit_bytes=64 * 1024 * 1024),
    )(x_nhwc.astype(jnp.float32), w1c, g1p, be1p, w2c, g2p, be2p)

    return out_p[..., :Cout]                      # drop lane-padding channels


def double_conv(x_nchw, w1, b1, g1, be1, w2, b2, g2, be2):
    """PyTorch-interface wrapper: NCHW in/out. The transposes exist only at
    the module boundary; in a real network keep NHWC across layers."""
    x = jnp.transpose(x_nchw, (0, 2, 3, 1))       # NHWC
    y = double_conv_nhwc(x, w1, b1, g1, be1, w2, b2, g2, be2)
    return jnp.transpose(y, (0, 3, 1, 2))         # NCHW


# ------------------------- pure-JAX reference ---------------------------------
def _ref_conv_bn_relu(x_nchw, w_hwio, b, gamma, beta):
    w_oihw = jnp.transpose(w_hwio, (3, 2, 0, 1))
    y = jax.lax.conv_general_dilated(
        x_nchw, w_oihw, window_strides=(1, 1), padding=((1, 1), (1, 1)),
        dimension_numbers=("NCHW", "OIHW", "NCHW"))
    y = y + b[None, :, None, None]                # bias kept in the reference
    mean = jnp.mean(y, axis=(0, 2, 3), keepdims=True)
    var = jnp.mean((y - mean) ** 2, axis=(0, 2, 3), keepdims=True)
    y = (y - mean) * jax.lax.rsqrt(var + EPS)
    y = y * gamma[None, :, None, None] + beta[None, :, None, None]
    return jnp.maximum(y, 0.0)


def double_conv_ref(x, w1, b1, g1, be1, w2, b2, g2, be2):
    y = _ref_conv_bn_relu(x, w1, b1, g1, be1)
    return _ref_conv_bn_relu(y, w2, b2, g2, be2)


# ------------------------------- main ------------------------------------------
if __name__ == "__main__":
    N, Cin, Cout, H, W = 2, 4, 8, 16, 16

    key = jax.random.PRNGKey(0)
    k = jax.random.split(key, 5)
    x = jax.random.normal(k[0], (N, Cin, H, W), jnp.float32)

    # Conv2d params (deterministic random; HWIO layout). BatchNorm params at
    # their PyTorch __init__ defaults: gamma = 1, beta = 0.
    w1 = jax.random.normal(k[1], (3, 3, Cin, Cout), jnp.float32) * 0.1
    b1 = jax.random.normal(k[2], (Cout,), jnp.float32) * 0.1
    w2 = jax.random.normal(k[3], (3, 3, Cout, Cout), jnp.float32) * 0.1
    b2 = jax.random.normal(k[4], (Cout,), jnp.float32) * 0.1
    g1 = jnp.ones((Cout,), jnp.float32)
    be1 = jnp.zeros((Cout,), jnp.float32)
    g2 = jnp.ones((Cout,), jnp.float32)
    be2 = jnp.zeros((Cout,), jnp.float32)

    out = double_conv(x, w1, b1, g1, be1, w2, b2, g2, be2)
    out = jax.block_until_ready(out)

    ref = double_conv_ref(x, w1, b1, g1, be1, w2, b2, g2, be2)
    ref = jax.block_until_ready(ref)

    assert out.shape == (N, Cout, H, W), out.shape
    assert jnp.allclose(out, ref, rtol=1e-4, atol=1e-4), (
        float(jnp.max(jnp.abs(out - ref))))

    print("KERNEL_OK")
</pallas_src>

<mosaic_0001>
module attributes {stable_mosaic.version = 11 : i64} {
  func.func @double_conv_kernel(%arg0: memref<2x16x16x4xf32, #tpu.memory_space<vmem>>, %arg1: memref<36x128xf32, #tpu.memory_space<vmem>>, %arg2: memref<1x128xf32, #tpu.memory_space<vmem>>, %arg3: memref<1x128xf32, #tpu.memory_space<vmem>>, %arg4: memref<1152x128xf32, #tpu.memory_space<vmem>>, %arg5: memref<1x128xf32, #tpu.memory_space<vmem>>, %arg6: memref<1x128xf32, #tpu.memory_space<vmem>>, %arg7: memref<2x16x16x128xf32, #tpu.memory_space<vmem>>, %arg8: memref<2x18x18x4xf32, #tpu.memory_space<vmem>>, %arg9: memref<2x18x18x128xf32, #tpu.memory_space<vmem>>) attributes {dimension_semantics = [], scalar_prefetch = 0 : i64, scratch_operands = 2 : i64, tpu.core_type = #tpu.core_type<tc>} {
    %c0 = arith.constant 0 : index
    %c0_0 = arith.constant 0 : index
    %c0_1 = arith.constant 0 : index
    %c0_2 = arith.constant 0 : index
    %0 = vector.load %arg0[%c0, %c0_0, %c0_1, %c0_2] : memref<2x16x16x4xf32, #tpu.memory_space<vmem>>, vector<2x16x16x4xf32>
    %cst = arith.constant 0.000000e+00 : f32
    %1 = vector.broadcast %cst : f32 to vector<2x1x18x4xf32>
    %c0_3 = arith.constant 0 : index
    %c0_4 = arith.constant 0 : index
    %c0_5 = arith.constant 0 : index
    %c0_6 = arith.constant 0 : index
    %2 = vector.load %arg8[%c0_3, %c0_4, %c0_5, %c0_6] : memref<2x18x18x4xf32, #tpu.memory_space<vmem>>, vector<2x1x18x4xf32>
    tpu.vector_store %arg8[%c0_3, %c0_4, %c0_5, %c0_6], %1 {strides = array<i32>} : memref<2x18x18x4xf32, #tpu.memory_space<vmem>>, vector<2x1x18x4xf32>,
    %c0_7 = arith.constant 0 : index
    %c17 = arith.constant 17 : index
    %c0_8 = arith.constant 0 : index
    %c0_9 = arith.constant 0 : index
    %3 = vector.load %arg8[%c0_7, %c17, %c0_8, %c0_9] : memref<2x18x18x4xf32, #tpu.memory_space<vmem>>, vector<2x1x18x4xf32>
    tpu.vector_store %arg8[%c0_7, %c17, %c0_8, %c0_9], %1 {strides = array<i32>} : memref<2x18x18x4xf32, #tpu.memory_space<vmem>>, vector<2x1x18x4xf32>,
    %cst_10 = arith.constant 0.000000e+00 : f32
    %4 = vector.broadcast %cst_10 : f32 to vector<2x16x1x4xf32>
    %c0_11 = arith.constant 0 : index
    %c1 = arith.constant 1 : index
    %c0_12 = arith.constant 0 : index
    %c0_13 = arith.constant 0 : index
    %5 = vector.load %arg8[%c0_11, %c1, %c0_12, %c0_13] : memref<2x18x18x4xf32, #tpu.memory_space<vmem>>, vector<2x16x1x4xf32>
    tpu.vector_store %arg8[%c0_11, %c1, %c0_12, %c0_13], %4 {strides = array<i32>} : memref<2x18x18x4xf32, #tpu.memory_space<vmem>>, vector<2x16x1x4xf32>,
    %c0_14 = arith.constant 0 : index
    %c1_15 = arith.constant 1 : index
    %c17_16 = arith.constant 17 : index
    %c0_17 = arith.constant 0 : index
    %6 = vector.load %arg8[%c0_14, %c1_15, %c17_16, %c0_17] : memref<2x18x18x4xf32, #tpu.memory_space<vmem>>, vector<2x16x1x4xf32>
    tpu.vector_store %arg8[%c0_14, %c1_15, %c17_16, %c0_17], %4 {strides = array<i32>} : memref<2x18x18x4xf32, #tpu.memory_space<vmem>>, vector<2x16x1x4xf32>,
    %c0_18 = arith.constant 0 : index
    %c1_19 = arith.constant 1 : index
    %c1_20 = arith.constant 1 : index
    %c0_21 = arith.constant 0 : index
    %7 = vector.load %arg8[%c0_18, %c1_19, %c1_20, %c0_21] : memref<2x18x18x4xf32, #tpu.memory_space<vmem>>, vector<2x16x16x4xf32>
    tpu.vector_store %arg8[%c0_18, %c1_19, %c1_20, %c0_21], %0 {strides = array<i32>} : memref<2x18x18x4xf32, #tpu.memory_space<vmem>>, vector<2x16x16x4xf32>,
    %c0_22 = arith.constant 0 : index
    %c0_23 = arith.constant 0 : index
    %c0_24 = arith.constant 0 : index
    %c0_25 = arith.constant 0 : index
    %8 = vector.load %arg8[%c0_22, %c0_23, %c0_24, %c0_25] : memref<2x18x18x4xf32, #tpu.memory_space<vmem>>, vector<2x18x18x4xf32>
    %c0_26 = arith.constant 0 : index
    %c0_27 = arith.constant 0 : index
    %9 = vector.load %arg1[%c0_26, %c0_27] : memref<36x128xf32, #tpu.memory_space<vmem>>, vector<36x128xf32>
    %10 = vector.extract_strided_slice %8 {offsets = [0, 0, 0, 0], sizes = [2, 16, 16, 4], strides = [1, 1, 1, 1]} : vector<2x18x18x4xf32> to vector<2x16x16x4xf32>
    %11 = vector.extract_strided_slice %8 {offsets = [0, 0, 1, 0], sizes = [2, 16, 16, 4], strides = [1, 1, 1, 1]} : vector<2x18x18x4xf32> to vector<2x16x16x4xf32>
    %12 = vector.extract_strided_slice %8 {offsets = [0, 0, 2, 0], sizes = [2, 16, 16, 4], strides = [1, 1, 1, 1]} : vector<2x18x18x4xf32> to vector<2x16x16x4xf32>
    %13 = vector.extract_strided_slice %8 {offsets = [0, 1, 0, 0], sizes = [2, 16, 16, 4], strides = [1, 1, 1, 1]} : vector<2x18x18x4xf32> to vector<2x16x16x4xf32>
    %14 = vector.extract_strided_slice %8 {offsets = [0, 1, 1, 0], sizes = [2, 16, 16, 4], strides = [1, 1, 1, 1]} : vector<2x18x18x4xf32> to vector<2x16x16x4xf32>
    %15 = vector.extract_strided_slice %8 {offsets = [0, 1, 2, 0], sizes = [2, 16, 16, 4], strides = [1, 1, 1, 1]} : vector<2x18x18x4xf32> to vector<2x16x16x4xf32>
    %16 = vector.extract_strided_slice %8 {offsets = [0, 2, 0, 0], sizes = [2, 16, 16, 4], strides = [1, 1, 1, 1]} : vector<2x18x18x4xf32> to vector<2x16x16x4xf32>
    %17 = vector.extract_strided_slice %8 {offsets = [0, 2, 1, 0], sizes = [2, 16, 16, 4], strides = [1, 1, 1, 1]} : vector<2x18x18x4xf32> to vector<2x16x16x4xf32>
    %18 = vector.extract_strided_slice %8 {offsets = [0, 2, 2, 0], sizes = [2, 16, 16, 4], strides = [1, 1, 1, 1]} : vector<2x18x18x4xf32> to vector<2x16x16x4xf32>
    %19 = tpu.concatenate %10, %11, %12, %13, %14, %15, %16, %17, %18 in 3 : vector<2x16x16x4xf32>, vector<2x16x16x4xf32>, vector<2x16x16x4xf32>, vector<2x16x16x4xf32>, vector<2x16x16x4xf32>, vector<2x16x16x4xf32>, vector<2x16x16x4xf32>, vector<2x16x16x4xf32>, vector<2x16x16x4xf32> -> vector<2x16x16x36xf32>
    %20 = vector.shape_cast %19 : vector<2x16x16x36xf32> to vector<512x36xf32>
    %cst_28 = arith.constant dense<0.000000e+00> : vector<512x128xf32>
    %21 = tpu.matmul %20, %9, %cst_28 {dimension_numbers = #tpu.dot_dimension_numbers<[1], [0], [0], [1], [0, 0, 1, 1], [], []>} : vector<512x36xf32>, vector<36x128xf32>, vector<512x128xf32> -> vector<512x128xf32>
    %c0_29 = arith.constant 0 : index
    %c0_30 = arith.constant 0 : index
    %22 = vector.load %arg2[%c0_29, %c0_30] : memref<1x128xf32, #tpu.memory_space<vmem>>, vector<1x128xf32>
    %c0_31 = arith.constant 0 : index
    %c0_32 = arith.constant 0 : index
    %23 = vector.load %arg3[%c0_31, %c0_32] : memref<1x128xf32, #tpu.memory_space<vmem>>, vector<1x128xf32>
    %cst_33 = arith.constant dense<0.000000e+00> : vector<128xf32>
    %24 = vector.multi_reduction <add>, %21, %cst_33 [0] : vector<512x128xf32> to vector<128xf32>
    %25 = vector.shape_cast %24 : vector<128xf32> to vector<1x128xf32>
    %26 = arith.mulf %21, %21 : vector<512x128xf32>
    %cst_34 = arith.constant dense<0.000000e+00> : vector<128xf32>
    %27 = vector.multi_reduction <add>, %26, %cst_34 [0] : vector<512x128xf32> to vector<128xf32>
    %28 = vector.shape_cast %27 : vector<128xf32> to vector<1x128xf32>
    %cst_35 = arith.constant 0.001953125 : f32
    %29 = vector.broadcast %cst_35 : f32 to vector<1x128xf32>
    %30 = arith.mulf %25, %29 : vector<1x128xf32>
    %cst_36 = arith.constant 0.001953125 : f32
    %31 = vector.broadcast %cst_36 : f32 to vector<1x128xf32>
    %32 = arith.mulf %28, %31 : vector<1x128xf32>
    %33 = arith.mulf %30, %30 : vector<1x128xf32>
    %34 = arith.subf %32, %33 : vector<1x128xf32>
    %cst_37 = arith.constant 9.99999974E-6 : f32
    %35 = vector.broadcast %cst_37 : f32 to vector<1x128xf32>
    %36 = arith.addf %34, %35 : vector<1x128xf32>
    %37 = math.rsqrt %36 : vector<1x128xf32>
    %38 = arith.mulf %37, %22 : vector<1x128xf32>
    %39 = vector.broadcast %30 : vector<1x128xf32> to vector<512x128xf32>
    %40 = arith.subf %21, %39 : vector<512x128xf32>
    %41 = vector.broadcast %38 : vector<1x128xf32> to vector<512x128xf32>
    %42 = arith.mulf %40, %41 : vector<512x128xf32>
    %43 = vector.broadcast %23 : vector<1x128xf32> to vector<512x128xf32>
    %44 = arith.addf %42, %43 : vector<512x128xf32>
    %cst_38 = arith.constant 0.000000e+00 : f32
    %45 = vector.broadcast %cst_38 : f32 to vector<512x128xf32>
    %46 = arith.maximumf %44, %45 : vector<512x128xf32>
    %47 = vector.shape_cast %46 : vector<512x128xf32> to vector<2x16x16x128xf32>
    %cst_39 = arith.constant 0.000000e+00 : f32
    %48 = vector.broadcast %cst_39 : f32 to vector<2x1x18x128xf32>
    %c0_40 = arith.constant 0 : index
    %c0_41 = arith.constant 0 : index
    %c0_42 = arith.constant 0 : index
    %c0_43 = arith.constant 0 : index
    %49 = vector.load %arg9[%c0_40, %c0_41, %c0_42, %c0_43] : memref<2x18x18x128xf32, #tpu.memory_space<vmem>>, vector<2x1x18x128xf32>
    tpu.vector_store %arg9[%c0_40, %c0_41, %c0_42, %c0_43], %48 {strides = array<i32>} : memref<2x18x18x128xf32, #tpu.memory_space<vmem>>, vector<2x1x18x128xf32>,
    %c0_44 = arith.constant 0 : index
    %c17_45 = arith.constant 17 : index
    %c0_46 = arith.constant 0 : index
    %c0_47 = arith.constant 0 : index
    %50 = vector.load %arg9[%c0_44, %c17_45, %c0_46, %c0_47] : memref<2x18x18x128xf32, #tpu.memory_space<vmem>>, vector<2x1x18x128xf32>
    tpu.vector_store %arg9[%c0_44, %c17_45, %c0_46, %c0_47], %48 {strides = array<i32>} : memref<2x18x18x128xf32, #tpu.memory_space<vmem>>, vector<2x1x18x128xf32>,
    %cst_48 = arith.constant 0.000000e+00 : f32
    %51 = vector.broadcast %cst_48 : f32 to vector<2x16x1x128xf32>
    %c0_49 = arith.constant 0 : index
    %c1_50 = arith.constant 1 : index
    %c0_51 = arith.constant 0 : index
    %c0_52 = arith.constant 0 : index
    %52 = vector.load %arg9[%c0_49, %c1_50, %c0_51, %c0_52] : memref<2x18x18x128xf32, #tpu.memory_space<vmem>>, vector<2x16x1x128xf32>
    tpu.vector_store %arg9[%c0_49, %c1_50, %c0_51, %c0_52], %51 {strides = array<i32>} : memref<2x18x18x128xf32, #tpu.memory_space<vmem>>, vector<2x16x1x128xf32>,
    %c0_53 = arith.constant 0 : index
    %c1_54 = arith.constant 1 : index
    %c17_55 = arith.constant 17 : index
    %c0_56 = arith.constant 0 : index
    %53 = vector.load %arg9[%c0_53, %c1_54, %c17_55, %c0_56] : memref<2x18x18x128xf32, #tpu.memory_space<vmem>>, vector<2x16x1x128xf32>
    tpu.vector_store %arg9[%c0_53, %c1_54, %c17_55, %c0_56], %51 {strides = array<i32>} : memref<2x18x18x128xf32, #tpu.memory_space<vmem>>, vector<2x16x1x128xf32>,
    %c0_57 = arith.constant 0 : index
    %c1_58 = arith.constant 1 : index
    %c1_59 = arith.constant 1 : index
    %c0_60 = arith.constant 0 : index
    %54 = vector.load %arg9[%c0_57, %c1_58, %c1_59, %c0_60] : memref<2x18x18x128xf32, #tpu.memory_space<vmem>>, vector<2x16x16x128xf32>
    tpu.vector_store %arg9[%c0_57, %c1_58, %c1_59, %c0_60], %47 {strides = array<i32>} : memref<2x18x18x128xf32, #tpu.memory_space<vmem>>, vector<2x16x16x128xf32>,
    %c0_61 = arith.constant 0 : index
    %c0_62 = arith.constant 0 : index
    %c0_63 = arith.constant 0 : index
    %c0_64 = arith.constant 0 : index
    %55 = vector.load %arg9[%c0_61, %c0_62, %c0_63, %c0_64] : memref<2x18x18x128xf32, #tpu.memory_space<vmem>>, vector<2x18x18x128xf32>
    %c0_65 = arith.constant 0 : index
    %c0_66 = arith.constant 0 : index
    %56 = vector.load %arg4[%c0_65, %c0_66] : memref<1152x128xf32, #tpu.memory_space<vmem>>, vector<1152x128xf32>
    %57 = vector.extract_strided_slice %55 {offsets = [0, 0, 0, 0], sizes = [2, 16, 16, 128], strides = [1, 1, 1, 1]} : vector<2x18x18x128xf32> to vector<2x16x16x128xf32>
    %58 = vector.extract_strided_slice %55 {offsets = [0, 0, 1, 0], sizes = [2, 16, 16, 128], strides = [1, 1, 1, 1]} : vector<2x18x18x128xf32> to vector<2x16x16x128xf32>
    %59 = vector.extract_strided_slice %55 {offsets = [0, 0, 2, 0], sizes = [2, 16, 16, 128], strides = [1, 1, 1, 1]} : vector<2x18x18x128xf32> to vector<2x16x16x128xf32>
    %60 = vector.extract_strided_slice %55 {offsets = [0, 1, 0, 0], sizes = [2, 16, 16, 128], strides = [1, 1, 1, 1]} : vector<2x18x18x128xf32> to vector<2x16x16x128xf32>
    %61 = vector.extract_strided_slice %55 {offsets = [0, 1, 1, 0], sizes = [2, 16, 16, 128], strides = [1, 1, 1, 1]} : vector<2x18x18x128xf32> to vector<2x16x16x128xf32>
    %62 = vector.extract_strided_slice %55 {offsets = [0, 1, 2, 0], sizes = [2, 16, 16, 128], strides = [1, 1, 1, 1]} : vector<2x18x18x128xf32> to vector<2x16x16x128xf32>
    %63 = vector.extract_strided_slice %55 {offsets = [0, 2, 0, 0], sizes = [2, 16, 16, 128], strides = [1, 1, 1, 1]} : vector<2x18x18x128xf32> to vector<2x16x16x128xf32>
    %64 = vector.extract_strided_slice %55 {offsets = [0, 2, 1, 0], sizes = [2, 16, 16, 128], strides = [1, 1, 1, 1]} : vector<2x18x18x128xf32> to vector<2x16x16x128xf32>
    %65 = vector.extract_strided_slice %55 {offsets = [0, 2, 2, 0], sizes = [2, 16, 16, 128], strides = [1, 1, 1, 1]} : vector<2x18x18x128xf32> to vector<2x16x16x128xf32>
    %66 = tpu.concatenate %57, %58, %59, %60, %61, %62, %63, %64, %65 in 3 : vector<2x16x16x128xf32>, vector<2x16x16x128xf32>, vector<2x16x16x128xf32>, vector<2x16x16x128xf32>, vector<2x16x16x128xf32>, vector<2x16x16x128xf32>, vector<2x16x16x128xf32>, vector<2x16x16x128xf32>, vector<2x16x16x128xf32> -> vector<2x16x16x1152xf32>
    %67 = vector.shape_cast %66 : vector<2x16x16x1152xf32> to vector<512x1152xf32>
    %cst_67 = arith.constant dense<0.000000e+00> : vector<512x128xf32>
    %68 = tpu.matmul %67, %56, %cst_67 {dimension_numbers = #tpu.dot_dimension_numbers<[1], [0], [0], [1], [0, 0, 1, 1], [], []>} : vector<512x1152xf32>, vector<1152x128xf32>, vector<512x128xf32> -> vector<512x128xf32>
    %c0_68 = arith.constant 0 : index
    %c0_69 = arith.constant 0 : index
    %69 = vector.load %arg5[%c0_68, %c0_69] : memref<1x128xf32, #tpu.memory_space<vmem>>, vector<1x128xf32>
    %c0_70 = arith.constant 0 : index
    %c0_71 = arith.constant 0 : index
    %70 = vector.load %arg6[%c0_70, %c0_71] : memref<1x128xf32, #tpu.memory_space<vmem>>, vector<1x128xf32>
    %cst_72 = arith.constant dense<0.000000e+00> : vector<128xf32>
    %71 = vector.multi_reduction <add>, %68, %cst_72 [0] : vector<512x128xf32> to vector<128xf32>
    %72 = vector.shape_cast %71 : vector<128xf32> to vector<1x128xf32>
    %73 = arith.mulf %68, %68 : vector<512x128xf32>
    %cst_73 = arith.constant dense<0.000000e+00> : vector<128xf32>
    %74 = vector.multi_reduction <add>, %73, %cst_73 [0] : vector<512x128xf32> to vector<128xf32>
    %75 = vector.shape_cast %74 : vector<128xf32> to vector<1x128xf32>
    %cst_74 = arith.constant 0.001953125 : f32
    %76 = vector.broadcast %cst_74 : f32 to vector<1x128xf32>
    %77 = arith.mulf %72, %76 : vector<1x128xf32>
    %cst_75 = arith.constant 0.001953125 : f32
    %78 = vector.broadcast %cst_75 : f32 to vector<1x128xf32>
    %79 = arith.mulf %75, %78 : vector<1x128xf32>
    %80 = arith.mulf %77, %77 : vector<1x128xf32>
    %81 = arith.subf %79, %80 : vector<1x128xf32>
    %cst_76 = arith.constant 9.99999974E-6 : f32
    %82 = vector.broadcast %cst_76 : f32 to vector<1x128xf32>
    %83 = arith.addf %81, %82 : vector<1x128xf32>
    %84 = math.rsqrt %83 : vector<1x128xf32>
    %85 = arith.mulf %84, %69 : vector<1x128xf32>
    %86 = vector.broadcast %77 : vector<1x128xf32> to vector<512x128xf32>
    %87 = arith.subf %68, %86 : vector<512x128xf32>
    %88 = vector.broadcast %85 : vector<1x128xf32> to vector<512x128xf32>
    %89 = arith.mulf %87, %88 : vector<512x128xf32>
    %90 = vector.broadcast %70 : vector<1x128xf32> to vector<512x128xf32>
    %91 = arith.addf %89, %90 : vector<512x128xf32>
    %cst_77 = arith.constant 0.000000e+00 : f32
    %92 = vector.broadcast %cst_77 : f32 to vector<512x128xf32>
    %93 = arith.maximumf %91, %92 : vector<512x128xf32>
    %94 = vector.shape_cast %93 : vector<512x128xf32> to vector<2x16x16x128xf32>
    %c0_78 = arith.constant 0 : index
    %c0_79 = arith.constant 0 : index
    %c0_80 = arith.constant 0 : index
    %c0_81 = arith.constant 0 : index
    %95 = vector.load %arg7[%c0_78, %c0_79, %c0_80, %c0_81] : memref<2x16x16x128xf32, #tpu.memory_space<vmem>>, vector<2x16x16x128xf32>
    tpu.vector_store %arg7[%c0_78, %c0_79, %c0_80, %c0_81], %94 {strides = array<i32>} : memref<2x16x16x128xf32, #tpu.memory_space<vmem>>, vector<2x16x16x128xf32>,
    return
  }
}

</mosaic_0001>

<bundles_post_ra>
// kernel: tpu_custom_call.1
= control target key start
LH: loop header
LB: loop body
LE: loop exit
PB: predicated region body
PF: predicated region fallthrough
CT: control target
= control target key end

     0   :  { %12 = vsyncpa [#allocation5], 0  ;;  %s15150_s0 = inlined_call_operand.vmem [shape: f32[2,16,16,4], index: 0, kind: input, shape index: {}]   ;;  %s15151_s1 = inlined_call_operand.vmem [shape: f32[36,128], index: 1, kind: input, shape index: {}]   ;;  %s15152_s2 = inlined_call_operand.vmem [shape: f32[1,128], index: 2, kind: input, shape index: {}]   ;;  %s15153_s3 = inlined_call_operand.vmem [shape: f32[1,128], index: 3, kind: input, shape index: {}]   ;;  %s15154_s4 = inlined_call_operand.hbm [shape: f32[1152,128], index: 4, kind: input, shape index: {}]   ;;  %s15155_s5 = inlined_call_operand.vmem [shape: f32[1,128], index: 5, kind: input, shape index: {}]   ;;  %s15156_s6 = inlined_call_operand.vmem [shape: f32[1,128], index: 6, kind: input, shape index: {}]   ;;  %s15157_s7 = inlined_call_operand.hbm [shape: f32[2,16,16,128], index: 7, kind: output, shape index: {}]  }
   0x1   :  { %13 = vsyncpa [#allocation6], 0  ;;  %s26_s26 = sshll.u32 %s15154_s4, 4  ;;  %s7498_s27 = smov [#allocation4]   ;;  %s27_s26 = int_to_ptr.hbm [resolvable:$true] %s26_s26 }
   0x2   :  { %s28_s28 = sshll.u32 %s7498_s27, 4  ;;  %s7499_s29 = smov 128   ;;  %s29_s28 = int_to_ptr.vmem [resolvable:$true] %s28_s28 }
   0x3   :  { %s7500_s30 = smov 8  }
   0x4   :  { %34 = dma.hbm_to_vmem [thread:$0]  %s27_s26, 18432, %s29_s28, [#allocation5], %s7499_s29, %s7499_s29, %s7500_s30  }
   0x5   :  { %7494 = dma.done.wait [#allocation5], 18432  }
   0x6   :  { %7495 = vsyncadd [#allocation5], 4294948864  ;;  %vm107_vm0 = vcmask 31744   ;;  %v7501_v0 = vmov 0.0   ;;  %vm461_vm1 = vcmask 1046528   ;;  %s7502_s4 = smov 4  }
   0x7   :  { %108 = vst.msk [vmem:[#allocation2] sm:$0xff] %vm107_vm0, %v7501_v0  ;;  %vm814_vm2 = vcmask 1045504   ;;  %vm123_vm3 = vcmask 24576   ;;  %v43_v9 = vld [vmem:[%s15150_s0] sm:$0xff]  ;;  %s7503_s10 = smov 12   ;;  %v44_v11 = vld [vmem:[%s15150_s0 + $0x8] sm:$0xff] }
   0x8   :  { %109 = vst.msk [vmem:[#allocation2 + $0x8] sm:$0xff] %vm107_vm0, %v7501_v0  ;;  %v45_v12 = vld [vmem:[%s15150_s0 + $0x10] sm:$0xff]  ;;  %v46_v13 = vld [vmem:[%s15150_s0 + $0x18] sm:$0xff]  ;;  %vm110_vm4 = vcmask 25600   ;;  %s7504_s17 = smov 16   ;;  %s7505_s18 = smov 28  }
   0x9   :  { %112 = vst.msk [vmem:[#allocation2 + $0x1b0] sm:$0xff] %vm107_vm0, %v7501_v0  ;;  %v47_v29 = vld [vmem:[%s15150_s0 + $0x20] sm:$0xff]  ;;  %v48_v30 = vld [vmem:[%s15150_s0 + $0x28] sm:$0xff]  ;;  %s7506_s23 = smov 32   ;;  %s7507_s24 = smov 24   ;;  %v49_v51 = vld [vmem:[%s15150_s0 + $0x30] sm:$0xff] }
   0xa   :  { %113 = vst.msk [vmem:[#allocation2 + $0x1b8] sm:$0xff] %vm107_vm0, %v7501_v0  ;;  %s7508_s25 = smov 20   ;;  %v50_v52 = vld [vmem:[%s15150_s0 + $0x38] sm:$0xff]  ;;  %v364_v63 = vld [vmem:[%s15151_s1 + $0x20] sm:$0xf]  ;;  %vm3083_vm5 = vcmask 1043456  }
   0xb   :  { %116 = vst.msk [vmem:[#allocation2 + $0x198] sm:$0xff] %vm107_vm0, %v7501_v0  ;;  %7226 = vmatpush.msk.msra.mxu0 %vm3083_vm5, %v364_v63  ;;  %7291 = vmatpush.msk.msra.mxu3 %vm3083_vm5, %v364_v63  ;;  %vm2435_vm6 = vcmask 64512   ;;  %vm2500_vm7 = vcmask 97280   ;;  %vm2565_vm8 = vcmask 130048   ;;  %vm2630_vm9 = vcmask 162816   ;;  %s7213_s22 = sshll.u32 %s15157_s7, 4  ;;  %s7214_s22 = int_to_ptr.hbm [resolvable:$true] %s7213_s22 }
   0xc   :  { %117 = vst.msk [vmem:[#allocation2 + $0x1a0] sm:$0xff] %vm107_vm0, %v7501_v0  ;;  %vm2695_vm10 = vcmask 195584   ;;  %vm2760_vm11 = vcmask 228352   ;;  %vm2825_vm12 = vcmask 261120   ;;  %vm2890_vm13 = vcmask 293888  }
   0xd   :  { %119 = vst.msk [vmem:[#allocation2 + $0x348] sm:$0xff] %vm107_vm0, %v7501_v0 }
   0xe   :  { %v7570_v1 = vld [vmem:[#allocation2] sm:$0xff]  ;;  %120 = vst.msk [vmem:[#allocation2 + $0x350] sm:$0xff] %vm107_vm0, %v7501_v0 }
   0xf   :  { %v7574_v2 = vld [vmem:[#allocation2 + $0x8] sm:$0xff]  ;;  %v462_v3 = vrot.slane %v7570_v1, 1  ;;  %3776 = vst [vmem:[#allocation3] sm:$0xff] %v7501_v0  ;;  %v815_v6 = vrot.slane %v7570_v1, 2 }
  0x10   :  { %v463_v4 = vrot.slane %v7574_v2, 1  ;;  %3778 = vst [vmem:[#allocation3 + $0x10] sm:$0x3] %v7501_v0  ;;  %v816_v7 = vrot.slane %v7574_v2, 2 }
  0x11   :  { %3781 = vst [vmem:[#allocation3 + $0x1c0] sm:$0x3] %v7501_v0 }
  0x12   :  { %v464_v5 = vsel %vm461_vm1, %v462_v3, %v463_v4  ;;  %3785 = vst [vmem:[#allocation3 + $0x1a8] sm:$0x3] %v7501_v0  ;;  %v817_v8 = vsel %vm814_vm2, %v815_v6, %v816_v7 }
  0x13   :  { %622 = vrot.lane.b32.xlu0 %v464_v5, %s7502_s4  ;;  %3788 = vst [vmem:[#allocation3 + $0x358] sm:$0x3] %v7501_v0  ;;  %v362_v5 = vld [vmem:[%s15151_s1 + $0x10] sm:$0xff] }
  0x14   :  { %3790 = vst [vmem:[#allocation3 + $0x18] sm:$0x1] %v7501_v0 }
  0x15   :  { %3791 = vst [vmem:[#allocation3 + $0x30] sm:$0x1] %v7501_v0 }
  0x16   :  { %3792 = vst [vmem:[#allocation3 + $0x48] sm:$0x1] %v7501_v0 }
  0x17   :  { %3793 = vst [vmem:[#allocation3 + $0x60] sm:$0x1] %v7501_v0 }
  0x18   :  { %3794 = vst [vmem:[#allocation3 + $0x78] sm:$0x1] %v7501_v0 }
  0x19   :  { %3795 = vst [vmem:[#allocation3 + $0x90] sm:$0x1] %v7501_v0 }
  0x1a   :  { %3796 = vst [vmem:[#allocation3 + $0xa8] sm:$0x1] %v7501_v0 }
  0x1b   :  { %3797 = vst [vmem:[#allocation3 + $0xc0] sm:$0x1] %v7501_v0  ;;  %975 = vrot.lane.b32.xlu0 %v817_v8, %s7500_s30  ;;  %v51_v8 = vld [vmem:[%s15150_s0 + $0x40] sm:$0xff] }
  0x1c   :  { %3798 = vst [vmem:[#allocation3 + $0xd8] sm:$0x1] %v7501_v0 }
  0x1d   :  { %3799 = vst [vmem:[#allocation3 + $0xf0] sm:$0x1] %v7501_v0 }
  0x1e   :  { %3800 = vst [vmem:[#allocation3 + $0x108] sm:$0x1] %v7501_v0 }
  0x1f   :  { %3801 = vst [vmem:[#allocation3 + $0x120] sm:$0x1] %v7501_v0 }
  0x20   :  { %3802 = vst [vmem:[#allocation3 + $0x138] sm:$0x1] %v7501_v0 }
  0x21   :  { %3803 = vst [vmem:[#allocation3 + $0x150] sm:$0x1] %v7501_v0 }
  0x22   :  { %3804 = vst [vmem:[#allocation3 + $0x168] sm:$0x1] %v7501_v0 }
  0x23   :  { %3805 = vst [vmem:[#allocation3 + $0x180] sm:$0x1] %v7501_v0 }
  0x24   :  { %3806 = vst [vmem:[#allocation3 + $0x1c8] sm:$0x1] %v7501_v0 }
  0x25   :  { %3807 = vst [vmem:[#allocation3 + $0x1e0] sm:$0x1] %v7501_v0 }
  0x26   :  { %3808 = vst [vmem:[#allocation3 + $0x1f8] sm:$0x1] %v7501_v0 }
  0x27   :  { %3809 = vst [vmem:[#allocation3 + $0x210] sm:$0x1] %v7501_v0 }
  0x28   :  { %3810 = vst [vmem:[#allocation3 + $0x228] sm:$0x1] %v7501_v0 }
  0x29   :  { %3811 = vst [vmem:[#allocation3 + $0x240] sm:$0x1] %v7501_v0 }
  0x2a   :  { %3812 = vst [vmem:[#allocation3 + $0x258] sm:$0x1] %v7501_v0 }
  0x2b   :  { %3813 = vst [vmem:[#allocation3 + $0x270] sm:$0x1] %v7501_v0 }
  0x2c   :  { %3814 = vst [vmem:[#allocation3 + $0x288] sm:$0x1] %v7501_v0 }
  0x2d   :  { %3815 = vst [vmem:[#allocation3 + $0x2a0] sm:$0x1] %v7501_v0 }
  0x2e   :  { %3816 = vst [vmem:[#allocation3 + $0x2b8] sm:$0x1] %v7501_v0 }
  0x2f   :  { %3817 = vst [vmem:[#allocation3 + $0x2d0] sm:$0x1] %v7501_v0 }
  0x30   :  { %3818 = vst [vmem:[#allocation3 + $0x2e8] sm:$0x1] %v7501_v0 }
  0x31   :  { %3819 = vst [vmem:[#allocation3 + $0x300] sm:$0x1] %v7501_v0 }
  0x32   :  { %3820 = vst [vmem:[#allocation3 + $0x318] sm:$0x1] %v7501_v0 }
  0x33   :  { %3821 = vst [vmem:[#allocation3 + $0x330] sm:$0x1] %v7501_v0 }
  0x34   :  { %3822 = vst [vmem:[#allocation3 + $0x29] sm:$0x1] %v7501_v0 }
  0x35   :  { %3823 = vst [vmem:[#allocation3 + $0x41] sm:$0x1] %v7501_v0 }
  0x36   :  { %3824 = vst [vmem:[#allocation3 + $0x59] sm:$0x1] %v7501_v0 }
  0x37   :  { %3825 = vst [vmem:[#allocation3 + $0x71] sm:$0x1] %v7501_v0 }
  0x38   :  { %3826 = vst [vmem:[#allocation3 + $0x89] sm:$0x1] %v7501_v0 }
  0x39   :  { %3827 = vst [vmem:[#allocation3 + $0xa1] sm:$0x1] %v7501_v0 }
  0x3a   :  { %3828 = vst [vmem:[#allocation3 + $0xb9] sm:$0x1] %v7501_v0 }
  0x3b   :  { %3829 = vst [vmem:[#allocation3 + $0xd1] sm:$0x1] %v7501_v0 }
  0x3c   :  { %3830 = vst [vmem:[#allocation3 + $0xe9] sm:$0x1] %v7501_v0 }
  0x3d   :  { %3831 = vst [vmem:[#allocation3 + $0x101] sm:$0x1] %v7501_v0 }
  0x3e   :  { %3832 = vst [vmem:[#allocation3 + $0x119] sm:$0x1] %v7501_v0 }
  0x3f   :  { %3833 = vst [vmem:[#allocation3 + $0x131] sm:$0x1] %v7501_v0 }
  0x40   :  { %3834 = vst [vmem:[#allocation3 + $0x149] sm:$0x1] %v7501_v0 }
  0x41   :  { %3835 = vst [vmem:[#allocation3 + $0x161] sm:$0x1] %v7501_v0 }
  0x42   :  { %3836 = vst [vmem:[#allocation3 + $0x179] sm:$0x1] %v7501_v0 }
  0x43   :  { %3837 = vst [vmem:[#allocation3 + $0x191] sm:$0x1] %v7501_v0 }
  0x44   :  { %3838 = vst [vmem:[#allocation3 + $0x1d9] sm:$0x1] %v7501_v0 }
  0x45   :  { %3839 = vst [vmem:[#allocation3 + $0x1f1] sm:$0x1] %v7501_v0 }
  0x46   :  { %3840 = vst [vmem:[#allocation3 + $0x209] sm:$0x1] %v7501_v0 }
  0x47   :  { %3841 = vst [vmem:[#allocation3 + $0x221] sm:$0x1] %v7501_v0 }
  0x48   :  { %3842 = vst [vmem:[#allocation3 + $0x239] sm:$0x1] %v7501_v0 }
  0x49   :  { %3843 = vst [vmem:[#allocation3 + $0x251] sm:$0x1] %v7501_v0 }
  0x4a   :  { %3844 = vst [vmem:[#allocation3 + $0x269] sm:$0x1] %v7501_v0 }
  0x4b   :  { %3845 = vst [vmem:[#allocation3 + $0x281] sm:$0x1] %v7501_v0 }
  0x4c   :  { %3846 = vst [vmem:[#allocation3 + $0x299] sm:$0x1] %v7501_v0 }
  0x4d   :  { %3847 = vst [vmem:[#allocation3 + $0x2b1] sm:$0x1] %v7501_v0 }
  0x4e   :  { %3848 = vst [vmem:[#allocation3 + $0x2c9] sm:$0x1] %v7501_v0 }
  0x4f   :  { %3849 = vst [vmem:[#allocation3 + $0x2e1] sm:$0x1] %v7501_v0 }
  0x50   :  { %3850 = vst [vmem:[#allocation3 + $0x2f9] sm:$0x1] %v7501_v0 }
  0x51   :  { %3851 = vst [vmem:[#allocation3 + $0x311] sm:$0x1] %v7501_v0 }
  0x52   :  { %3852 = vst [vmem:[#allocation3 + $0x329] sm:$0x1] %v7501_v0 }
  0x53   :  { %3853 = vst [vmem:[#allocation3 + $0x341] sm:$0x1] %v7501_v0 }
  0x54   :  { %124 = vst.msk [vmem:[#allocation2 + $0x18] sm:$0x1] %vm123_vm3, %v7501_v0 }
  0x55   :  { %188 = vst.msk [vmem:[#allocation2 + $0x19] sm:$0xff] %vm107_vm0, %v43_v9  ;;  %v52_v9 = vld [vmem:[%s15150_s0 + $0x48] sm:$0xff] }
  0x56   :  { %125 = vst.msk [vmem:[#allocation2 + $0x30] sm:$0x1] %vm123_vm3, %v7501_v0 }
  0x57   :  { %126 = vst.msk [vmem:[#allocation2 + $0x48] sm:$0x1] %vm123_vm3, %v7501_v0 }
  0x58   :  { %127 = vst.msk [vmem:[#allocation2 + $0x60] sm:$0x1] %vm123_vm3, %v7501_v0 }
  0x59   :  { %128 = vst.msk [vmem:[#allocation2 + $0x78] sm:$0x1] %vm123_vm3, %v7501_v0 }
  0x5a   :  { %129 = vst.msk [vmem:[#allocation2 + $0x90] sm:$0x1] %vm123_vm3, %v7501_v0 }
  0x5b   :  { %130 = vst.msk [vmem:[#allocation2 + $0xa8] sm:$0x1] %vm123_vm3, %v7501_v0 }
  0x5c   :  { %v7675_v10 = vld [vmem:[#allocation2 + $0x18] sm:$0xff]  ;;  %131 = vst.msk [vmem:[#allocation2 + $0xc0] sm:$0x1] %vm123_vm3, %v7501_v0 }
  0x5d   :  { %1171 = vrot.lane.b32.xlu1 %v7675_v10, %s7503_s10  ;;  %132 = vst.msk [vmem:[#allocation2 + $0xd8] sm:$0x1] %vm123_vm3, %v7501_v0  ;;  %v467_v14 = vrot.slane %v7675_v10, 1  ;;  %v820_v36 = vrot.slane %v7675_v10, 2 }
  0x5e   :  { %133 = vst.msk [vmem:[#allocation2 + $0xf0] sm:$0x1] %vm123_vm3, %v7501_v0 }
  0x5f   :  { %134 = vst.msk [vmem:[#allocation2 + $0x108] sm:$0x1] %vm123_vm3, %v7501_v0 }
  0x60   :  { %135 = vst.msk [vmem:[#allocation2 + $0x120] sm:$0x1] %vm123_vm3, %v7501_v0 }
  0x61   :  { %136 = vst.msk [vmem:[#allocation2 + $0x138] sm:$0x1] %vm123_vm3, %v7501_v0 }
  0x62   :  { %137 = vst.msk [vmem:[#allocation2 + $0x150] sm:$0x1] %vm123_vm3, %v7501_v0 }
  0x63   :  { %138 = vst.msk [vmem:[#allocation2 + $0x168] sm:$0x1] %vm123_vm3, %v7501_v0 }
  0x64   :  { %139 = vst.msk [vmem:[#allocation2 + $0x180] sm:$0x1] %vm123_vm3, %v7501_v0 }
  0x65   :  { %140 = vst.msk [vmem:[#allocation2 + $0x1c8] sm:$0x1] %vm123_vm3, %v7501_v0 }
  0x66   :  { %141 = vst.msk [vmem:[#allocation2 + $0x1e0] sm:$0x1] %vm123_vm3, %v7501_v0 }
  0x67   :  { %142 = vst.msk [vmem:[#allocation2 + $0x1f8] sm:$0x1] %vm123_vm3, %v7501_v0 }
  0x68   :  { %143 = vst.msk [vmem:[#allocation2 + $0x210] sm:$0x1] %vm123_vm3, %v7501_v0 }
  0x69   :  { %144 = vst.msk [vmem:[#allocation2 + $0x228] sm:$0x1] %vm123_vm3, %v7501_v0 }
  0x6a   :  { %145 = vst.msk [vmem:[#allocation2 + $0x240] sm:$0x1] %vm123_vm3, %v7501_v0 }
  0x6b   :  { %146 = vst.msk [vmem:[#allocation2 + $0x258] sm:$0x1] %vm123_vm3, %v7501_v0 }
  0x6c   :  { %147 = vst.msk [vmem:[#allocation2 + $0x270] sm:$0x1] %vm123_vm3, %v7501_v0 }
  0x6d   :  { %148 = vst.msk [vmem:[#allocation2 + $0x288] sm:$0x1] %vm123_vm3, %v7501_v0 }
  0x6e   :  { %149 = vst.msk [vmem:[#allocation2 + $0x2a0] sm:$0x1] %vm123_vm3, %v7501_v0 }
  0x6f   :  { %150 = vst.msk [vmem:[#allocation2 + $0x2b8] sm:$0x1] %vm123_vm3, %v7501_v0 }
  0x70   :  { %151 = vst.msk [vmem:[#allocation2 + $0x2d0] sm:$0x1] %vm123_vm3, %v7501_v0 }
  0x71   :  { %152 = vst.msk [vmem:[#allocation2 + $0x2e8] sm:$0x1] %vm123_vm3, %v7501_v0 }
  0x72   :  { %153 = vst.msk [vmem:[#allocation2 + $0x300] sm:$0x1] %vm123_vm3, %v7501_v0 }
  0x73   :  { %154 = vst.msk [vmem:[#allocation2 + $0x318] sm:$0x1] %vm123_vm3, %v7501_v0 }
  0x74   :  { %155 = vst.msk [vmem:[#allocation2 + $0x330] sm:$0x1] %vm123_vm3, %v7501_v0 }
  0x75   :  { %156 = vst.msk [vmem:[#allocation2 + $0x29] sm:$0x1] %vm123_vm3, %v7501_v0 }
  0x76   :  { %157 = vst.msk [vmem:[#allocation2 + $0x41] sm:$0x1] %vm123_vm3, %v7501_v0 }
  0x77   :  { %158 = vst.msk [vmem:[#allocation2 + $0x59] sm:$0x1] %vm123_vm3, %v7501_v0 }
  0x78   :  { %159 = vst.msk [vmem:[#allocation2 + $0x71] sm:$0x1] %vm123_vm3, %v7501_v0 }
  0x79   :  { %160 = vst.msk [vmem:[#allocation2 + $0x89] sm:$0x1] %vm123_vm3, %v7501_v0 }
  0x7a   :  { %161 = vst.msk [vmem:[#allocation2 + $0xa1] sm:$0x1] %vm123_vm3, %v7501_v0 }
  0x7b   :  { %162 = vst.msk [vmem:[#allocation2 + $0xb9] sm:$0x1] %vm123_vm3, %v7501_v0 }
  0x7c   :  { %163 = vst.msk [vmem:[#allocation2 + $0xd1] sm:$0x1] %vm123_vm3, %v7501_v0 }
  0x7d   :  { %164 = vst.msk [vmem:[#allocation2 + $0xe9] sm:$0x1] %vm123_vm3, %v7501_v0 }
  0x7e   :  { %165 = vst.msk [vmem:[#allocation2 + $0x101] sm:$0x1] %vm123_vm3, %v7501_v0 }
  0x7f   :  { %166 = vst.msk [vmem:[#allocation2 + $0x119] sm:$0x1] %vm123_vm3, %v7501_v0 }
  0x80   :  { %167 = vst.msk [vmem:[#allocation2 + $0x131] sm:$0x1] %vm123_vm3, %v7501_v0 }
  0x81   :  { %168 = vst.msk [vmem:[#allocation2 + $0x149] sm:$0x1] %vm123_vm3, %v7501_v0 }
  0x82   :  { %169 = vst.msk [vmem:[#allocation2 + $0x161] sm:$0x1] %vm123_vm3, %v7501_v0 }
  0x83   :  { %170 = vst.msk [vmem:[#allocation2 + $0x179] sm:$0x1] %vm123_vm3, %v7501_v0 }
  0x84   :  { %171 = vst.msk [vmem:[#allocation2 + $0x191] sm:$0x1] %vm123_vm3, %v7501_v0 }
  0x85   :  { %172 = vst.msk [vmem:[#allocation2 + $0x1d9] sm:$0x1] %vm123_vm3, %v7501_v0 }
  0x86   :  { %173 = vst.msk [vmem:[#allocation2 + $0x1f1] sm:$0x1] %vm123_vm3, %v7501_v0 }
  0x87   :  { %174 = vst.msk [vmem:[#allocation2 + $0x209] sm:$0x1] %vm123_vm3, %v7501_v0 }
  0x88   :  { %175 = vst.msk [vmem:[#allocation2 + $0x221] sm:$0x1] %vm123_vm3, %v7501_v0 }
  0x89   :  { %176 = vst.msk [vmem:[#allocation2 + $0x239] sm:$0x1] %vm123_vm3, %v7501_v0 }
  0x8a   :  { %177 = vst.msk [vmem:[#allocation2 + $0x251] sm:$0x1] %vm123_vm3, %v7501_v0 }
  0x8b   :  { %178 = vst.msk [vmem:[#allocation2 + $0x269] sm:$0x1] %vm123_vm3, %v7501_v0 }
  0x8c   :  { %179 = vst.msk [vmem:[#allocation2 + $0x281] sm:$0x1] %vm123_vm3, %v7501_v0 }
  0x8d   :  { %180 = vst.msk [vmem:[#allocation2 + $0x299] sm:$0x1] %vm123_vm3, %v7501_v0 }
  0x8e   :  { %181 = vst.msk [vmem:[#allocation2 + $0x2b1] sm:$0x1] %vm123_vm3, %v7501_v0 }
  0x8f   :  { %182 = vst.msk [vmem:[#allocation2 + $0x2c9] sm:$0x1] %vm123_vm3, %v7501_v0 }
  0x90   :  { %183 = vst.msk [vmem:[#allocation2 + $0x2e1] sm:$0x1] %vm123_vm3, %v7501_v0 }
  0x91   :  { %184 = vst.msk [vmem:[#allocation2 + $0x2f9] sm:$0x1] %vm123_vm3, %v7501_v0 }
  0x92   :  { %185 = vst.msk [vmem:[#allocation2 + $0x311] sm:$0x1] %vm123_vm3, %v7501_v0 }
  0x93   :  { %186 = vst.msk [vmem:[#allocation2 + $0x329] sm:$0x1] %vm123_vm3, %v7501_v0 }
  0x94   :  { %187 = vst.msk [vmem:[#allocation2 + $0x341] sm:$0x1] %vm123_vm3, %v7501_v0 }
  0x95   :  { %189 = vst.msk [vmem:[#allocation2 + $0x21] sm:$0xff] %vm107_vm0, %v44_v11  ;;  %v360_v11 = vld [vmem:[%s15151_s1] sm:$0xff] }
  0x96   :  { %190 = vst.msk [vmem:[#allocation2 + $0x31] sm:$0xff] %vm107_vm0, %v45_v12 }
  0x97   :  { %191 = vst.msk [vmem:[#allocation2 + $0x39] sm:$0xff] %vm107_vm0, %v46_v13 }
  0x98   :  { %111 = vst.msk [vmem:[#allocation2 + $0x10] sm:$0x3] %vm110_vm4, %v7501_v0 }
  0x99   :  { %114 = vst.msk [vmem:[#allocation2 + $0x1c0] sm:$0x3] %vm110_vm4, %v7501_v0 }
  0x9a   :  { %118 = vst.msk [vmem:[#allocation2 + $0x1a8] sm:$0x3] %vm110_vm4, %v7501_v0 }
  0x9b   :  { %121 = vst.msk [vmem:[#allocation2 + $0x358] sm:$0x3] %vm110_vm4, %v7501_v0 }
  0x9c   :  { %v7810_v15 = vld [vmem:[#allocation2 + $0x20] sm:$0xff]  ;;  %192 = vst.msk [vmem:[#allocation2 + $0x49] sm:$0xff] %vm107_vm0, %v47_v29  ;;  %v257_v33 = vld [vmem:[#allocation2 + $0x28] sm:$0x3] }
  0x9d   :  { %v468_v16 = vrot.slane %v7810_v15, 1  ;;  %v7813_v17 = vld [vmem:[#allocation2 + $0x30] sm:$0xff]  ;;  %193 = vst.msk [vmem:[#allocation2 + $0x51] sm:$0xff] %vm107_vm0, %v48_v30  ;;  %v821_v34 = vrot.slane %v7810_v15, 2  ;;  %v823_v35 = vrot.slane %v257_v33, 2  ;;  %v470_v41 = vrot.slane %v257_v33, 1 }
  0x9e   :  { %v7815_v18 = vld [vmem:[#allocation2 + $0x38] sm:$0xff]  ;;  %v472_v19 = vrot.slane %v7813_v17, 1  ;;  %v825_v25 = vrot.slane %v7813_v17, 2  ;;  %v260_v39 = vld [vmem:[#allocation2 + $0x40] sm:$0x3]  ;;  %194 = vst.msk [vmem:[#allocation2 + $0x61] sm:$0xff] %vm107_vm0, %v49_v51 }
  0x9f   :  { %v469_v20 = vsel %vm461_vm1, %v467_v14, %v468_v16  ;;  %v473_v21 = vrot.slane %v7815_v18, 1  ;;  %v254_v22 = vld [vmem:[#allocation2 + $0x10] sm:$0x3]  ;;  %v826_v26 = vrot.slane %v7815_v18, 2  ;;  %v824_v37 = vsel %vm814_vm2, %v821_v34, %v823_v35  ;;  %195 = vst.msk [vmem:[#allocation2 + $0x69] sm:$0xff] %vm107_vm0, %v50_v52 }
  0xa0   :  { %1375 = vrot.lane.b32.xlu1 %v469_v20, %s7504_s17  ;;  %v465_v23 = vrot.slane %v254_v22, 1  ;;  %v818_v28 = vrot.slane %v254_v22, 2  ;;  %v822_v38 = vsel %vm814_vm2, %v820_v36, %v821_v34  ;;  %v828_v40 = vrot.slane %v260_v39, 2  ;;  %196 = vst.msk [vmem:[#allocation2 + $0x79] sm:$0xff] %vm107_vm0, %v51_v8  ;;  %v53_v52 = vld [vmem:[%s15150_s0 + $0x50] sm:$0xff] }
  0xa1   :  { %v7822_v24 = vsel %vm461_vm1, %v472_v19, %v473_v21  ;;  %v827_v31 = vsel %vm814_vm2, %v825_v25, %v826_v26  ;;  %v471_v43 = vsel %vm461_vm1, %v468_v16, %v470_v41  ;;  %v475_v44 = vrot.slane %v260_v39, 1  ;;  %197 = vst.msk [vmem:[#allocation2 + $0x81] sm:$0xff] %vm107_vm0, %v52_v9  ;;  %v623_v16 = vpop.permute.xlu0 %622 }
  0xa2   :  { %1977 = vrot.lane.b32.xlu0 %v7822_v24, %s7505_s18  ;;  %v466_v27 = vsel %vm461_vm1, %v463_v4, %v465_v23  ;;  %v819_v32 = vsel %vm814_vm2, %v816_v7, %v818_v28  ;;  %v7857_v42 = vsel %vm814_vm2, %v826_v26, %v828_v40  ;;  %v363_v4 = vld [vmem:[%s15151_s1 + $0x18] sm:$0xff]  ;;  %v361_v7 = vld [vmem:[%s15151_s1 + $0x8] sm:$0xff]  ;;  %198 = vst.msk [vmem:[#allocation2 + $0x91] sm:$0xff] %vm107_vm0, %v53_v52 }
  0xa3   :  { %624 = vrot.lane.b32.xlu2 %v466_v27, %s7502_s4  ;;  %v7867_v45 = vsel %vm461_vm1, %v473_v21, %v475_v44  ;;  %v7873_v46 = vld [vmem:[#allocation2 + $0x48] sm:$0xff]  ;;  %3099 = vmatpush.msra.mxu0 %v363_v4  ;;  %v2371_v27 = vsel %vm107_vm0, %v7570_v1, %v623_v16 }
  0xa4   :  { %v7875_v47 = vld [vmem:[#allocation2 + $0x50] sm:$0xff]  ;;  %v477_v48 = vrot.slane %v7873_v46, 1  ;;  %v830_v53 = vrot.slane %v7873_v46, 2  ;;  %v263_v56 = vld [vmem:[#allocation2 + $0x58] sm:$0x3]  ;;  %7292 = vmatpush.msra.mxu3 %v363_v4 }
  0xa5   :  { %v478_v49 = vrot.slane %v7875_v47, 1  ;;  %v831_v54 = vrot.slane %v7875_v47, 2  ;;  %v480_v57 = vrot.slane %v263_v56, 1  ;;  %v833_v59 = vrot.slane %v263_v56, 2  ;;  %v7928_v61 = vld [vmem:[#allocation2 + $0x60] sm:$0xff]  ;;  %3100 = vmatpush.msra.mxu0 %v362_v5 }
  0xa6   :  { %v7930_v62 = vld [vmem:[#allocation2 + $0x68] sm:$0xff]  ;;  %v835_v0 = vrot.slane %v7928_v61, 2  ;;  %7293 = vmatpush.msra.mxu3 %v362_v5  ;;  %v482_v12 = vrot.slane %v7928_v61, 1  ;;  %v266_v21 = vld [vmem:[#allocation2 + $0x70] sm:$0x3] }
  0xa7   :  { %v7885_v50 = vsel %vm461_vm1, %v477_v48, %v478_v49  ;;  %v7903_v55 = vsel %vm814_vm2, %v830_v53, %v831_v54  ;;  %v7910_v58 = vsel %vm461_vm1, %v478_v49, %v480_v57  ;;  %v7919_v60 = vsel %vm814_vm2, %v831_v54, %v833_v59  ;;  %3101 = vmatpush.msra.mxu0 %v361_v7 }
  0xa8   :  { %2179 = vrot.lane.b32.xlu1 %v827_v31, %s7506_s23  ;;  %v836_v3 = vrot.slane %v7930_v62, 2  ;;  %7294 = vmatpush.msra.mxu3 %v361_v7  ;;  %v483_v13 = vrot.slane %v7930_v62, 1  ;;  %v485_v23 = vrot.slane %v266_v21, 1  ;;  %v838_v33 = vrot.slane %v266_v21, 2 }
  0xa9   :  { %3102 = vmatpush.msra.mxu0 %v360_v11 }
  0xaa   :  { %977 = vrot.lane.b32.xlu0 %v819_v32, %s7500_s30  ;;  %v7950_v6 = vsel %vm814_vm2, %v835_v0, %v836_v3  ;;  %7295 = vmatpush.msra.mxu3 %v360_v11  ;;  %v7977_v19 = vsel %vm461_vm1, %v482_v12, %v483_v13  ;;  %v7990_v26 = vsel %vm461_vm1, %v483_v13, %v485_v23  ;;  %v269_v11 = vld [vmem:[#allocation2 + $0x88] sm:$0x3] }
  0xab   :  { %1773 = vrot.lane.b32.xlu2 %v7813_v17, %s7507_s24  ;;  %v8010_v36 = vsel %vm814_vm2, %v836_v3, %v838_v33  ;;  %v490_v23 = vrot.slane %v269_v11, 1  ;;  %v8097_v33 = vld [vmem:[#allocation2 + $0x90] sm:$0xff] }
  0xac   :  { %v845_v52 = vrot.slane %v8097_v33, 2 }
  0xb0   :  { %1173 = vrot.lane.b32.xlu1 %v7810_v15, %s7503_s10 }
  0xb2   :  { %1579 = vrot.lane.b32.xlu0 %v824_v37, %s7508_s25 }
  0xb3   :  { %1577 = vrot.lane.b32.xlu2 %v822_v38, %s7508_s25 }
  0xb8   :  { %1775 = vrot.lane.b32.xlu1 %v7815_v18, %s7507_s24 }
  0xba   :  { %2181 = vrot.lane.b32.xlu0 %v7857_v42, %s7506_s23 }
  0xbb   :  { %1377 = vrot.lane.b32.xlu2 %v471_v43, %s7504_s17 }
  0xc0   :  { %626 = vrot.lane.b32.xlu1 %v469_v20, %s7502_s4 }
  0xc2   :  { %1175 = vrot.lane.b32.xlu0 %v7813_v17, %s7503_s10 }
  0xc3   :  { %1979 = vrot.lane.b32.xlu2 %v7867_v45, %s7505_s18 }
  0xc8   :  { %1379 = vrot.lane.b32.xlu1 %v7822_v24, %s7504_s17 }
  0xca   :  { %1777 = vrot.lane.b32.xlu0 %v7873_v46, %s7507_s24 }
  0xcb   :  { %979 = vrot.lane.b32.xlu2 %v822_v38, %s7500_s30  ;;  %v8014_v38 = vld [vmem:[#allocation2 + $0x80] sm:$0xff] }
  0xcf   :  { %v1172_v22 = vpop.permute.xlu1 %1171 }
  0xd0   :  { %1981 = vrot.lane.b32.xlu1 %v7885_v50, %s7505_s18 }
  0xd2   :  { %628 = vrot.lane.b32.xlu0 %v471_v43, %s7502_s4  ;;  %v488_v43 = vrot.slane %v8014_v38, 1 }
  0xd3   :  { %1581 = vrot.lane.b32.xlu2 %v827_v31, %s7508_s25 }
  0xd8   :  { %981 = vrot.lane.b32.xlu1 %v824_v37, %s7500_s30  ;;  %v8012_v37 = vld [vmem:[#allocation2 + $0x78] sm:$0xff] }
  0xd9   :  { %v840_v49 = vrot.slane %v8012_v37, 2 }
  0xda   :  { %1381 = vrot.lane.b32.xlu0 %v7867_v45, %s7504_s17 }
  0xdb   :  { %2183 = vrot.lane.b32.xlu2 %v7903_v55, %s7506_s23 }
  0xe0   :  { %1583 = vrot.lane.b32.xlu1 %v7857_v42, %s7508_s25 }
  0xe2   :  { %1983 = vrot.lane.b32.xlu0 %v7910_v58, %s7505_s18 }
  0xe3   :  { %1177 = vrot.lane.b32.xlu2 %v7815_v18, %s7503_s10 }
  0xe8   :  { %2185 = vrot.lane.b32.xlu1 %v7919_v60, %s7506_s23 }
  0xea   :  { %983 = vrot.lane.b32.xlu0 %v827_v31, %s7500_s30 }
  0xeb   :  { %1779 = vrot.lane.b32.xlu2 %v7875_v47, %s7507_s24 }
  0xf0   :  { %1179 = vrot.lane.b32.xlu1 %v7873_v46, %s7503_s10 }
  0xf2   :  { %1585 = vrot.lane.b32.xlu0 %v7903_v55, %s7508_s25 }
  0xf3   :  { %630 = vrot.lane.b32.xlu2 %v7822_v24, %s7502_s4  ;;  %v976_v24 = vpop.permute.xlu0 %975 }
  0xf4   :  { %v2436_v28 = vsel %vm2435_vm6, %v2371_v27, %v976_v24 }
  0xf5   :  { %v2501_v29 = vsel %vm2500_vm7, %v2436_v28, %v1172_v22 }
  0xf8   :  { %1781 = vrot.lane.b32.xlu1 %v7928_v61, %s7507_s24 }
  0xfa   :  { %2187 = vrot.lane.b32.xlu0 %v7950_v6, %s7506_s23 }
  0xfb   :  { %1383 = vrot.lane.b32.xlu2 %v7885_v50, %s7504_s17 }
  0xfd   :  { %v625_v14 = vpop.permute.xlu2 %624 }
  0xfe   :  { %v2372_v53 = vsel %vm107_vm0, %v7574_v2, %v625_v14 }
 0x100   :  { %632 = vrot.lane.b32.xlu1 %v7867_v45, %s7502_s4 }
 0x102   :  { %1181 = vrot.lane.b32.xlu0 %v7875_v47, %s7503_s10 }
 0x103   :  { %1985 = vrot.lane.b32.xlu2 %v7977_v19, %s7505_s18 }
 0x105   :  { %v1774_v20 = vpop.permute.xlu2 %1773 }
 0x108   :  { %1385 = vrot.lane.b32.xlu1 %v7910_v58, %s7504_s17 }
 0x10a   :  { %1783 = vrot.lane.b32.xlu0 %v7930_v62, %s7507_s24 }
 0x10b   :  { %985 = vrot.lane.b32.xlu2 %v7857_v42, %s7500_s30  ;;  %v487_v42 = vrot.slane %v8012_v37, 1 }
 0x10d   :  { %v1578_v25 = vpop.permute.xlu2 %1577  ;;  %v8026_v48 = vsel %vm461_vm1, %v487_v42, %v488_v43 }
 0x110   :  { %1987 = vrot.lane.b32.xlu1 %v7990_v26, %s7505_s18 }
 0x112   :  { %v1376_v30 = vpop.permute.xlu1 %1375  ;;  %634 = vrot.lane.b32.xlu0 %v7885_v50, %s7502_s4  ;;  %v841_v50 = vrot.slane %v8014_v38, 2 }
 0x113   :  { %v2566_v31 = vsel %vm2565_vm8, %v2501_v29, %v1376_v30  ;;  %1587 = vrot.lane.b32.xlu2 %v7919_v60, %s7508_s25 }
 0x114   :  { %v2631_v1 = vsel %vm2630_vm9, %v2566_v31, %v1578_v25  ;;  %v1978_v32 = vpop.permute.xlu0 %1977  ;;  %v8047_v59 = vsel %vm814_vm2, %v840_v49, %v841_v50 }
 0x115   :  { %v1378_v34 = vpop.permute.xlu2 %1377  ;;  %v2696_v35 = vsel %vm2695_vm10, %v2631_v1, %v1774_v20 }
 0x116   :  { %v2761_v39 = vsel %vm2760_vm11, %v2696_v35, %v1978_v32  ;;  %v492_v35 = vrot.slane %v8097_v33, 1 }
 0x118   :  { %987 = vrot.lane.b32.xlu1 %v7903_v55, %s7500_s30  ;;  %v54_v55 = vld [vmem:[%s15150_s0 + $0x58] sm:$0xff] }
 0x119   :  { %199 = vst.msk [vmem:[#allocation2 + $0x99] sm:$0xff] %vm107_vm0, %v54_v55  ;;  %v76_v55 = vld [vmem:[%s15150_s0 + $0x108] sm:$0xff] }
 0x11a   :  { %v2180_v40 = vpop.permute.xlu1 %2179  ;;  %1387 = vrot.lane.b32.xlu0 %v7977_v19, %s7504_s17  ;;  %221 = vst.msk [vmem:[#allocation2 + $0x1d1] sm:$0xff] %vm107_vm0, %v76_v55 }
 0x11b   :  { %v2826_v41 = vsel %vm2825_vm12, %v2761_v39, %v2180_v40  ;;  %2189 = vrot.lane.b32.xlu2 %v8010_v36, %s7506_s23 }
 0x11c   :  { %7227 = vmatmul.msk.f32.vlgmr.msra.gmra.mxu0 %vm2890_vm13, %v2826_v41  ;;  %v978_v44 = vpop.permute.xlu0 %977 }
 0x11d   :  { %v1980_v45 = vpop.permute.xlu2 %1979  ;;  %v2437_v56 = vsel %vm2435_vm6, %v2372_v53, %v978_v44 }
 0x120   :  { %1589 = vrot.lane.b32.xlu1 %v7950_v6, %s7508_s25 }
 0x122   :  { %v1174_v51 = vpop.permute.xlu1 %1173  ;;  %1989 = vrot.lane.b32.xlu0 %v8026_v48, %s7505_s18 }
 0x123   :  { %1183 = vrot.lane.b32.xlu2 %v7928_v61, %s7503_s10  ;;  %v2502_v63 = vsel %vm2500_vm7, %v2437_v56, %v1174_v51 }
 0x124   :  { %v1580_v54 = vpop.permute.xlu0 %1579  ;;  %v2567_v2 = vsel %vm2565_vm8, %v2502_v63, %v1378_v34  ;;  %v8099_v34 = vld [vmem:[#allocation2 + $0x98] sm:$0xff] }
 0x125   :  { %v980_v57 = vpop.permute.xlu2 %979  ;;  %v2632_v0 = vsel %vm2630_vm9, %v2567_v2, %v1580_v54  ;;  %v493_v39 = vrot.slane %v8099_v34, 1  ;;  %v846_v53 = vrot.slane %v8099_v34, 2  ;;  %v75_v54 = vld [vmem:[%s15150_s0 + $0x100] sm:$0xff] }
 0x126   :  { %220 = vst.msk [vmem:[#allocation2 + $0x1c9] sm:$0xff] %vm107_vm0, %v75_v54  ;;  %v272_v2 = vld [vmem:[#allocation2 + $0xa0] sm:$0x3] }
 0x127   :  { %v8145_v63 = vsel %vm814_vm2, %v845_v52, %v846_v53 }
 0x128   :  { %2191 = vrot.lane.b32.xlu1 %v8047_v59, %s7506_s23 }
 0x12a   :  { %v1776_v3 = vpop.permute.xlu1 %1775  ;;  %989 = vrot.lane.b32.xlu0 %v7919_v60, %s7500_s30  ;;  %v843_v60 = vrot.slane %v269_v11, 2  ;;  %v77_v11 = vld [vmem:[%s15150_s0 + $0x110] sm:$0xff] }
 0x12b   :  { %v2697_v4 = vsel %vm2695_vm10, %v2632_v0, %v1776_v3  ;;  %1785 = vrot.lane.b32.xlu2 %v8012_v37, %s7507_s24  ;;  %222 = vst.msk [vmem:[#allocation2 + $0x1e1] sm:$0xff] %vm107_vm0, %v77_v11 }
 0x12c   :  { %v2182_v5 = vpop.permute.xlu0 %2181  ;;  %v2762_v7 = vsel %vm2760_vm11, %v2697_v4, %v1980_v45  ;;  %v8070_v16 = vsel %vm814_vm2, %v841_v50, %v843_v60  ;;  %v55_v45 = vld [vmem:[%s15150_s0 + $0x60] sm:$0xff]  ;;  %v78_v60 = vld [vmem:[%s15150_s0 + $0x118] sm:$0xff] }
 0x12d   :  { %v1582_v8 = vpop.permute.xlu2 %1581  ;;  %v2827_v9 = vsel %vm2825_vm12, %v2762_v7, %v2182_v5  ;;  %200 = vst.msk [vmem:[#allocation2 + $0xa9] sm:$0xff] %vm107_vm0, %v55_v45  ;;  %v495_v7 = vrot.slane %v272_v2, 1  ;;  %v8213_v45 = vld [vmem:[#allocation2 + $0x1d0] sm:$0xff] }
 0x12e   :  { %7228 = vmatmul.msk.f32.gmra.mxu0 %vm2890_vm13, %v2827_v9  ;;  %223 = vst.msk [vmem:[#allocation2 + $0x1e9] sm:$0xff] %vm107_vm0, %v78_v60  ;;  %v548_v54 = vrot.slane %v8213_v45, 1 }
 0x12f   :  { %v8156_v9 = vsel %vm461_vm1, %v493_v39, %v495_v7 }
 0x130   :  { %1185 = vrot.lane.b32.xlu1 %v7930_v62, %s7503_s10 }
 0x132   :  { %v627_v12 = vpop.permute.xlu1 %626  ;;  %1591 = vrot.lane.b32.xlu0 %v8010_v36, %s7508_s25 }
 0x133   :  { %636 = vrot.lane.b32.xlu2 %v7910_v58, %s7502_s4  ;;  %v2373_v20 = vsel %vm107_vm0, %v7675_v10, %v627_v12  ;;  %v8086_v10 = vsel %vm461_vm1, %v488_v43, %v490_v23  ;;  %v8110_v43 = vsel %vm461_vm1, %v492_v35, %v493_v39 }
 0x134   :  { %v1176_v13 = vpop.permute.xlu0 %1175  ;;  %v2438_v58 = vsel %vm2435_vm6, %v2373_v20, %v980_v57 }
 0x135   :  { %v2184_v14 = vpop.permute.xlu2 %2183  ;;  %v2503_v24 = vsel %vm2500_vm7, %v2438_v58, %v1176_v13  ;;  %v848_v13 = vrot.slane %v272_v2, 2  ;;  %v8247_v2 = vld [vmem:[#allocation2 + $0x1e0] sm:$0xff] }
 0x137   :  { %v8176_v58 = vsel %vm814_vm2, %v846_v53, %v848_v13 }
 0x138   :  { %1787 = vrot.lane.b32.xlu1 %v8014_v38, %s7507_s24 }
 0x13a   :  { %v1380_v21 = vpop.permute.xlu1 %1379  ;;  %2193 = vrot.lane.b32.xlu0 %v8070_v16, %s7506_s23 }
 0x13b   :  { %1389 = vrot.lane.b32.xlu2 %v7990_v26, %s7504_s17  ;;  %v2568_v27 = vsel %vm2565_vm8, %v2503_v24, %v1380_v21 }
 0x13c   :  { %v1778_v22 = vpop.permute.xlu0 %1777  ;;  %v2633_v28 = vsel %vm2630_vm9, %v2568_v27, %v1582_v8 }
 0x13d   :  { %v1178_v25 = vpop.permute.xlu2 %1177  ;;  %v2698_v29 = vsel %vm2695_vm10, %v2633_v28, %v1778_v22 }
 0x140   :  { %638 = vrot.lane.b32.xlu1 %v7977_v19, %s7502_s4 }
 0x142   :  { %v1982_v30 = vpop.permute.xlu1 %1981  ;;  %1187 = vrot.lane.b32.xlu0 %v8012_v37, %s7503_s10 }
 0x143   :  { %v2763_v31 = vsel %vm2760_vm11, %v2698_v29, %v1982_v30  ;;  %1991 = vrot.lane.b32.xlu2 %v8086_v10, %s7505_s18 }
 0x144   :  { %v2828_v1 = vsel %vm2825_vm12, %v2763_v31, %v2184_v14  ;;  %v629_v32 = vpop.permute.xlu0 %628 }
 0x145   :  { %7229 = vmatmul.msk.f32.gmra.mxu0 %vm2890_vm13, %v2828_v1  ;;  %v1780_v19 = vpop.permute.xlu2 %1779  ;;  %v2374_v44 = vsel %vm107_vm0, %v7810_v15, %v629_v32  ;;  %v79_v1 = vld [vmem:[%s15150_s0 + $0x120] sm:$0xff] }
 0x146   :  { %224 = vst.msk [vmem:[#allocation2 + $0x1f9] sm:$0xff] %vm107_vm0, %v79_v1  ;;  %v905_v1 = vrot.slane %v8247_v2, 2 }
 0x148   :  { %1391 = vrot.lane.b32.xlu1 %v8026_v48, %s7504_s17 }
 0x14a   :  { %v982_v40 = vpop.permute.xlu1 %981  ;;  %1789 = vrot.lane.b32.xlu0 %v8097_v33, %s7507_s24 }
 0x14b   :  { %991 = vrot.lane.b32.xlu2 %v7950_v6, %s7500_s30  ;;  %v56_v6 = vld [vmem:[%s15150_s0 + $0x68] sm:$0xff]  ;;  %v2439_v49 = vsel %vm2435_vm6, %v2374_v44, %v982_v40 }
 0x14c   :  { %v1382_v41 = vpop.permute.xlu0 %1381  ;;  %201 = vst.msk [vmem:[#allocation2 + $0xb1] sm:$0xff] %vm107_vm0, %v56_v6  ;;  %v2504_v15 = vsel %vm2500_vm7, %v2439_v49, %v1178_v25  ;;  %v8211_v44 = vld [vmem:[#allocation2 + $0x1c8] sm:$0xff] }
 0x14d   :  { %v631_v42 = vpop.permute.xlu2 %630  ;;  %v900_v49 = vrot.slane %v8211_v44, 2  ;;  %v547_v53 = vrot.slane %v8211_v44, 1 }
 0x14e   :  { %v2375_v12 = vsel %vm107_vm0, %v7813_v17, %v631_v42 }
 0x150   :  { %1993 = vrot.lane.b32.xlu1 %v8110_v43, %s7505_s18 }
 0x152   :  { %v1584_v50 = vpop.permute.xlu1 %1583  ;;  %640 = vrot.lane.b32.xlu0 %v7990_v26, %s7502_s4  ;;  %v2569_v26 = vsel %vm2565_vm8, %v2504_v15, %v1382_v41 }
 0x153   :  { %1593 = vrot.lane.b32.xlu2 %v8047_v59, %s7508_s25  ;;  %v2634_v57 = vsel %vm2630_vm9, %v2569_v26, %v1584_v50  ;;  %v8198_v32 = vld [vmem:[#allocation2 + $0xb0] sm:$0xff]  ;;  %v901_v50 = vrot.slane %v8213_v45, 2 }
 0x154   :  { %v1984_v51 = vpop.permute.xlu0 %1983  ;;  %v2699_v0 = vsel %vm2695_vm10, %v2634_v57, %v1780_v19  ;;  %v80_v19 = vld [vmem:[%s15150_s0 + $0x128] sm:$0xff]  ;;  %v498_v40 = vrot.slane %v8198_v32, 1  ;;  %v8245_v57 = vsel %vm461_vm1, %v547_v53, %v548_v54  ;;  %v851_v13 = vrot.slane %v8198_v32, 2 }
 0x155   :  { %v1384_v56 = vpop.permute.xlu2 %1383  ;;  %v2764_v3 = vsel %vm2760_vm11, %v2699_v0, %v1984_v51  ;;  %225 = vst.msk [vmem:[#allocation2 + $0x201] sm:$0xff] %vm107_vm0, %v80_v19  ;;  %v8237_v26 = vsel %vm814_vm2, %v900_v49, %v901_v50  ;;  %v8249_v0 = vld [vmem:[#allocation2 + $0x1e8] sm:$0xff] }
 0x156   :  { %v906_v19 = vrot.slane %v8249_v0, 2 }
 0x158   :  { %993 = vrot.lane.b32.xlu1 %v8010_v36, %s7500_s30 }
 0x15a   :  { %v2186_v4 = vpop.permute.xlu1 %2185  ;;  %1393 = vrot.lane.b32.xlu0 %v8086_v10, %s7504_s17 }
 0x15b   :  { %v2829_v5 = vsel %vm2825_vm12, %v2764_v3, %v2186_v4  ;;  %2195 = vrot.lane.b32.xlu2 %v8145_v63, %s7506_s23 }
 0x15c   :  { %7230 = vmatmul.msk.f32.gmra.mxu0 %vm2890_vm13, %v2829_v5  ;;  %v984_v36 = vpop.permute.xlu0 %983 }
 0x15d   :  { %v1986_v8 = vpop.permute.xlu2 %1985  ;;  %v2440_v20 = vsel %vm2435_vm6, %v2375_v12, %v984_v36  ;;  %v552_v36 = vrot.slane %v8247_v2, 1 }
 0x160   :  { %1595 = vrot.lane.b32.xlu1 %v8070_v16, %s7508_s25 }
 0x162   :  { %v1180_v14 = vpop.permute.xlu1 %1179  ;;  %1995 = vrot.lane.b32.xlu0 %v8156_v9, %s7505_s18 }
 0x163   :  { %1189 = vrot.lane.b32.xlu2 %v8014_v38, %s7503_s10  ;;  %v2505_v22 = vsel %vm2500_vm7, %v2440_v20, %v1180_v14 }
 0x164   :  { %v1586_v17 = vpop.permute.xlu0 %1585  ;;  %v2570_v23 = vsel %vm2565_vm8, %v2505_v22, %v1384_v56 }
 0x165   :  { %v986_v21 = vpop.permute.xlu2 %985  ;;  %v2635_v24 = vsel %vm2630_vm9, %v2570_v23, %v1586_v17 }
 0x168   :  { %2197 = vrot.lane.b32.xlu1 %v8176_v58, %s7506_s23 }
 0x16a   :  { %v1782_v25 = vpop.permute.xlu1 %1781  ;;  %995 = vrot.lane.b32.xlu0 %v8047_v59, %s7500_s30  ;;  %v8196_v59 = vld [vmem:[#allocation2 + $0xa8] sm:$0xff] }
 0x16b   :  { %v2700_v27 = vsel %vm2695_vm10, %v2635_v24, %v1782_v25  ;;  %1791 = vrot.lane.b32.xlu2 %v8099_v34, %s7507_s24  ;;  %v497_v39 = vrot.slane %v8196_v59, 1  ;;  %v850_v60 = vrot.slane %v8196_v59, 2  ;;  %v8282_v24 = vld [vmem:[#allocation2 + $0x1f8] sm:$0xff]  ;;  %v8284_v25 = vld [vmem:[#allocation2 + $0x200] sm:$0xff] }
 0x16c   :  { %v2188_v28 = vpop.permute.xlu0 %2187  ;;  %v2765_v29 = vsel %vm2760_vm11, %v2700_v27, %v1986_v8  ;;  %v553_v8 = vrot.slane %v8249_v0, 1 }
 0x16d   :  { %v1588_v30 = vpop.permute.xlu2 %1587  ;;  %v2830_v31 = vsel %vm2825_vm12, %v2765_v29, %v2188_v28  ;;  %v8218_v6 = vsel %vm461_vm1, %v497_v39, %v498_v40  ;;  %v8272_v20 = vsel %vm814_vm2, %v850_v60, %v851_v13  ;;  %v557_v29 = vrot.slane %v8282_v24, 1 }
 0x16e   :  { %7231 = vmatmul.msk.f32.gmra.mxu0 %vm2890_vm13, %v2830_v31  ;;  %v911_v60 = vrot.slane %v8284_v25, 2 }
 0x170   :  { %1191 = vrot.lane.b32.xlu1 %v8097_v33, %s7503_s10 }
 0x172   :  { %v633_v35 = vpop.permute.xlu1 %632  ;;  %1597 = vrot.lane.b32.xlu0 %v8145_v63, %s7508_s25 }
 0x173   :  { %642 = vrot.lane.b32.xlu2 %v8026_v48, %s7502_s4  ;;  %v2376_v48 = vsel %vm107_vm0, %v7815_v18, %v633_v35 }
 0x174   :  { %v1182_v41 = vpop.permute.xlu0 %1181  ;;  %v2441_v51 = vsel %vm2435_vm6, %v2376_v48, %v986_v21  ;;  %v311_v48 = vld [vmem:[#allocation2 + $0x1d8] sm:$0x3] }
 0x175   :  { %v2190_v42 = vpop.permute.xlu2 %2189  ;;  %v2506_v18 = vsel %vm2500_vm7, %v2441_v51, %v1182_v41  ;;  %v550_v53 = vrot.slane %v311_v48, 1 }
 0x178   :  { %1793 = vrot.lane.b32.xlu1 %v8196_v59, %s7507_s24 }
 0x17a   :  { %v1386_v15 = vpop.permute.xlu1 %1385  ;;  %1997 = vrot.lane.b32.xlu0 %v8218_v6, %s7505_s18 }
 0x17b   :  { %1395 = vrot.lane.b32.xlu2 %v8110_v43, %s7504_s17  ;;  %v2571_v56 = vsel %vm2565_vm8, %v2506_v18, %v1386_v15 }
 0x17c   :  { %v1784_v52 = vpop.permute.xlu0 %1783  ;;  %v2636_v3 = vsel %vm2630_vm9, %v2571_v56, %v1588_v30  ;;  %v275_v56 = vld [vmem:[#allocation2 + $0xb8] sm:$0x3] }
 0x17d   :  { %v1184_v55 = vpop.permute.xlu2 %1183  ;;  %v2701_v4 = vsel %vm2695_vm10, %v2636_v3, %v1784_v52  ;;  %v8321_v3 = vsel %vm461_vm1, %v548_v54, %v550_v53  ;;  %v910_v54 = vrot.slane %v8282_v24, 2 }
 0x180   :  { %1043 = vrot.lane.b32.xlu1 %v8237_v26, %s7500_s30 }
 0x182   :  { %v1988_v5 = vpop.permute.xlu1 %1987  ;;  %644 = vrot.lane.b32.xlu0 %v8086_v10, %s7502_s4  ;;  %v8267_v10 = vsel %vm461_vm1, %v552_v36, %v553_v8 }
 0x183   :  { %v2766_v7 = vsel %vm2760_vm11, %v2701_v4, %v1988_v5  ;;  %690 = vrot.lane.b32.xlu2 %v8245_v57, %s7502_s4  ;;  %v500_v5 = vrot.slane %v275_v56, 1 }
 0x184   :  { %v2831_v11 = vsel %vm2825_vm12, %v2766_v7, %v2190_v42  ;;  %v635_v12 = vpop.permute.xlu0 %634  ;;  %v8308_v42 = vsel %vm814_vm2, %v905_v1, %v906_v19  ;;  %v58_v1 = vld [vmem:[%s15150_s0 + $0x78] sm:$0xff] }
 0x185   :  { %7232 = vmatmul.msk.f32.gmra.mxu0 %vm2890_vm13, %v2831_v11  ;;  %v1786_v14 = vpop.permute.xlu2 %1785  ;;  %v2377_v23 = vsel %vm107_vm0, %v7873_v46, %v635_v12  ;;  %v558_v46 = vrot.slane %v8284_v25, 1  ;;  %v853_v11 = vrot.slane %v275_v56, 2  ;;  %203 = vst.msk [vmem:[#allocation2 + $0xc9] sm:$0xff] %vm107_vm0, %v58_v1 }
 0x188   :  { %1239 = vrot.lane.b32.xlu1 %v8247_v2, %s7503_s10 }
 0x18a   :  { %v988_v17 = vpop.permute.xlu1 %987  ;;  %1443 = vrot.lane.b32.xlu0 %v8267_v10, %s7504_s17 }
 0x18b   :  { %2199 = vrot.lane.b32.xlu2 %v8272_v20, %s7506_s23  ;;  %v2442_v27 = vsel %vm2435_vm6, %v2377_v23, %v988_v17 }
 0x18c   :  { %v1388_v21 = vpop.permute.xlu0 %1387  ;;  %v2507_v30 = vsel %vm2500_vm7, %v2442_v27, %v1184_v55 }
 0x18d   :  { %v637_v22 = vpop.permute.xlu2 %636  ;;  %v2572_v35 = vsel %vm2565_vm8, %v2507_v30, %v1388_v21  ;;  %v8341_v21 = vsel %vm814_vm2, %v851_v13, %v853_v11  ;;  %v903_v30 = vrot.slane %v311_v48, 2 }
 0x18e   :  { %v2378_v4 = vsel %vm107_vm0, %v7875_v47, %v637_v22  ;;  %v8348_v22 = vsel %vm814_vm2, %v910_v54, %v911_v60 }
 0x18f   :  { %v8373_v48 = vsel %vm814_vm2, %v901_v50, %v903_v30 }
 0x190   :  { %1193 = vrot.lane.b32.xlu1 %v8099_v34, %s7503_s10 }
 0x192   :  { %v1590_v28 = vpop.permute.xlu1 %1589  ;;  %1397 = vrot.lane.b32.xlu0 %v8156_v9, %s7504_s17 }
 0x193   :  { %997 = vrot.lane.b32.xlu2 %v8070_v16, %s7500_s30  ;;  %v2637_v41 = vsel %vm2630_vm9, %v2572_v35, %v1590_v28  ;;  %v8301_v16 = vsel %vm461_vm1, %v557_v29, %v558_v46 }
 0x194   :  { %v1990_v31 = vpop.permute.xlu0 %1989  ;;  %v2702_v49 = vsel %vm2695_vm10, %v2637_v41, %v1786_v14  ;;  %v8337_v14 = vsel %vm461_vm1, %v498_v40, %v500_v5  ;;  %v314_v41 = vld [vmem:[#allocation2 + $0x1f0] sm:$0x3]  ;;  %v317_v5 = vld [vmem:[#allocation2 + $0x208] sm:$0x3] }
 0x195   :  { %v1390_v39 = vpop.permute.xlu2 %1389  ;;  %v2767_v15 = vsel %vm2760_vm11, %v2702_v49, %v1990_v31  ;;  %v57_v31 = vld [vmem:[%s15150_s0 + $0x70] sm:$0xff]  ;;  %v555_v49 = vrot.slane %v314_v41, 1  ;;  %v913_v54 = vrot.slane %v317_v5, 2 }
 0x196   :  { %202 = vst.msk [vmem:[#allocation2 + $0xc1] sm:$0xff] %vm107_vm0, %v57_v31 }
 0x198   :  { %1841 = vrot.lane.b32.xlu1 %v8282_v24, %s7507_s24 }
 0x19a   :  { %v2192_v51 = vpop.permute.xlu1 %2191  ;;  %2045 = vrot.lane.b32.xlu0 %v8301_v16, %s7505_s18 }
 0x19b   :  { %v2832_v52 = vsel %vm2825_vm12, %v2767_v15, %v2192_v51  ;;  %1645 = vrot.lane.b32.xlu2 %v8308_v42, %s7508_s25  ;;  %v908_v51 = vrot.slane %v314_v41, 2 }
 0x19c   :  { %7233 = vmatmul.msk.f32.gmra.mxu0 %vm2890_vm13, %v2832_v52  ;;  %v990_v18 = vpop.permute.xlu0 %989 }
 0x19d   :  { %v1992_v55 = vpop.permute.xlu2 %1991  ;;  %v2443_v36 = vsel %vm2435_vm6, %v2378_v4, %v990_v18  ;;  %v8387_v50 = vsel %vm814_vm2, %v906_v19, %v908_v51  ;;  %v8437_v31 = vld [vmem:[#allocation2 + $0xc0] sm:$0xff]  ;;  %v8439_v1 = vld [vmem:[#allocation2 + $0xc8] sm:$0xff] }
 0x19e   :  { %v856_v41 = vrot.slane %v8439_v1, 2  ;;  %v502_v51 = vrot.slane %v8437_v31, 1 }
 0x1a0   :  { %1795 = vrot.lane.b32.xlu1 %v8198_v32, %s7507_s24 }
 0x1a2   :  { %v1186_v7 = vpop.permute.xlu1 %1185  ;;  %692 = vrot.lane.b32.xlu0 %v8321_v3, %s7502_s4 }
 0x1a3   :  { %1599 = vrot.lane.b32.xlu2 %v8176_v58, %s7508_s25  ;;  %v2508_v17 = vsel %vm2500_vm7, %v2443_v36, %v1186_v7  ;;  %v560_v7 = vrot.slane %v317_v5, 1 }
 0x1a4   :  { %v1592_v12 = vpop.permute.xlu0 %1591  ;;  %v2573_v23 = vsel %vm2565_vm8, %v2508_v17, %v1390_v39 }
 0x1a5   :  { %v992_v47 = vpop.permute.xlu2 %991  ;;  %v2638_v27 = vsel %vm2630_vm9, %v2573_v23, %v1592_v12 }
 0x1a8   :  { %1999 = vrot.lane.b32.xlu1 %v8337_v14, %s7505_s18 }
 0x1aa   :  { %v1788_v28 = vpop.permute.xlu1 %1787  ;;  %2201 = vrot.lane.b32.xlu0 %v8341_v21, %s7506_s23 }
 0x1ab   :  { %v2703_v40 = vsel %vm2695_vm10, %v2638_v27, %v1788_v28  ;;  %2247 = vrot.lane.b32.xlu2 %v8348_v22, %s7506_s23  ;;  %v8418_v28 = vsel %vm461_vm1, %v558_v46, %v560_v7  ;;  %v82_v46 = vld [vmem:[%s15150_s0 + $0x138] sm:$0xff] }
 0x1ac   :  { %v2194_v13 = vpop.permute.xlu0 %2193  ;;  %v2768_v29 = vsel %vm2760_vm11, %v2703_v40, %v1992_v55  ;;  %v8423_v40 = vsel %vm814_vm2, %v911_v60, %v913_v54  ;;  %227 = vst.msk [vmem:[#allocation2 + $0x219] sm:$0xff] %vm107_vm0, %v82_v46 }
 0x1ad   :  { %v1594_v35 = vpop.permute.xlu2 %1593  ;;  %v2833_v39 = vsel %vm2825_vm12, %v2768_v29, %v2194_v13 }
 0x1ae   :  { %7234 = vmatmul.msk.f32.gmra.mxu0 %vm2890_vm13, %v2833_v39  ;;  %v855_v39 = vrot.slane %v8437_v31, 2 }
 0x1b0   :  { %646 = vrot.lane.b32.xlu1 %v8110_v43, %s7502_s4  ;;  %v8382_v43 = vsel %vm461_vm1, %v553_v8, %v555_v49 }
 0x1b2   :  { %v639_v15 = vpop.permute.xlu1 %638  ;;  %999 = vrot.lane.b32.xlu0 %v8145_v63, %s7500_s30 }
 0x1b3   :  { %1045 = vrot.lane.b32.xlu2 %v8373_v48, %s7500_s30  ;;  %v2379_v63 = vsel %vm107_vm0, %v7928_v61, %v639_v15 }
 0x1b4   :  { %v1188_v52 = vpop.permute.xlu0 %1187  ;;  %v2444_v8 = vsel %vm2435_vm6, %v2379_v63, %v992_v47  ;;  %v81_v47 = vld [vmem:[%s15150_s0 + $0x130] sm:$0xff] }
 0x1b5   :  { %v2196_v53 = vpop.permute.xlu2 %2195  ;;  %v2509_v56 = vsel %vm2500_vm7, %v2444_v8, %v1188_v52  ;;  %226 = vst.msk [vmem:[#allocation2 + $0x211] sm:$0xff] %vm107_vm0, %v81_v47  ;;  %v503_v52 = vrot.slane %v8439_v1, 1 }
 0x1b8   :  { %1445 = vrot.lane.b32.xlu1 %v8382_v43, %s7504_s17 }
 0x1ba   :  { %v1392_v18 = vpop.permute.xlu1 %1391  ;;  %1647 = vrot.lane.b32.xlu0 %v8387_v50, %s7508_s25 }
 0x1bb   :  { %1241 = vrot.lane.b32.xlu2 %v8249_v0, %s7503_s10  ;;  %v2574_v4 = vsel %vm2565_vm8, %v2509_v56, %v1392_v18  ;;  %v8457_v18 = vsel %vm814_vm2, %v855_v39, %v856_v41 }
 0x1bc   :  { %v1790_v55 = vpop.permute.xlu0 %1789  ;;  %v2639_v61 = vsel %vm2630_vm9, %v2574_v4, %v1594_v35 }
 0x1bd   :  { %v1190_v19 = vpop.permute.xlu2 %1189  ;;  %v2704_v36 = vsel %vm2695_vm10, %v2639_v61, %v1790_v55  ;;  %v8463_v55 = vsel %vm461_vm1, %v502_v51, %v503_v52 }
 0x1c0   :  { %1399 = vrot.lane.b32.xlu1 %v8218_v6, %s7504_s17 }
 0x1c2   :  { %v1994_v11 = vpop.permute.xlu1 %1993  ;;  %1601 = vrot.lane.b32.xlu0 %v8272_v20, %s7508_s25 }
 0x1c3   :  { %v2769_v12 = vsel %vm2760_vm11, %v2704_v36, %v1994_v11  ;;  %1195 = vrot.lane.b32.xlu2 %v8196_v59, %s7503_s10 }
 0x1c4   :  { %v2834_v17 = vsel %vm2825_vm12, %v2769_v12, %v2196_v53  ;;  %v641_v23 = vpop.permute.xlu0 %640 }
 0x1c5   :  { %7235 = vmatmul.msk.f32.gmra.mxu0 %vm2890_vm13, %v2834_v17  ;;  %v1792_v27 = vpop.permute.xlu2 %1791  ;;  %v2380_v60 = vsel %vm107_vm0, %v7930_v62, %v641_v23  ;;  %v8483_v23 = vld [vmem:[#allocation2 + $0x210] sm:$0xff] }
 0x1c6   :  { %v562_v51 = vrot.slane %v8483_v23, 1 }
 0x1c8   :  { %2047 = vrot.lane.b32.xlu1 %v8418_v28, %s7505_s18 }
 0x1ca   :  { %v994_v13 = vpop.permute.xlu1 %993  ;;  %2249 = vrot.lane.b32.xlu0 %v8423_v40, %s7506_s23 }
 0x1cb   :  { %1843 = vrot.lane.b32.xlu2 %v8284_v25, %s7507_s24  ;;  %v2445_v35 = vsel %vm2435_vm6, %v2380_v60, %v994_v13  ;;  %v278_v60 = vld [vmem:[#allocation2 + $0xd0] sm:$0x3] }
 0x1cc   :  { %v1394_v29 = vpop.permute.xlu0 %1393  ;;  %v2510_v62 = vsel %vm2500_vm7, %v2445_v35, %v1190_v19  ;;  %v915_v35 = vrot.slane %v8483_v23, 2 }
 0x1cd   :  { %v643_v30 = vpop.permute.xlu2 %642  ;;  %v2575_v53 = vsel %vm2565_vm8, %v2510_v62, %v1394_v29  ;;  %v505_v62 = vrot.slane %v278_v60, 1 }
 0x1ce   :  { %v2381_v36 = vsel %vm107_vm0, %v8012_v37, %v643_v30  ;;  %v8496_v30 = vld [vmem:[#allocation2 + $0x218] sm:$0xff] }
 0x1cf   :  { %v916_v39 = vrot.slane %v8496_v30, 2 }
 0x1d0   :  { %694 = vrot.lane.b32.xlu1 %v8267_v10, %s7502_s4 }
 0x1d2   :  { %v1596_v49 = vpop.permute.xlu1 %1595  ;;  %1047 = vrot.lane.b32.xlu0 %v8308_v42, %s7500_s30 }
 0x1d3   :  { %1797 = vrot.lane.b32.xlu2 %v8437_v31, %s7507_s24  ;;  %v2640_v8 = vsel %vm2630_vm9, %v2575_v53, %v1596_v49  ;;  %v563_v53 = vrot.slane %v8496_v30, 1 }
 0x1d4   :  { %v1996_v15 = vpop.permute.xlu0 %1995  ;;  %v2705_v56 = vsel %vm2695_vm10, %v2640_v8, %v1792_v27  ;;  %v8512_v8 = vsel %vm814_vm2, %v915_v35, %v916_v39 }
 0x1d5   :  { %v1396_v63 = vpop.permute.xlu2 %1395  ;;  %v2770_v19 = vsel %vm2760_vm11, %v2705_v56, %v1996_v15  ;;  %v8515_v56 = vsel %vm461_vm1, %v503_v52, %v505_v62 }
 0x1d8   :  { %2203 = vrot.lane.b32.xlu1 %v8457_v18, %s7506_s23 }
 0x1da   :  { %v2198_v4 = vpop.permute.xlu1 %2197  ;;  %1243 = vrot.lane.b32.xlu0 %v8282_v24, %s7503_s10 }
 0x1db   :  { %v2835_v5 = vsel %vm2825_vm12, %v2770_v19, %v2198_v4  ;;  %2001 = vrot.lane.b32.xlu2 %v8463_v55, %s7505_s18  ;;  %v59_v19 = vld [vmem:[%s15150_s0 + $0x80] sm:$0xff]  ;;  %v8523_v4 = vsel %vm461_vm1, %v562_v51, %v563_v53 }
 0x1dc   :  { %7236 = vmatmul.msk.f32.gmra.mxu0 %vm2890_vm13, %v2835_v5  ;;  %v996_v61 = vpop.permute.xlu0 %995  ;;  %204 = vst.msk [vmem:[#allocation2 + $0xd9] sm:$0xff] %vm107_vm0, %v59_v19 }
 0x1dd   :  { %v691_v7 = vpop.permute.xlu2 %690  ;;  %v2446_v12 = vsel %vm2435_vm6, %v2381_v36, %v996_v61  ;;  %v60_v61 = vld [vmem:[%s15150_s0 + $0x88] sm:$0xff] }
 0x1de   :  { %205 = vst.msk [vmem:[#allocation2 + $0xe1] sm:$0xff] %vm107_vm0, %v60_v61 }
 0x1e0   :  { %1001 = vrot.lane.b32.xlu1 %v8176_v58, %s7500_s30 }
 0x1e2   :  { %v1192_v11 = vpop.permute.xlu1 %1191  ;;  %1197 = vrot.lane.b32.xlu0 %v8198_v32, %s7503_s10 }
 0x1e3   :  { %648 = vrot.lane.b32.xlu2 %v8156_v9, %s7502_s4  ;;  %v2511_v17 = vsel %vm2500_vm7, %v2446_v12, %v1192_v11  ;;  %v2405_v12 = vsel %vm107_vm0, %v8211_v44, %v691_v7 }
 0x1e4   :  { %v1598_v54 = vpop.permute.xlu0 %1597  ;;  %v2576_v37 = vsel %vm2565_vm8, %v2511_v17, %v1396_v63 }
 0x1e5   :  { %v2200_v47 = vpop.permute.xlu2 %2199  ;;  %v2641_v32 = vsel %vm2630_vm9, %v2576_v37, %v1598_v54 }
 0x1e8   :  { %1649 = vrot.lane.b32.xlu1 %v8348_v22, %s7508_s25 }
 0x1ea   :  { %v1794_v58 = vpop.permute.xlu1 %1793  ;;  %1845 = vrot.lane.b32.xlu0 %v8483_v23, %s7507_s24 }
 0x1eb   :  { %1447 = vrot.lane.b32.xlu2 %v8301_v16, %s7504_s17  ;;  %v2706_v9 = vsel %vm2695_vm10, %v2641_v32, %v1794_v58 }
 0x1ec   :  { %v1998_v27 = vpop.permute.xlu0 %1997 }
 0x1ed   :  { %v2771_v13 = vsel %vm2760_vm11, %v2706_v9, %v1998_v27  ;;  %v998_v29 = vpop.permute.xlu2 %997 }
 0x1ee   :  { %v2836_v46 = vsel %vm2825_vm12, %v2771_v13, %v2200_v47  ;;  %v858_v47 = vrot.slane %v278_v60, 2 }
 0x1ef   :  { %7237 = vmatmul.msk.f32.gmra.mxu0 %vm2890_vm13, %v2836_v46 }
 0x1f0   :  { %1603 = vrot.lane.b32.xlu1 %v8341_v21, %s7508_s25 }
 0x1f2   :  { %v1044_v49 = vpop.permute.xlu1 %1043  ;;  %1799 = vrot.lane.b32.xlu0 %v8439_v1, %s7507_s24 }
 0x1f3   :  { %1401 = vrot.lane.b32.xlu2 %v8337_v14, %s7504_s17  ;;  %v2470_v37 = vsel %vm2435_vm6, %v2405_v12, %v1044_v49  ;;  %v8590_v12 = vld [vmem:[#allocation2 + $0xd8] sm:$0xff] }
 0x1f4   :  { %v645_v15 = vpop.permute.xlu0 %644 }
 0x1f5   :  { %v1646_v63 = vpop.permute.xlu2 %1645  ;;  %v2382_v60 = vsel %vm107_vm0, %v8014_v38, %v645_v15 }
 0x1f6   :  { %v2447_v51 = vsel %vm2435_vm6, %v2382_v60, %v998_v29 }
 0x1f8   :  { %2251 = vrot.lane.b32.xlu1 %v8512_v8, %s7506_s23 }
 0x1fa   :  { %v1240_v5 = vpop.permute.xlu1 %1239  ;;  %2003 = vrot.lane.b32.xlu0 %v8515_v56, %s7505_s18 }
 0x1fb   :  { %2049 = vrot.lane.b32.xlu2 %v8523_v4, %s7505_s18  ;;  %v2535_v58 = vsel %vm2500_vm7, %v2470_v37, %v1240_v5 }
 0x1fc   :  { %v1444_v52 = vpop.permute.xlu0 %1443 }
 0x1fd   :  { %v1600_v36 = vpop.permute.xlu2 %1599  ;;  %v2600_v32 = vsel %vm2565_vm8, %v2535_v58, %v1444_v52 }
 0x1fe   :  { %v2665_v7 = vsel %vm2630_vm9, %v2600_v32, %v1646_v63  ;;  %v860_v32 = vrot.slane %v8590_v12, 2 }
 0x200   :  { %1049 = vrot.lane.b32.xlu1 %v8387_v50, %s7500_s30 }
 0x202   :  { %v1194_v11 = vpop.permute.xlu1 %1193  ;;  %650 = vrot.lane.b32.xlu0 %v8218_v6, %s7502_s4  ;;  %v8550_v6 = vsel %vm814_vm2, %v856_v41, %v858_v47  ;;  %v320_v41 = vld [vmem:[#allocation2 + $0x220] sm:$0x3] }
 0x203   :  { %696 = vrot.lane.b32.xlu2 %v8382_v43, %s7502_s4  ;;  %v565_v49 = vrot.slane %v320_v41, 1  ;;  %v2512_v19 = vsel %vm2500_vm7, %v2447_v51, %v1194_v11  ;;  %v8595_v47 = vld [vmem:[#allocation2 + $0xe0] sm:$0xff] }
 0x204   :  { %v1398_v54 = vpop.permute.xlu0 %1397  ;;  %v508_v37 = vrot.slane %v8595_v47, 1 }
 0x205   :  { %v2248_v17 = vpop.permute.xlu2 %2247  ;;  %v2577_v5 = vsel %vm2565_vm8, %v2512_v19, %v1398_v54  ;;  %v8573_v52 = vsel %vm461_vm1, %v563_v53, %v565_v49  ;;  %v83_v53 = vld [vmem:[%s15150_s0 + $0x140] sm:$0xff] }
 0x206   :  { %v2642_v38 = vsel %vm2630_vm9, %v2577_v5, %v1600_v36  ;;  %v84_v36 = vld [vmem:[%s15150_s0 + $0x148] sm:$0xff]  ;;  %228 = vst.msk [vmem:[#allocation2 + $0x229] sm:$0xff] %vm107_vm0, %v83_v53 }
 0x207   :  { %229 = vst.msk [vmem:[#allocation2 + $0x231] sm:$0xff] %vm107_vm0, %v84_v36 }
 0x208   :  { %1245 = vrot.lane.b32.xlu1 %v8284_v25, %s7503_s10 }
 0x20a   :  { %v1842_v44 = vpop.permute.xlu1 %1841  ;;  %1449 = vrot.lane.b32.xlu0 %v8418_v28, %s7504_s17 }
 0x20b   :  { %2205 = vrot.lane.b32.xlu2 %v8550_v6, %s7506_s23  ;;  %v2730_v9 = vsel %vm2695_vm10, %v2665_v7, %v1842_v44  ;;  %v861_v44 = vrot.slane %v8595_v47, 2 }
 0x20c   :  { %v2046_v27 = vpop.permute.xlu0 %2045 }
 0x20d   :  { %v2795_v13 = vsel %vm2760_vm11, %v2730_v9, %v2046_v27  ;;  %v1046_v25 = vpop.permute.xlu2 %1045  ;;  %v918_v9 = vrot.slane %v320_v41, 2 }
 0x20e   :  { %v2860_v46 = vsel %vm2825_vm12, %v2795_v13, %v2248_v17  ;;  %v507_v17 = vrot.slane %v8590_v12, 1 }
 0x20f   :  { %7261 = vmatmul.msk.f32.vlgmr.msra.gmra.mxu3 %vm2890_vm13, %v2860_v46  ;;  %v8616_v46 = vsel %vm814_vm2, %v860_v32, %v861_v44 }
 0x210   :  { %1199 = vrot.lane.b32.xlu1 %v8437_v31, %s7503_s10  ;;  %v8611_v13 = vsel %vm461_vm1, %v507_v17, %v508_v37 }
 0x212   :  { %v1796_v35 = vpop.permute.xlu1 %1795  ;;  %1403 = vrot.lane.b32.xlu0 %v8463_v55, %s7504_s17 }
 0x213   :  { %1003 = vrot.lane.b32.xlu2 %v8272_v20, %s7500_s30  ;;  %v2707_v20 = vsel %vm2695_vm10, %v2642_v38, %v1796_v35 }
 0x214   :  { %v693_v62 = vpop.permute.xlu0 %692 }
 0x215   :  { %v1242_v63 = vpop.permute.xlu2 %1241  ;;  %v2406_v49 = vsel %vm107_vm0, %v8213_v45, %v693_v62 }
 0x218   :  { %1847 = vrot.lane.b32.xlu1 %v8496_v30, %s7507_s24 }
 0x21a   :  { %v2000_v15 = vpop.permute.xlu1 %1999  ;;  %2051 = vrot.lane.b32.xlu0 %v8573_v52, %s7505_s18 }
 0x21b   :  { %1651 = vrot.lane.b32.xlu2 %v8423_v40, %s7508_s25  ;;  %v2772_v29 = vsel %vm2760_vm11, %v2707_v20, %v2000_v15 }
 0x21c   :  { %v2202_v61 = vpop.permute.xlu0 %2201 }
 0x21d   :  { %v1196_v11 = vpop.permute.xlu2 %1195  ;;  %v2837_v54 = vsel %vm2825_vm12, %v2772_v29, %v2202_v61  ;;  %v8653_v29 = vld [vmem:[#allocation2 + $0x228] sm:$0xff]  ;;  %v8655_v61 = vld [vmem:[#allocation2 + $0x230] sm:$0xff] }
 0x21e   :  { %7238 = vmatmul.msk.f32.gmra.mxu0 %vm2890_vm13, %v2837_v54  ;;  %v567_v36 = vrot.slane %v8653_v29, 1  ;;  %v568_v54 = vrot.slane %v8655_v61, 1 }
 0x220   :  { %1801 = vrot.lane.b32.xlu1 %v8590_v12, %s7507_s24 }
 0x222   :  { %v647_v58 = vpop.permute.xlu1 %646  ;;  %698 = vrot.lane.b32.xlu0 %v8301_v16, %s7502_s4  ;;  %v8623_v16 = vsel %vm814_vm2, %v916_v39, %v918_v9  ;;  %v2471_v39 = vsel %vm2435_vm6, %v2406_v49, %v1046_v25 }
 0x223   :  { %1605 = vrot.lane.b32.xlu2 %v8457_v18, %s7508_s25  ;;  %v2536_v38 = vsel %vm2500_vm7, %v2471_v39, %v1242_v63  ;;  %v2383_v20 = vsel %vm107_vm0, %v8097_v33, %v647_v58  ;;  %v920_v58 = vrot.slane %v8653_v29, 2 }
 0x224   :  { %v1000_v7 = vpop.permute.xlu0 %999 }
 0x225   :  { %v1844_v27 = vpop.permute.xlu2 %1843  ;;  %v2448_v53 = vsel %vm2435_vm6, %v2383_v20, %v1000_v7  ;;  %v921_v7 = vrot.slane %v8655_v61, 2 }
 0x226   :  { %v2513_v17 = vsel %vm2500_vm7, %v2448_v53, %v1196_v11  ;;  %v8674_v11 = vsel %vm461_vm1, %v567_v36, %v568_v54 }
 0x227   :  { %v8680_v49 = vsel %vm814_vm2, %v920_v58, %v921_v7 }
 0x228   :  { %2005 = vrot.lane.b32.xlu1 %v8611_v13, %s7505_s18 }
 0x22a   :  { %v1446_v41 = vpop.permute.xlu1 %1445  ;;  %2207 = vrot.lane.b32.xlu0 %v8616_v46, %s7506_s23 }
 0x22b   :  { %2253 = vrot.lane.b32.xlu2 %v8623_v16, %s7506_s23  ;;  %v2601_v15 = vsel %vm2565_vm8, %v2536_v38, %v1446_v41 }
 0x22c   :  { %v1648_v60 = vpop.permute.xlu0 %1647 }
 0x22d   :  { %v1798_v35 = vpop.permute.xlu2 %1797  ;;  %v2666_v45 = vsel %vm2630_vm9, %v2601_v15, %v1648_v60 }
 0x230   :  { %652 = vrot.lane.b32.xlu1 %v8337_v14, %s7502_s4 }
 0x232   :  { %v1400_v51 = vpop.permute.xlu1 %1399  ;;  %1005 = vrot.lane.b32.xlu0 %v8341_v21, %s7500_s30  ;;  %v2731_v21 = vsel %vm2695_vm10, %v2666_v45, %v1844_v27  ;;  %v62_v45 = vld [vmem:[%s15150_s0 + $0x98] sm:$0xff] }
 0x233   :  { %1051 = vrot.lane.b32.xlu2 %v8348_v22, %s7500_s30  ;;  %v2578_v33 = vsel %vm2565_vm8, %v2513_v17, %v1400_v51  ;;  %207 = vst.msk [vmem:[#allocation2 + $0xf9] sm:$0xff] %vm107_vm0, %v62_v45  ;;  %v323_v45 = vld [vmem:[#allocation2 + $0x238] sm:$0x3] }
 0x234   :  { %v1602_v19 = vpop.permute.xlu0 %1601 }
 0x235   :  { %v2002_v5 = vpop.permute.xlu2 %2001  ;;  %v2643_v9 = vsel %vm2630_vm9, %v2578_v33, %v1602_v19 }
 0x236   :  { %v2708_v60 = vsel %vm2695_vm10, %v2643_v9, %v1798_v35  ;;  %v61_v35 = vld [vmem:[%s15150_s0 + $0x90] sm:$0xff] }
 0x237   :  { %v2773_v51 = vsel %vm2760_vm11, %v2708_v60, %v2002_v5  ;;  %206 = vst.msk [vmem:[#allocation2 + $0xf1] sm:$0xff] %vm107_vm0, %v61_v35  ;;  %v281_v5 = vld [vmem:[#allocation2 + $0xe8] sm:$0x3] }
 0x238   :  { %1451 = vrot.lane.b32.xlu1 %v8523_v4, %s7504_s17 }
 0x23a   :  { %v2048_v14 = vpop.permute.xlu1 %2047  ;;  %1653 = vrot.lane.b32.xlu0 %v8512_v8, %s7508_s25 }
 0x23b   :  { %1247 = vrot.lane.b32.xlu2 %v8483_v23, %s7503_s10  ;;  %v2796_v22 = vsel %vm2760_vm11, %v2731_v21, %v2048_v14  ;;  %v863_v14 = vrot.slane %v281_v5, 2 }
 0x23c   :  { %v2250_v25 = vpop.permute.xlu0 %2249 }
 0x23d   :  { %v649_v62 = vpop.permute.xlu2 %648  ;;  %v2861_v63 = vsel %vm2825_vm12, %v2796_v22, %v2250_v25  ;;  %v510_v25 = vrot.slane %v281_v5, 1 }
 0x23e   :  { %7262 = vmatmul.msk.f32.gmra.mxu3 %vm2890_vm13, %v2861_v63  ;;  %v2384_v58 = vsel %vm107_vm0, %v8099_v34, %v649_v62 }
 0x23f   :  { %v8715_v20 = vsel %vm461_vm1, %v508_v37, %v510_v25  ;;  %v86_v25 = vld [vmem:[%s15150_s0 + $0x158] sm:$0xff] }
 0x240   :  { %1405 = vrot.lane.b32.xlu1 %v8515_v56, %s7504_s17  ;;  %231 = vst.msk [vmem:[#allocation2 + $0x249] sm:$0xff] %vm107_vm0, %v86_v25 }
 0x242   :  { %v695_v32 = vpop.permute.xlu1 %694  ;;  %1607 = vrot.lane.b32.xlu0 %v8550_v6, %s7508_s25 }
 0x243   :  { %1201 = vrot.lane.b32.xlu2 %v8439_v1, %s7503_s10 }
 0x244   :  { %v1048_v27 = vpop.permute.xlu0 %1047 }
 0x245   :  { %v1448_v41 = vpop.permute.xlu2 %1447 }
 0x248   :  { %2053 = vrot.lane.b32.xlu1 %v8674_v11, %s7505_s18 }
 0x24a   :  { %v2204_v39 = vpop.permute.xlu1 %2203  ;;  %2255 = vrot.lane.b32.xlu0 %v8680_v49, %s7506_s23 }
 0x24b   :  { %v2838_v19 = vsel %vm2825_vm12, %v2773_v51, %v2204_v39  ;;  %1849 = vrot.lane.b32.xlu2 %v8653_v29, %s7507_s24 }
 0x24c   :  { %7239 = vmatmul.msk.f32.gmra.mxu0 %vm2890_vm13, %v2838_v19  ;;  %v1244_v38 = vpop.permute.xlu0 %1243 }
 0x24d   :  { %v1402_v15 = vpop.permute.xlu2 %1401 }
 0x250   :  { %700 = vrot.lane.b32.xlu1 %v8418_v28, %s7502_s4  ;;  %v8708_v28 = vsel %vm814_vm2, %v861_v44, %v863_v14  ;;  %v2407_v44 = vsel %vm107_vm0, %v8247_v2, %v695_v32  ;;  %v8755_v14 = vld [vmem:[#allocation2 + $0xf0] sm:$0xff] }
 0x251   :  { %v2472_v17 = vsel %vm2435_vm6, %v2407_v44, %v1048_v27 }
 0x252   :  { %v1002_v21 = vpop.permute.xlu1 %1001  ;;  %1053 = vrot.lane.b32.xlu0 %v8423_v40, %s7500_s30  ;;  %v2537_v37 = vsel %vm2500_vm7, %v2472_v17, %v1244_v38 }
 0x253   :  { %1803 = vrot.lane.b32.xlu2 %v8595_v47, %s7507_s24  ;;  %v2602_v2 = vsel %vm2565_vm8, %v2537_v37, %v1448_v41  ;;  %v570_v37 = vrot.slane %v323_v45, 1 }
 0x254   :  { %v1198_v22 = vpop.permute.xlu0 %1197 }
 0x255   :  { %v2050_v63 = vpop.permute.xlu2 %2049 }
 0x258   :  { %2209 = vrot.lane.b32.xlu1 %v8708_v28, %s7506_s23 }
 0x25a   :  { %v1650_v40 = vpop.permute.xlu1 %1649  ;;  %1249 = vrot.lane.b32.xlu0 %v8496_v30, %s7503_s10 }
 0x25b   :  { %2007 = vrot.lane.b32.xlu2 %v8715_v20, %s7505_s18  ;;  %v2667_v27 = vsel %vm2630_vm9, %v2602_v2, %v1650_v40  ;;  %v8790_v2 = vsel %vm461_vm1, %v568_v54, %v570_v37 }
 0x25c   :  { %v1846_v53 = vpop.permute.xlu0 %1845 }
 0x25d   :  { %v697_v36 = vpop.permute.xlu2 %696  ;;  %v2732_v51 = vsel %vm2695_vm10, %v2667_v27, %v1846_v53  ;;  %v512_v53 = vrot.slane %v8755_v14, 1 }
 0x25e   :  { %v2408_v54 = vsel %vm107_vm0, %v8249_v0, %v697_v36 }
 0x260   :  { %1007 = vrot.lane.b32.xlu1 %v8457_v18, %s7500_s30  ;;  %v2449_v18 = vsel %vm2435_vm6, %v2384_v58, %v1002_v21  ;;  %v85_v21 = vld [vmem:[%s15150_s0 + $0x150] sm:$0xff] }
 0x261   :  { %v2514_v60 = vsel %vm2500_vm7, %v2449_v18, %v1198_v22  ;;  %v8762_v22 = vld [vmem:[#allocation2 + $0xf8] sm:$0xff]  ;;  %230 = vst.msk [vmem:[#allocation2 + $0x241] sm:$0xff] %vm107_vm0, %v85_v21 }
 0x262   :  { %v1604_v33 = vpop.permute.xlu1 %1603  ;;  %1203 = vrot.lane.b32.xlu0 %v8590_v12, %s7503_s10  ;;  %v2579_v34 = vsel %vm2565_vm8, %v2514_v60, %v1402_v15  ;;  %v513_v44 = vrot.slane %v8762_v22, 1 }
 0x263   :  { %654 = vrot.lane.b32.xlu2 %v8463_v55, %s7502_s4  ;;  %v2797_v55 = vsel %vm2760_vm11, %v2732_v51, %v2050_v63  ;;  %v2644_v41 = vsel %vm2630_vm9, %v2579_v34, %v1604_v33  ;;  %v923_v63 = vrot.slane %v323_v45, 2  ;;  %v865_v51 = vrot.slane %v8755_v14, 2 }
 0x264   :  { %v1800_v9 = vpop.permute.xlu0 %1799  ;;  %v866_v34 = vrot.slane %v8762_v22, 2 }
 0x265   :  { %v2206_v32 = vpop.permute.xlu2 %2205  ;;  %v2709_v19 = vsel %vm2695_vm10, %v2644_v41, %v1800_v9  ;;  %v8778_v58 = vsel %vm814_vm2, %v921_v7, %v923_v63  ;;  %v8783_v9 = vsel %vm461_vm1, %v512_v53, %v513_v44 }
 0x266   :  { %v8812_v0 = vsel %vm814_vm2, %v865_v51, %v866_v34 }
 0x268   :  { %1655 = vrot.lane.b32.xlu1 %v8623_v16, %s7508_s25  ;;  %v8827_v45 = vld [vmem:[#allocation2 + $0x248] sm:$0xff] }
 0x26a   :  { %v2252_v62 = vpop.permute.xlu1 %2251  ;;  %1851 = vrot.lane.b32.xlu0 %v8655_v61, %s7507_s24 }
 0x26b   :  { %v2862_v39 = vsel %vm2825_vm12, %v2797_v55, %v2252_v62  ;;  %1453 = vrot.lane.b32.xlu2 %v8573_v52, %s7504_s17 }
 0x26c   :  { %7263 = vmatmul.msk.f32.gmra.mxu3 %vm2890_vm13, %v2862_v39  ;;  %v2004_v35 = vpop.permute.xlu0 %2003 }
 0x26d   :  { %v2774_v38 = vsel %vm2760_vm11, %v2709_v19, %v2004_v35  ;;  %v8751_v15 = vpop.permute.xlu2 %1003 }
 0x26e   :  { %v2839_v5 = vsel %vm2825_vm12, %v2774_v38, %v2206_v32 }
 0x26f   :  { %7240 = vmatmul.msk.f32.gmra.mxu0 %vm2890_vm13, %v2839_v5  ;;  %v8825_v5 = vld [vmem:[#allocation2 + $0x240] sm:$0xff] }
 0x270   :  { %1609 = vrot.lane.b32.xlu1 %v8616_v46, %s7508_s25  ;;  %v572_v63 = vrot.slane %v8825_v5, 1 }
 0x272   :  { %v1050_v40 = vpop.permute.xlu1 %1049  ;;  %1805 = vrot.lane.b32.xlu0 %v8755_v14, %s7507_s24 }
 0x273   :  { %1407 = vrot.lane.b32.xlu2 %v8611_v13, %s7504_s17  ;;  %v2473_v55 = vsel %vm2435_vm6, %v2408_v54, %v1050_v40  ;;  %v573_v40 = vrot.slane %v8827_v45, 1 }
 0x274   :  { %v651_v17 = vpop.permute.xlu0 %650 }
 0x275   :  { %v1652_v33 = vpop.permute.xlu2 %1651  ;;  %v2385_v21 = vsel %vm107_vm0, %v8196_v59, %v651_v17  ;;  %v8844_v17 = vsel %vm461_vm1, %v572_v63, %v573_v40 }
 0x276   :  { %v2450_v37 = vsel %vm2435_vm6, %v2385_v21, %v8751_v15 }
 0x278   :  { %2257 = vrot.lane.b32.xlu1 %v8778_v58, %s7506_s23 }
 0x27a   :  { %v1246_v32 = vpop.permute.xlu1 %1245  ;;  %2009 = vrot.lane.b32.xlu0 %v8783_v9, %s7505_s18 }
 0x27b   :  { %2055 = vrot.lane.b32.xlu2 %v8790_v2, %s7505_s18 }
 0x27c   :  { %v1450_v7 = vpop.permute.xlu0 %1449 }
 0x27d   :  { %v1606_v18 = vpop.permute.xlu2 %1605 }
 0x280   :  { %1055 = vrot.lane.b32.xlu1 %v8512_v8, %s7500_s30  ;;  %v2538_v8 = vsel %vm2500_vm7, %v2473_v55, %v1246_v32 }
 0x281   :  { %v2603_v41 = vsel %vm2565_vm8, %v2538_v8, %v1450_v7 }
 0x282   :  { %v1200_v27 = vpop.permute.xlu1 %1199  ;;  %656 = vrot.lane.b32.xlu0 %v8515_v56, %s7502_s4 }
 0x283   :  { %702 = vrot.lane.b32.xlu2 %v8523_v4, %s7502_s4  ;;  %v2668_v4 = vsel %vm2630_vm9, %v2603_v41, %v1652_v33  ;;  %v2515_v32 = vsel %vm2500_vm7, %v2450_v37, %v1200_v27 }
 0x284   :  { %v1404_v60 = vpop.permute.xlu0 %1403 }
 0x285   :  { %v2254_v62 = vpop.permute.xlu2 %2253  ;;  %v2580_v59 = vsel %vm2565_vm8, %v2515_v32, %v1404_v60 }
 0x288   :  { %1251 = vrot.lane.b32.xlu1 %v8653_v29, %s7503_s10 }
 0x28a   :  { %v1848_v56 = vpop.permute.xlu1 %1847  ;;  %1455 = vrot.lane.b32.xlu0 %v8674_v11, %s7504_s17 }
 0x28b   :  { %2211 = vrot.lane.b32.xlu2 %v8812_v0, %s7506_s23  ;;  %v2733_v36 = vsel %vm2695_vm10, %v2668_v4, %v1848_v56  ;;  %v925_v56 = vrot.slane %v8825_v5, 2  ;;  %v926_v4 = vrot.slane %v8827_v45, 2 }
 0x28c   :  { %v2052_v39 = vpop.permute.xlu0 %2051 }
 0x28d   :  { %v2798_v19 = vsel %vm2760_vm11, %v2733_v36, %v2052_v39  ;;  %v1052_v35 = vpop.permute.xlu2 %1051 }
 0x28e   :  { %v2863_v38 = vsel %vm2825_vm12, %v2798_v19, %v2254_v62  ;;  %v284_v62 = vld [vmem:[#allocation2 + $0x100] sm:$0x3] }
 0x28f   :  { %7264 = vmatmul.msk.f32.gmra.mxu3 %vm2890_vm13, %v2863_v38  ;;  %v868_v8 = vrot.slane %v284_v62, 2 }
 0x290   :  { %1205 = vrot.lane.b32.xlu1 %v8595_v47, %s7503_s10 }
 0x291   :  { %v8871_v19 = vsel %vm814_vm2, %v866_v34, %v868_v8  ;;  %v64_v34 = vld [vmem:[%s15150_s0 + $0xa8] sm:$0xff] }
 0x292   :  { %v1802_v25 = vpop.permute.xlu1 %1801  ;;  %1409 = vrot.lane.b32.xlu0 %v8715_v20, %s7504_s17  ;;  %209 = vst.msk [vmem:[#allocation2 + $0x111] sm:$0xff] %vm107_vm0, %v64_v34 }
 0x293   :  { %1009 = vrot.lane.b32.xlu2 %v8550_v6, %s7500_s30  ;;  %v2645_v6 = vsel %vm2630_vm9, %v2580_v59, %v1606_v18  ;;  %v515_v18 = vrot.slane %v284_v62, 1 }
 0x294   :  { %v699_v53 = vpop.permute.xlu0 %698  ;;  %v2710_v15 = vsel %vm2695_vm10, %v2645_v6, %v1802_v25 }
 0x295   :  { %v1248_v33 = vpop.permute.xlu2 %1247  ;;  %v8868_v39 = vsel %vm461_vm1, %v513_v44, %v515_v18  ;;  %v63_v44 = vld [vmem:[%s15150_s0 + $0xa0] sm:$0xff]  ;;  %v2409_v63 = vsel %vm107_vm0, %v8282_v24, %v699_v53 }
 0x296   :  { %208 = vst.msk [vmem:[#allocation2 + $0x109] sm:$0xff] %vm107_vm0, %v63_v44  ;;  %v2474_v32 = vsel %vm2435_vm6, %v2409_v63, %v1052_v35 }
 0x298   :  { %1853 = vrot.lane.b32.xlu1 %v8825_v5, %s7507_s24 }
 0x29a   :  { %v2006_v7 = vpop.permute.xlu1 %2005  ;;  %2057 = vrot.lane.b32.xlu0 %v8844_v17, %s7505_s18 }
 0x29b   :  { %1657 = vrot.lane.b32.xlu2 %v8680_v49, %s7508_s25  ;;  %v2775_v27 = vsel %vm2760_vm11, %v2710_v15, %v2006_v7  ;;  %v2539_v7 = vsel %vm2500_vm7, %v2474_v32, %v1248_v33 }
 0x29c   :  { %v2208_v54 = vpop.permute.xlu0 %2207 }
 0x29d   :  { %v1202_v60 = vpop.permute.xlu2 %1201  ;;  %v2840_v51 = vsel %vm2825_vm12, %v2775_v27, %v2208_v54  ;;  %v7346_v27 = vld [vmem:[#allocation2 + $0xb0] sm:$0xff] }
 0x29e   :  { %7241 = vmatmul.msk.f32.gmra.mxu0 %vm2890_vm13, %v2840_v51  ;;  %v326_v51 = vld [vmem:[#allocation2 + $0x250] sm:$0x3] }
 0x29f   :  { %v575_v18 = vrot.slane %v326_v51, 1 }
 0x2a0   :  { %1807 = vrot.lane.b32.xlu1 %v8762_v22, %s7507_s24 }
 0x2a1   :  { %v8930_v44 = vsel %vm461_vm1, %v573_v40, %v575_v18 }
 0x2a2   :  { %v653_v55 = vpop.permute.xlu1 %652  ;;  %704 = vrot.lane.b32.xlu0 %v8573_v52, %s7502_s4  ;;  %v8876_v52 = vsel %vm814_vm2, %v925_v56, %v926_v4 }
 0x2a3   :  { %1611 = vrot.lane.b32.xlu2 %v8708_v28, %s7508_s25  ;;  %v2386_v54 = vsel %vm107_vm0, %v7346_v27, %v653_v55  ;;  %v928_v55 = vrot.slane %v326_v51, 2 }
 0x2a4   :  { %v1006_v41 = vpop.permute.xlu0 %1005 }
 0x2a5   :  { %v1850_v36 = vpop.permute.xlu2 %1849  ;;  %v2451_v62 = vsel %vm2435_vm6, %v2386_v54, %v1006_v41  ;;  %v87_v41 = vld [vmem:[%s15150_s0 + $0x160] sm:$0xff]  ;;  %v8934_v63 = vsel %vm814_vm2, %v926_v4, %v928_v55  ;;  %v88_v4 = vld [vmem:[%s15150_s0 + $0x168] sm:$0xff] }
 0x2a6   :  { %v2516_v8 = vsel %vm2500_vm7, %v2451_v62, %v1202_v60  ;;  %232 = vst.msk [vmem:[#allocation2 + $0x259] sm:$0xff] %vm107_vm0, %v87_v41  ;;  %v7347_v62 = vld [vmem:[#allocation2 + $0x200] sm:$0xff] }
 0x2a7   :  { %233 = vst.msk [vmem:[#allocation2 + $0x261] sm:$0xff] %vm107_vm0, %v88_v4 }
 0x2a8   :  { %2011 = vrot.lane.b32.xlu1 %v8868_v39, %s7505_s18 }
 0x2aa   :  { %v1452_v38 = vpop.permute.xlu1 %1451  ;;  %2213 = vrot.lane.b32.xlu0 %v8871_v19, %s7506_s23 }
 0x2ab   :  { %2259 = vrot.lane.b32.xlu2 %v8876_v52, %s7506_s23  ;;  %v2604_v15 = vsel %vm2565_vm8, %v2539_v7, %v1452_v38  ;;  %v8951_v7 = vld [vmem:[#allocation2 + $0x110] sm:$0xff] }
 0x2ac   :  { %v1654_v21 = vpop.permute.xlu0 %1653 }
 0x2ad   :  { %v1804_v25 = vpop.permute.xlu2 %1803  ;;  %v2669_v24 = vsel %vm2630_vm9, %v2604_v15, %v1654_v21 }
 0x2b0   :  { %658 = vrot.lane.b32.xlu1 %v8611_v13, %s7502_s4 }
 0x2b2   :  { %v1406_v37 = vpop.permute.xlu1 %1405  ;;  %1011 = vrot.lane.b32.xlu0 %v8616_v46, %s7500_s30  ;;  %v2734_v46 = vsel %vm2695_vm10, %v2669_v24, %v1850_v36  ;;  %v871_v24 = vrot.slane %v8951_v7, 2 }
 0x2b3   :  { %1057 = vrot.lane.b32.xlu2 %v8623_v16, %s7500_s30  ;;  %v2581_v36 = vsel %vm2565_vm8, %v2516_v8, %v1406_v37 }
 0x2b4   :  { %v1608_v59 = vpop.permute.xlu0 %1607 }
 0x2b5   :  { %v2008_v6 = vpop.permute.xlu2 %2007  ;;  %v2646_v38 = vsel %vm2630_vm9, %v2581_v36, %v1608_v59 }
 0x2b6   :  { %v2711_v34 = vsel %vm2695_vm10, %v2646_v38, %v1804_v25 }
 0x2b7   :  { %v2776_v37 = vsel %vm2760_vm11, %v2711_v34, %v2008_v6  ;;  %v8949_v6 = vld [vmem:[#allocation2 + $0x108] sm:$0xff] }
 0x2b8   :  { %1457 = vrot.lane.b32.xlu1 %v8790_v2, %s7504_s17  ;;  %v870_v15 = vrot.slane %v8949_v6, 2 }
 0x2ba   :  { %v2054_v13 = vpop.permute.xlu1 %2053  ;;  %1659 = vrot.lane.b32.xlu0 %v8778_v58, %s7508_s25 }
 0x2bb   :  { %1253 = vrot.lane.b32.xlu2 %v8655_v61, %s7503_s10  ;;  %v2799_v16 = vsel %vm2760_vm11, %v2734_v46, %v2054_v13 }
 0x2bc   :  { %v2256_v35 = vpop.permute.xlu0 %2255 }
 0x2bd   :  { %v655_v53 = vpop.permute.xlu2 %654  ;;  %v2864_v33 = vsel %vm2825_vm12, %v2799_v16, %v2256_v35  ;;  %v517_v16 = vrot.slane %v8949_v6, 1  ;;  %v518_v35 = vrot.slane %v8951_v7, 1 }
 0x2be   :  { %7265 = vmatmul.msk.f32.gmra.mxu3 %vm2890_vm13, %v2864_v33  ;;  %v2387_v41 = vsel %vm107_vm0, %v8437_v31, %v655_v53 }
 0x2bf   :  { %v8971_v27 = vsel %vm461_vm1, %v517_v16, %v518_v35  ;;  %v287_v16 = vld [vmem:[#allocation2 + $0x118] sm:$0x3] }
 0x2c0   :  { %1411 = vrot.lane.b32.xlu1 %v8783_v9, %s7504_s17 }
 0x2c2   :  { %v701_v56 = vpop.permute.xlu1 %700  ;;  %1613 = vrot.lane.b32.xlu0 %v8812_v0, %s7508_s25 }
 0x2c3   :  { %1207 = vrot.lane.b32.xlu2 %v8755_v14, %s7503_s10  ;;  %v2410_v18 = vsel %vm107_vm0, %v7347_v62, %v701_v56  ;;  %v520_v62 = vrot.slane %v287_v16, 1 }
 0x2c4   :  { %v1054_v21 = vpop.permute.xlu0 %1053 }
 0x2c5   :  { %v1454_v60 = vpop.permute.xlu2 %1453  ;;  %v2475_v8 = vsel %vm2435_vm6, %v2410_v18, %v1054_v21 }
 0x2c8   :  { %2059 = vrot.lane.b32.xlu1 %v8930_v44, %s7505_s18 }
 0x2ca   :  { %v2210_v32 = vpop.permute.xlu1 %2209  ;;  %2261 = vrot.lane.b32.xlu0 %v8934_v63, %s7506_s23 }
 0x2cb   :  { %v2841_v59 = vsel %vm2825_vm12, %v2776_v37, %v2210_v32  ;;  %1855 = vrot.lane.b32.xlu2 %v8827_v45, %s7507_s24 }
 0x2cc   :  { %7242 = vmatmul.msk.f32.gmra.mxu0 %vm2890_vm13, %v2841_v59  ;;  %v1250_v40 = vpop.permute.xlu0 %1249  ;;  %v8995_v59 = vld [vmem:[#allocation2 + $0x258] sm:$0xff] }
 0x2cd   :  { %v1408_v25 = vpop.permute.xlu2 %1407  ;;  %v2540_v36 = vsel %vm2500_vm7, %v2475_v8, %v1250_v40  ;;  %v577_v8 = vrot.slane %v8995_v59, 1 }
 0x2ce   :  { %v2605_v56 = vsel %vm2565_vm8, %v2540_v36, %v1454_v60 }
 0x2d0   :  { %706 = vrot.lane.b32.xlu1 %v8674_v11, %s7502_s4  ;;  %v8966_v11 = vsel %vm814_vm2, %v870_v15, %v871_v24 }
 0x2d2   :  { %v1008_v13 = vpop.permute.xlu1 %1007  ;;  %1059 = vrot.lane.b32.xlu0 %v8680_v49, %s7500_s30 }
 0x2d3   :  { %1809 = vrot.lane.b32.xlu2 %v8949_v6, %s7507_s24 }
 0x2d4   :  { %v1204_v46 = vpop.permute.xlu0 %1203 }
 0x2d5   :  { %v2056_v33 = vpop.permute.xlu2 %2055 }
 0x2d8   :  { %2215 = vrot.lane.b32.xlu1 %v8966_v11, %s7506_s23 }
 0x2da   :  { %v1656_v49 = vpop.permute.xlu1 %1655  ;;  %1255 = vrot.lane.b32.xlu0 %v8825_v5, %s7503_s10 }
 0x2db   :  { %2013 = vrot.lane.b32.xlu2 %v8971_v27, %s7505_s18  ;;  %v2670_v21 = vsel %vm2630_vm9, %v2605_v56, %v1656_v49  ;;  %v65_v56 = vld [vmem:[%s15150_s0 + $0xb0] sm:$0xff] }
 0x2dc   :  { %v1852_v54 = vpop.permute.xlu0 %1851  ;;  %210 = vst.msk [vmem:[#allocation2 + $0x121] sm:$0xff] %vm107_vm0, %v65_v56 }
 0x2dd   :  { %v8977_v51 = vpop.permute.xlu2 %702  ;;  %v2735_v32 = vsel %vm2695_vm10, %v2670_v21, %v1852_v54  ;;  %v66_v21 = vld [vmem:[%s15150_s0 + $0xb8] sm:$0xff] }
 0x2de   :  { %211 = vst.msk [vmem:[#allocation2 + $0x129] sm:$0xff] %vm107_vm0, %v66_v21 }
 0x2e0   :  { %1013 = vrot.lane.b32.xlu1 %v8708_v28, %s7500_s30  ;;  %v2452_v28 = vsel %vm2435_vm6, %v2387_v41, %v1008_v13 }
 0x2e1   :  { %v2517_v37 = vsel %vm2500_vm7, %v2452_v28, %v1204_v46  ;;  %v9011_v46 = vld [vmem:[#allocation2 + $0x260] sm:$0xff] }
 0x2e2   :  { %v1610_v55 = vpop.permute.xlu1 %1609  ;;  %1209 = vrot.lane.b32.xlu0 %v8762_v22, %s7503_s10  ;;  %v2582_v31 = vsel %vm2565_vm8, %v2517_v37, %v1408_v25  ;;  %v2800_v22 = vsel %vm2760_vm11, %v2735_v32, %v2056_v33  ;;  %v930_v33 = vrot.slane %v8995_v59, 2  ;;  %v931_v49 = vrot.slane %v9011_v46, 2 }
 0x2e3   :  { %660 = vrot.lane.b32.xlu2 %v8715_v20, %s7502_s4  ;;  %v2647_v53 = vsel %vm2630_vm9, %v2582_v31, %v1610_v55  ;;  %v578_v36 = vrot.slane %v9011_v46, 1  ;;  %v2411_v31 = vsel %vm107_vm0, %v8483_v23, %v8977_v51 }
 0x2e4   :  { %v1806_v38 = vpop.permute.xlu0 %1805  ;;  %v9027_v41 = vsel %vm814_vm2, %v930_v33, %v931_v49 }
 0x2e5   :  { %v2212_v34 = vpop.permute.xlu2 %2211  ;;  %v2712_v40 = vsel %vm2695_vm10, %v2647_v53, %v1806_v38  ;;  %v9030_v38 = vsel %vm461_vm1, %v518_v35, %v520_v62 }
 0x2e8   :  { %1661 = vrot.lane.b32.xlu1 %v8876_v52, %s7508_s25 }
 0x2ea   :  { %v2258_v20 = vpop.permute.xlu1 %2257  ;;  %1857 = vrot.lane.b32.xlu0 %v8995_v59, %s7507_s24 }
 0x2eb   :  { %v2865_v60 = vsel %vm2825_vm12, %v2800_v22, %v2258_v20  ;;  %1459 = vrot.lane.b32.xlu2 %v8844_v17, %s7504_s17  ;;  %v873_v22 = vrot.slane %v287_v16, 2 }
 0x2ec   :  { %7266 = vmatmul.msk.f32.gmra.mxu3 %vm2890_vm13, %v2865_v60  ;;  %v2010_v4 = vpop.permute.xlu0 %2009 }
 0x2ed   :  { %v2777_v25 = vsel %vm2760_vm11, %v2712_v40, %v2010_v4  ;;  %v1010_v15 = vpop.permute.xlu2 %1009 }
 0x2ee   :  { %v2842_v13 = vsel %vm2825_vm12, %v2777_v25, %v2212_v34  ;;  %v9038_v34 = vsel %vm461_vm1, %v577_v8, %v578_v36 }
 0x2ef   :  { %7243 = vmatmul.msk.f32.gmra.mxu0 %vm2890_vm13, %v2842_v13 }
 0x2f0   :  { %1615 = vrot.lane.b32.xlu1 %v8871_v19, %s7508_s25 }
 0x2f2   :  { %v1056_v54 = vpop.permute.xlu1 %1055  ;;  %1811 = vrot.lane.b32.xlu0 %v8951_v7, %s7507_s24 }
 0x2f3   :  { %1413 = vrot.lane.b32.xlu2 %v8868_v39, %s7504_s17  ;;  %v2476_v60 = vsel %vm2435_vm6, %v2411_v31, %v1056_v54  ;;  %v9106_v31 = vld [vmem:[#allocation2 + $0x120] sm:$0xff] }
 0x2f4   :  { %v657_v18 = vpop.permute.xlu0 %656 }
 0x2f5   :  { %v1658_v55 = vpop.permute.xlu2 %1657  ;;  %v2388_v16 = vsel %vm107_vm0, %v8439_v1, %v657_v18 }
 0x2f6   :  { %v2453_v8 = vsel %vm2435_vm6, %v2388_v16, %v1010_v15 }
 0x2f8   :  { %2263 = vrot.lane.b32.xlu1 %v9027_v41, %s7506_s23 }
 0x2fa   :  { %v1252_v28 = vpop.permute.xlu1 %1251  ;;  %2015 = vrot.lane.b32.xlu0 %v9030_v38, %s7505_s18 }
 0x2fb   :  { %2061 = vrot.lane.b32.xlu2 %v9038_v34, %s7505_s18  ;;  %v2541_v40 = vsel %vm2500_vm7, %v2476_v60, %v1252_v28 }
 0x2fc   :  { %v1456_v35 = vpop.permute.xlu0 %1455 }
 0x2fd   :  { %v1612_v37 = vpop.permute.xlu2 %1611 }
 0x300   :  { %1061 = vrot.lane.b32.xlu1 %v8778_v58, %s7500_s30  ;;  %v2606_v58 = vsel %vm2565_vm8, %v2541_v40, %v1456_v35 }
 0x302   :  { %v1206_v32 = vpop.permute.xlu1 %1205  ;;  %662 = vrot.lane.b32.xlu0 %v8783_v9, %s7502_s4  ;;  %v9066_v9 = vsel %vm814_vm2, %v871_v24, %v873_v22  ;;  %v329_v24 = vld [vmem:[#allocation2 + $0x268] sm:$0x3] }
 0x303   :  { %708 = vrot.lane.b32.xlu2 %v8790_v2, %s7502_s4  ;;  %v2671_v2 = vsel %vm2630_vm9, %v2606_v58, %v1658_v55  ;;  %v580_v54 = vrot.slane %v329_v24, 1  ;;  %v2518_v56 = vsel %vm2500_vm7, %v2453_v8, %v1206_v32  ;;  %v9111_v22 = vld [vmem:[#allocation2 + $0x128] sm:$0xff]  ;;  %v875_v58 = vrot.slane %v9106_v31, 2 }
 0x304   :  { %v1410_v20 = vpop.permute.xlu0 %1409  ;;  %v523_v60 = vrot.slane %v9111_v22, 1 }
 0x305   :  { %v2260_v53 = vpop.permute.xlu2 %2259  ;;  %v2583_v28 = vsel %vm2565_vm8, %v2518_v56, %v1410_v20  ;;  %v9089_v35 = vsel %vm461_vm1, %v578_v36, %v580_v54  ;;  %v89_v36 = vld [vmem:[%s15150_s0 + $0x170] sm:$0xff] }
 0x306   :  { %v2648_v1 = vsel %vm2630_vm9, %v2583_v28, %v1612_v37  ;;  %v90_v37 = vld [vmem:[%s15150_s0 + $0x178] sm:$0xff]  ;;  %234 = vst.msk [vmem:[#allocation2 + $0x271] sm:$0xff] %vm107_vm0, %v89_v36 }
 0x307   :  { %235 = vst.msk [vmem:[#allocation2 + $0x279] sm:$0xff] %vm107_vm0, %v90_v37 }
 0x308   :  { %1257 = vrot.lane.b32.xlu1 %v8827_v45, %s7503_s10 }
 0x30a   :  { %v1854_v23 = vpop.permute.xlu1 %1853  ;;  %1461 = vrot.lane.b32.xlu0 %v8930_v44, %s7504_s17 }
 0x30b   :  { %2217 = vrot.lane.b32.xlu2 %v9066_v9, %s7506_s23  ;;  %v2736_v51 = vsel %vm2695_vm10, %v2671_v2, %v1854_v23  ;;  %v876_v23 = vrot.slane %v9111_v22, 2 }
 0x30c   :  { %v2058_v4 = vpop.permute.xlu0 %2057 }
 0x30d   :  { %v2801_v25 = vsel %vm2760_vm11, %v2736_v51, %v2058_v4  ;;  %v1058_v45 = vpop.permute.xlu2 %1057  ;;  %v933_v51 = vrot.slane %v329_v24, 2 }
 0x30e   :  { %v2866_v13 = vsel %vm2825_vm12, %v2801_v25, %v2260_v53  ;;  %v522_v53 = vrot.slane %v9106_v31, 1 }
 0x30f   :  { %7267 = vmatmul.msk.f32.gmra.mxu3 %vm2890_vm13, %v2866_v13  ;;  %v9132_v13 = vsel %vm814_vm2, %v875_v58, %v876_v23 }
 0x310   :  { %1211 = vrot.lane.b32.xlu1 %v8949_v6, %s7503_s10  ;;  %v9127_v25 = vsel %vm461_vm1, %v522_v53, %v523_v60 }
 0x312   :  { %v1808_v33 = vpop.permute.xlu1 %1807  ;;  %1415 = vrot.lane.b32.xlu0 %v8971_v27, %s7504_s17 }
 0x313   :  { %1015 = vrot.lane.b32.xlu2 %v8812_v0, %s7500_s30  ;;  %v2713_v0 = vsel %vm2695_vm10, %v2648_v1, %v1808_v33 }
 0x314   :  { %v705_v62 = vpop.permute.xlu0 %704 }
 0x315   :  { %v1254_v55 = vpop.permute.xlu2 %1253  ;;  %v2412_v54 = vsel %vm107_vm0, %v8496_v30, %v705_v62 }
 0x318   :  { %1859 = vrot.lane.b32.xlu1 %v9011_v46, %s7507_s24 }
 0x31a   :  { %v2012_v18 = vpop.permute.xlu1 %2011  ;;  %2063 = vrot.lane.b32.xlu0 %v9089_v35, %s7505_s18 }
 0x31b   :  { %1663 = vrot.lane.b32.xlu2 %v8934_v63, %s7508_s25  ;;  %v2778_v15 = vsel %vm2760_vm11, %v2713_v0, %v2012_v18 }
 0x31c   :  { %v2214_v21 = vpop.permute.xlu0 %2213 }
 0x31d   :  { %v1208_v32 = vpop.permute.xlu2 %1207  ;;  %v2843_v20 = vsel %vm2825_vm12, %v2778_v15, %v2214_v21  ;;  %v9169_v15 = vld [vmem:[#allocation2 + $0x270] sm:$0xff]  ;;  %v9171_v21 = vld [vmem:[#allocation2 + $0x278] sm:$0xff] }
 0x31e   :  { %7244 = vmatmul.msk.f32.gmra.mxu0 %vm2890_vm13, %v2843_v20  ;;  %v582_v37 = vrot.slane %v9169_v15, 1  ;;  %v583_v20 = vrot.slane %v9171_v21, 1 }
 0x320   :  { %1813 = vrot.lane.b32.xlu1 %v9106_v31, %s7507_s24 }
 0x322   :  { %v659_v40 = vpop.permute.xlu1 %658  ;;  %710 = vrot.lane.b32.xlu0 %v8844_v17, %s7502_s4  ;;  %v9139_v17 = vsel %vm814_vm2, %v931_v49, %v933_v51  ;;  %v2477_v49 = vsel %vm2435_vm6, %v2412_v54, %v1058_v45 }
 0x323   :  { %1617 = vrot.lane.b32.xlu2 %v8966_v11, %s7508_s25  ;;  %v2542_v1 = vsel %vm2500_vm7, %v2477_v49, %v1254_v55  ;;  %v2389_v0 = vsel %vm107_vm0, %v8590_v12, %v659_v40  ;;  %v935_v40 = vrot.slane %v9169_v15, 2 }
 0x324   :  { %v1012_v2 = vpop.permute.xlu0 %1011 }
 0x325   :  { %v1856_v4 = vpop.permute.xlu2 %1855  ;;  %v2454_v36 = vsel %vm2435_vm6, %v2389_v0, %v1012_v2  ;;  %v936_v2 = vrot.slane %v9171_v21, 2 }
 0x326   :  { %v2519_v53 = vsel %vm2500_vm7, %v2454_v36, %v1208_v32  ;;  %v9190_v32 = vsel %vm461_vm1, %v582_v37, %v583_v20 }
 0x327   :  { %v9196_v54 = vsel %vm814_vm2, %v935_v40, %v936_v2 }
 0x328   :  { %2017 = vrot.lane.b32.xlu1 %v9127_v25, %s7505_s18 }
 0x32a   :  { %v1458_v24 = vpop.permute.xlu1 %1457  ;;  %2219 = vrot.lane.b32.xlu0 %v9132_v13, %s7506_s23 }
 0x32b   :  { %2265 = vrot.lane.b32.xlu2 %v9139_v17, %s7506_s23  ;;  %v2607_v18 = vsel %vm2565_vm8, %v2542_v1, %v1458_v24 }
 0x32c   :  { %v1660_v16 = vpop.permute.xlu0 %1659 }
 0x32d   :  { %v1810_v33 = vpop.permute.xlu2 %1809  ;;  %v2672_v30 = vsel %vm2630_vm9, %v2607_v18, %v1660_v16 }
 0x330   :  { %664 = vrot.lane.b32.xlu1 %v8868_v39, %s7502_s4 }
 0x332   :  { %v1412_v8 = vpop.permute.xlu1 %1411  ;;  %1017 = vrot.lane.b32.xlu0 %v8871_v19, %s7500_s30  ;;  %v2737_v19 = vsel %vm2695_vm10, %v2672_v30, %v1856_v4  ;;  %v68_v30 = vld [vmem:[%s15150_s0 + $0xc8] sm:$0xff] }
 0x333   :  { %1063 = vrot.lane.b32.xlu2 %v8876_v52, %s7500_s30  ;;  %v2584_v12 = vsel %vm2565_vm8, %v2519_v53, %v1412_v8  ;;  %213 = vst.msk [vmem:[#allocation2 + $0x141] sm:$0xff] %vm107_vm0, %v68_v30  ;;  %v332_v30 = vld [vmem:[#allocation2 + $0x280] sm:$0x3] }
 0x334   :  { %v1614_v56 = vpop.permute.xlu0 %1613 }
 0x335   :  { %v2014_v28 = vpop.permute.xlu2 %2013  ;;  %v2649_v51 = vsel %vm2630_vm9, %v2584_v12, %v1614_v56 }
 0x336   :  { %v2714_v16 = vsel %vm2695_vm10, %v2649_v51, %v1810_v33  ;;  %v67_v33 = vld [vmem:[%s15150_s0 + $0xc0] sm:$0xff] }
 0x337   :  { %v2779_v8 = vsel %vm2760_vm11, %v2714_v16, %v2014_v28  ;;  %212 = vst.msk [vmem:[#allocation2 + $0x139] sm:$0xff] %vm107_vm0, %v67_v33  ;;  %v290_v28 = vld [vmem:[#allocation2 + $0x130] sm:$0x3] }
 0x338   :  { %1463 = vrot.lane.b32.xlu1 %v9038_v34, %s7504_s17 }
 0x33a   :  { %v2060_v39 = vpop.permute.xlu1 %2059  ;;  %1665 = vrot.lane.b32.xlu0 %v9027_v41, %s7508_s25 }
 0x33b   :  { %1259 = vrot.lane.b32.xlu2 %v8995_v59, %s7503_s10  ;;  %v2802_v52 = vsel %vm2760_vm11, %v2737_v19, %v2060_v39  ;;  %v878_v39 = vrot.slane %v290_v28, 2 }
 0x33c   :  { %v2262_v45 = vpop.permute.xlu0 %2261 }
 0x33d   :  { %v661_v62 = vpop.permute.xlu2 %660  ;;  %v2867_v55 = vsel %vm2825_vm12, %v2802_v52, %v2262_v45  ;;  %v525_v45 = vrot.slane %v290_v28, 1 }
 0x33e   :  { %7268 = vmatmul.msk.f32.gmra.mxu3 %vm2890_vm13, %v2867_v55  ;;  %v2390_v40 = vsel %vm107_vm0, %v8595_v47, %v661_v62 }
 0x33f   :  { %v9231_v0 = vsel %vm461_vm1, %v523_v60, %v525_v45  ;;  %v92_v45 = vld [vmem:[%s15150_s0 + $0x188] sm:$0xff] }
 0x340   :  { %1417 = vrot.lane.b32.xlu1 %v9030_v38, %s7504_s17  ;;  %237 = vst.msk [vmem:[#allocation2 + $0x291] sm:$0xff] %vm107_vm0, %v92_v45 }
 0x342   :  { %v707_v58 = vpop.permute.xlu1 %706  ;;  %1619 = vrot.lane.b32.xlu0 %v9066_v9, %s7508_s25 }
 0x343   :  { %1213 = vrot.lane.b32.xlu2 %v8951_v7, %s7503_s10 }
 0x344   :  { %v1060_v4 = vpop.permute.xlu0 %1059 }
 0x345   :  { %v1460_v24 = vpop.permute.xlu2 %1459 }
 0x348   :  { %2065 = vrot.lane.b32.xlu1 %v9190_v32, %s7505_s18 }
 0x34a   :  { %v2216_v49 = vpop.permute.xlu1 %2215  ;;  %2267 = vrot.lane.b32.xlu0 %v9196_v54, %s7506_s23 }
 0x34b   :  { %v2844_v56 = vsel %vm2825_vm12, %v2779_v8, %v2216_v49  ;;  %1861 = vrot.lane.b32.xlu2 %v9169_v15, %s7507_s24 }
 0x34c   :  { %7245 = vmatmul.msk.f32.gmra.mxu0 %vm2890_vm13, %v2844_v56  ;;  %v1256_v1 = vpop.permute.xlu0 %1255 }
 0x34d   :  { %v1414_v18 = vpop.permute.xlu2 %1413 }
 0x350   :  { %712 = vrot.lane.b32.xlu1 %v8930_v44, %s7502_s4  ;;  %v9224_v44 = vsel %vm814_vm2, %v876_v23, %v878_v39  ;;  %v2413_v23 = vsel %vm107_vm0, %v8653_v29, %v707_v58  ;;  %v9271_v39 = vld [vmem:[#allocation2 + $0x138] sm:$0xff] }
 0x351   :  { %v2478_v53 = vsel %vm2435_vm6, %v2413_v23, %v1060_v4 }
 0x352   :  { %v1014_v19 = vpop.permute.xlu1 %1013  ;;  %1065 = vrot.lane.b32.xlu0 %v8934_v63, %s7500_s30  ;;  %v2543_v60 = vsel %vm2500_vm7, %v2478_v53, %v1256_v1 }
 0x353   :  { %1815 = vrot.lane.b32.xlu2 %v9111_v22, %s7507_s24  ;;  %v2608_v29 = vsel %vm2565_vm8, %v2543_v60, %v1460_v24  ;;  %v585_v60 = vrot.slane %v332_v30, 1 }
 0x354   :  { %v1210_v52 = vpop.permute.xlu0 %1209 }
 0x355   :  { %v2062_v55 = vpop.permute.xlu2 %2061 }
 0x358   :  { %2221 = vrot.lane.b32.xlu1 %v9224_v44, %s7506_s23 }
 0x35a   :  { %v1662_v63 = vpop.permute.xlu1 %1661  ;;  %1261 = vrot.lane.b32.xlu0 %v9011_v46, %s7503_s10 }
 0x35b   :  { %2019 = vrot.lane.b32.xlu2 %v9231_v0, %s7505_s18  ;;  %v2673_v4 = vsel %vm2630_vm9, %v2608_v29, %v1662_v63  ;;  %v9306_v29 = vsel %vm461_vm1, %v583_v20, %v585_v60 }
 0x35c   :  { %v1858_v36 = vpop.permute.xlu0 %1857 }
 0x35d   :  { %v709_v37 = vpop.permute.xlu2 %708  ;;  %v2738_v8 = vsel %vm2695_vm10, %v2673_v4, %v1858_v36  ;;  %v527_v36 = vrot.slane %v9271_v39, 1 }
 0x35e   :  { %v2414_v20 = vsel %vm107_vm0, %v8655_v61, %v709_v37 }
 0x360   :  { %1019 = vrot.lane.b32.xlu1 %v8966_v11, %s7500_s30  ;;  %v2455_v11 = vsel %vm2435_vm6, %v2390_v40, %v1014_v19  ;;  %v91_v19 = vld [vmem:[%s15150_s0 + $0x180] sm:$0xff] }
 0x361   :  { %v2520_v16 = vsel %vm2500_vm7, %v2455_v11, %v1210_v52  ;;  %v9278_v52 = vld [vmem:[#allocation2 + $0x140] sm:$0xff]  ;;  %236 = vst.msk [vmem:[#allocation2 + $0x289] sm:$0xff] %vm107_vm0, %v91_v19 }
 0x362   :  { %v1616_v12 = vpop.permute.xlu1 %1615  ;;  %1215 = vrot.lane.b32.xlu0 %v9106_v31, %s7503_s10  ;;  %v2585_v47 = vsel %vm2565_vm8, %v2520_v16, %v1414_v18  ;;  %v528_v23 = vrot.slane %v9278_v52, 1 }
 0x363   :  { %666 = vrot.lane.b32.xlu2 %v8971_v27, %s7502_s4  ;;  %v2803_v27 = vsel %vm2760_vm11, %v2738_v8, %v2062_v55  ;;  %v2650_v24 = vsel %vm2630_vm9, %v2585_v47, %v1616_v12  ;;  %v938_v55 = vrot.slane %v332_v30, 2  ;;  %v880_v8 = vrot.slane %v9271_v39, 2 }
 0x364   :  { %v1812_v51 = vpop.permute.xlu0 %1811  ;;  %v881_v47 = vrot.slane %v9278_v52, 2 }
 0x365   :  { %v2218_v58 = vpop.permute.xlu2 %2217  ;;  %v2715_v56 = vsel %vm2695_vm10, %v2650_v24, %v1812_v51  ;;  %v9294_v40 = vsel %vm814_vm2, %v936_v2, %v938_v55  ;;  %v9299_v51 = vsel %vm461_vm1, %v527_v36, %v528_v23 }
 0x366   :  { %v9328_v61 = vsel %vm814_vm2, %v880_v8, %v881_v47 }
 0x368   :  { %1667 = vrot.lane.b32.xlu1 %v9139_v17, %s7508_s25  ;;  %v9343_v30 = vld [vmem:[#allocation2 + $0x290] sm:$0xff] }
 0x36a   :  { %v2264_v62 = vpop.permute.xlu1 %2263  ;;  %1863 = vrot.lane.b32.xlu0 %v9171_v21, %s7507_s24 }
 0x36b   :  { %v2868_v49 = vsel %vm2825_vm12, %v2803_v27, %v2264_v62  ;;  %1465 = vrot.lane.b32.xlu2 %v9089_v35, %s7504_s17 }
 0x36c   :  { %7269 = vmatmul.msk.f32.gmra.mxu3 %vm2890_vm13, %v2868_v49  ;;  %v2016_v33 = vpop.permute.xlu0 %2015 }
 0x36d   :  { %v2780_v1 = vsel %vm2760_vm11, %v2715_v56, %v2016_v33  ;;  %v9267_v18 = vpop.permute.xlu2 %1015 }
 0x36e   :  { %v2845_v28 = vsel %vm2825_vm12, %v2780_v1, %v2218_v58 }
 0x36f   :  { %7246 = vmatmul.msk.f32.gmra.mxu0 %vm2890_vm13, %v2845_v28  ;;  %v9341_v28 = vld [vmem:[#allocation2 + $0x288] sm:$0xff] }
 0x370   :  { %1621 = vrot.lane.b32.xlu1 %v9132_v13, %s7508_s25  ;;  %v587_v55 = vrot.slane %v9341_v28, 1 }
 0x372   :  { %v1062_v63 = vpop.permute.xlu1 %1061  ;;  %1817 = vrot.lane.b32.xlu0 %v9271_v39, %s7507_s24 }
 0x373   :  { %1419 = vrot.lane.b32.xlu2 %v9127_v25, %s7504_s17  ;;  %v2479_v27 = vsel %vm2435_vm6, %v2414_v20, %v1062_v63  ;;  %v588_v63 = vrot.slane %v9343_v30, 1 }
 0x374   :  { %v663_v53 = vpop.permute.xlu0 %662 }
 0x375   :  { %v1664_v12 = vpop.permute.xlu2 %1663  ;;  %v2391_v19 = vsel %vm107_vm0, %v8755_v14, %v663_v53  ;;  %v9360_v53 = vsel %vm461_vm1, %v587_v55, %v588_v63 }
 0x376   :  { %v2456_v60 = vsel %vm2435_vm6, %v2391_v19, %v9267_v18 }
 0x378   :  { %2269 = vrot.lane.b32.xlu1 %v9294_v40, %s7506_s23 }
 0x37a   :  { %v1258_v58 = vpop.permute.xlu1 %1257  ;;  %2021 = vrot.lane.b32.xlu0 %v9299_v51, %s7505_s18 }
 0x37b   :  { %2067 = vrot.lane.b32.xlu2 %v9306_v29, %s7505_s18 }
 0x37c   :  { %v1462_v2 = vpop.permute.xlu0 %1461 }
 0x37d   :  { %v1618_v11 = vpop.permute.xlu2 %1617 }
 0x380   :  { %1067 = vrot.lane.b32.xlu1 %v9027_v41, %s7500_s30  ;;  %v2544_v41 = vsel %vm2500_vm7, %v2479_v27, %v1258_v58 }
 0x381   :  { %v2609_v24 = vsel %vm2565_vm8, %v2544_v41, %v1462_v2 }
 0x382   :  { %v1212_v4 = vpop.permute.xlu1 %1211  ;;  %668 = vrot.lane.b32.xlu0 %v9030_v38, %s7502_s4 }
 0x383   :  { %714 = vrot.lane.b32.xlu2 %v9038_v34, %s7502_s4  ;;  %v2674_v34 = vsel %vm2630_vm9, %v2609_v24, %v1664_v12  ;;  %v2521_v58 = vsel %vm2500_vm7, %v2456_v60, %v1212_v4 }
 0x384   :  { %v1416_v16 = vpop.permute.xlu0 %1415 }
 0x385   :  { %v2266_v62 = vpop.permute.xlu2 %2265  ;;  %v2586_v14 = vsel %vm2565_vm8, %v2521_v58, %v1416_v16 }
 0x388   :  { %1263 = vrot.lane.b32.xlu1 %v9169_v15, %s7503_s10 }
 0x38a   :  { %v1860_v38 = vpop.permute.xlu1 %1859  ;;  %1467 = vrot.lane.b32.xlu0 %v9190_v32, %s7504_s17 }
 0x38b   :  { %2223 = vrot.lane.b32.xlu2 %v9328_v61, %s7506_s23  ;;  %v2739_v37 = vsel %vm2695_vm10, %v2674_v34, %v1860_v38  ;;  %v940_v38 = vrot.slane %v9341_v28, 2  ;;  %v941_v34 = vrot.slane %v9343_v30, 2 }
 0x38c   :  { %v2064_v49 = vpop.permute.xlu0 %2063 }
 0x38d   :  { %v2804_v56 = vsel %vm2760_vm11, %v2739_v37, %v2064_v49  ;;  %v1064_v33 = vpop.permute.xlu2 %1063 }
 0x38e   :  { %v2869_v1 = vsel %vm2825_vm12, %v2804_v56, %v2266_v62  ;;  %v293_v62 = vld [vmem:[#allocation2 + $0x148] sm:$0x3] }
 0x38f   :  { %7270 = vmatmul.msk.f32.gmra.mxu3 %vm2890_vm13, %v2869_v1  ;;  %v883_v41 = vrot.slane %v293_v62, 2 }
 0x390   :  { %1217 = vrot.lane.b32.xlu1 %v9111_v22, %s7503_s10 }
 0x391   :  { %v9387_v56 = vsel %vm814_vm2, %v881_v47, %v883_v41  ;;  %v70_v47 = vld [vmem:[%s15150_s0 + $0xd8] sm:$0xff] }
 0x392   :  { %v1814_v45 = vpop.permute.xlu1 %1813  ;;  %1421 = vrot.lane.b32.xlu0 %v9231_v0, %s7504_s17  ;;  %215 = vst.msk [vmem:[#allocation2 + $0x159] sm:$0xff] %vm107_vm0, %v70_v47 }
 0x393   :  { %1021 = vrot.lane.b32.xlu2 %v9066_v9, %s7500_s30  ;;  %v2651_v9 = vsel %vm2630_vm9, %v2586_v14, %v1618_v11  ;;  %v530_v11 = vrot.slane %v293_v62, 1 }
 0x394   :  { %v711_v36 = vpop.permute.xlu0 %710  ;;  %v2716_v18 = vsel %vm2695_vm10, %v2651_v9, %v1814_v45 }
 0x395   :  { %v1260_v12 = vpop.permute.xlu2 %1259  ;;  %v9384_v49 = vsel %vm461_vm1, %v528_v23, %v530_v11  ;;  %v69_v23 = vld [vmem:[%s15150_s0 + $0xd0] sm:$0xff]  ;;  %v2415_v55 = vsel %vm107_vm0, %v8825_v5, %v711_v36 }
 0x396   :  { %214 = vst.msk [vmem:[#allocation2 + $0x151] sm:$0xff] %vm107_vm0, %v69_v23  ;;  %v2480_v58 = vsel %vm2435_vm6, %v2415_v55, %v1064_v33 }
 0x398   :  { %1865 = vrot.lane.b32.xlu1 %v9341_v28, %s7507_s24 }
 0x39a   :  { %v2018_v2 = vpop.permute.xlu1 %2017  ;;  %2069 = vrot.lane.b32.xlu0 %v9360_v53, %s7505_s18 }
 0x39b   :  { %1669 = vrot.lane.b32.xlu2 %v9196_v54, %s7508_s25  ;;  %v2781_v4 = vsel %vm2760_vm11, %v2716_v18, %v2018_v2  ;;  %v2545_v2 = vsel %vm2500_vm7, %v2480_v58, %v1260_v12 }
 0x39c   :  { %v2220_v20 = vpop.permute.xlu0 %2219 }
 0x39d   :  { %v1214_v16 = vpop.permute.xlu2 %1213  ;;  %v2846_v8 = vsel %vm2825_vm12, %v2781_v4, %v2220_v20  ;;  %v7348_v4 = vld [vmem:[#allocation2 + $0xf8] sm:$0xff] }
 0x39e   :  { %7247 = vmatmul.msk.f32.gmra.mxu0 %vm2890_vm13, %v2846_v8  ;;  %v335_v8 = vld [vmem:[#allocation2 + $0x298] sm:$0x3] }
 0x39f   :  { %v590_v11 = vrot.slane %v335_v8, 1 }
 0x3a0   :  { %1819 = vrot.lane.b32.xlu1 %v9278_v52, %s7507_s24 }
 0x3a1   :  { %v9446_v23 = vsel %vm461_vm1, %v588_v63, %v590_v11 }
 0x3a2   :  { %v665_v27 = vpop.permute.xlu1 %664  ;;  %716 = vrot.lane.b32.xlu0 %v9089_v35, %s7502_s4  ;;  %v9392_v35 = vsel %vm814_vm2, %v940_v38, %v941_v34 }
 0x3a3   :  { %1623 = vrot.lane.b32.xlu2 %v9224_v44, %s7508_s25  ;;  %v2392_v20 = vsel %vm107_vm0, %v7348_v4, %v665_v27  ;;  %v943_v27 = vrot.slane %v335_v8, 2 }
 0x3a4   :  { %v1018_v24 = vpop.permute.xlu0 %1017 }
 0x3a5   :  { %v1862_v37 = vpop.permute.xlu2 %1861  ;;  %v2457_v62 = vsel %vm2435_vm6, %v2392_v20, %v1018_v24  ;;  %v93_v24 = vld [vmem:[%s15150_s0 + $0x190] sm:$0xff]  ;;  %v9450_v55 = vsel %vm814_vm2, %v941_v34, %v943_v27  ;;  %v94_v34 = vld [vmem:[%s15150_s0 + $0x198] sm:$0xff] }
 0x3a6   :  { %v2522_v41 = vsel %vm2500_vm7, %v2457_v62, %v1214_v16  ;;  %238 = vst.msk [vmem:[#allocation2 + $0x2a1] sm:$0xff] %vm107_vm0, %v93_v24  ;;  %v7349_v62 = vld [vmem:[#allocation2 + $0x248] sm:$0xff] }
 0x3a7   :  { %239 = vst.msk [vmem:[#allocation2 + $0x2a9] sm:$0xff] %vm107_vm0, %v94_v34 }
 0x3a8   :  { %2023 = vrot.lane.b32.xlu1 %v9384_v49, %s7505_s18 }
 0x3aa   :  { %v1464_v1 = vpop.permute.xlu1 %1463  ;;  %2225 = vrot.lane.b32.xlu0 %v9387_v56, %s7506_s23 }
 0x3ab   :  { %2271 = vrot.lane.b32.xlu2 %v9392_v35, %s7506_s23  ;;  %v2610_v18 = vsel %vm2565_vm8, %v2545_v2, %v1464_v1  ;;  %v9467_v2 = vld [vmem:[#allocation2 + $0x158] sm:$0xff] }
 0x3ac   :  { %v1666_v19 = vpop.permute.xlu0 %1665 }
 0x3ad   :  { %v1816_v45 = vpop.permute.xlu2 %1815  ;;  %v2675_v5 = vsel %vm2630_vm9, %v2610_v18, %v1666_v19 }
 0x3b0   :  { %670 = vrot.lane.b32.xlu1 %v9127_v25, %s7502_s4 }
 0x3b2   :  { %v1418_v60 = vpop.permute.xlu1 %1417  ;;  %1023 = vrot.lane.b32.xlu0 %v9132_v13, %s7500_s30  ;;  %v2740_v13 = vsel %vm2695_vm10, %v2675_v5, %v1862_v37  ;;  %v886_v5 = vrot.slane %v9467_v2, 2 }
 0x3b3   :  { %1069 = vrot.lane.b32.xlu2 %v9139_v17, %s7500_s30  ;;  %v2587_v37 = vsel %vm2565_vm8, %v2522_v41, %v1418_v60 }
 0x3b4   :  { %v1620_v14 = vpop.permute.xlu0 %1619 }
 0x3b5   :  { %v2020_v9 = vpop.permute.xlu2 %2019  ;;  %v2652_v1 = vsel %vm2630_vm9, %v2587_v37, %v1620_v14 }
 0x3b6   :  { %v2717_v47 = vsel %vm2695_vm10, %v2652_v1, %v1816_v45 }
 0x3b7   :  { %v2782_v60 = vsel %vm2760_vm11, %v2717_v47, %v2020_v9  ;;  %v9465_v9 = vld [vmem:[#allocation2 + $0x150] sm:$0xff] }
 0x3b8   :  { %1469 = vrot.lane.b32.xlu1 %v9306_v29, %s7504_s17  ;;  %v885_v18 = vrot.slane %v9465_v9, 2 }
 0x3ba   :  { %v2066_v25 = vpop.permute.xlu1 %2065  ;;  %1671 = vrot.lane.b32.xlu0 %v9294_v40, %s7508_s25 }
 0x3bb   :  { %1265 = vrot.lane.b32.xlu2 %v9171_v21, %s7503_s10  ;;  %v2805_v17 = vsel %vm2760_vm11, %v2740_v13, %v2066_v25 }
 0x3bc   :  { %v2268_v33 = vpop.permute.xlu0 %2267 }
 0x3bd   :  { %v667_v36 = vpop.permute.xlu2 %666  ;;  %v2870_v12 = vsel %vm2825_vm12, %v2805_v17, %v2268_v33  ;;  %v532_v17 = vrot.slane %v9465_v9, 1  ;;  %v533_v33 = vrot.slane %v9467_v2, 1 }
 0x3be   :  { %7271 = vmatmul.msk.f32.gmra.mxu3 %vm2890_vm13, %v2870_v12  ;;  %v2393_v24 = vsel %vm107_vm0, %v8949_v6, %v667_v36 }
 0x3bf   :  { %v9487_v4 = vsel %vm461_vm1, %v532_v17, %v533_v33  ;;  %v296_v17 = vld [vmem:[#allocation2 + $0x160] sm:$0x3] }
 0x3c0   :  { %1423 = vrot.lane.b32.xlu1 %v9299_v51, %s7504_s17 }
 0x3c2   :  { %v713_v38 = vpop.permute.xlu1 %712  ;;  %1625 = vrot.lane.b32.xlu0 %v9328_v61, %s7508_s25 }
 0x3c3   :  { %1219 = vrot.lane.b32.xlu2 %v9271_v39, %s7503_s10  ;;  %v2416_v11 = vsel %vm107_vm0, %v7349_v62, %v713_v38  ;;  %v535_v62 = vrot.slane %v296_v17, 1 }
 0x3c4   :  { %v1066_v19 = vpop.permute.xlu0 %1065 }
 0x3c5   :  { %v1466_v16 = vpop.permute.xlu2 %1465  ;;  %v2481_v41 = vsel %vm2435_vm6, %v2416_v11, %v1066_v19 }
 0x3c8   :  { %2071 = vrot.lane.b32.xlu1 %v9446_v23, %s7505_s18 }
 0x3ca   :  { %v2222_v58 = vpop.permute.xlu1 %2221  ;;  %2273 = vrot.lane.b32.xlu0 %v9450_v55, %s7506_s23 }
 0x3cb   :  { %v2847_v14 = vsel %vm2825_vm12, %v2782_v60, %v2222_v58  ;;  %1867 = vrot.lane.b32.xlu2 %v9343_v30, %s7507_s24 }
 0x3cc   :  { %7248 = vmatmul.msk.f32.gmra.mxu0 %vm2890_vm13, %v2847_v14  ;;  %v1262_v63 = vpop.permute.xlu0 %1261  ;;  %v9511_v14 = vld [vmem:[#allocation2 + $0x2a0] sm:$0xff] }
 0x3cd   :  { %v1420_v45 = vpop.permute.xlu2 %1419  ;;  %v2546_v37 = vsel %vm2500_vm7, %v2481_v41, %v1262_v63  ;;  %v592_v41 = vrot.slane %v9511_v14, 1 }
 0x3ce   :  { %v2611_v38 = vsel %vm2565_vm8, %v2546_v37, %v1466_v16 }
 0x3d0   :  { %718 = vrot.lane.b32.xlu1 %v9190_v32, %s7502_s4  ;;  %v9482_v32 = vsel %vm814_vm2, %v885_v18, %v886_v5 }
 0x3d2   :  { %v1020_v25 = vpop.permute.xlu1 %1019  ;;  %1071 = vrot.lane.b32.xlu0 %v9196_v54, %s7500_s30 }
 0x3d3   :  { %1821 = vrot.lane.b32.xlu2 %v9465_v9, %s7507_s24 }
 0x3d4   :  { %v1216_v13 = vpop.permute.xlu0 %1215 }
 0x3d5   :  { %v2068_v12 = vpop.permute.xlu2 %2067 }
 0x3d8   :  { %2227 = vrot.lane.b32.xlu1 %v9482_v32, %s7506_s23 }
 0x3da   :  { %v1668_v54 = vpop.permute.xlu1 %1667  ;;  %1267 = vrot.lane.b32.xlu0 %v9341_v28, %s7503_s10 }
 0x3db   :  { %2025 = vrot.lane.b32.xlu2 %v9487_v4, %s7505_s18  ;;  %v2676_v19 = vsel %vm2630_vm9, %v2611_v38, %v1668_v54  ;;  %v71_v38 = vld [vmem:[%s15150_s0 + $0xe0] sm:$0xff] }
 0x3dc   :  { %v1864_v20 = vpop.permute.xlu0 %1863  ;;  %216 = vst.msk [vmem:[#allocation2 + $0x169] sm:$0xff] %vm107_vm0, %v71_v38 }
 0x3dd   :  { %v9493_v8 = vpop.permute.xlu2 %714  ;;  %v2741_v58 = vsel %vm2695_vm10, %v2676_v19, %v1864_v20  ;;  %v72_v19 = vld [vmem:[%s15150_s0 + $0xe8] sm:$0xff] }
 0x3de   :  { %217 = vst.msk [vmem:[#allocation2 + $0x171] sm:$0xff] %vm107_vm0, %v72_v19 }
 0x3e0   :  { %1025 = vrot.lane.b32.xlu1 %v9224_v44, %s7500_s30  ;;  %v2458_v44 = vsel %vm2435_vm6, %v2393_v24, %v1020_v25 }
 0x3e1   :  { %v2523_v60 = vsel %vm2500_vm7, %v2458_v44, %v1216_v13  ;;  %v9527_v13 = vld [vmem:[#allocation2 + $0x2a8] sm:$0xff] }
 0x3e2   :  { %v1622_v27 = vpop.permute.xlu1 %1621  ;;  %1221 = vrot.lane.b32.xlu0 %v9278_v52, %s7503_s10  ;;  %v2588_v6 = vsel %vm2565_vm8, %v2523_v60, %v1420_v45  ;;  %v2806_v52 = vsel %vm2760_vm11, %v2741_v58, %v2068_v12  ;;  %v945_v12 = vrot.slane %v9511_v14, 2  ;;  %v946_v54 = vrot.slane %v9527_v13, 2 }
 0x3e3   :  { %672 = vrot.lane.b32.xlu2 %v9231_v0, %s7502_s4  ;;  %v2653_v36 = vsel %vm2630_vm9, %v2588_v6, %v1622_v27  ;;  %v593_v37 = vrot.slane %v9527_v13, 1  ;;  %v2417_v6 = vsel %vm107_vm0, %v8995_v59, %v9493_v8 }
 0x3e4   :  { %v1818_v1 = vpop.permute.xlu0 %1817  ;;  %v9543_v24 = vsel %vm814_vm2, %v945_v12, %v946_v54 }
 0x3e5   :  { %v2224_v47 = vpop.permute.xlu2 %2223  ;;  %v2718_v63 = vsel %vm2695_vm10, %v2653_v36, %v1818_v1  ;;  %v9546_v1 = vsel %vm461_vm1, %v533_v33, %v535_v62 }
 0x3e8   :  { %1673 = vrot.lane.b32.xlu1 %v9392_v35, %s7508_s25 }
 0x3ea   :  { %v2270_v0 = vpop.permute.xlu1 %2269  ;;  %1869 = vrot.lane.b32.xlu0 %v9511_v14, %s7507_s24 }
 0x3eb   :  { %v2871_v16 = vsel %vm2825_vm12, %v2806_v52, %v2270_v0  ;;  %1471 = vrot.lane.b32.xlu2 %v9360_v53, %s7504_s17  ;;  %v888_v52 = vrot.slane %v296_v17, 2 }
 0x3ec   :  { %7272 = vmatmul.msk.f32.gmra.mxu3 %vm2890_vm13, %v2871_v16  ;;  %v2022_v34 = vpop.permute.xlu0 %2021 }
 0x3ed   :  { %v2783_v45 = vsel %vm2760_vm11, %v2718_v63, %v2022_v34  ;;  %v1022_v18 = vpop.permute.xlu2 %1021 }
 0x3ee   :  { %v2848_v25 = vsel %vm2825_vm12, %v2783_v45, %v2224_v47  ;;  %v9554_v47 = vsel %vm461_vm1, %v592_v41, %v593_v37 }
 0x3ef   :  { %7249 = vmatmul.msk.f32.gmra.mxu0 %vm2890_vm13, %v2848_v25 }
 0x3f0   :  { %1627 = vrot.lane.b32.xlu1 %v9387_v56, %s7508_s25 }
 0x3f2   :  { %v1068_v20 = vpop.permute.xlu1 %1067  ;;  %1823 = vrot.lane.b32.xlu0 %v9467_v2, %s7507_s24 }
 0x3f3   :  { %1425 = vrot.lane.b32.xlu2 %v9384_v49, %s7504_s17  ;;  %v2482_v16 = vsel %vm2435_vm6, %v2417_v6, %v1068_v20  ;;  %v9622_v6 = vld [vmem:[#allocation2 + $0x168] sm:$0xff] }
 0x3f4   :  { %v669_v11 = vpop.permute.xlu0 %668 }
 0x3f5   :  { %v1670_v27 = vpop.permute.xlu2 %1669  ;;  %v2394_v17 = vsel %vm107_vm0, %v8951_v7, %v669_v11 }
 0x3f6   :  { %v2459_v41 = vsel %vm2435_vm6, %v2394_v17, %v1022_v18 }
 0x3f8   :  { %2275 = vrot.lane.b32.xlu1 %v9543_v24, %s7506_s23 }
 0x3fa   :  { %v1264_v44 = vpop.permute.xlu1 %1263  ;;  %2027 = vrot.lane.b32.xlu0 %v9546_v1, %s7505_s18 }
 0x3fb   :  { %2073 = vrot.lane.b32.xlu2 %v9554_v47, %s7505_s18  ;;  %v2547_v63 = vsel %vm2500_vm7, %v2482_v16, %v1264_v44 }
 0x3fc   :  { %v1468_v33 = vpop.permute.xlu0 %1467 }
 0x3fd   :  { %v1624_v60 = vpop.permute.xlu2 %1623 }
 0x400   :  { %1073 = vrot.lane.b32.xlu1 %v9294_v40, %s7500_s30  ;;  %v2612_v40 = vsel %vm2565_vm8, %v2547_v63, %v1468_v33 }
 0x402   :  { %v1218_v58 = vpop.permute.xlu1 %1217  ;;  %674 = vrot.lane.b32.xlu0 %v9299_v51, %s7502_s4  ;;  %v9582_v51 = vsel %vm814_vm2, %v886_v5, %v888_v52  ;;  %v338_v5 = vld [vmem:[#allocation2 + $0x2b0] sm:$0x3] }
 0x403   :  { %720 = vrot.lane.b32.xlu2 %v9306_v29, %s7502_s4  ;;  %v2677_v29 = vsel %vm2630_vm9, %v2612_v40, %v1670_v27  ;;  %v595_v20 = vrot.slane %v338_v5, 1  ;;  %v2524_v38 = vsel %vm2500_vm7, %v2459_v41, %v1218_v58  ;;  %v9627_v52 = vld [vmem:[#allocation2 + $0x170] sm:$0xff]  ;;  %v890_v40 = vrot.slane %v9622_v6, 2 }
 0x404   :  { %v1422_v0 = vpop.permute.xlu0 %1421  ;;  %v538_v16 = vrot.slane %v9627_v52, 1 }
 0x405   :  { %v2272_v36 = vpop.permute.xlu2 %2271  ;;  %v2589_v44 = vsel %vm2565_vm8, %v2524_v38, %v1422_v0  ;;  %v9605_v33 = vsel %vm461_vm1, %v593_v37, %v595_v20  ;;  %v95_v37 = vld [vmem:[%s15150_s0 + $0x1a0] sm:$0xff] }
 0x406   :  { %v2654_v7 = vsel %vm2630_vm9, %v2589_v44, %v1624_v60  ;;  %v96_v60 = vld [vmem:[%s15150_s0 + $0x1a8] sm:$0xff]  ;;  %240 = vst.msk [vmem:[#allocation2 + $0x2b9] sm:$0xff] %vm107_vm0, %v95_v37 }
 0x407   :  { %241 = vst.msk [vmem:[#allocation2 + $0x2c1] sm:$0xff] %vm107_vm0, %v96_v60 }
 0x408   :  { %1269 = vrot.lane.b32.xlu1 %v9343_v30, %s7503_s10 }
 0x40a   :  { %v1866_v59 = vpop.permute.xlu1 %1865  ;;  %1473 = vrot.lane.b32.xlu0 %v9446_v23, %s7504_s17 }
 0x40b   :  { %2229 = vrot.lane.b32.xlu2 %v9582_v51, %s7506_s23  ;;  %v2742_v8 = vsel %vm2695_vm10, %v2677_v29, %v1866_v59  ;;  %v891_v59 = vrot.slane %v9627_v52, 2 }
 0x40c   :  { %v2070_v34 = vpop.permute.xlu0 %2069 }
 0x40d   :  { %v2807_v45 = vsel %vm2760_vm11, %v2742_v8, %v2070_v34  ;;  %v1070_v30 = vpop.permute.xlu2 %1069  ;;  %v948_v8 = vrot.slane %v338_v5, 2 }
 0x40e   :  { %v2872_v25 = vsel %vm2825_vm12, %v2807_v45, %v2272_v36  ;;  %v537_v36 = vrot.slane %v9622_v6, 1 }
 0x40f   :  { %7273 = vmatmul.msk.f32.gmra.mxu3 %vm2890_vm13, %v2872_v25  ;;  %v9648_v25 = vsel %vm814_vm2, %v890_v40, %v891_v59 }
 0x410   :  { %1223 = vrot.lane.b32.xlu1 %v9465_v9, %s7503_s10  ;;  %v9643_v45 = vsel %vm461_vm1, %v537_v36, %v538_v16 }
 0x412   :  { %v1820_v12 = vpop.permute.xlu1 %1819  ;;  %1427 = vrot.lane.b32.xlu0 %v9487_v4, %s7504_s17 }
 0x413   :  { %1027 = vrot.lane.b32.xlu2 %v9328_v61, %s7500_s30  ;;  %v2719_v61 = vsel %vm2695_vm10, %v2654_v7, %v1820_v12 }
 0x414   :  { %v717_v62 = vpop.permute.xlu0 %716 }
 0x415   :  { %v1266_v27 = vpop.permute.xlu2 %1265  ;;  %v2418_v20 = vsel %vm107_vm0, %v9011_v46, %v717_v62 }
 0x418   :  { %1871 = vrot.lane.b32.xlu1 %v9527_v13, %s7507_s24 }
 0x41a   :  { %v2024_v11 = vpop.permute.xlu1 %2023  ;;  %2075 = vrot.lane.b32.xlu0 %v9605_v33, %s7505_s18 }
 0x41b   :  { %1675 = vrot.lane.b32.xlu2 %v9450_v55, %s7508_s25  ;;  %v2784_v18 = vsel %vm2760_vm11, %v2719_v61, %v2024_v11 }
 0x41c   :  { %v2226_v19 = vpop.permute.xlu0 %2225 }
 0x41d   :  { %v1220_v58 = vpop.permute.xlu2 %1219  ;;  %v2849_v0 = vsel %vm2825_vm12, %v2784_v18, %v2226_v19  ;;  %v9685_v18 = vld [vmem:[#allocation2 + $0x2b8] sm:$0xff]  ;;  %v9687_v19 = vld [vmem:[#allocation2 + $0x2c0] sm:$0xff] }
 0x41e   :  { %7250 = vmatmul.msk.f32.gmra.mxu0 %vm2890_vm13, %v2849_v0  ;;  %v597_v60 = vrot.slane %v9685_v18, 1  ;;  %v598_v0 = vrot.slane %v9687_v19, 1 }
 0x420   :  { %1825 = vrot.lane.b32.xlu1 %v9622_v6, %s7507_s24 }
 0x422   :  { %v671_v63 = vpop.permute.xlu1 %670  ;;  %722 = vrot.lane.b32.xlu0 %v9360_v53, %s7502_s4  ;;  %v9655_v53 = vsel %vm814_vm2, %v946_v54, %v948_v8  ;;  %v2483_v54 = vsel %vm2435_vm6, %v2418_v20, %v1070_v30 }
 0x423   :  { %1629 = vrot.lane.b32.xlu2 %v9482_v32, %s7508_s25  ;;  %v2548_v7 = vsel %vm2500_vm7, %v2483_v54, %v1266_v27  ;;  %v2395_v61 = vsel %vm107_vm0, %v9106_v31, %v671_v63  ;;  %v950_v63 = vrot.slane %v9685_v18, 2 }
 0x424   :  { %v1024_v29 = vpop.permute.xlu0 %1023 }
 0x425   :  { %v1868_v34 = vpop.permute.xlu2 %1867  ;;  %v2460_v37 = vsel %vm2435_vm6, %v2395_v61, %v1024_v29  ;;  %v951_v29 = vrot.slane %v9687_v19, 2 }
 0x426   :  { %v2525_v36 = vsel %vm2500_vm7, %v2460_v37, %v1220_v58  ;;  %v9706_v58 = vsel %vm461_vm1, %v597_v60, %v598_v0 }
 0x427   :  { %v9712_v20 = vsel %vm814_vm2, %v950_v63, %v951_v29 }
 0x428   :  { %2029 = vrot.lane.b32.xlu1 %v9643_v45, %s7505_s18 }
 0x42a   :  { %v1470_v5 = vpop.permute.xlu1 %1469  ;;  %2231 = vrot.lane.b32.xlu0 %v9648_v25, %s7506_s23 }
 0x42b   :  { %2277 = vrot.lane.b32.xlu2 %v9655_v53, %s7506_s23  ;;  %v2613_v11 = vsel %vm2565_vm8, %v2548_v7, %v1470_v5  ;;  %v9725_v7 = vpop.f32.mrf.mxu0 }
 0x42c   :  { %v1672_v17 = vpop.permute.xlu0 %1671 }
 0x42d   :  { %v1822_v12 = vpop.permute.xlu2 %1821  ;;  %v2678_v46 = vsel %vm2630_vm9, %v2613_v11, %v1672_v17 }
 0x430   :  { %676 = vrot.lane.b32.xlu1 %v9384_v49, %s7502_s4 }
 0x432   :  { %v1424_v41 = vpop.permute.xlu1 %1423  ;;  %1029 = vrot.lane.b32.xlu0 %v9387_v56, %s7500_s30  ;;  %v2743_v56 = vsel %vm2695_vm10, %v2678_v46, %v1868_v34  ;;  %v299_v46 = vld [vmem:[#allocation2 + $0x178] sm:$0x3] }
 0x433   :  { %1075 = vrot.lane.b32.xlu2 %v9392_v35, %s7500_s30  ;;  %v2590_v31 = vsel %vm2565_vm8, %v2525_v36, %v1424_v41 }
 0x434   :  { %v1626_v38 = vpop.permute.xlu0 %1625 }
 0x435   :  { %v2026_v44 = vpop.permute.xlu2 %2025  ;;  %v2655_v8 = vsel %vm2630_vm9, %v2590_v31, %v1626_v38 }
 0x436   :  { %v2720_v17 = vsel %vm2695_vm10, %v2655_v8, %v1822_v12  ;;  %v73_v12 = vld [vmem:[%s15150_s0 + $0xf0] sm:$0xff] }
 0x437   :  { %v2785_v41 = vsel %vm2760_vm11, %v2720_v17, %v2026_v44  ;;  %218 = vst.msk [vmem:[#allocation2 + $0x181] sm:$0xff] %vm107_vm0, %v73_v12 }
 0x438   :  { %1475 = vrot.lane.b32.xlu1 %v9554_v47, %s7504_s17 }
 0x43a   :  { %v2072_v49 = vpop.permute.xlu1 %2071  ;;  %1677 = vrot.lane.b32.xlu0 %v9543_v24, %s7508_s25 }
 0x43b   :  { %1271 = vrot.lane.b32.xlu2 %v9511_v14, %s7503_s10  ;;  %v2808_v35 = vsel %vm2760_vm11, %v2743_v56, %v2072_v49  ;;  %v74_v49 = vld [vmem:[%s15150_s0 + $0xf8] sm:$0xff]  ;;  %v893_v56 = vrot.slane %v299_v46, 2 }
 0x43c   :  { %v2274_v30 = vpop.permute.xlu0 %2273  ;;  %219 = vst.msk [vmem:[#allocation2 + $0x189] sm:$0xff] %vm107_vm0, %v74_v49 }
 0x43d   :  { %v673_v62 = vpop.permute.xlu2 %672  ;;  %v2873_v27 = vsel %vm2825_vm12, %v2808_v35, %v2274_v30 }
 0x43e   :  { %7274 = vmatmul.msk.f32.gmra.mxu3 %vm2890_vm13, %v2873_v27  ;;  %v540_v27 = vrot.slane %v299_v46, 1  ;;  %v2396_v8 = vsel %vm107_vm0, %v9111_v22, %v673_v62 }
 0x440   :  { %1429 = vrot.lane.b32.xlu1 %v9546_v1, %s7504_s17  ;;  %v9749_v37 = vsel %vm461_vm1, %v538_v16, %v540_v27  ;;  %v97_v27 = vld [vmem:[%s15150_s0 + $0x1b0] sm:$0xff] }
 0x441   :  { %242 = vst.msk [vmem:[#allocation2 + $0x2d1] sm:$0xff] %vm107_vm0, %v97_v27 }
 0x442   :  { %v719_v40 = vpop.permute.xlu1 %718  ;;  %1631 = vrot.lane.b32.xlu0 %v9582_v51, %s7508_s25 }
 0x443   :  { %1225 = vrot.lane.b32.xlu2 %v9467_v2, %s7503_s10 }
 0x444   :  { %v1072_v34 = vpop.permute.xlu0 %1071 }
 0x445   :  { %v1472_v5 = vpop.permute.xlu2 %1471 }
 0x448   :  { %2077 = vrot.lane.b32.xlu1 %v9706_v58, %s7505_s18  ;;  %v9861_v27 = vld [vmem:[#allocation2 + $0x2d0] sm:$0xff] }
 0x44a   :  { %v2228_v54 = vpop.permute.xlu1 %2227  ;;  %2279 = vrot.lane.b32.xlu0 %v9712_v20, %s7506_s23 }
 0x44b   :  { %v2850_v38 = vsel %vm2825_vm12, %v2785_v41, %v2228_v54  ;;  %1873 = vrot.lane.b32.xlu2 %v9685_v18, %s7507_s24 }
 0x44c   :  { %7251 = vmatmul.msk.f32.gmra.mxu0 %vm2890_vm13, %v2850_v38  ;;  %v1268_v11 = vpop.permute.xlu0 %1267 }
 0x44d   :  { %v1426_v44 = vpop.permute.xlu2 %1425 }
 0x450   :  { %724 = vrot.lane.b32.xlu1 %v9446_v23, %s7502_s4  ;;  %v9742_v23 = vsel %vm814_vm2, %v891_v59, %v893_v56  ;;  %v2419_v59 = vsel %vm107_vm0, %v9169_v15, %v719_v40  ;;  %v341_v56 = vld [vmem:[#allocation2 + $0x2c8] sm:$0x3] }
 0x451   :  { %v2484_v31 = vsel %vm2435_vm6, %v2419_v59, %v1072_v34 }
 0x452   :  { %v1026_v35 = vpop.permute.xlu1 %1025  ;;  %1077 = vrot.lane.b32.xlu0 %v9450_v55, %s7500_s30  ;;  %v2549_v16 = vsel %vm2500_vm7, %v2484_v31, %v1268_v11 }
 0x453   :  { %1827 = vrot.lane.b32.xlu2 %v9627_v52, %s7507_s24  ;;  %v2614_v15 = vsel %vm2565_vm8, %v2549_v16, %v1472_v5 }
 0x454   :  { %v1222_v30 = vpop.permute.xlu0 %1221 }
 0x455   :  { %v2074_v61 = vpop.permute.xlu2 %2073 }
 0x458   :  { %2233 = vrot.lane.b32.xlu1 %v9742_v23, %s7506_s23 }
 0x45a   :  { %v1674_v55 = vpop.permute.xlu1 %1673  ;;  %1273 = vrot.lane.b32.xlu0 %v9527_v13, %s7503_s10 }
 0x45b   :  { %2031 = vrot.lane.b32.xlu2 %v9749_v37, %s7505_s18  ;;  %v2679_v34 = vsel %vm2630_vm9, %v2614_v15, %v1674_v55  ;;  %v98_v55 = vld [vmem:[%s15150_s0 + $0x1b8] sm:$0xff] }
 0x45c   :  { %v1870_v60 = vpop.permute.xlu0 %1869  ;;  %243 = vst.msk [vmem:[#allocation2 + $0x2d9] sm:$0xff] %vm107_vm0, %v98_v55 }
 0x45d   :  { %v721_v36 = vpop.permute.xlu2 %720  ;;  %v2744_v54 = vsel %vm2695_vm10, %v2679_v34, %v1870_v60  ;;  %v953_v60 = vrot.slane %v341_v56, 2 }
 0x45f   :  { %v9814_v15 = vsel %vm814_vm2, %v951_v29, %v953_v60 }
 0x460   :  { %1031 = vrot.lane.b32.xlu1 %v9482_v32, %s7500_s30  ;;  %v2461_v32 = vsel %vm2435_vm6, %v2396_v8, %v1026_v35  ;;  %v9788_v35 = vpop.f32.mrf.mxu0  ;;  %v600_v8 = vrot.slane %v341_v56, 1 }
 0x461   :  { %v2526_v41 = vsel %vm2500_vm7, %v2461_v32, %v1222_v30  ;;  %v9791_v30 = vld [vmem:[#allocation2 + $0x180] sm:$0xff] }
 0x462   :  { %v1628_v63 = vpop.permute.xlu1 %1627  ;;  %1227 = vrot.lane.b32.xlu0 %v9622_v6, %s7503_s10  ;;  %v2591_v22 = vsel %vm2565_vm8, %v2526_v41, %v1426_v44  ;;  %v1365_v31 = vrot.slane %v9791_v30, 1  ;;  %v9826_v32 = vsel %vm461_vm1, %v598_v0, %v600_v8  ;;  %v2420_v0 = vsel %vm107_vm0, %v9171_v21, %v721_v36 }
 0x463   :  { %678 = vrot.lane.b32.xlu2 %v9487_v4, %s7502_s4  ;;  %v2809_v4 = vsel %vm2760_vm11, %v2744_v54, %v2074_v61  ;;  %v2656_v5 = vsel %vm2630_vm9, %v2591_v22, %v1628_v63  ;;  %v9798_v61 = vld [vmem:[#allocation2 + $0x188] sm:$0xff]  ;;  %v1567_v22 = vrot.slane %v9791_v30, 2  ;;  %v9863_v55 = vld [vmem:[#allocation2 + $0x2d8] sm:$0xff] }
 0x464   :  { %v1824_v17 = vpop.permute.xlu0 %1823  ;;  %v1366_v16 = vrot.slane %v9798_v61, 1  ;;  %v603_v8 = vrot.slane %v9863_v55, 1 }
 0x465   :  { %v2230_v40 = vpop.permute.xlu2 %2229  ;;  %v2721_v12 = vsel %vm2695_vm10, %v2656_v5, %v1824_v17 }
 0x468   :  { %1679 = vrot.lane.b32.xlu1 %v9655_v53, %s7508_s25 }
 0x46a   :  { %v2276_v62 = vpop.permute.xlu1 %2275  ;;  %1875 = vrot.lane.b32.xlu0 %v9687_v19, %s7507_s24 }
 0x46b   :  { %v2874_v38 = vsel %vm2825_vm12, %v2809_v4, %v2276_v62  ;;  %1477 = vrot.lane.b32.xlu2 %v9605_v33, %s7504_s17  ;;  %v1568_v4 = vrot.slane %v9798_v61, 2 }
 0x46c   :  { %7275 = vmatmul.msk.f32.gmra.mxu3 %vm2890_vm13, %v2874_v38  ;;  %v2028_v11 = vpop.permute.xlu0 %2027 }
 0x46d   :  { %v2786_v44 = vsel %vm2760_vm11, %v2721_v12, %v2028_v11  ;;  %v9785_v46 = vpop.permute.xlu2 %1027  ;;  %v9848_v21 = vsel %vm814_vm2, %v1567_v22, %v1568_v4 }
 0x46e   :  { %v2851_v49 = vsel %vm2825_vm12, %v2786_v44, %v2230_v40  ;;  %v9819_v40 = vsel %vm461_vm1, %v1365_v31, %v1366_v16  ;;  %v602_v31 = vrot.slane %v9861_v27, 1 }
 0x46f   :  { %7252 = vmatmul.msk.f32.gmra.mxu0 %vm2890_vm13, %v2851_v49 }
 0x470   :  { %1633 = vrot.lane.b32.xlu1 %v9648_v25, %s7508_s25 }
 0x472   :  { %v1074_v59 = vpop.permute.xlu1 %1073  ;;  %1829 = vrot.lane.b32.xlu0 %v9791_v30, %s7507_s24 }
 0x473   :  { %1431 = vrot.lane.b32.xlu2 %v9643_v45, %s7504_s17  ;;  %v2485_v38 = vsel %vm2435_vm6, %v2420_v0, %v1074_v59 }
 0x474   :  { %v675_v63 = vpop.permute.xlu0 %674 }
 0x475   :  { %v1676_v17 = vpop.permute.xlu2 %1675  ;;  %v2397_v60 = vsel %vm107_vm0, %v9271_v39, %v675_v63  ;;  %v9880_v63 = vsel %vm461_vm1, %v602_v31, %v603_v8 }
 0x478   :  { %2281 = vrot.lane.b32.xlu1 %v9814_v15, %s7506_s23 }
 0x47a   :  { %v1270_v34 = vpop.permute.xlu1 %1269  ;;  %2033 = vrot.lane.b32.xlu0 %v9819_v40, %s7505_s18 }
 0x47b   :  { %2079 = vrot.lane.b32.xlu2 %v9826_v32, %s7505_s18 }
 0x47c   :  { %v1474_v29 = vpop.permute.xlu0 %1473 }
 0x47d   :  { %v1630_v41 = vpop.permute.xlu2 %1629 }
 0x480   :  { %1079 = vrot.lane.b32.xlu1 %v9543_v24, %s7500_s30  ;;  %v2550_v24 = vsel %vm2500_vm7, %v2485_v38, %v1270_v34  ;;  %v2462_v34 = vsel %vm2435_vm6, %v2397_v60, %v9785_v46 }
 0x481   :  { %v2615_v12 = vsel %vm2565_vm8, %v2550_v24, %v1474_v29  ;;  %v9892_v24 = vpop.f32.mrf.mxu0 }
 0x482   :  { %v1224_v54 = vpop.permute.xlu1 %1223  ;;  %680 = vrot.lane.b32.xlu0 %v9546_v1, %s7502_s4 }
 0x483   :  { %726 = vrot.lane.b32.xlu2 %v9554_v47, %s7502_s4  ;;  %v2680_v47 = vsel %vm2630_vm9, %v2615_v12, %v1676_v17  ;;  %v2527_v0 = vsel %vm2500_vm7, %v2462_v34, %v1224_v54 }
 0x484   :  { %v1428_v62 = vpop.permute.xlu0 %1427 }
 0x485   :  { %v2278_v5 = vpop.permute.xlu2 %2277  ;;  %v2592_v39 = vsel %vm2565_vm8, %v2527_v0, %v1428_v62 }
 0x488   :  { %1275 = vrot.lane.b32.xlu1 %v9685_v18, %s7503_s10 }
 0x48a   :  { %v1872_v1 = vpop.permute.xlu1 %1871  ;;  %1479 = vrot.lane.b32.xlu0 %v9706_v58, %s7504_s17 }
 0x48b   :  { %2235 = vrot.lane.b32.xlu2 %v9848_v21, %s7506_s23  ;;  %v2745_v36 = vsel %vm2695_vm10, %v2680_v47, %v1872_v1 }
 0x48c   :  { %v2076_v11 = vpop.permute.xlu0 %2075 }
 0x48d   :  { %v2810_v44 = vsel %vm2760_vm11, %v2745_v36, %v2076_v11  ;;  %v1076_v49 = vpop.permute.xlu2 %1075  ;;  %v955_v11 = vrot.slane %v9861_v27, 2 }
 0x48e   :  { %v2875_v56 = vsel %vm2825_vm12, %v2810_v44, %v2278_v5  ;;  %v956_v44 = vrot.slane %v9863_v55, 2 }
 0x48f   :  { %7276 = vmatmul.msk.f32.gmra.mxu3 %vm2890_vm13, %v2875_v56 }
 0x490   :  { %1229 = vrot.lane.b32.xlu1 %v9627_v52, %s7503_s10 }
 0x492   :  { %v1826_v59 = vpop.permute.xlu1 %1825  ;;  %1433 = vrot.lane.b32.xlu0 %v9749_v37, %s7504_s17 }
 0x493   :  { %1033 = vrot.lane.b32.xlu2 %v9582_v51, %s7500_s30  ;;  %v2657_v51 = vsel %vm2630_vm9, %v2592_v39, %v1630_v41  ;;  %v302_v41 = vld [vmem:[#allocation2 + $0x190] sm:$0x3] }
 0x494   :  { %v723_v17 = vpop.permute.xlu0 %722  ;;  %v2722_v46 = vsel %vm2695_vm10, %v2657_v51, %v1826_v59  ;;  %v1368_v12 = vrot.slane %v302_v41, 1  ;;  %v1570_v47 = vrot.slane %v302_v41, 2  ;;  %v344_v41 = vld [vmem:[#allocation2 + $0x2e0] sm:$0x3] }
 0x495   :  { %v1272_v29 = vpop.permute.xlu2 %1271 }
 0x496   :  { %v9906_v60 = vsel %vm461_vm1, %v1366_v16, %v1368_v12  ;;  %v9909_v59 = vsel %vm814_vm2, %v1568_v4, %v1570_v47  ;;  %v2421_v16 = vsel %vm107_vm0, %v9341_v28, %v723_v17  ;;  %v605_v47 = vrot.slane %v344_v41, 1 }
 0x497   :  { %v2486_v39 = vsel %vm2435_vm6, %v2421_v16, %v1076_v49 }
 0x498   :  { %1877 = vrot.lane.b32.xlu1 %v9861_v27, %s7507_s24 }
 0x49a   :  { %v2030_v22 = vpop.permute.xlu1 %2029  ;;  %2081 = vrot.lane.b32.xlu0 %v9880_v63, %s7505_s18 }
 0x49b   :  { %1681 = vrot.lane.b32.xlu2 %v9712_v20, %s7508_s25  ;;  %v2787_v54 = vsel %vm2760_vm11, %v2722_v46, %v2030_v22  ;;  %v2551_v46 = vsel %vm2500_vm7, %v2486_v39, %v1272_v29 }
 0x49c   :  { %v2232_v62 = vpop.permute.xlu0 %2231 }
 0x49d   :  { %v2852_v5 = vsel %vm2825_vm12, %v2787_v54, %v2232_v62  ;;  %v1226_v38 = vpop.permute.xlu2 %1225  ;;  %v7350_v62 = vld [vmem:[#allocation2 + $0x140] sm:$0xff] }
 0x49e   :  { %7253 = vmatmul.msk.f32.gmra.mxu0 %vm2890_vm13, %v2852_v5 }
 0x4a0   :  { %1831 = vrot.lane.b32.xlu1 %v9798_v61, %s7507_s24 }
 0x4a2   :  { %v677_v1 = vpop.permute.xlu1 %676  ;;  %728 = vrot.lane.b32.xlu0 %v9605_v33, %s7502_s4  ;;  %v9914_v33 = vsel %vm814_vm2, %v955_v11, %v956_v44 }
 0x4a3   :  { %1635 = vrot.lane.b32.xlu2 %v9742_v23, %s7508_s25  ;;  %v2398_v5 = vsel %vm107_vm0, %v7350_v62, %v677_v1  ;;  %v958_v1 = vrot.slane %v344_v41, 2 }
 0x4a4   :  { %v1030_v36 = vpop.permute.xlu0 %1029 }
 0x4a5   :  { %v1874_v56 = vpop.permute.xlu2 %1873  ;;  %v2463_v12 = vsel %vm2435_vm6, %v2398_v5, %v1030_v36  ;;  %v99_v36 = vld [vmem:[%s15150_s0 + $0x1c0] sm:$0xff] }
 0x4a6   :  { %244 = vst.msk [vmem:[#allocation2 + $0x2e9] sm:$0xff] %vm107_vm0, %v99_v36 }
 0x4a8   :  { %2035 = vrot.lane.b32.xlu1 %v9906_v60, %s7505_s18 }
 0x4aa   :  { %v1476_v31 = vpop.permute.xlu1 %1475  ;;  %2237 = vrot.lane.b32.xlu0 %v9909_v59, %s7506_s23 }
 0x4ab   :  { %2283 = vrot.lane.b32.xlu2 %v9914_v33, %s7506_s23  ;;  %v2616_v54 = vsel %vm2565_vm8, %v2551_v46, %v1476_v31  ;;  %v9983_v46 = vld [vmem:[#allocation2 + $0x1a0] sm:$0xff] }
 0x4ac   :  { %v1678_v34 = vpop.permute.xlu0 %1677 }
 0x4ad   :  { %v1828_v0 = vpop.permute.xlu2 %1827  ;;  %v2681_v28 = vsel %vm2630_vm9, %v2616_v54, %v1678_v34 }
 0x4b0   :  { %682 = vrot.lane.b32.xlu1 %v9643_v45, %s7502_s4 }
 0x4b2   :  { %v1430_v4 = vpop.permute.xlu1 %1429  ;;  %1035 = vrot.lane.b32.xlu0 %v9648_v25, %s7500_s30  ;;  %v2746_v25 = vsel %vm2695_vm10, %v2681_v28, %v1874_v56  ;;  %v2170_v28 = vrot.slane %v9983_v46, 2 }
 0x4b3   :  { %1081 = vrot.lane.b32.xlu2 %v9655_v53, %s7500_s30 }
 0x4b4   :  { %v1632_v51 = vpop.permute.xlu0 %1631 }
 0x4b5   :  { %v2032_v22 = vpop.permute.xlu2 %2031 }
 0x4b8   :  { %1481 = vrot.lane.b32.xlu1 %v9826_v32, %s7504_s17 }
 0x4ba   :  { %v2078_v45 = vpop.permute.xlu1 %2077  ;;  %1683 = vrot.lane.b32.xlu0 %v9814_v15, %s7508_s25 }
 0x4bb   :  { %1277 = vrot.lane.b32.xlu2 %v9687_v19, %s7503_s10  ;;  %v2811_v53 = vsel %vm2760_vm11, %v2746_v25, %v2078_v45  ;;  %v2528_v19 = vsel %vm2500_vm7, %v2463_v12, %v1226_v38  ;;  %v7351_v12 = vld [vmem:[#allocation2 + $0x290] sm:$0xff] }
 0x4bc   :  { %v2280_v49 = vpop.permute.xlu0 %2279  ;;  %v2593_v56 = vsel %vm2565_vm8, %v2528_v19, %v1430_v4 }
 0x4bd   :  { %v9940_v17 = vpop.permute.xlu2 %678  ;;  %v2876_v29 = vsel %vm2825_vm12, %v2811_v53, %v2280_v49  ;;  %v2658_v31 = vsel %vm2630_vm9, %v2593_v56, %v1632_v51  ;;  %v1968_v49 = vrot.slane %v9983_v46, 1 }
 0x4be   :  { %7277 = vmatmul.msk.f32.gmra.mxu3 %vm2890_vm13, %v2876_v29  ;;  %v2723_v34 = vsel %vm2695_vm10, %v2658_v31, %v1828_v0  ;;  %v100_v0 = vld [vmem:[%s15150_s0 + $0x1c8] sm:$0xff]  ;;  %v2399_v36 = vsel %vm107_vm0, %v9465_v9, %v9940_v17 }
 0x4bf   :  { %v2788_v16 = vsel %vm2760_vm11, %v2723_v34, %v2032_v22  ;;  %245 = vst.msk [vmem:[#allocation2 + $0x2f1] sm:$0xff] %vm107_vm0, %v100_v0  ;;  %v303_v22 = vld [vmem:[#allocation2 + $0x198] sm:$0xff] }
 0x4c0   :  { %1435 = vrot.lane.b32.xlu1 %v9819_v40, %s7504_s17  ;;  %v2169_v54 = vrot.slane %v303_v22, 2  ;;  %v1967_v53 = vrot.slane %v303_v22, 1 }
 0x4c2   :  { %v725_v11 = vpop.permute.xlu1 %724  ;;  %1637 = vrot.lane.b32.xlu0 %v9848_v21, %s7508_s25  ;;  %v9962_v21 = vsel %vm461_vm1, %v603_v8, %v605_v47  ;;  %v9976_v8 = vpop.f32.mrf.mxu0  ;;  %v2171_v62 = vsel %vm814_vm2, %v2169_v54, %v2170_v28 }
 0x4c3   :  { %1231 = vrot.lane.b32.xlu2 %v9791_v30, %s7503_s10  ;;  %v9966_v30 = vsel %vm814_vm2, %v956_v44, %v958_v1  ;;  %v2422_v47 = vsel %vm107_vm0, %v7351_v12, %v725_v11 }
 0x4c4   :  { %v1078_v40 = vpop.permute.xlu0 %1077 }
 0x4c5   :  { %v1478_v38 = vpop.permute.xlu2 %1477  ;;  %v2487_v19 = vsel %vm2435_vm6, %v2422_v47, %v1078_v40 }
 0x4c8   :  { %2083 = vrot.lane.b32.xlu1 %v9962_v21, %s7505_s18 }
 0x4ca   :  { %v2234_v4 = vpop.permute.xlu1 %2233  ;;  %2285 = vrot.lane.b32.xlu0 %v9966_v30, %s7506_s23 }
 0x4cb   :  { %v2853_v39 = vsel %vm2825_vm12, %v2788_v16, %v2234_v4  ;;  %1879 = vrot.lane.b32.xlu2 %v9863_v55, %s7507_s24 }
 0x4cc   :  { %7254 = vmatmul.msk.f32.gmra.mxu0 %vm2890_vm13, %v2853_v39  ;;  %v1274_v44 = vpop.permute.xlu0 %1273 }
 0x4cd   :  { %v1432_v51 = vpop.permute.xlu2 %1431  ;;  %v2552_v56 = vsel %vm2500_vm7, %v2487_v19, %v1274_v44 }
 0x4ce   :  { %v2617_v11 = vsel %vm2565_vm8, %v2552_v56, %v1478_v38 }
 0x4d0   :  { %730 = vrot.lane.b32.xlu1 %v9706_v58, %s7502_s4  ;;  %v1969_v58 = vsel %vm461_vm1, %v1967_v53, %v1968_v49  ;;  %v305_v53 = vld [vmem:[#allocation2 + $0x1a8] sm:$0x3] }
 0x4d2   :  { %v1032_v45 = vpop.permute.xlu1 %1031  ;;  %1083 = vrot.lane.b32.xlu0 %v9712_v20, %s7500_s30 }
 0x4d3   :  { %1833 = vrot.lane.b32.xlu2 %v303_v22, %s7507_s24 }
 0x4d4   :  { %v1228_v25 = vpop.permute.xlu0 %1227 }
 0x4d5   :  { %v2080_v29 = vpop.permute.xlu2 %2079 }
 0x4d8   :  { %2239 = vrot.lane.b32.xlu1 %v2171_v62, %s7506_s23 }
 0x4da   :  { %v1680_v5 = vpop.permute.xlu1 %1679  ;;  %1279 = vrot.lane.b32.xlu0 %v9861_v27, %s7503_s10 }
 0x4db   :  { %2037 = vrot.lane.b32.xlu2 %v1969_v58, %s7505_s18  ;;  %v2682_v40 = vsel %vm2630_vm9, %v2617_v11, %v1680_v5  ;;  %v1970_v5 = vrot.slane %v305_v53, 1 }
 0x4dc   :  { %v1876_v20 = vpop.permute.xlu0 %1875 }
 0x4dd   :  { %v10000_v41 = vpop.permute.xlu2 %726  ;;  %v2747_v4 = vsel %vm2695_vm10, %v2682_v40, %v1876_v20  ;;  %v1971_v56 = vsel %vm461_vm1, %v1968_v49, %v1970_v5  ;;  %v347_v5 = vld [vmem:[#allocation2 + $0x2f8] sm:$0x3] }
 0x4de   :  { %v2812_v17 = vsel %vm2760_vm11, %v2747_v4, %v2080_v29  ;;  %v2423_v4 = vsel %vm107_vm0, %v9511_v14, %v10000_v41 }
 0x4e0   :  { %1037 = vrot.lane.b32.xlu1 %v9742_v23, %s7500_s30  ;;  %v2464_v23 = vsel %vm2435_vm6, %v2399_v36, %v1032_v45  ;;  %v10037_v45 = vld [vmem:[#allocation2 + $0x2f0] sm:$0xff]  ;;  %v10065_v36 = vld [vmem:[#allocation2 + $0x1b8] sm:$0xff] }
 0x4e1   :  { %v2529_v16 = vsel %vm2500_vm7, %v2464_v23, %v1228_v25  ;;  %v10039_v25 = vpop.f32.mrf.mxu0  ;;  %v961_v62 = vrot.slane %v10037_v45, 2  ;;  %v608_v47 = vrot.slane %v10037_v45, 1  ;;  %v543_v49 = vrot.slane %v10065_v36, 1 }
 0x4e2   :  { %v1634_v1 = vpop.permute.xlu1 %1633  ;;  %1233 = vrot.lane.b32.xlu0 %v9798_v61, %s7503_s10  ;;  %v10019_v61 = vld [vmem:[#allocation2 + $0x2e8] sm:$0xff]  ;;  %v2594_v9 = vsel %vm2565_vm8, %v2529_v16, %v1432_v51 }
 0x4e3   :  { %684 = vrot.lane.b32.xlu2 %v9749_v37, %s7502_s4  ;;  %v2659_v38 = vsel %vm2630_vm9, %v2594_v9, %v1634_v1  ;;  %v960_v29 = vrot.slane %v10019_v61, 2  ;;  %v607_v12 = vrot.slane %v10019_v61, 1 }
 0x4e4   :  { %v1830_v31 = vpop.permute.xlu0 %1829 }
 0x4e5   :  { %v2236_v34 = vpop.permute.xlu2 %2235  ;;  %v2724_v44 = vsel %vm2695_vm10, %v2659_v38, %v1830_v31  ;;  %v10061_v1 = vsel %vm461_vm1, %v607_v12, %v608_v47 }
 0x4e8   :  { %1685 = vrot.lane.b32.xlu1 %v9914_v33, %s7508_s25 }
 0x4ea   :  { %v2282_v37 = vpop.permute.xlu1 %2281  ;;  %1881 = vrot.lane.b32.xlu0 %v10019_v61, %s7507_s24 }
 0x4eb   :  { %v2877_v39 = vsel %vm2825_vm12, %v2812_v17, %v2282_v37  ;;  %1483 = vrot.lane.b32.xlu2 %v9880_v63, %s7504_s17  ;;  %v2172_v37 = vrot.slane %v305_v53, 2 }
 0x4ec   :  { %7278 = vmatmul.msk.f32.gmra.mxu3 %vm2890_vm13, %v2877_v39  ;;  %v2034_v0 = vpop.permute.xlu0 %2033 }
 0x4ed   :  { %v2789_v51 = vsel %vm2760_vm11, %v2724_v44, %v2034_v0  ;;  %v10034_v22 = vpop.permute.xlu2 %1033 }
 0x4ee   :  { %v2854_v54 = vsel %vm2825_vm12, %v2789_v51, %v2236_v34 }
 0x4ef   :  { %7255 = vmatmul.msk.f32.gmra.mxu0 %vm2890_vm13, %v2854_v54  ;;  %v896_v54 = vrot.slane %v10065_v36, 2 }
 0x4f0   :  { %1639 = vrot.lane.b32.xlu1 %v9909_v59, %s7508_s25  ;;  %v10055_v59 = vsel %vm814_vm2, %v960_v29, %v961_v62  ;;  %v7352_v29 = vld [vmem:[#allocation2 + $0x1c8] sm:$0xff] }
 0x4f2   :  { %v1080_v58 = vpop.permute.xlu1 %1079  ;;  %1835 = vrot.lane.b32.xlu0 %v9983_v46, %s7507_s24 }
 0x4f3   :  { %1437 = vrot.lane.b32.xlu2 %v9906_v60, %s7504_s17  ;;  %v10063_v60 = vld [vmem:[#allocation2 + $0x1b0] sm:$0xff]  ;;  %v2488_v38 = vsel %vm2435_vm6, %v2423_v4, %v1080_v58 }
 0x4f4   :  { %v681_v20 = vpop.permute.xlu0 %680  ;;  %v542_v11 = vrot.slane %v10063_v60, 1  ;;  %v895_v51 = vrot.slane %v10063_v60, 2 }
 0x4f5   :  { %v1682_v19 = vpop.permute.xlu2 %1681  ;;  %v2400_v12 = vsel %vm107_vm0, %v9467_v2, %v681_v20 }
 0x4f6   :  { %v544_v40 = vsel %vm461_vm1, %v542_v11, %v543_v49  ;;  %v897_v58 = vsel %vm814_vm2, %v895_v51, %v896_v54  ;;  %v2465_v11 = vsel %vm2435_vm6, %v2400_v12, %v10034_v22 }
 0x4f8   :  { %2287 = vrot.lane.b32.xlu1 %v10055_v59, %s7506_s23 }
 0x4fa   :  { %v1276_v31 = vpop.permute.xlu1 %1275  ;;  %2039 = vrot.lane.b32.xlu0 %v1971_v56, %s7505_s18  ;;  %v610_v56 = vrot.slane %v347_v5, 1 }
 0x4fb   :  { %2085 = vrot.lane.b32.xlu2 %v10061_v1, %s7505_s18  ;;  %v2553_v39 = vsel %vm2500_vm7, %v2488_v38, %v1276_v31  ;;  %v10132_v38 = vpop.f32.mrf.mxu0 }
 0x4fc   :  { %v1480_v34 = vpop.permute.xlu0 %1479 }
 0x4fd   :  { %v1636_v23 = vpop.permute.xlu2 %1635  ;;  %v2618_v44 = vsel %vm2565_vm8, %v2553_v39, %v1480_v34  ;;  %v7353_v39 = vld [vmem:[#allocation2 + $0x1e0] sm:$0xff] }
 0x500   :  { %1085 = vrot.lane.b32.xlu1 %v9814_v15, %s7500_s30  ;;  %v2173_v15 = vsel %vm814_vm2, %v2170_v28, %v2172_v37  ;;  %v10113_v37 = vsel %vm461_vm1, %v608_v47, %v610_v56  ;;  %v101_v47 = vld [vmem:[%s15150_s0 + $0x1d0] sm:$0xff] }
 0x501   :  { %246 = vst.msk [vmem:[#allocation2 + $0x301] sm:$0xff] %vm107_vm0, %v101_v47  ;;  %v7354_v47 = vld [vmem:[#allocation2 + $0x1d0] sm:$0xff] }
 0x502   :  { %v1230_v16 = vpop.permute.xlu1 %1229  ;;  %686 = vrot.lane.b32.xlu0 %v544_v40, %s7502_s4 }
 0x503   :  { %732 = vrot.lane.b32.xlu2 %v9826_v32, %s7502_s4  ;;  %v2683_v32 = vsel %vm2630_vm9, %v2618_v44, %v1682_v19  ;;  %v2530_v40 = vsel %vm2500_vm7, %v2465_v11, %v1230_v16 }
 0x504   :  { %v1434_v9 = vpop.permute.xlu0 %1433 }
 0x505   :  { %v2284_v17 = vpop.permute.xlu2 %2283  ;;  %v2595_v4 = vsel %vm2565_vm8, %v2530_v40, %v1434_v9 }
 0x508   :  { %1281 = vrot.lane.b32.xlu1 %v9863_v55, %s7503_s10  ;;  %v10178_v40 = vld [vmem:[#allocation2 + $0x300] sm:$0xff] }
 0x50a   :  { %v1878_v14 = vpop.permute.xlu1 %1877  ;;  %1485 = vrot.lane.b32.xlu0 %v9962_v21, %s7504_s17 }
 0x50b   :  { %2241 = vrot.lane.b32.xlu2 %v2173_v15, %s7506_s23  ;;  %v2748_v41 = vsel %vm2695_vm10, %v2683_v32, %v1878_v14  ;;  %v963_v14 = vrot.slane %v347_v5, 2 }
 0x50c   :  { %v2082_v0 = vpop.permute.xlu0 %2081 }
 0x50d   :  { %v2813_v53 = vsel %vm2760_vm11, %v2748_v41, %v2082_v0  ;;  %v1082_v46 = vpop.permute.xlu2 %1081  ;;  %v308_v41 = vld [vmem:[#allocation2 + $0x1c0] sm:$0x3]  ;;  %v10146_v0 = vsel %vm814_vm2, %v961_v62, %v963_v14 }
 0x50e   :  { %v2878_v28 = vsel %vm2825_vm12, %v2813_v53, %v2284_v17  ;;  %v545_v51 = vrot.slane %v308_v41, 1 }
 0x50f   :  { %7279 = vmatmul.msk.f32.gmra.mxu3 %vm2890_vm13, %v2878_v28 }
 0x510   :  { %1235 = vrot.lane.b32.xlu1 %v7352_v29, %s7503_s10 }
 0x512   :  { %v1832_v19 = vpop.permute.xlu1 %1831  ;;  %1439 = vrot.lane.b32.xlu0 %v8245_v57, %s7504_s17  ;;  %v2660_v57 = vsel %vm2630_vm9, %v2595_v4, %v1636_v23  ;;  %v102_v23 = vld [vmem:[%s15150_s0 + $0x1d8] sm:$0xff] }
 0x513   :  { %1039 = vrot.lane.b32.xlu2 %v897_v58, %s7500_s30  ;;  %v2725_v20 = vsel %vm2695_vm10, %v2660_v57, %v1832_v19  ;;  %247 = vst.msk [vmem:[#allocation2 + $0x309] sm:$0xff] %vm107_vm0, %v102_v23  ;;  %v965_v23 = vrot.slane %v10178_v40, 2 }
 0x514   :  { %v729_v31 = vpop.permute.xlu0 %728 }
 0x515   :  { %v1278_v34 = vpop.permute.xlu2 %1277  ;;  %v2424_v62 = vsel %vm107_vm0, %v9527_v13, %v729_v31 }
 0x518   :  { %1883 = vrot.lane.b32.xlu1 %v10037_v45, %s7507_s24 }
 0x51a   :  { %v2036_v2 = vpop.permute.xlu1 %2035  ;;  %2087 = vrot.lane.b32.xlu0 %v10113_v37, %s7505_s18  ;;  %v10180_v4 = vld [vmem:[#allocation2 + $0x308] sm:$0xff] }
 0x51b   :  { %1687 = vrot.lane.b32.xlu2 %v9966_v30, %s7508_s25  ;;  %v2790_v22 = vsel %vm2760_vm11, %v2725_v20, %v2036_v2  ;;  %v612_v2 = vrot.slane %v10178_v40, 1  ;;  %v613_v20 = vrot.slane %v10180_v4, 1 }
 0x51c   :  { %v2238_v16 = vpop.permute.xlu0 %2237 }
 0x51d   :  { %v2855_v9 = vsel %vm2825_vm12, %v2790_v22, %v2238_v16  ;;  %v1232_v17 = vpop.permute.xlu2 %1231 }
 0x51e   :  { %7256 = vmatmul.msk.f32.gmra.mxu0 %vm2890_vm13, %v2855_v9  ;;  %v966_v9 = vrot.slane %v10180_v4, 2 }
 0x520   :  { %1837 = vrot.lane.b32.xlu1 %v7353_v39, %s7507_s24 }
 0x522   :  { %v683_v44 = vpop.permute.xlu1 %682  ;;  %734 = vrot.lane.b32.xlu0 %v9880_v63, %s7502_s4 }
 0x523   :  { %1641 = vrot.lane.b32.xlu2 %v8237_v26, %s7508_s25  ;;  %v898_v26 = vrot.slane %v308_v41, 2 }
 0x524   :  { %v1036_v15 = vpop.permute.xlu0 %1035 }
 0x525   :  { %v1880_v32 = vpop.permute.xlu2 %1879  ;;  %v899_v29 = vsel %vm814_vm2, %v896_v54, %v898_v26 }
 0x528   :  { %2041 = vrot.lane.b32.xlu1 %v8267_v10, %s7505_s18  ;;  %v546_v10 = vsel %vm461_vm1, %v543_v49, %v545_v51  ;;  %v10210_v51 = vpop.f32.mrf.mxu0 }
 0x52a   :  { %v1482_v53 = vpop.permute.xlu1 %1481  ;;  %2243 = vrot.lane.b32.xlu0 %v8308_v42, %s7506_s23  ;;  %v2489_v42 = vsel %vm2435_vm6, %v2424_v62, %v1082_v46 }
 0x52b   :  { %2289 = vrot.lane.b32.xlu2 %v10146_v0, %s7506_s23  ;;  %v2554_v19 = vsel %vm2500_vm7, %v2489_v42, %v1278_v34  ;;  %v2401_v34 = vsel %vm107_vm0, %v9622_v6, %v683_v44 }
 0x52c   :  { %v1684_v63 = vpop.permute.xlu0 %1683  ;;  %v2619_v49 = vsel %vm2565_vm8, %v2554_v19, %v1482_v53  ;;  %v2466_v57 = vsel %vm2435_vm6, %v2401_v34, %v1036_v15  ;;  %v10196_v15 = vsel %vm461_vm1, %v612_v2, %v613_v20 }
 0x52d   :  { %v1834_v28 = vpop.permute.xlu2 %1833  ;;  %v2684_v54 = vsel %vm2630_vm9, %v2619_v49, %v1684_v63  ;;  %v2531_v22 = vsel %vm2500_vm7, %v2466_v57, %v1232_v17  ;;  %v103_v63 = vld [vmem:[%s15150_s0 + $0x1e0] sm:$0xff] }
 0x52e   :  { %v2749_v46 = vsel %vm2695_vm10, %v2684_v54, %v1880_v32  ;;  %248 = vst.msk [vmem:[#allocation2 + $0x319] sm:$0xff] %vm107_vm0, %v103_v63 }
 0x530   :  { %688 = vrot.lane.b32.xlu1 %v546_v10, %s7502_s4 }
 0x532   :  { %v1436_v58 = vpop.permute.xlu1 %1435  ;;  %1041 = vrot.lane.b32.xlu0 %v899_v29, %s7500_s30  ;;  %v7355_v29 = vld [vmem:[#allocation2 + $0x1e8] sm:$0xff] }
 0x533   :  { %1087 = vrot.lane.b32.xlu2 %v9914_v33, %s7500_s30  ;;  %v2596_v6 = vsel %vm2565_vm8, %v2531_v22, %v1436_v58 }
 0x534   :  { %v1638_v5 = vpop.permute.xlu0 %1637 }
 0x535   :  { %v2038_v12 = vpop.permute.xlu2 %2037 }
 0x538   :  { %1487 = vrot.lane.b32.xlu1 %v10061_v1, %s7504_s17 }
 0x53a   :  { %v2084_v13 = vpop.permute.xlu1 %2083  ;;  %1689 = vrot.lane.b32.xlu0 %v10055_v59, %s7508_s25 }
 0x53b   :  { %1283 = vrot.lane.b32.xlu2 %v10019_v61, %s7503_s10  ;;  %v2814_v33 = vsel %vm2760_vm11, %v2749_v46, %v2084_v13 }
 0x53c   :  { %v2286_v56 = vpop.permute.xlu0 %2285 }
 0x53d   :  { %v685_v31 = vpop.permute.xlu2 %684  ;;  %v2879_v11 = vsel %vm2825_vm12, %v2814_v33, %v2286_v56 }
 0x53e   :  { %7280 = vmatmul.msk.f32.gmra.mxu3 %vm2890_vm13, %v2879_v11 }
 0x540   :  { %1441 = vrot.lane.b32.xlu1 %v8321_v3, %s7504_s17  ;;  %v2661_v3 = vsel %vm2630_vm9, %v2596_v6, %v1638_v5 }
 0x541   :  { %v2726_v17 = vsel %vm2695_vm10, %v2661_v3, %v1834_v28  ;;  %v104_v28 = vld [vmem:[%s15150_s0 + $0x1e8] sm:$0xff] }
 0x542   :  { %v731_v16 = vpop.permute.xlu1 %730  ;;  %1643 = vrot.lane.b32.xlu0 %v8373_v48, %s7508_s25  ;;  %v10200_v48 = vsel %vm814_vm2, %v965_v23, %v966_v9  ;;  %v2791_v14 = vsel %vm2760_vm11, %v2726_v17, %v2038_v12  ;;  %249 = vst.msk [vmem:[#allocation2 + $0x321] sm:$0xff] %vm107_vm0, %v104_v28  ;;  %v105_v28 = vld [vmem:[%s15150_s0 + $0x1f0] sm:$0xff] }
 0x543   :  { %1237 = vrot.lane.b32.xlu2 %v7354_v47, %s7503_s10  ;;  %v2425_v49 = vsel %vm107_vm0, %v9685_v18, %v731_v16  ;;  %250 = vst.msk [vmem:[#allocation2 + $0x331] sm:$0xff] %vm107_vm0, %v105_v28 }
 0x544   :  { %v1084_v39 = vpop.permute.xlu0 %1083 }
 0x545   :  { %v1484_v44 = vpop.permute.xlu2 %1483 }
 0x548   :  { %2089 = vrot.lane.b32.xlu1 %v10196_v15, %s7505_s18 }
 0x549   :  { %v10278_v17 = vld [vmem:[#allocation2 + $0x320] sm:$0xff] }
 0x54a   :  { %v2240_v32 = vpop.permute.xlu1 %2239  ;;  %2291 = vrot.lane.b32.xlu0 %v10200_v48, %s7506_s23 }
 0x54b   :  { %v2856_v41 = vsel %vm2825_vm12, %v2791_v14, %v2240_v32  ;;  %1885 = vrot.lane.b32.xlu2 %v10178_v40, %s7507_s24 }
 0x54c   :  { %7257 = vmatmul.msk.f32.gmra.mxu0 %vm2890_vm13, %v2856_v41  ;;  %v1280_v53 = vpop.permute.xlu0 %1279  ;;  %v971_v41 = vrot.slane %v10278_v17, 2 }
 0x54d   :  { %v1438_v26 = vpop.permute.xlu2 %1437 }
 0x550   :  { %736 = vrot.lane.b32.xlu1 %v9962_v21, %s7502_s4  ;;  %v350_v21 = vld [vmem:[#allocation2 + $0x310] sm:$0x3] }
 0x551   :  { %v615_v5 = vrot.slane %v350_v21, 1  ;;  %v968_v54 = vrot.slane %v350_v21, 2 }
 0x552   :  { %v1038_v10 = vpop.permute.xlu1 %1037  ;;  %1089 = vrot.lane.b32.xlu0 %v9966_v30, %s7500_s30 }
 0x553   :  { %1839 = vrot.lane.b32.xlu2 %v7355_v29, %s7507_s24  ;;  %v10235_v30 = vsel %vm461_vm1, %v613_v20, %v615_v5  ;;  %v10251_v11 = vsel %vm814_vm2, %v966_v9, %v968_v54 }
 0x554   :  { %v1234_v62 = vpop.permute.xlu0 %1233 }
 0x555   :  { %v2086_v58 = vpop.permute.xlu2 %2085 }
 0x558   :  { %2245 = vrot.lane.b32.xlu1 %v8387_v50, %s7506_s23  ;;  %v2490_v50 = vsel %vm2435_vm6, %v2425_v49, %v1084_v39 }
 0x559   :  { %v2555_v13 = vsel %vm2500_vm7, %v2490_v50, %v1280_v53 }
 0x55a   :  { %v1686_v42 = vpop.permute.xlu1 %1685  ;;  %1489 = vrot.lane.b32.xlu0 %v10113_v37, %s7504_s17  ;;  %v2620_v18 = vsel %vm2565_vm8, %v2555_v13, %v1484_v44  ;;  %v10276_v44 = vld [vmem:[#allocation2 + $0x318] sm:$0xff] }
 0x55b   :  { %2043 = vrot.lane.b32.xlu2 %v8382_v43, %s7505_s18  ;;  %v2402_v43 = vsel %vm107_vm0, %v9627_v52, %v685_v31  ;;  %v2685_v57 = vsel %vm2630_vm9, %v2620_v18, %v1686_v42  ;;  %v970_v32 = vrot.slane %v10276_v44, 2 }
 0x55c   :  { %v1882_v12 = vpop.permute.xlu0 %1881  ;;  %v2467_v34 = vsel %vm2435_vm6, %v2402_v43, %v1038_v10  ;;  %v106_v10 = vld [vmem:[%s15150_s0 + $0x1f8] sm:$0xff] }
 0x55d   :  { %v10232_v19 = vpop.permute.xlu2 %732  ;;  %v2532_v2 = vsel %vm2500_vm7, %v2467_v34, %v1234_v62  ;;  %v2750_v20 = vsel %vm2695_vm10, %v2685_v57, %v1882_v12  ;;  %v10287_v63 = vsel %vm814_vm2, %v970_v32, %v971_v41  ;;  %251 = vst.msk [vmem:[#allocation2 + $0x339] sm:$0xff] %vm107_vm0, %v106_v10  ;;  %v618_v62 = vrot.slane %v10278_v17, 1  ;;  %v7356_v12 = vld [vmem:[#allocation2 + $0x2c0] sm:$0xff] }
 0x55e   :  { %v2597_v52 = vsel %vm2565_vm8, %v2532_v2, %v1438_v26  ;;  %v2815_v22 = vsel %vm2760_vm11, %v2750_v20, %v2086_v58  ;;  %v617_v58 = vrot.slane %v10276_v44, 1  ;;  %v2426_v49 = vsel %vm107_vm0, %v7356_v12, %v10232_v19 }
 0x560   :  { %1691 = vrot.lane.b32.xlu1 %v10146_v0, %s7508_s25  ;;  %v10308_v42 = vsel %vm461_vm1, %v617_v58, %v618_v62 }
 0x562   :  { %v1640_v46 = vpop.permute.xlu1 %1639  ;;  %2091 = vrot.lane.b32.xlu0 %v10235_v30, %s7505_s18 }
 0x563   :  { %1285 = vrot.lane.b32.xlu2 %v10037_v45, %s7503_s10  ;;  %v2662_v16 = vsel %vm2630_vm9, %v2597_v52, %v1640_v46  ;;  %v353_v46 = vld [vmem:[#allocation2 + $0x328] sm:$0x3] }
 0x564   :  { %v1836_v33 = vpop.permute.xlu0 %1835 }
 0x565   :  { %v2242_v56 = vpop.permute.xlu2 %2241  ;;  %v2727_v47 = vsel %vm2695_vm10, %v2662_v16, %v1836_v33  ;;  %v620_v33 = vrot.slane %v353_v46, 1  ;;  %v973_v16 = vrot.slane %v353_v46, 2 }
 0x567   :  { %v10329_v20 = vsel %vm461_vm1, %v618_v62, %v620_v33 }
 0x568   :  { %2293 = vrot.lane.b32.xlu1 %v10251_v11, %s7506_s23 }
 0x56a   :  { %v2288_v31 = vpop.permute.xlu1 %2287  ;;  %1091 = vrot.lane.b32.xlu0 %v10055_v59, %s7500_s30  ;;  %v10271_v59 = vpop.f32.mrf.mxu0 }
 0x56b   :  { %v2880_v6 = vsel %vm2825_vm12, %v2815_v22, %v2288_v31  ;;  %1887 = vrot.lane.b32.xlu2 %v10180_v4, %s7507_s24 }
 0x56c   :  { %7281 = vmatmul.msk.f32.gmra.mxu3 %vm2890_vm13, %v2880_v6  ;;  %v2040_v23 = vpop.permute.xlu0 %2039 }
 0x56d   :  { %v2792_v9 = vsel %vm2760_vm11, %v2727_v47, %v2040_v23  ;;  %v1040_v3 = vpop.permute.xlu2 %1039 }
 0x56e   :  { %v2857_v39 = vsel %vm2825_vm12, %v2792_v9, %v2242_v56 }
 0x56f   :  { %7258 = vmatmul.msk.f32.gmra.mxu0 %vm2890_vm13, %v2857_v39  ;;  %v10348_v39 = vld [vmem:[#allocation2 + $0x338] sm:$0xff] }
 0x570   :  { %1287 = vrot.lane.b32.xlu1 %v10178_v40, %s7503_s10  ;;  %v1573_v58 = vrot.slane %v10348_v39, 2 }
 0x572   :  { %v1086_v14 = vpop.permute.xlu1 %1085  ;;  %1693 = vrot.lane.b32.xlu0 %v10200_v48, %s7508_s25 }
 0x573   :  { %738 = vrot.lane.b32.xlu2 %v10061_v1, %s7502_s4  ;;  %v2491_v13 = vsel %vm2435_vm6, %v2426_v49, %v1086_v14 }
 0x574   :  { %v687_v53 = vpop.permute.xlu0 %686 }
 0x575   :  { %v1688_v26 = vpop.permute.xlu2 %1687  ;;  %v2403_v31 = vsel %vm107_vm0, %v10063_v60, %v687_v53  ;;  %v10346_v60 = vld [vmem:[#allocation2 + $0x330] sm:$0xff] }
 0x576   :  { %v2468_v6 = vsel %vm2435_vm6, %v2403_v31, %v1040_v3  ;;  %v1370_v53 = vrot.slane %v10346_v60, 1  ;;  %v1572_v62 = vrot.slane %v10346_v60, 2 }
 0x578   :  { %1889 = vrot.lane.b32.xlu1 %v10276_v44, %s7507_s24  ;;  %v10375_v49 = vsel %vm814_vm2, %v1572_v62, %v1573_v58 }
 0x57a   :  { %v1282_v29 = vpop.permute.xlu1 %1281  ;;  %2295 = vrot.lane.b32.xlu0 %v10287_v63, %s7506_s23 }
 0x57b   :  { %1491 = vrot.lane.b32.xlu2 %v10196_v15, %s7504_s17 }
 0x57c   :  { %v1486_v1 = vpop.permute.xlu0 %1485 }
 0x57d   :  { %v1642_v21 = vpop.permute.xlu2 %1641 }
 0x580   :  { %740 = vrot.lane.b32.xlu1 %v10113_v37, %s7502_s4  ;;  %v2556_v37 = vsel %vm2500_vm7, %v2491_v13, %v1282_v29  ;;  %v10363_v29 = vpop.f32.mrf.mxu0 }
 0x581   :  { %v2621_v43 = vsel %vm2565_vm8, %v2556_v37, %v1486_v1 }
 0x582   :  { %v1236_v5 = vpop.permute.xlu1 %1235  ;;  %1289 = vrot.lane.b32.xlu0 %v10180_v4, %s7503_s10  ;;  %v2686_v19 = vsel %vm2630_vm9, %v2621_v43, %v1688_v26  ;;  %v1371_v26 = vrot.slane %v10348_v39, 1  ;;  %v356_v43 = vld [vmem:[#allocation2 + $0x340] sm:$0x3] }
 0x583   :  { %2093 = vrot.lane.b32.xlu2 %v10308_v42, %s7505_s18  ;;  %v2533_v23 = vsel %vm2500_vm7, %v2468_v6, %v1236_v5 }
 0x584   :  { %v1440_v50 = vpop.permute.xlu0 %1439  ;;  %v1372_v1 = vsel %vm461_vm1, %v1370_v53, %v1371_v26 }
 0x585   :  { %v2290_v54 = vpop.permute.xlu2 %2289  ;;  %v2598_v9 = vsel %vm2565_vm8, %v2533_v23, %v1440_v50 }
 0x586   :  { %v2663_v14 = vsel %vm2630_vm9, %v2598_v9, %v1642_v21 }
 0x588   :  { %1493 = vrot.lane.b32.xlu1 %v10235_v30, %s7504_s17  ;;  %v10383_v13 = vpop.f32.mrf.mxu0 }
 0x58a   :  { %v1884_v18 = vpop.permute.xlu1 %1883  ;;  %1891 = vrot.lane.b32.xlu0 %v10278_v17, %s7507_s24 }
 0x58b   :  { %1093 = vrot.lane.b32.xlu2 %v10146_v0, %s7500_s30  ;;  %v2751_v56 = vsel %vm2695_vm10, %v2686_v19, %v1884_v18  ;;  %v1575_v18 = vrot.slane %v356_v43, 2 }
 0x58c   :  { %v2088_v34 = vpop.permute.xlu0 %2087 }
 0x58d   :  { %v2816_v57 = vsel %vm2760_vm11, %v2751_v56, %v2088_v34  ;;  %v1088_v2 = vpop.permute.xlu2 %1087 }
 0x58e   :  { %v2881_v52 = vsel %vm2825_vm12, %v2816_v57, %v2290_v54 }
 0x58f   :  { %7282 = vmatmul.msk.f32.gmra.mxu3 %vm2890_vm13, %v2881_v52  ;;  %v10399_v52 = vsel %vm814_vm2, %v1573_v58, %v1575_v18  ;;  %v357_v58 = vld [vmem:[#allocation2 + $0x348] sm:$0xff] }
 0x590   :  { %2095 = vrot.lane.b32.xlu1 %v10329_v20, %s7505_s18  ;;  %v10394_v56 = vpop.f32.mrf.mxu0 }
 0x592   :  { %v1838_v0 = vpop.permute.xlu1 %1837  ;;  %742 = vrot.lane.b32.xlu0 %v10196_v15, %s7502_s4  ;;  %v10351_v15 = vsel %vm814_vm2, %v971_v41, %v973_v16  ;;  %v1373_v16 = vrot.slane %v356_v43, 1 }
 0x593   :  { %1695 = vrot.lane.b32.xlu2 %v10251_v11, %s7508_s25  ;;  %v2728_v3 = vsel %vm2695_vm10, %v2663_v14, %v1838_v0 }
 0x594   :  { %v735_v22 = vpop.permute.xlu0 %734 }
 0x595   :  { %v1284_v47 = vpop.permute.xlu2 %1283  ;;  %v2427_v37 = vsel %vm107_vm0, %v9861_v27, %v735_v22 }
 0x598   :  { %1095 = vrot.lane.b32.xlu1 %v10200_v48, %s7500_s30  ;;  %v10410_v6 = vpop.f32.mrf.mxu0 }
 0x59a   :  { %v2042_v32 = vpop.permute.xlu1 %2041  ;;  %1495 = vrot.lane.b32.xlu0 %v10308_v42, %s7504_s17 }
 0x59b   :  { %2297 = vrot.lane.b32.xlu2 %v10351_v15, %s7506_s23  ;;  %v2793_v48 = vsel %vm2760_vm11, %v2728_v3, %v2042_v32  ;;  %v1374_v32 = vsel %vm461_vm1, %v1371_v26, %v1373_v16 }
 0x59c   :  { %v2244_v28 = vpop.permute.xlu0 %2243 }
 0x59d   :  { %v2858_v41 = vsel %vm2825_vm12, %v2793_v48, %v2244_v28  ;;  %v1238_v10 = vpop.permute.xlu2 %1237 }
 0x59e   :  { %7259 = vmatmul.msk.f32.gmra.mxu0 %vm2890_vm13, %v2858_v41 }
 0x5a0   :  { %1697 = vrot.lane.b32.xlu1 %v10287_v63, %s7508_s25  ;;  %v10426_v41 = vpop.f32.mrf.mxu0 }
 0x5a2   :  { %v689_v21 = vpop.permute.xlu1 %688  ;;  %2097 = vrot.lane.b32.xlu0 %v1372_v1, %s7505_s18 }
 0x5a3   :  { %1291 = vrot.lane.b32.xlu2 %v10276_v44, %s7503_s10  ;;  %v2404_v9 = vsel %vm107_vm0, %v10065_v36, %v689_v21 }
 0x5a4   :  { %v1042_v5 = vpop.permute.xlu0 %1041 }
 0x5a5   :  { %v1886_v12 = vpop.permute.xlu2 %1885  ;;  %v2469_v14 = vsel %vm2435_vm6, %v2404_v9, %v1042_v5 }
 0x5a6   :  { %v2534_v3 = vsel %vm2500_vm7, %v2469_v14, %v1238_v10  ;;  %v1972_v10 = vrot.slane %v357_v58, 1 }
 0x5a8   :  { %2299 = vrot.lane.b32.xlu1 %v10375_v49, %s7506_s23 }
 0x5aa   :  { %v1488_v50 = vpop.permute.xlu1 %1487  ;;  %1097 = vrot.lane.b32.xlu0 %v10251_v11, %s7500_s30  ;;  %v2492_v11 = vsel %vm2435_vm6, %v2427_v37, %v1088_v2 }
 0x5ab   :  { %1893 = vrot.lane.b32.xlu2 %v10346_v60, %s7507_s24  ;;  %v2557_v27 = vsel %vm2500_vm7, %v2492_v11, %v1284_v47  ;;  %v2174_v11 = vrot.slane %v357_v58, 2 }
 0x5ac   :  { %v1690_v54 = vpop.permute.xlu0 %1689  ;;  %v2622_v57 = vsel %vm2565_vm8, %v2557_v27, %v1488_v50 }
 0x5ad   :  { %v1840_v46 = vpop.permute.xlu2 %1839  ;;  %v2687_v31 = vsel %vm2630_vm9, %v2622_v57, %v1690_v54  ;;  %v10436_v54 = vpop.f32.mrf.mxu0 }
 0x5ae   :  { %15460 = vst [vmem:[#allocation10_spill] sm:$0xff] %v10436_v54 }
 0x5b0   :  { %1293 = vrot.lane.b32.xlu1 %v10278_v17, %s7503_s10 }
 0x5b2   :  { %v1442_v33 = vpop.permute.xlu1 %1441  ;;  %1699 = vrot.lane.b32.xlu0 %v10351_v15, %s7508_s25 }
 0x5b3   :  { %744 = vrot.lane.b32.xlu2 %v10235_v30, %s7502_s4  ;;  %v2752_v30 = vsel %vm2695_vm10, %v2687_v31, %v1886_v12  ;;  %v2599_v48 = vsel %vm2565_vm8, %v2534_v3, %v1442_v33  ;;  %v359_v31 = vld [vmem:[#allocation2 + $0x358] sm:$0x3] }
 0x5b4   :  { %v1644_v19 = vpop.permute.xlu0 %1643  ;;  %v2177_v14 = vrot.slane %v359_v31, 2 }
 0x5b5   :  { %v2044_v34 = vpop.permute.xlu2 %2043  ;;  %v2664_v36 = vsel %vm2630_vm9, %v2599_v48, %v1644_v19 }
 0x5b6   :  { %v2729_v26 = vsel %vm2695_vm10, %v2664_v36, %v1840_v46 }
 0x5b8   :  { %1895 = vrot.lane.b32.xlu1 %v10348_v39, %s7507_s24 }
 0x5ba   :  { %v2090_v2 = vpop.permute.xlu1 %2089  ;;  %2301 = vrot.lane.b32.xlu0 %v10399_v52, %s7506_s23 }
 0x5bb   :  { %1497 = vrot.lane.b32.xlu2 %v10329_v20, %s7504_s17  ;;  %v2817_v0 = vsel %vm2760_vm11, %v2752_v30, %v2090_v2 }
 0x5bc   :  { %v2292_v22 = vpop.permute.xlu0 %2291 }
 0x5bd   :  { %v2882_v47 = vsel %vm2825_vm12, %v2817_v0, %v2292_v22  ;;  %v1286_v23 = vpop.permute.xlu2 %1285  ;;  %v1975_v22 = vrot.slane %v359_v31, 1 }
 0x5be   :  { %7283 = vmatmul.msk.f32.gmra.mxu3 %vm2890_vm13, %v2882_v47 }
 0x5c0   :  { %746 = vrot.lane.b32.xlu1 %v10308_v42, %s7502_s4  ;;  %v358_v42 = vld [vmem:[#allocation2 + $0x350] sm:$0xff] }
 0x5c1   :  { %v1973_v21 = vrot.slane %v358_v42, 1  ;;  %v2175_v19 = vrot.slane %v358_v42, 2 }
 0x5c2   :  { %v737_v53 = vpop.permute.xlu1 %736  ;;  %1295 = vrot.lane.b32.xlu0 %v10346_v60, %s7503_s10  ;;  %v2794_v60 = vsel %vm2760_vm11, %v2729_v26, %v2044_v34  ;;  %v10448_v34 = vpop.f32.mrf.mxu0 }
 0x5c3   :  { %2099 = vrot.lane.b32.xlu2 %v1374_v32, %s7505_s18  ;;  %v1974_v46 = vsel %vm461_vm1, %v1972_v10, %v1973_v21  ;;  %v2428_v37 = vsel %vm107_vm0, %v9863_v55, %v737_v53  ;;  %15461 = vst [vmem:[#allocation11_spill] sm:$0xff] %v10448_v34  ;;  %v2178_v36 = vsel %vm814_vm2, %v2175_v19, %v2177_v14 }
 0x5c4   :  { %v1090_v28 = vpop.permute.xlu0 %1089 }
 0x5c5   :  { %v1888_v62 = vpop.permute.xlu2 %1887  ;;  %v2493_v43 = vsel %vm2435_vm6, %v2428_v37, %v1090_v28 }
 0x5c8   :  { %1499 = vrot.lane.b32.xlu1 %v1372_v1, %s7504_s17 }
 0x5ca   :  { %v2246_v5 = vpop.permute.xlu1 %2245  ;;  %1897 = vrot.lane.b32.xlu0 %v357_v58, %s7507_s24  ;;  %v10461_v47 = vpop.f32.mrf.mxu0 }
 0x5cb   :  { %v2859_v12 = vsel %vm2825_vm12, %v2794_v60, %v2246_v5  ;;  %1099 = vrot.lane.b32.xlu2 %v10287_v63, %s7500_s30  ;;  %v2558_v63 = vsel %vm2500_vm7, %v2493_v43, %v1286_v23  ;;  %15462 = vst [vmem:[#allocation12_spill] sm:$0xff] %v10461_v47  ;;  %v1976_v23 = vsel %vm461_vm1, %v1973_v21, %v1975_v22 }
 0x5cc   :  { %7260 = vmatmul.msk.f32.gmra.mxu0 %vm2890_vm13, %v2859_v12  ;;  %v1490_v50 = vpop.permute.xlu0 %1489  ;;  %v10485_v12 = vpop.f32.mrf.mxu3 }
 0x5cd   :  { %v739_v1 = vpop.permute.xlu2 %738  ;;  %v2623_v55 = vsel %vm2565_vm8, %v2558_v63, %v1490_v50  ;;  %15465 = vst [vmem:[#allocation15_spill] sm:$0xff] %v10485_v12 }
 0x5ce   :  { %v2429_v9 = vsel %vm107_vm0, %v10019_v61, %v739_v1 }
 0x5d0   :  { %2101 = vrot.lane.b32.xlu1 %v1974_v46, %s7505_s18 }
 0x5d2   :  { %v1692_v33 = vpop.permute.xlu1 %1691  ;;  %748 = vrot.lane.b32.xlu0 %v10329_v20, %s7502_s4  ;;  %v2176_v20 = vsel %vm814_vm2, %v2174_v11, %v2175_v19  ;;  %v10472_v48 = vpop.f32.mrf.mxu0 }
 0x5d3   :  { %1701 = vrot.lane.b32.xlu2 %v10375_v49, %s7508_s25  ;;  %v2688_v57 = vsel %vm2630_vm9, %v2623_v55, %v1692_v33  ;;  %15463 = vst [vmem:[#allocation13_spill] sm:$0xff] %v10472_v48 }
 0x5d4   :  { %v2092_v18 = vpop.permute.xlu0 %2091  ;;  %v2753_v49 = vsel %vm2695_vm10, %v2688_v57, %v1888_v62 }
 0x5d5   :  { %v1492_v27 = vpop.permute.xlu2 %1491  ;;  %v2818_v2 = vsel %vm2760_vm11, %v2753_v49, %v2092_v18 }
 0x5d8   :  { %1101 = vrot.lane.b32.xlu1 %v10351_v15, %s7500_s30 }
 0x5da   :  { %v2294_v30 = vpop.permute.xlu1 %2293  ;;  %1501 = vrot.lane.b32.xlu0 %v1374_v32, %s7504_s17  ;;  %v10482_v21 = vpop.f32.mrf.mxu0 }
 0x5db   :  { %v2883_v0 = vsel %vm2825_vm12, %v2818_v2, %v2294_v30  ;;  %2303 = vrot.lane.b32.xlu2 %v2176_v20, %s7506_s23  ;;  %15464 = vst [vmem:[#allocation14_spill] sm:$0xff] %v10482_v21 }
 0x5dc   :  { %7284 = vmatmul.msk.f32.gmra.mxu3 %vm2890_vm13, %v2883_v0  ;;  %v1092_v16 = vpop.permute.xlu0 %1091 }
 0x5dd   :  { %v2094_v15 = vpop.permute.xlu2 %2093  ;;  %v2494_v3 = vsel %vm2435_vm6, %v2429_v9, %v1092_v16 }
 0x5e0   :  { %1703 = vrot.lane.b32.xlu1 %v10399_v52, %s7508_s25 }
 0x5e2   :  { %v1288_v32 = vpop.permute.xlu1 %1287  ;;  %2103 = vrot.lane.b32.xlu0 %v1976_v23, %s7505_s18  ;;  %v10488_v1 = vpop.f32.mrf.mxu0 }
 0x5e3   :  { %1297 = vrot.lane.b32.xlu2 %v10348_v39, %s7503_s10  ;;  %v2559_v61 = vsel %vm2500_vm7, %v2494_v3, %v1288_v32  ;;  %15466 = vst [vmem:[#allocation16_spill] sm:$0xff] %v10488_v1 }
 0x5e4   :  { %v1694_v53 = vpop.permute.xlu0 %1693  ;;  %v2624_v52 = vsel %vm2565_vm8, %v2559_v61, %v1492_v27  ;;  %v10497_v27 = vpop.f32.mrf.mxu3 }
 0x5e5   :  { %v1094_v28 = vpop.permute.xlu2 %1093  ;;  %v2689_v62 = vsel %vm2630_vm9, %v2624_v52, %v1694_v53 }
 0x5e8   :  { %2305 = vrot.lane.b32.xlu1 %v2178_v36, %s7506_s23 }
 0x5ea   :  { %v1890_v58 = vpop.permute.xlu1 %1889  ;;  %v10493_v11 = vpop.f32.mrf.mxu0 }
 0x5eb   :  { %v2754_v26 = vsel %vm2695_vm10, %v2689_v62, %v1890_v58  ;;  %1899 = vrot.lane.b32.xlu2 %v358_v42, %s7507_s24  ;;  %15467 = vst [vmem:[#allocation17_spill] sm:$0xff] %v10493_v11 }
 0x5ec   :  { %v2819_v39 = vsel %vm2760_vm11, %v2754_v26, %v2094_v15  ;;  %v2296_v10 = vpop.permute.xlu0 %2295  ;;  %v10506_v22 = vpop.f32.mrf.mxu3 }
 0x5ed   :  { %v2884_v60 = vsel %vm2825_vm12, %v2819_v39, %v2296_v10  ;;  %v1696_v5 = vpop.permute.xlu2 %1695 }
 0x5ee   :  { %7285 = vmatmul.msk.f32.gmra.mxu3 %vm2890_vm13, %v2884_v60 }
 0x5f2   :  { %v741_v50 = vpop.permute.xlu1 %740  ;;  %v10503_v30 = vpop.f32.mrf.mxu0 }
 0x5f3   :  { %v2430_v42 = vsel %vm107_vm0, %v10037_v45, %v741_v50  ;;  %15468 = vst [vmem:[#allocation18_spill] sm:$0xff] %v10503_v30 }
 0x5f4   :  { %v1290_v46 = vpop.permute.xlu0 %1289  ;;  %v2495_v33 = vsel %vm2435_vm6, %v2430_v42, %v1094_v28  ;;  %v10512_v14 = vpop.f32.mrf.mxu3 }
 0x5f5   :  { %v2298_v37 = vpop.permute.xlu2 %2297  ;;  %v2560_v18 = vsel %vm2500_vm7, %v2495_v33, %v1290_v46 }
 0x5fa   :  { %v1494_v43 = vpop.permute.xlu1 %1493  ;;  %v10508_v23 = vpop.f32.mrf.mxu0 }
 0x5fb   :  { %v2625_v55 = vsel %vm2565_vm8, %v2560_v18, %v1494_v43  ;;  %15469 = vst [vmem:[#allocation19_spill] sm:$0xff] %v10508_v23 }
 0x5fc   :  { %v1892_v63 = vpop.permute.xlu0 %1891  ;;  %v2690_v57 = vsel %vm2630_vm9, %v2625_v55, %v1696_v5  ;;  %v10520_v58 = vpop.f32.mrf.mxu3 }
 0x5fd   :  { %v1292_v19 = vpop.permute.xlu2 %1291  ;;  %v2755_v31 = vsel %vm2695_vm10, %v2690_v57, %v1892_v63 }
 0x602   :  { %v2096_v20 = vpop.permute.xlu1 %2095  ;;  %v10516_v61 = vpop.f32.mrf.mxu0 }
 0x603   :  { %v2820_v45 = vsel %vm2760_vm11, %v2755_v31, %v2096_v20  ;;  %15470 = vst [vmem:[#allocation20_spill] sm:$0xff] %v10516_v61 }
 0x604   :  { %v2885_v49 = vsel %vm2825_vm12, %v2820_v45, %v2298_v37  ;;  %v743_v2 = vpop.permute.xlu0 %742  ;;  %v10528_v46 = vpop.f32.mrf.mxu3 }
 0x605   :  { %7286 = vmatmul.msk.f32.gmra.mxu3 %vm2890_vm13, %v2885_v49  ;;  %v1894_v0 = vpop.permute.xlu2 %1893  ;;  %v2431_v9 = vsel %vm107_vm0, %v10178_v40, %v743_v2 }
 0x60a   :  { %v1096_v16 = vpop.permute.xlu1 %1095  ;;  %v10526_v50 = vpop.f32.mrf.mxu0 }
 0x60b   :  { %v2496_v3 = vsel %vm2435_vm6, %v2431_v9, %v1096_v16  ;;  %15471 = vst [vmem:[#allocation21_spill] sm:$0xff] %v10526_v50  ;;  %v3368_v9 = vmul.f32 %v9788_v35, %v9788_v35 }
 0x60c   :  { %v1496_v15 = vpop.permute.xlu0 %1495  ;;  %v2561_v36 = vsel %vm2500_vm7, %v2496_v3, %v1292_v19  ;;  %v10536_v55 = vpop.f32.mrf.mxu3  ;;  %v3298_v3 = vadd.f32 %v9788_v35, %v9725_v7 }
 0x60d   :  { %v745_v32 = vpop.permute.xlu2 %744  ;;  %v2626_v52 = vsel %vm2565_vm8, %v2561_v36, %v1496_v15 }
 0x60e   :  { %v2432_v37 = vsel %vm107_vm0, %v10180_v4, %v745_v32  ;;  %v3367_v32 = vmul.f32 %v9725_v7, %v9725_v7 }
 0x612   :  { %v1698_v53 = vpop.permute.xlu1 %1697  ;;  %v10533_v18 = vpop.f32.mrf.mxu0 }
 0x613   :  { %v2691_v62 = vsel %vm2630_vm9, %v2626_v52, %v1698_v53  ;;  %15472 = vst [vmem:[#allocation22_spill] sm:$0xff] %v10533_v18  ;;  %v3369_v53 = vmul.f32 %v9892_v24, %v9892_v24  ;;  %v3299_v52 = vadd.f32 %v3298_v3, %v9892_v24 }
 0x614   :  { %v2098_v28 = vpop.permute.xlu0 %2097  ;;  %v2756_v26 = vsel %vm2695_vm10, %v2691_v62, %v1894_v0  ;;  %v10546_v15 = vpop.f32.mrf.mxu3  ;;  %v3370_v62 = vmul.f32 %v9976_v8, %v9976_v8 }
 0x615   :  { %v1498_v40 = vpop.permute.xlu2 %1497  ;;  %v2821_v39 = vsel %vm2760_vm11, %v2756_v26, %v2098_v28  ;;  %v3431_v28 = vadd.f32 %v3368_v9, %v3367_v32 }
 0x61a   :  { %v2300_v10 = vpop.permute.xlu1 %2299  ;;  %v10542_v2 = vpop.f32.mrf.mxu0 }
 0x61b   :  { %v2886_v60 = vsel %vm2825_vm12, %v2821_v39, %v2300_v10  ;;  %15473 = vst [vmem:[#allocation23_spill] sm:$0xff] %v10542_v2  ;;  %v3432_v39 = vadd.f32 %v3431_v28, %v3369_v53  ;;  %v3300_v10 = vadd.f32 %v3299_v52, %v9976_v8 }
 0x61c   :  { %7287 = vmatmul.msk.f32.gmra.mxu3 %vm2890_vm13, %v2886_v60  ;;  %v1098_v5 = vpop.permute.xlu0 %1097  ;;  %v3371_v60 = vmul.f32 %v10039_v25, %v10039_v25 }
 0x61d   :  { %v2497_v43 = vsel %vm2435_vm6, %v2432_v37, %v1098_v5  ;;  %v2100_v33 = vpop.permute.xlu2 %2099  ;;  %v10564_v5 = vpop.f32.mrf.mxu3 }
 0x622   :  { %v1294_v42 = vpop.permute.xlu1 %1293 }
 0x623   :  { %v2562_v19 = vsel %vm2500_vm7, %v2497_v43, %v1294_v42  ;;  %v3433_v42 = vadd.f32 %v3432_v39, %v3370_v62  ;;  %v3301_v43 = vadd.f32 %v3300_v10, %v10039_v25 }
 0x624   :  { %v1700_v63 = vpop.permute.xlu0 %1699  ;;  %v2627_v57 = vsel %vm2565_vm8, %v2562_v19, %v1498_v40  ;;  %v10559_v40 = vpop.f32.mrf.mxu0 }
 0x625   :  { %v2692_v31 = vsel %vm2630_vm9, %v2627_v57, %v1700_v63  ;;  %v1100_v16 = vpop.permute.xlu2 %1099  ;;  %15474 = vst [vmem:[#allocation24_spill] sm:$0xff] %v10559_v40  ;;  %v3434_v19 = vadd.f32 %v3433_v42, %v3371_v60  ;;  %v3302_v57 = vadd.f32 %v3301_v43, %v10132_v38  ;;  %v10585_v52 = vpop.f32.mrf.mxu3  ;;  %v3377_v43 = vmul.f32 %v10394_v56, %v10394_v56 }
 0x62a   :  { %v1896_v20 = vpop.permute.xlu1 %1895 }
 0x62b   :  { %v2757_v45 = vsel %vm2695_vm10, %v2692_v31, %v1896_v20  ;;  %v3373_v31 = vmul.f32 %v10210_v51, %v10210_v51 }
 0x62c   :  { %v2822_v4 = vsel %vm2760_vm11, %v2757_v45, %v2100_v33  ;;  %v2302_v49 = vpop.permute.xlu0 %2301  ;;  %v3372_v33 = vmul.f32 %v10132_v38, %v10132_v38  ;;  %v10578_v32 = vpop.f32.mrf.mxu0 }
 0x62d   :  { %v2887_v0 = vsel %vm2825_vm12, %v2822_v4, %v2302_v49  ;;  %v1702_v37 = vpop.permute.xlu2 %1701  ;;  %v3303_v4 = vadd.f32 %v3302_v57, %v10210_v51  ;;  %v3374_v49 = vmul.f32 %v10271_v59, %v10271_v59  ;;  %15475 = vst [vmem:[#allocation25_spill] sm:$0xff] %v10578_v32 }
 0x62e   :  { %7288 = vmatmul.msk.f32.gmra.mxu3 %vm2890_vm13, %v2887_v0  ;;  %v3435_v45 = vadd.f32 %v3434_v19, %v3372_v33 }
 0x62f   :  { %v3304_v53 = vadd.f32 %v3303_v4, %v10271_v59 }
 0x630   :  { %v3436_v3 = vadd.f32 %v3435_v45, %v3373_v31 }
 0x631   :  { %v3305_v39 = vadd.f32 %v3304_v53, %v10363_v29 }
 0x632   :  { %v747_v36 = vpop.permute.xlu1 %746  ;;  %v3437_v62 = vadd.f32 %v3436_v3, %v3374_v49 }
 0x633   :  { %v2433_v63 = vsel %vm107_vm0, %v10276_v44, %v747_v36  ;;  %v3375_v36 = vmul.f32 %v10363_v29, %v10363_v29  ;;  %v3306_v42 = vadd.f32 %v3305_v39, %v10383_v13  ;;  %v3381_v39 = vmul.f32 %v10448_v34, %v10448_v34 }
 0x634   :  { %v1296_v26 = vpop.permute.xlu0 %1295  ;;  %v2498_v0 = vsel %vm2435_vm6, %v2433_v63, %v1100_v16  ;;  %v3376_v16 = vmul.f32 %v10383_v13, %v10383_v13  ;;  %v10600_v4 = vpop.f32.mrf.mxu0 }
 0x635   :  { %v2563_v44 = vsel %vm2500_vm7, %v2498_v0, %v1296_v26  ;;  %v2304_v60 = vpop.permute.xlu2 %2303  ;;  %v3438_v26 = vadd.f32 %v3437_v62, %v3375_v36  ;;  %v3307_v31 = vadd.f32 %v3306_v42, %v10394_v56  ;;  %15476 = vst [vmem:[#allocation26_spill] sm:$0xff] %v10600_v4  ;;  %v3380_v36 = vmul.f32 %v10436_v54, %v10436_v54 }
 0x637   :  { %v3439_v57 = vadd.f32 %v3438_v26, %v3376_v16  ;;  %v3308_v0 = vadd.f32 %v3307_v31, %v10410_v6  ;;  %v3382_v26 = vmul.f32 %v10461_v47, %v10461_v47 }
 0x639   :  { %v3440_v49 = vadd.f32 %v3439_v57, %v3377_v43  ;;  %v3309_v53 = vadd.f32 %v3308_v0, %v10426_v41  ;;  %v3383_v57 = vmul.f32 %v10472_v48, %v10472_v48  ;;  %v3384_v0 = vmul.f32 %v10482_v21, %v10482_v21 }
 0x63a   :  { %v1500_v20 = vpop.permute.xlu1 %1499 }
 0x63b   :  { %v2628_v28 = vsel %vm2565_vm8, %v2563_v44, %v1500_v20  ;;  %v3378_v20 = vmul.f32 %v10410_v6, %v10410_v6  ;;  %v10606_v44 = vpop.f32.mrf.mxu3  ;;  %v3310_v62 = vadd.f32 %v3309_v53, %v10436_v54 }
 0x63c   :  { %v1898_v9 = vpop.permute.xlu0 %1897  ;;  %v2693_v10 = vsel %vm2630_vm9, %v2628_v28, %v1702_v37  ;;  %v10617_v43 = vpop.f32.mrf.mxu0 }
 0x63d   :  { %v2758_v33 = vsel %vm2695_vm10, %v2693_v10, %v1898_v9  ;;  %v3379_v9 = vmul.f32 %v10426_v41, %v10426_v41  ;;  %v3441_v3 = vadd.f32 %v3440_v49, %v3378_v20  ;;  %v1298_v42 = vpop.permute.xlu2 %1297  ;;  %15477 = vst [vmem:[#allocation27_spill] sm:$0xff] %v10617_v43 }
 0x63f   :  { %v3442_v28 = vadd.f32 %v3441_v3, %v3379_v9 }
 0x641   :  { %v3443_v10 = vadd.f32 %v3442_v28, %v3380_v36  ;;  %v3385_v36 = vmul.f32 %v10488_v1, %v10488_v1 }
 0x642   :  { %v2102_v63 = vpop.permute.xlu1 %2101 }
 0x643   :  { %v2823_v19 = vsel %vm2760_vm11, %v2758_v33, %v2102_v63  ;;  %v3444_v63 = vadd.f32 %v3443_v10, %v3381_v39  ;;  %v10624_v20 = vpop.f32.mrf.mxu3 }
 0x644   :  { %v2888_v37 = vsel %vm2825_vm12, %v2823_v19, %v2304_v60  ;;  %v749_v45 = vpop.permute.xlu0 %748  ;;  %v3311_v60 = vadd.f32 %v3310_v62, %v10448_v34  ;;  %v10637_v10 = vpop.f32.mrf.mxu0 }
 0x645   :  { %7289 = vmatmul.msk.f32.gmra.mxu3 %vm2890_vm13, %v2888_v37  ;;  %v2434_v31 = vsel %vm107_vm0, %v10278_v17, %v749_v45  ;;  %v3445_v37 = vadd.f32 %v3444_v63, %v3382_v26  ;;  %v3386_v45 = vmul.f32 %v10493_v11, %v10493_v11  ;;  %15478 = vst [vmem:[#allocation28_spill] sm:$0xff] %v10637_v10 }
 0x646   :  { %v3312_v19 = vadd.f32 %v3311_v60, %v10461_v47  ;;  %v3387_v63 = vmul.f32 %v10503_v30, %v10503_v30 }
 0x647   :  { %v3446_v3 = vadd.f32 %v3445_v37, %v3383_v57  ;;  %v1900_v57 = vpop.permute.xlu2 %1899 }
 0x648   :  { %v3313_v49 = vadd.f32 %v3312_v19, %v10472_v48 }
 0x649   :  { %v3447_v62 = vadd.f32 %v3446_v3, %v3384_v0 }
 0x64a   :  { %v1102_v16 = vpop.permute.xlu1 %1101  ;;  %v3314_v53 = vadd.f32 %v3313_v49, %v10482_v21 }
 0x64b   :  { %v2499_v9 = vsel %vm2435_vm6, %v2434_v31, %v1102_v16  ;;  %v3448_v16 = vadd.f32 %v3447_v62, %v3385_v36  ;;  %v10644_v31 = vpop.f32.mrf.mxu3 }
 0x64c   :  { %v1502_v33 = vpop.permute.xlu0 %1501  ;;  %v3315_v17 = vadd.f32 %v3314_v53, %v10488_v1  ;;  %v2564_v39 = vsel %vm2500_vm7, %v2499_v9, %v1298_v42  ;;  %v3388_v42 = vmul.f32 %v10508_v23, %v10508_v23  ;;  %v3389_v53 = vmul.f32 %v10516_v61, %v10516_v61 }
 0x64d   :  { %v2629_v60 = vsel %vm2565_vm8, %v2564_v39, %v1502_v33  ;;  %v3449_v49 = vadd.f32 %v3448_v16, %v3386_v45  ;;  %v3390_v39 = vmul.f32 %v10526_v50, %v10526_v50 }
 0x64e   :  { %v3316_v26 = vadd.f32 %v3315_v17, %v10493_v11 }
 0x64f   :  { %v3450_v9 = vadd.f32 %v3449_v49, %v3387_v63  ;;  %v3391_v63 = vmul.f32 %v10533_v18, %v10533_v18  ;;  %v3392_v49 = vmul.f32 %v10542_v2, %v10542_v2 }
 0x650   :  { %v3317_v0 = vadd.f32 %v3316_v26, %v10503_v30 }
 0x651   :  { %v3451_v17 = vadd.f32 %v3450_v9, %v3388_v42 }
 0x652   :  { %v1704_v28 = vpop.permute.xlu1 %1703  ;;  %v3318_v3 = vadd.f32 %v3317_v0, %v10508_v23 }
 0x653   :  { %v2694_v19 = vsel %vm2630_vm9, %v2629_v60, %v1704_v28  ;;  %v10659_v60 = vpop.f32.mrf.mxu0  ;;  %v3452_v16 = vadd.f32 %v3451_v17, %v3389_v53  ;;  %v3394_v53 = vmul.f32 %v10578_v32, %v10578_v32  ;;  %v3395_v17 = vmul.f32 %v10600_v4, %v10600_v4 }
 0x654   :  { %v2104_v37 = vpop.permute.xlu0 %2103  ;;  %v2759_v33 = vsel %vm2695_vm10, %v2694_v19, %v1900_v57  ;;  %v3319_v45 = vadd.f32 %v3318_v3, %v10516_v61  ;;  %15479 = vst [vmem:[#allocation29_spill] sm:$0xff] %v10659_v60  ;;  %v10664_v19 = vpop.f32.mrf.mxu3 }
 0x655   :  { %v2824_v36 = vsel %vm2760_vm11, %v2759_v33, %v2104_v37  ;;  %v3453_v57 = vadd.f32 %v3452_v16, %v3390_v39  ;;  %v3393_v33 = vmul.f32 %v10559_v40, %v10559_v40 }
 0x656   :  { %v3320_v26 = vadd.f32 %v3319_v45, %v10526_v50 }
 0x657   :  { %v3454_v0 = vadd.f32 %v3453_v57, %v3391_v63 }
 0x658   :  { %v3321_v37 = vadd.f32 %v3320_v26, %v10533_v18  ;;  %v3396_v26 = vmul.f32 %v10617_v43, %v10617_v43 }
 0x659   :  { %v3455_v9 = vadd.f32 %v3454_v0, %v3392_v49 }
 0x65a   :  { %v2306_v28 = vpop.permute.xlu1 %2305  ;;  %v3322_v42 = vadd.f32 %v3321_v37, %v10542_v2  ;;  %v3397_v37 = vmul.f32 %v10637_v10, %v10637_v10 }
 0x65b   :  { %v2889_v62 = vsel %vm2825_vm12, %v2824_v36, %v2306_v28  ;;  %v10675_v36 = vpop.f32.mrf.mxu0  ;;  %v3456_v28 = vadd.f32 %v3455_v9, %v3393_v33 }
 0x65c   :  { %7290 = vmatmul.msk.f32.gmra.mxu3 %vm2890_vm13, %v2889_v62  ;;  %v3323_v3 = vadd.f32 %v3322_v42, %v10559_v40  ;;  %15480 = vst [vmem:[#allocation30_spill] sm:$0xff] %v10675_v36  ;;  %v10680_v45 = vpop.f32.mrf.mxu3  ;;  %v3398_v42 = vmul.f32 %v10659_v60, %v10659_v60 }
 0x65d   :  { %v3457_v39 = vadd.f32 %v3456_v28, %v3394_v53  ;;  %v3399_v53 = vmul.f32 %v10675_v36, %v10675_v36 }
 0x65e   :  { %v3324_v62 = vadd.f32 %v3323_v3, %v10578_v32 }
 0x65f   :  { %v3458_v63 = vadd.f32 %v3457_v39, %v3395_v17 }
 0x660   :  { %v3325_v16 = vadd.f32 %v3324_v62, %v10600_v4 }
 0x661   :  { %v3459_v49 = vadd.f32 %v3458_v63, %v3396_v26 }
 0x662   :  { %v3326_v57 = vadd.f32 %v3325_v16, %v10617_v43 }
 0x663   :  { %v10691_v33 = vpop.f32.mrf.mxu0  ;;  %v3460_v9 = vadd.f32 %v3459_v49, %v3397_v37 }
 0x664   :  { %v3327_v0 = vadd.f32 %v3326_v57, %v10637_v10  ;;  %15481 = vst [vmem:[#allocation31_spill] sm:$0xff] %v10691_v33  ;;  %v10696_v28 = vpop.f32.mrf.mxu3  ;;  %v3400_v39 = vmul.f32 %v10691_v33, %v10691_v33  ;;  %v3401_v57 = vmul.f32 %v10485_v12, %v10485_v12 }
 0x665   :  { %v3461_v62 = vadd.f32 %v3460_v9, %v3398_v42  ;;  %v3402_v42 = vmul.f32 %v10497_v27, %v10497_v27 }
 0x666   :  { %v3328_v3 = vadd.f32 %v3327_v0, %v10659_v60 }
 0x667   :  { %v3462_v16 = vadd.f32 %v3461_v62, %v3399_v53  ;;  %v3403_v53 = vmul.f32 %v10506_v22, %v10506_v22 }
 0x668   :  { %v3329_v17 = vadd.f32 %v3328_v3, %v10675_v36 }
 0x669   :  { %v3463_v63 = vadd.f32 %v3462_v16, %v3400_v39  ;;  %v3404_v16 = vmul.f32 %v10512_v14, %v10512_v14 }
 0x66a   :  { %v3330_v26 = vadd.f32 %v3329_v17, %v10691_v33 }
 0x66b   :  { %v3464_v0 = vadd.f32 %v3463_v63, %v3401_v57  ;;  %v3405_v57 = vmul.f32 %v10520_v58, %v10520_v58 }
 0x66c   :  { %v3331_v37 = vadd.f32 %v3330_v26, %v10485_v12  ;;  %v10705_v49 = vpop.f32.mrf.mxu3 }
 0x66d   :  { %v3465_v3 = vadd.f32 %v3464_v0, %v3402_v42 }
 0x66e   :  { %v3332_v9 = vadd.f32 %v3331_v37, %v10497_v27 }
 0x66f   :  { %v3466_v39 = vadd.f32 %v3465_v3, %v3403_v53  ;;  %v3407_v53 = vmul.f32 %v10536_v55, %v10536_v55 }
 0x670   :  { %v3333_v62 = vadd.f32 %v3332_v9, %v10506_v22  ;;  %v3406_v9 = vmul.f32 %v10528_v46, %v10528_v46 }
 0x671   :  { %v3467_v63 = vadd.f32 %v3466_v39, %v3404_v16 }
 0x672   :  { %v3334_v26 = vadd.f32 %v3333_v62, %v10512_v14 }
 0x673   :  { %v3468_v42 = vadd.f32 %v3467_v63, %v3405_v57  ;;  %v3409_v57 = vmul.f32 %v10564_v5, %v10564_v5 }
 0x674   :  { %v10713_v17 = vpop.f32.mrf.mxu3  ;;  %v3335_v37 = vadd.f32 %v3334_v26, %v10520_v58  ;;  %v3408_v26 = vmul.f32 %v10546_v15, %v10546_v15 }
 0x675   :  { %v3469_v3 = vadd.f32 %v3468_v42, %v3406_v9 }
 0x676   :  { %v3336_v12 = vadd.f32 %v3335_v37, %v10528_v46 }
 0x677   :  { %v3470_v16 = vadd.f32 %v3469_v3, %v3407_v53  ;;  %v3411_v53 = vmul.f32 %v10606_v44, %v10606_v44 }
 0x678   :  { %v3337_v62 = vadd.f32 %v3336_v12, %v10536_v55  ;;  %v3410_v12 = vmul.f32 %v10585_v52, %v10585_v52 }
 0x679   :  { %v3471_v63 = vadd.f32 %v3470_v16, %v3408_v26 }
 0x67a   :  { %v3338_v33 = vadd.f32 %v3337_v62, %v10546_v15 }
 0x67b   :  { %v3472_v9 = vadd.f32 %v3471_v63, %v3409_v57  ;;  %v3413_v57 = vmul.f32 %v10644_v31, %v10644_v31 }
 0x67c   :  { %v10721_v0 = vpop.f32.mrf.mxu3  ;;  %v3339_v37 = vadd.f32 %v3338_v33, %v10564_v5  ;;  %v3412_v33 = vmul.f32 %v10624_v20, %v10624_v20 }
 0x67d   :  { %v3473_v3 = vadd.f32 %v3472_v9, %v3410_v12 }
 0x67e   :  { %v3340_v36 = vadd.f32 %v3339_v37, %v10585_v52 }
 0x67f   :  { %v3474_v26 = vadd.f32 %v3473_v3, %v3411_v53  ;;  %v3415_v53 = vmul.f32 %v10680_v45, %v10680_v45 }
 0x680   :  { %v3341_v62 = vadd.f32 %v3340_v36, %v10606_v44  ;;  %v3414_v36 = vmul.f32 %v10664_v19, %v10664_v19 }
 0x681   :  { %v3475_v63 = vadd.f32 %v3474_v26, %v3412_v33 }
 0x682   :  { %v3342_v60 = vadd.f32 %v3341_v62, %v10624_v20 }
 0x683   :  { %v3476_v12 = vadd.f32 %v3475_v63, %v3413_v57  ;;  %v3417_v57 = vmul.f32 %v10705_v49, %v10705_v49 }
 0x684   :  { %v10729_v39 = vpop.f32.mrf.mxu3  ;;  %v3343_v37 = vadd.f32 %v3342_v60, %v10644_v31  ;;  %v3416_v60 = vmul.f32 %v10696_v28, %v10696_v28 }
 0x685   :  { %v3477_v3 = vadd.f32 %v3476_v12, %v3414_v36 }
 0x686   :  { %v3344_v10 = vadd.f32 %v3343_v37, %v10664_v19 }
 0x687   :  { %v3478_v33 = vadd.f32 %v3477_v3, %v3415_v53  ;;  %v3419_v53 = vmul.f32 %v10721_v0, %v10721_v0 }
 0x688   :  { %v3345_v62 = vadd.f32 %v3344_v10, %v10680_v45  ;;  %v3418_v10 = vmul.f32 %v10713_v17, %v10713_v17 }
 0x689   :  { %v3479_v63 = vadd.f32 %v3478_v33, %v3416_v60 }
 0x68a   :  { %v3346_v43 = vadd.f32 %v3345_v62, %v10696_v28 }
 0x68b   :  { %v3480_v36 = vadd.f32 %v3479_v63, %v3417_v57 }
 0x68c   :  { %v10737_v42 = vpop.f32.mrf.mxu3  ;;  %v3347_v37 = vadd.f32 %v3346_v43, %v10705_v49  ;;  %v3420_v43 = vmul.f32 %v10729_v39, %v10729_v39 }
 0x68d   :  { %v3481_v3 = vadd.f32 %v3480_v36, %v3418_v10  ;;  %v3421_v57 = vmul.f32 %v10737_v42, %v10737_v42 }
 0x68e   :  { %v3348_v4 = vadd.f32 %v3347_v37, %v10713_v17 }
 0x68f   :  { %v3482_v60 = vadd.f32 %v3481_v3, %v3419_v53 }
 0x690   :  { %v3349_v62 = vadd.f32 %v3348_v4, %v10721_v0 }
 0x691   :  { %v3483_v63 = vadd.f32 %v3482_v60, %v3420_v43 }
 0x692   :  { %v3350_v32 = vadd.f32 %v3349_v62, %v10729_v39 }
 0x693   :  { %v3484_v10 = vadd.f32 %v3483_v63, %v3421_v57 }
 0x694   :  { %v10745_v16 = vpop.f32.mrf.mxu3  ;;  %v3351_v37 = vadd.f32 %v3350_v32, %v10737_v42 }
 0x695   :  { %v3422_v4 = vmul.f32 %v10745_v16, %v10745_v16 }
 0x696   :  { %v3352_v40 = vadd.f32 %v3351_v37, %v10745_v16 }
 0x697   :  { %v3485_v3 = vadd.f32 %v3484_v10, %v3422_v4 }
 0x69c   :  { %v10753_v9 = vpop.f32.mrf.mxu3 }
 0x69d   :  { %v3423_v53 = vmul.f32 %v10753_v9, %v10753_v9  ;;  %v3353_v62 = vadd.f32 %v3352_v40, %v10753_v9 }
 0x69f   :  { %v3486_v43 = vadd.f32 %v3485_v3, %v3423_v53 }
 0x6a4   :  { %v10761_v26 = vpop.f32.mrf.mxu3 }
 0x6a5   :  { %v3354_v2 = vadd.f32 %v3353_v62, %v10761_v26  ;;  %v3424_v32 = vmul.f32 %v10761_v26, %v10761_v26 }
 0x6a7   :  { %v3487_v63 = vadd.f32 %v3486_v43, %v3424_v32 }
 0x6ac   :  { %v10769_v12 = vpop.f32.mrf.mxu3 }
 0x6ad   :  { %v3355_v57 = vadd.f32 %v3354_v2, %v10769_v12  ;;  %v3425_v37 = vmul.f32 %v10769_v12, %v10769_v12 }
 0x6af   :  { %v3488_v40 = vadd.f32 %v3487_v63, %v3425_v37 }
 0x6b4   :  { %v10777_v33 = vpop.f32.mrf.mxu3 }
 0x6b5   :  { %v3426_v10 = vmul.f32 %v10777_v33, %v10777_v33  ;;  %v3356_v18 = vadd.f32 %v3355_v57, %v10777_v33 }
 0x6b7   :  { %v3489_v53 = vadd.f32 %v3488_v40, %v3426_v10 }
 0x6bc   :  { %v10785_v36 = vpop.f32.mrf.mxu3 }
 0x6bd   :  { %v3427_v3 = vmul.f32 %v10785_v36, %v10785_v36  ;;  %v3357_v62 = vadd.f32 %v3356_v18, %v10785_v36 }
 0x6bf   :  { %v3490_v43 = vadd.f32 %v3489_v53, %v3427_v3 }
 0x6c4   :  { %v10793_v60 = vpop.f32.mrf.mxu3 }
 0x6c5   :  { %v3428_v2 = vmul.f32 %v10793_v60, %v10793_v60  ;;  %v3358_v32 = vadd.f32 %v3357_v62, %v10793_v60 }
 0x6c7   :  { %v3491_v61 = vadd.f32 %v3490_v43, %v3428_v2 }
 0x6cc   :  { %v10803_v4 = vpop.f32.mrf.mxu3 }
 0x6cd   :  { %v3429_v50 = vmul.f32 %v10803_v4, %v10803_v4  ;;  %v3359_v63 = vadd.f32 %v3358_v32, %v10803_v4 }
 0x6cf   :  { %v3492_v57 = vadd.f32 %v3491_v61, %v3429_v50 }
 0x6df   :  { %v3293_v37 = vpop.f32.mrf.mxu3 }
 0x6e0   :  { %v3360_v23 = vadd.f32 %v3359_v63, %v3293_v37  ;;  %v3430_v30 = vmul.f32 %v3293_v37, %v3293_v37 }
 0x6e2   :  { %v3361_v11 = vrot.slane %v3360_v23, 4  ;;  %v3493_v10 = vadd.f32 %v3492_v57, %v3430_v30 }
 0x6e4   :  { %v3362_v40 = vadd.f32 %v3361_v11, %v3360_v23  ;;  %v3494_v18 = vrot.slane %v3493_v10, 4 }
 0x6e6   :  { %v3363_v1 = vrot.slane %v3362_v40, 2  ;;  %v3495_v21 = vadd.f32 %v3494_v18, %v3493_v10 }
 0x6e8   :  { %v3364_v48 = vadd.f32 %v3363_v1, %v3362_v40  ;;  %v3496_v3 = vrot.slane %v3495_v21, 2 }
 0x6ea   :  { %v3365_v53 = vrot.slane %v3364_v48, 1  ;;  %v3497_v62 = vadd.f32 %v3496_v3, %v3495_v21  ;;  %v10825_v21 = vld [vmem:[%s15153_s3] ss:$0 sm:$0xff] }
 0x6ec   :  { %v3366_v47 = vadd.f32 %v3365_v53, %v3364_v48  ;;  %v3498_v34 = vrot.slane %v3497_v62, 1  ;;  %v3296_v48 = vld [vmem:[%s15152_s2] sm:$0x1] }
 0x6ee   :  { %v3499_v54 = vadd.f32 %v3498_v34, %v3497_v62  ;;  %v10815_v2 = vmul.f32 0.001953125, %v3366_v47 }
 0x6f0   :  { %v3501_v43 = vmul.f32 0.001953125, %v3499_v54  ;;  %v3502_v61 = vmul.f32 %v10815_v2, %v10815_v2  ;;  %v3579_v57 = vsub.f32 %v3293_v37, %v10815_v2  ;;  %v3516_v40 = vsub.f32 %v9725_v7, %v10815_v2 }
 0x6f1   :  { %v3517_v18 = vsub.f32 %v9788_v35, %v10815_v2  ;;  %v3518_v3 = vsub.f32 %v9892_v24, %v10815_v2  ;;  %v15493_v7 = vsub.f32 %v10039_v25, %v10815_v2  ;;  %v15494_v35 = vsub.f32 %v10132_v38, %v10815_v2  ;;  %v15500_v38 = vld [vmem:[#allocation25_spill] sm:$0xff] }
 0x6f2   :  { %v3503_v50 = vsub.f32 %v3501_v43, %v3502_v61  ;;  %v15492_v43 = vsub.f32 %v9976_v8, %v10815_v2  ;;  %v15497_v8 = vld [vmem:[#allocation23_spill] sm:$0xff]  ;;  %v15501_v24 = vsub.f32 %v10271_v59, %v10815_v2 }
 0x6f4   :  { %v3504_v32 = vadd.f32 1e-05, %v3503_v50 }
 0x6f6   :  { %7342 = vrsqrt.f32 %v3504_v32  ;;  %vm3511_vm15 = vweird.f32 %v3504_v32 }
 0x6fc   :  { %v7343_v11 = vpop.eup %7342 }
 0x6fd   :  { %v3506_v30 = vmul.f32 %v7343_v11, %v3504_v32  ;;  %vm3512_vm14 = vweird.f32 %v7343_v11 }
 0x6fe   :  { %vm3513_vm0 = vmor %vm3511_vm15, %vm3512_vm14 }
 0x6ff   :  { %v3507_v23 = vmul.f32 %v7343_v11, %v3506_v30 }
 0x701   :  { %v3508_v63 = vmul.f32 0.5, %v3507_v23 }
 0x703   :  { %v3509_v1 = vsub.f32 1.5, %v3508_v63  ;;  %v3551_v63 = vsub.f32 %v10497_v27, %v10815_v2  ;;  %v3558_v27 = vsub.f32 %v10564_v5, %v10815_v2  ;;  %v3565_v5 = vsub.f32 %v10696_v28, %v10815_v2 }
 0x704   :  { %v3572_v28 = vsub.f32 %v10753_v9, %v10815_v2 }
 0x705   :  { %v3510_v34 = vmul.f32 %v7343_v11, %v3509_v1  ;;  %v3552_v1 = vsub.f32 %v10506_v22, %v10815_v2  ;;  %v3559_v22 = vsub.f32 %v10585_v52, %v10815_v2  ;;  %v3566_v52 = vsub.f32 %v10705_v49, %v10815_v2 }
 0x706   :  { %v3573_v49 = vsub.f32 %v10761_v26, %v10815_v2 }
 0x707   :  { %v3514_v54 = vsel %vm3513_vm0, %v7343_v11, %v3510_v34  ;;  %v3554_v34 = vsub.f32 %v10520_v58, %v10815_v2  ;;  %v3561_v58 = vsub.f32 %v10624_v20, %v10815_v2  ;;  %v3568_v20 = vsub.f32 %v10721_v0, %v10815_v2 }
 0x708   :  { %v3515_v47 = vmul.f32 %v3514_v54, %v3296_v48  ;;  %v3553_v48 = vsub.f32 %v10512_v14, %v10815_v2  ;;  %v3555_v54 = vsub.f32 %v10528_v46, %v10815_v2  ;;  %v3560_v14 = vsub.f32 %v10606_v44, %v10815_v2 }
 0x709   :  { %v3562_v46 = vsub.f32 %v10644_v31, %v10815_v2  ;;  %v3567_v44 = vsub.f32 %v10713_v17, %v10815_v2  ;;  %v3569_v31 = vsub.f32 %v10729_v39, %v10815_v2  ;;  %v3574_v17 = vsub.f32 %v10769_v12, %v10815_v2 }
 0x70a   :  { %v10828_v10 = vperm.slane %v3515_v47, 0  ;;  %v3556_v47 = vsub.f32 %v10536_v55, %v10815_v2  ;;  %v3563_v55 = vsub.f32 %v10664_v19, %v10815_v2  ;;  %v3570_v19 = vsub.f32 %v10737_v42, %v10815_v2 }
 0x70b   :  { %v3575_v0 = vsub.f32 %v10777_v33, %v10815_v2  ;;  %v3576_v39 = vsub.f32 %v10785_v36, %v10815_v2  ;;  %v3577_v42 = vsub.f32 %v10793_v60, %v10815_v2  ;;  %v15502_v11 = vsub.f32 %v10363_v29, %v10815_v2 }
 0x70c   :  { %v3644_v62 = vmul.f32 %v10828_v10, %v3579_v57  ;;  %v3557_v57 = vsub.f32 %v10546_v15, %v10815_v2  ;;  %v3564_v15 = vsub.f32 %v10680_v45, %v10815_v2  ;;  %v3571_v45 = vsub.f32 %v10745_v16, %v10815_v2 }
 0x70d   :  { %v3578_v16 = vsub.f32 %v10803_v4, %v10815_v2  ;;  %v10911_v9 = vmul.f32 %v10828_v10, %v3551_v63  ;;  %v10914_v26 = vmul.f32 %v10828_v10, %v3552_v1  ;;  %v10917_v12 = vmul.f32 %v10828_v10, %v3553_v48 }
 0x70e   :  { %v3711_v23 = vadd.f32 %v10825_v21, %v3644_v62  ;;  %v10920_v33 = vmul.f32 %v10828_v10, %v3554_v34  ;;  %v10923_v36 = vmul.f32 %v10828_v10, %v3555_v54  ;;  %v10926_v60 = vmul.f32 %v10828_v10, %v3556_v47 }
 0x70f   :  { %v10929_v4 = vmul.f32 %v10828_v10, %v3557_v57  ;;  %v10935_v63 = vmul.f32 %v10828_v10, %v3559_v22  ;;  %v10938_v1 = vmul.f32 %v10828_v10, %v3560_v14  ;;  %v10941_v48 = vmul.f32 %v10828_v10, %v3561_v58 }
 0x710   :  { %v3775_v62 = vmax.f32 %v3711_v23, 0.0  ;;  %v10932_v23 = vmul.f32 %v10828_v10, %v3558_v27  ;;  %v10944_v34 = vmul.f32 %v10828_v10, %v3562_v46  ;;  %v10947_v54 = vmul.f32 %v10828_v10, %v3563_v55 }
 0x711   :  { %v10950_v47 = vmul.f32 %v10828_v10, %v3564_v15  ;;  %v10953_v57 = vmul.f32 %v10828_v10, %v3565_v5  ;;  %v10959_v27 = vmul.f32 %v10828_v10, %v3567_v44  ;;  %v10962_v22 = vmul.f32 %v10828_v10, %v3568_v20  ;;  %v15485_v20 = vld [vmem:[#allocation13_spill] sm:$0xff] }
 0x712   :  { %3917 = vst [vmem:[#allocation3 + $0x339] sm:$0xff] %v3775_v62  ;;  %v10956_v62 = vmul.f32 %v10828_v10, %v3566_v52  ;;  %v10965_v14 = vmul.f32 %v10828_v10, %v3569_v31  ;;  %v10968_v58 = vmul.f32 %v10828_v10, %v3570_v19  ;;  %v10971_v46 = vmul.f32 %v10828_v10, %v3571_v45  ;;  %v15486_v31 = vld [vmem:[#allocation14_spill] sm:$0xff] }
 0x713   :  { %v10974_v55 = vmul.f32 %v10828_v10, %v3572_v28  ;;  %v10977_v15 = vmul.f32 %v10828_v10, %v3573_v49  ;;  %v10980_v5 = vmul.f32 %v10828_v10, %v3574_v17  ;;  %v10983_v52 = vmul.f32 %v10828_v10, %v3575_v0  ;;  %v15482_v28 = vld [vmem:[#allocation10_spill] sm:$0xff]  ;;  %v15483_v17 = vld [vmem:[#allocation11_spill] sm:$0xff] }
 0x714   :  { %v10986_v44 = vmul.f32 %v10828_v10, %v3576_v39  ;;  %v10993_v19 = vmul.f32 %v10828_v10, %v3577_v42  ;;  %v10996_v45 = vmul.f32 %v10828_v10, %v3578_v16  ;;  %v15484_v39 = vld [vmem:[#allocation12_spill] sm:$0xff]  ;;  %v15488_v16 = vld [vmem:[#allocation17_spill] sm:$0xff]  ;;  %v15489_v49 = vld [vmem:[#allocation18_spill] sm:$0xff]  ;;  %v3581_v32 = vmul.f32 %v10828_v10, %v3516_v40 }
 0x715   :  { %v15487_v42 = vld [vmem:[#allocation16_spill] sm:$0xff]  ;;  %v3582_v50 = vmul.f32 %v10828_v10, %v3517_v18  ;;  %v3583_v37 = vmul.f32 %v10828_v10, %v3518_v3  ;;  %v3584_v53 = vmul.f32 %v10828_v10, %v15492_v43  ;;  %v3585_v40 = vmul.f32 %v10828_v10, %v15493_v7  ;;  %v15496_v3 = vld [vmem:[#allocation22_spill] sm:$0xff] }
 0x716   :  { %v3586_v18 = vmul.f32 %v10828_v10, %v15494_v35  ;;  %v15498_v43 = vsub.f32 %v10210_v51, %v10815_v2  ;;  %v15499_v7 = vld [vmem:[#allocation24_spill] sm:$0xff]  ;;  %v3588_v61 = vmul.f32 %v10828_v10, %v15501_v24  ;;  %v11064_v30 = vmul.f32 %v10828_v10, %v15502_v11 }
 0x717   :  { %v15503_v51 = vsub.f32 %v10383_v13, %v10815_v2  ;;  %v15504_v35 = vsub.f32 %v10394_v56, %v10815_v2  ;;  %v11079_v59 = vadd.f32 %v10825_v21, %v3581_v32  ;;  %v11082_v29 = vadd.f32 %v10825_v21, %v3582_v50 }
 0x718   :  { %v3587_v25 = vmul.f32 %v10828_v10, %v15498_v43  ;;  %v11085_v11 = vadd.f32 %v10825_v21, %v3583_v37  ;;  %v11088_v13 = vadd.f32 %v10825_v21, %v3584_v53  ;;  %v11091_v24 = vadd.f32 %v10825_v21, %v3585_v40 }
 0x719   :  { %v11070_v43 = vmul.f32 %v10828_v10, %v15503_v51  ;;  %v11076_v0 = vmul.f32 %v10828_v10, %v15504_v35  ;;  %v11094_v56 = vadd.f32 %v10825_v21, %v3586_v18  ;;  %v4041_v35 = vld [vmem:[#allocation4 + $0x78] sm:$0xff]  ;;  %v11101_v50 = vadd.f32 %v10825_v21, %v10911_v9 }
 0x71a   :  { %v11097_v51 = vadd.f32 %v10825_v21, %v3587_v25  ;;  %v11105_v37 = vadd.f32 %v10825_v21, %v10914_v26  ;;  %v11109_v53 = vadd.f32 %v10825_v21, %v10917_v12  ;;  %4782 = vmatpush.msra.mxu1 %v4041_v35  ;;  %v11113_v32 = vadd.f32 %v10825_v21, %v10920_v33  ;;  %v4040_v12 = vld [vmem:[#allocation4 + $0x70] sm:$0xff] }
 0x71b   :  { %v11117_v40 = vadd.f32 %v10825_v21, %v10923_v36  ;;  %v11121_v9 = vadd.f32 %v10825_v21, %v10926_v60  ;;  %v11125_v26 = vadd.f32 %v10825_v21, %v10929_v4  ;;  %7296 = vmatpush.msra.mxu2 %v4041_v35  ;;  %v11129_v18 = vadd.f32 %v10825_v21, %v10932_v23  ;;  %v4073_v4 = vld [vmem:[#allocation4 + $0x178] sm:$0xff] }
 0x71c   :  { %v11133_v33 = vadd.f32 %v10825_v21, %v10935_v63  ;;  %v11137_v36 = vadd.f32 %v10825_v21, %v10938_v1  ;;  %v11141_v60 = vadd.f32 %v10825_v21, %v10941_v48  ;;  %4783 = vmatpush.msra.mxu1 %v4040_v12  ;;  %v11145_v25 = vadd.f32 %v10825_v21, %v10944_v34  ;;  %v4039_v48 = vld [vmem:[#allocation4 + $0x68] sm:$0xff] }
 0x71d   :  { %v11149_v23 = vadd.f32 %v10825_v21, %v10947_v54  ;;  %v11153_v63 = vadd.f32 %v10825_v21, %v10950_v47  ;;  %v11157_v1 = vadd.f32 %v10825_v21, %v10953_v57  ;;  %7297 = vmatpush.msra.mxu2 %v4040_v12  ;;  %v11161_v35 = vadd.f32 %v10825_v21, %v10956_v62  ;;  %v4072_v57 = vld [vmem:[#allocation4 + $0x170] sm:$0xff] }
 0x71e   :  { %v11165_v34 = vadd.f32 %v10825_v21, %v10959_v27  ;;  %v11169_v54 = vadd.f32 %v10825_v21, %v10962_v22  ;;  %v11173_v47 = vadd.f32 %v10825_v21, %v10965_v14  ;;  %5200 = vmatpush.msrb.mxu3 %v4073_v4  ;;  %v11177_v12 = vadd.f32 %v10825_v21, %v10968_v58  ;;  %v4038_v14 = vld [vmem:[#allocation4 + $0x60] sm:$0xff] }
 0x71f   :  { %v11181_v62 = vadd.f32 %v10825_v21, %v10971_v46  ;;  %v11185_v27 = vadd.f32 %v10825_v21, %v10974_v55  ;;  %v11189_v22 = vadd.f32 %v10825_v21, %v10977_v15  ;;  %4784 = vmatpush.msra.mxu1 %v4039_v48  ;;  %v11193_v4 = vadd.f32 %v10825_v21, %v10980_v5  ;;  %v4071_v15 = vld [vmem:[#allocation4 + $0x168] sm:$0xff] }
 0x720   :  { %v11197_v58 = vadd.f32 %v10825_v21, %v10983_v52  ;;  %v11201_v46 = vadd.f32 %v10825_v21, %v10986_v44  ;;  %v11205_v55 = vadd.f32 %v10825_v21, %v10993_v19  ;;  %7298 = vmatpush.msra.mxu2 %v4039_v48  ;;  %v3712_v5 = vmax.f32 %v11079_v59, 0.0  ;;  %5201 = vmatpush.msrb.mxu3 %v4072_v57  ;;  %v4037_v44 = vld [vmem:[#allocation4 + $0x58] sm:$0xff]  ;;  %v4070_v59 = vld [vmem:[#allocation4 + $0x160] sm:$0xff] }
 0x721   :  { %15505 = vst [vmem:[#allocation10_spill] sm:$0xff] %v11189_v22  ;;  %v11209_v22 = vadd.f32 %v10825_v21, %v10996_v45  ;;  %v3714_v52 = vmax.f32 %v11085_v11, 0.0  ;;  %4785 = vmatpush.msra.mxu1 %v4038_v14  ;;  %v15511_v19 = vsub.f32 %v10410_v6, %v10815_v2  ;;  %v3655_v45 = vadd.f32 %v10825_v21, %v3588_v61  ;;  %v4036_v6 = vld [vmem:[#allocation4 + $0x50] sm:$0xff]  ;;  %v15513_v61 = vld [vmem:[#allocation27_spill] sm:$0xff] }
 0x722   :  { %15506 = vst [vmem:[#allocation11_spill] sm:$0xff] %v11193_v4  ;;  %v3713_v4 = vmax.f32 %v11082_v29, 0.0  ;;  %7299 = vmatpush.msra.mxu2 %v4038_v14  ;;  %v15512_v29 = vsub.f32 %v10426_v41, %v10815_v2  ;;  %v3656_v57 = vadd.f32 %v10825_v21, %v11064_v30  ;;  %5202 = vmatpush.msrb.mxu3 %v4071_v15  ;;  %v4069_v30 = vld [vmem:[#allocation4 + $0x158] sm:$0xff] }
 0x723   :  { %15507 = vst [vmem:[#allocation12_spill] sm:$0xff] %v11197_v58  ;;  %v3592_v48 = vmul.f32 %v10828_v10, %v15511_v19  ;;  %v3716_v58 = vmax.f32 %v11091_v24, 0.0  ;;  %4786 = vmatpush.msra.mxu1 %v4037_v44  ;;  %v3657_v41 = vadd.f32 %v10825_v21, %v11070_v43  ;;  %v15515_v24 = vsub.f32 %v15483_v17, %v10815_v2  ;;  %v15516_v43 = vld [vmem:[#allocation28_spill] sm:$0xff] }
 0x724   :  { %15508 = vst [vmem:[#allocation13_spill] sm:$0xff] %v11201_v46  ;;  %v15510_v46 = vld [vmem:[#allocation26_spill] sm:$0xff]  ;;  %v3593_v11 = vmul.f32 %v10828_v10, %v15512_v29  ;;  %v3717_v29 = vmax.f32 %v11094_v56, 0.0  ;;  %7300 = vmatpush.msra.mxu2 %v4037_v44  ;;  %5203 = vmatpush.msrb.mxu3 %v4070_v59  ;;  %v3720_v19 = vmax.f32 %v3656_v57, 0.0 }
 0x725   :  { %15509 = vst [vmem:[#allocation14_spill] sm:$0xff] %v11209_v22  ;;  %v3715_v22 = vmax.f32 %v11088_v13, 0.0  ;;  %v15514_v13 = vsub.f32 %v15482_v28, %v10815_v2  ;;  %v3595_v15 = vmul.f32 %v10828_v10, %v15515_v24  ;;  %v3718_v28 = vmax.f32 %v11097_v51, 0.0  ;;  %4787 = vmatpush.msra.mxu1 %v4036_v6 }
 0x726   :  { %3854 = vst [vmem:[#allocation3 + $0x19] sm:$0xff] %v3712_v5  ;;  %v3658_v5 = vadd.f32 %v10825_v21, %v11076_v0  ;;  %v3659_v17 = vadd.f32 %v10825_v21, %v3592_v48  ;;  %v3719_v24 = vmax.f32 %v3655_v45, 0.0  ;;  %7301 = vmatpush.msra.mxu2 %v4036_v6  ;;  %v4068_v0 = vld [vmem:[#allocation4 + $0x150] sm:$0xff]  ;;  %v15518_v51 = vsub.f32 %v15485_v20, %v10815_v2  ;;  %v4067_v6 = vld [vmem:[#allocation4 + $0x148] sm:$0xff] }
 0x727   :  { %v3594_v14 = vmul.f32 %v10828_v10, %v15514_v13  ;;  %3855 = vst [vmem:[#allocation3 + $0x21] sm:$0xff] %v3713_v4  ;;  %v4035_v13 = vld [vmem:[#allocation4 + $0x48] sm:$0xff]  ;;  %v15517_v4 = vsub.f32 %v15484_v39, %v10815_v2  ;;  %v3660_v59 = vadd.f32 %v10825_v21, %v3593_v11  ;;  %5204 = vmatpush.msrb.mxu3 %v4069_v30  ;;  %v4034_v39 = vld [vmem:[#allocation4 + $0x40] sm:$0xff]  ;;  %v3721_v20 = vmax.f32 %v3657_v41, 0.0 }
 0x728   :  { %3856 = vst [vmem:[#allocation3 + $0x31] sm:$0xff] %v3714_v52  ;;  %v3597_v52 = vmul.f32 %v10828_v10, %v15518_v51  ;;  %4788 = vmatpush.msra.mxu1 %v4035_v13  ;;  %7302 = vmatpush.msra.mxu2 %v4035_v13  ;;  %v3662_v57 = vadd.f32 %v10825_v21, %v3595_v15  ;;  %v3722_v30 = vmax.f32 %v3658_v5, 0.0  ;;  %v15522_v51 = vld [vmem:[#allocation30_spill] sm:$0xff]  ;;  %v4089_v13 = vld [vmem:[#allocation4 + $0x1f8] sm:$0xff] }
 0x729   :  { %v3596_v44 = vmul.f32 %v10828_v10, %v15517_v4  ;;  %3857 = vst [vmem:[#allocation3 + $0x39] sm:$0xff] %v3715_v22  ;;  %v15519_v4 = vld [vmem:[#allocation29_spill] sm:$0xff]  ;;  %v15520_v22 = vsub.f32 %v15486_v31, %v10815_v2  ;;  %v3661_v45 = vadd.f32 %v10825_v21, %v3594_v14  ;;  %5205 = vmatpush.msrb.mxu3 %v4068_v0  ;;  %v3724_v0 = vmax.f32 %v3660_v59, 0.0 }
 0x72a   :  { %3858 = vst [vmem:[#allocation3 + $0x49] sm:$0xff] %v3716_v58  ;;  %v3547_v56 = vsub.f32 %v15519_v4, %v10815_v2  ;;  %v15521_v58 = vsub.f32 %v15487_v42, %v10815_v2  ;;  %4789 = vmatpush.msra.mxu1 %v4034_v39  ;;  %v4033_v31 = vld [vmem:[#allocation4 + $0x38] sm:$0xff]  ;;  %v15523_v14 = vsub.f32 %v15488_v16, %v10815_v2  ;;  %v3723_v42 = vmax.f32 %v3659_v17, 0.0  ;;  %v4066_v16 = vld [vmem:[#allocation4 + $0x140] sm:$0xff] }
 0x72b   :  { %v3598_v48 = vmul.f32 %v10828_v10, %v15520_v22  ;;  %3859 = vst [vmem:[#allocation3 + $0x51] sm:$0xff] %v3717_v29  ;;  %v3548_v22 = vsub.f32 %v15522_v51, %v10815_v2  ;;  %v3663_v29 = vadd.f32 %v10825_v21, %v3596_v44  ;;  %7303 = vmatpush.msra.mxu2 %v4034_v39  ;;  %v15527_v39 = vld [vmem:[#allocation20_spill] sm:$0xff]  ;;  %v4026_v4 = vld [vmem:[#allocation4] sm:$0xff] }
 0x72c   :  { %v3599_v11 = vmul.f32 %v10828_v10, %v15521_v58  ;;  %3860 = vst [vmem:[#allocation3 + $0x61] sm:$0xff] %v3718_v28  ;;  %v3600_v41 = vmul.f32 %v10828_v10, %v15523_v14  ;;  %v15524_v15 = vsub.f32 %v15489_v49, %v10815_v2  ;;  %v3664_v28 = vadd.f32 %v10825_v21, %v3597_v52  ;;  %v15525_v58 = vld [vmem:[#allocation19_spill] sm:$0xff]  ;;  %v4032_v49 = vld [vmem:[#allocation4 + $0x30] sm:$0xff]  ;;  %v4082_v51 = vld [vmem:[#allocation4 + $0x1c0] sm:$0xff] }
 0x72d   :  { %3861 = vst [vmem:[#allocation3 + $0x69] sm:$0xff] %v3719_v24  ;;  %5206 = vmatpush.msrb.mxu3 %v4067_v6  ;;  %4790 = vmatpush.msra.mxu1 %v4033_v31  ;;  %v15526_v14 = vsub.f32 %v15525_v58, %v10815_v2  ;;  %v11286_v17 = vadd.f32 %v10825_v21, %v3598_v48  ;;  %v3725_v24 = vmax.f32 %v3661_v45, 0.0  ;;  %v3726_v6 = vmax.f32 %v3662_v57, 0.0  ;;  %v15529_v48 = vld [vmem:[#allocation21_spill] sm:$0xff] }
 0x72e   :  { %v3601_v5 = vmul.f32 %v10828_v10, %v15524_v15  ;;  %3862 = vst [vmem:[#allocation3 + $0x79] sm:$0xff] %v3720_v19  ;;  %7304 = vmatpush.msra.mxu2 %v4033_v31  ;;  %5409 = vmatpush.msrb.mxu0 %v4089_v13  ;;  %v15528_v52 = vsub.f32 %v15527_v39, %v10815_v2  ;;  %v4088_v15 = vld [vmem:[#allocation4 + $0x1f0] sm:$0xff]  ;;  %v3727_v13 = vmax.f32 %v3663_v29, 0.0  ;;  %v4065_v58 = vld [vmem:[#allocation4 + $0x138] sm:$0xff]  ;;  %v3728_v39 = vmax.f32 %v3664_v28, 0.0 }
 0x72f   :  { %v3602_v44 = vmul.f32 %v10828_v10, %v15526_v14  ;;  %3863 = vst [vmem:[#allocation3 + $0x81] sm:$0xff] %v3721_v20  ;;  %v11293_v59 = vadd.f32 %v10825_v21, %v3599_v11  ;;  %5207 = vmatpush.msrb.mxu3 %v4066_v16  ;;  %4791 = vmatpush.msra.mxu1 %v4032_v49  ;;  %v15531_v11 = vld [vmem:[#allocation31_spill] sm:$0xff] }
 0x730   :  { %v3603_v19 = vmul.f32 %v10828_v10, %v15528_v52  ;;  %3864 = vst [vmem:[#allocation3 + $0x91] sm:$0xff] %v3722_v30  ;;  %v15530_v45 = vsub.f32 %v15529_v48, %v10815_v2  ;;  %v11300_v31 = vadd.f32 %v10825_v21, %v3600_v41  ;;  %7305 = vmatpush.msra.mxu2 %v4032_v49  ;;  %v4031_v41 = vld [vmem:[#allocation4 + $0x28] sm:$0xff]  ;;  %v3729_v52 = vmax.f32 %v11286_v17, 0.0  ;;  %v4064_v17 = vld [vmem:[#allocation4 + $0x130] sm:$0xff]  ;;  %v4086_v48 = vld [vmem:[#allocation4 + $0x1e0] sm:$0xff] }
 0x731   :  { %3865 = vst [vmem:[#allocation3 + $0x99] sm:$0xff] %v3723_v42  ;;  %5410 = vmatpush.msrb.mxu0 %v4088_v15  ;;  %v3549_v57 = vsub.f32 %v15531_v11, %v10815_v2  ;;  %v15532_v30 = vsub.f32 %v15496_v3, %v10815_v2  ;;  %v11309_v14 = vadd.f32 %v10825_v21, %v3601_v5  ;;  %v4087_v3 = vld [vmem:[#allocation4 + $0x1e8] sm:$0xff]  ;;  %v7357_v11 = vld [vmem:[#allocation3] sm:$0xff] }
 0x732   :  { %v3604_v20 = vmul.f32 %v10828_v10, %v15530_v45  ;;  %3866 = vst [vmem:[#allocation3 + $0xa9] sm:$0xff] %v3724_v0  ;;  %5208 = vmatpush.msrb.mxu3 %v4065_v58  ;;  %v15533_v29 = vsub.f32 %v15497_v8, %v10815_v2  ;;  %v11316_v49 = vadd.f32 %v10825_v21, %v3602_v44  ;;  %v15534_v5 = vld [vmem:[#allocation15_spill] sm:$0xff]  ;;  %v3730_v44 = vmax.f32 %v11293_v59, 0.0  ;;  %v4029_v59 = vld [vmem:[#allocation4 + $0x18] sm:$0xff] }
 0x733   :  { %v3605_v16 = vmul.f32 %v10828_v10, %v15532_v30  ;;  %3867 = vst [vmem:[#allocation3 + $0xb1] sm:$0xff] %v3725_v24  ;;  %4792 = vmatpush.msra.mxu1 %v4031_v41  ;;  %7306 = vmatpush.msra.mxu2 %v4031_v41  ;;  %v3550_v28 = vsub.f32 %v15534_v5, %v10815_v2  ;;  %v4030_v24 = vld [vmem:[#allocation4 + $0x20] sm:$0xff] }
 0x734   :  { %v3606_v42 = vmul.f32 %v10828_v10, %v15533_v29  ;;  %v15535_v0 = vsub.f32 %v15499_v7, %v10815_v2  ;;  %v11326_v8 = vadd.f32 %v10825_v21, %v3603_v19  ;;  %3868 = vst [vmem:[#allocation3 + $0xc1] sm:$0xff] %v3726_v6  ;;  %5411 = vmatpush.msrb.mxu0 %v4087_v3  ;;  %v3731_v7 = vmax.f32 %v11300_v31, 0.0  ;;  %v4063_v19 = vld [vmem:[#allocation4 + $0x128] sm:$0xff]  ;;  %v4085_v6 = vld [vmem:[#allocation4 + $0x1d8] sm:$0xff]  ;;  %v4028_v31 = vld [vmem:[#allocation4 + $0x10] sm:$0xff] }
 0x735   :  { %v15536_v45 = vsub.f32 %v15500_v38, %v10815_v2  ;;  %v11334_v30 = vadd.f32 %v10825_v21, %v3604_v20  ;;  %3869 = vst [vmem:[#allocation3 + $0xc9] sm:$0xff] %v3727_v13  ;;  %5209 = vmatpush.msrb.mxu3 %v4064_v17  ;;  %4793 = vmatpush.msra.mxu1 %v4030_v24  ;;  %v3732_v3 = vmax.f32 %v11309_v14, 0.0  ;;  %v4062_v20 = vld [vmem:[#allocation4 + $0x120] sm:$0xff] }
 0x736   :  { %v3607_v15 = vmul.f32 %v10828_v10, %v15535_v0  ;;  %v15537_v41 = vsub.f32 %v15510_v46, %v10815_v2  ;;  %v3672_v38 = vadd.f32 %v10825_v21, %v3605_v16  ;;  %3870 = vst [vmem:[#allocation3 + $0xd9] sm:$0xff] %v3728_v39  ;;  %7307 = vmatpush.msra.mxu2 %v4030_v24  ;;  %v3733_v46 = vmax.f32 %v11316_v49, 0.0  ;;  %v4084_v16 = vld [vmem:[#allocation4 + $0x1d0] sm:$0xff] }
 0x737   :  { %v3608_v58 = vmul.f32 %v10828_v10, %v15536_v45  ;;  %5412 = vmatpush.msrb.mxu0 %v4086_v48  ;;  %v15538_v13 = vsub.f32 %v15513_v61, %v10815_v2  ;;  %v3673_v17 = vadd.f32 %v10825_v21, %v3606_v42  ;;  %3871 = vst [vmem:[#allocation3 + $0xe1] sm:$0xff] %v3729_v52  ;;  %v3734_v48 = vmax.f32 %v11326_v8, 0.0  ;;  %v4061_v61 = vld [vmem:[#allocation4 + $0x118] sm:$0xff]  ;;  %v4027_v42 = vld [vmem:[#allocation4 + $0x8] sm:$0xff] }
 0x738   :  { %v3609_v29 = vmul.f32 %v10828_v10, %v15537_v41  ;;  %5210 = vmatpush.msrb.mxu3 %v4063_v19  ;;  %4794 = vmatpush.msra.mxu1 %v4029_v59  ;;  %v15539_v14 = vsub.f32 %v15516_v43, %v10815_v2  ;;  %v3674_v24 = vadd.f32 %v10825_v21, %v3607_v15  ;;  %v3735_v43 = vmax.f32 %v11334_v30, 0.0  ;;  %v4083_v15 = vld [vmem:[#allocation4 + $0x1c8] sm:$0xff] }
 0x739   :  { %v3610_v0 = vmul.f32 %v10828_v10, %v15538_v13  ;;  %3872 = vst [vmem:[#allocation3 + $0xf1] sm:$0xff] %v3730_v44  ;;  %7308 = vmatpush.msra.mxu2 %v4029_v59  ;;  %5413 = vmatpush.msrb.mxu0 %v4085_v6  ;;  %v3612_v49 = vmul.f32 %v10828_v10, %v3547_v56  ;;  %v3736_v45 = vmax.f32 %v3672_v38, 0.0  ;;  %v4060_v56 = vld [vmem:[#allocation4 + $0x110] sm:$0xff]  ;;  %v4081_v38 = vld [vmem:[#allocation4 + $0x1b8] sm:$0xff] }
 0x73a   :  { %v3611_v39 = vmul.f32 %v10828_v10, %v15539_v14  ;;  %v3675_v52 = vadd.f32 %v10825_v21, %v3608_v58  ;;  %3873 = vst [vmem:[#allocation3 + $0xf9] sm:$0xff] %v3731_v7  ;;  %5211 = vmatpush.msrb.mxu3 %v4062_v20  ;;  %4795 = vmatpush.msra.mxu1 %v4028_v31  ;;  %v3737_v7 = vmax.f32 %v3673_v17, 0.0  ;;  %v3738_v59 = vmax.f32 %v3674_v24, 0.0  ;;  %v4080_v20 = vld [vmem:[#allocation4 + $0x1b0] sm:$0xff]  ;;  %v4079_v17 = vld [vmem:[#allocation4 + $0x1a8] sm:$0xff]  ;;  %v4078_v14 = vld [vmem:[#allocation4 + $0x1a0] sm:$0xff] }
 0x73b   :  { %v3613_v8 = vmul.f32 %v10828_v10, %v3548_v22  ;;  %v3676_v44 = vadd.f32 %v10825_v21, %v3609_v29  ;;  %3874 = vst [vmem:[#allocation3 + $0x109] sm:$0xff] %v3732_v3  ;;  %7309 = vmatpush.msra.mxu2 %v4028_v31  ;;  %5414 = vmatpush.msrb.mxu0 %v4084_v16  ;;  %v4059_v29 = vld [vmem:[#allocation4 + $0x108] sm:$0xff]  ;;  %v4058_v3 = vld [vmem:[#allocation4 + $0x100] sm:$0xff] }
 0x73c   :  { %v3614_v58 = vmul.f32 %v10828_v10, %v3549_v57  ;;  %v3677_v30 = vadd.f32 %v10825_v21, %v3610_v0  ;;  %3875 = vst [vmem:[#allocation3 + $0x111] sm:$0xff] %v3733_v46  ;;  %5212 = vmatpush.msrb.mxu3 %v4061_v61  ;;  %4796 = vmatpush.msra.mxu1 %v4027_v42  ;;  %v11376_v57 = vrot.slane %v7357_v11, 2  ;;  %v3739_v41 = vmax.f32 %v3675_v52, 0.0  ;;  %v4056_v52 = vld [vmem:[#allocation4 + $0xf0] sm:$0xff] }
 0x73d   :  { %v3615_v22 = vmul.f32 %v10828_v10, %v3550_v28  ;;  %v3678_v19 = vadd.f32 %v10825_v21, %v3611_v39  ;;  %3876 = vst [vmem:[#allocation3 + $0x121] sm:$0xff] %v3734_v48  ;;  %7310 = vmatpush.msra.mxu2 %v4027_v42  ;;  %5415 = vmatpush.msrb.mxu0 %v4083_v15  ;;  %v3740_v10 = vmax.f32 %v3676_v44, 0.0  ;;  %v11383_v39 = vld [vmem:[#allocation3 + $0x10] sm:$0x3]  ;;  %v3747_v61 = vmax.f32 %v11101_v50, 0.0  ;;  %v4077_v42 = vld [vmem:[#allocation4 + $0x198] sm:$0xff] }
 0x73e   :  { %v3679_v6 = vadd.f32 %v10825_v21, %v3612_v49  ;;  %3877 = vst [vmem:[#allocation3 + $0x129] sm:$0xff] %v3735_v43  ;;  %5213 = vmatpush.msrb.mxu3 %v4060_v56  ;;  %4797 = vmatpush.msra.mxu1 %v4026_v4  ;;  %v3680_v2 = vadd.f32 %v10825_v21, %v3613_v8  ;;  %v3741_v28 = vmax.f32 %v3677_v30, 0.0  ;;  %v4493_v48 = vrot.slane %v11383_v39, 2  ;;  %v4105_v43 = vld [vmem:[#allocation4 + $0x278] sm:$0xff]  ;;  %v4076_v8 = vld [vmem:[#allocation4 + $0x190] sm:$0xff]  ;;  %v4055_v44 = vld [vmem:[#allocation4 + $0xe8] sm:$0xff] }
 0x73f   :  { %3878 = vst [vmem:[#allocation3 + $0x139] sm:$0xff] %v3736_v45  ;;  %7311 = vmatpush.msra.mxu2 %v4026_v4  ;;  %5416 = vmatpush.msrb.mxu0 %v4082_v51  ;;  %v3681_v5 = vadd.f32 %v10825_v21, %v3614_v58  ;;  %v3682_v31 = vadd.f32 %v10825_v21, %v3615_v22  ;;  %v3742_v13 = vmax.f32 %v3678_v19, 0.0  ;;  %v4057_v21 = vld [vmem:[#allocation4 + $0xf8] sm:$0xff]  ;;  %v3748_v49 = vmax.f32 %v11105_v37, 0.0  ;;  %v4104_v37 = vld [vmem:[#allocation4 + $0x270] sm:$0xff]  ;;  %v4075_v4 = vld [vmem:[#allocation4 + $0x188] sm:$0xff] }
 0x740   :  { %3879 = vst [vmem:[#allocation3 + $0x141] sm:$0xff] %v3737_v7  ;;  %4798 = vmatmul.f32.vlgmr.msra.gmra.mxu1 %v7357_v11  ;;  %4894 = vmatmul.f32.vlgmr.msra.gmra.mxu2 %v7357_v11  ;;  %v3743_v0 = vmax.f32 %v3679_v6, 0.0  ;;  %v3744_v46 = vmax.f32 %v3680_v2, 0.0  ;;  %v3749_v15 = vmax.f32 %v11109_v53, 0.0  ;;  %v3750_v45 = vmax.f32 %v11113_v32, 0.0  ;;  %v3921_v58 = vld [vmem:[#allocation3 + $0x18] sm:$0xff] }
 0x741   :  { %3880 = vst [vmem:[#allocation3 + $0x151] sm:$0xff] %v3738_v59  ;;  %5214 = vmatpush.msrb.mxu3 %v4059_v29  ;;  %5417 = vmatpush.msrb.mxu0 %v4081_v38  ;;  %v3745_v16 = vmax.f32 %v3681_v5, 0.0  ;;  %v3746_v24 = vmax.f32 %v3682_v31, 0.0  ;;  %v4494_v50 = vsel %vm814_vm2, %v11376_v57, %v4493_v48  ;;  %v3751_v56 = vmax.f32 %v11117_v40, 0.0  ;;  %v11393_v53 = vld [vmem:[#allocation3 + $0x20] sm:$0xff] }
 0x742   :  { %3881 = vst [vmem:[#allocation3 + $0x159] sm:$0xff] %v3739_v41  ;;  %4991 = vmatpush.msrb.mxu2 %v4057_v21  ;;  %5618 = vmatpush.msrb.mxu1 %v4105_v43  ;;  %v3752_v30 = vmax.f32 %v11121_v9, 0.0  ;;  %v3753_v32 = vmax.f32 %v11125_v26, 0.0  ;;  %v4074_v7 = vld [vmem:[#allocation4 + $0x180] sm:$0xff]  ;;  %v3754_v51 = vmax.f32 %v11129_v18, 0.0  ;;  %v4271_v40 = vrot.slane %v3921_v58, 1 }
 0x743   :  { %3882 = vst [vmem:[#allocation3 + $0x169] sm:$0xff] %v3740_v10  ;;  %5215 = vmatpush.msrb.mxu3 %v4058_v3  ;;  %5418 = vmatpush.msrb.mxu0 %v4080_v20  ;;  %v4495_v22 = vrot.slane %v3921_v58, 2  ;;  %v4496_v19 = vrot.slane %v11393_v53, 2  ;;  %v3755_v59 = vmax.f32 %v11133_v33, 0.0  ;;  %v4272_v26 = vrot.slane %v11393_v53, 1  ;;  %v4054_v18 = vld [vmem:[#allocation4 + $0xe0] sm:$0xff] }
 0x744   :  { %3883 = vst [vmem:[#allocation3 + $0x171] sm:$0xff] %v3741_v28  ;;  %5216 = vmatmul.f32.vlgmr.msrb.gmra.mxu3 %v11376_v57  ;;  %4992 = vmatpush.msrb.mxu2 %v4056_v52  ;;  %v3757_v6 = vmax.f32 %v11141_v60, 0.0  ;;  %v3758_v41 = vmax.f32 %v11145_v25, 0.0  ;;  %v3759_v38 = vmax.f32 %v11149_v23, 0.0  ;;  %v3923_v60 = vld [vmem:[#allocation3 + $0x28] sm:$0x3] }
 0x745   :  { %3884 = vst [vmem:[#allocation3 + $0x181] sm:$0xff] %v3742_v13  ;;  %5419 = vmatpush.msrb.mxu0 %v4079_v17  ;;  %5619 = vmatpush.msrb.mxu1 %v4104_v37  ;;  %v11408_v33 = vsel %vm814_vm2, %v4495_v22, %v4496_v19  ;;  %v11411_v29 = vsel %vm461_vm1, %v4271_v40, %v4272_v26  ;;  %v3760_v2 = vmax.f32 %v11153_v63, 0.0  ;;  %v3761_v25 = vmax.f32 %v11157_v1, 0.0  ;;  %v15543_v17 = vld [vmem:[#allocation11_spill] sm:$0xff]  ;;  %v4102_v43 = vld [vmem:[#allocation4 + $0x260] sm:$0xff]  ;;  %v11471_v37 = vld [vmem:[#allocation3 + $0x50] sm:$0xff] }
 0x746   :  { %3885 = vst [vmem:[#allocation3 + $0x189] sm:$0xff] %v3743_v0  ;;  %4993 = vmatpush.msrb.mxu2 %v4055_v44  ;;  %v3762_v10 = vmax.f32 %v11161_v35, 0.0  ;;  %v4274_v5 = vrot.slane %v3923_v60, 1  ;;  %v3763_v28 = vmax.f32 %v11165_v34, 0.0  ;;  %v3764_v23 = vmax.f32 %v11169_v54, 0.0  ;;  %v11437_v0 = vld [vmem:[#allocation3 + $0x30] sm:$0xff] }
 0x747   :  { %3886 = vst [vmem:[#allocation3 + $0x1c9] sm:$0xff] %v3744_v46  ;;  %5420 = vmatpush.msrb.mxu0 %v4078_v14  ;;  %v4498_v20 = vrot.slane %v3923_v60, 2  ;;  %v3765_v1 = vmax.f32 %v11173_v47, 0.0  ;;  %v3766_v35 = vmax.f32 %v11177_v12, 0.0  ;;  %v3767_v34 = vmax.f32 %v11181_v62, 0.0  ;;  %v15542_v47 = vld [vmem:[#allocation10_spill] sm:$0xff] }
 0x748   :  { %3887 = vst [vmem:[#allocation3 + $0x1d1] sm:$0xff] %v3745_v16  ;;  %4801 = vmatmul.f32.gmra.mxu1 %v7357_v11  ;;  %4897 = vmatmul.f32.gmra.mxu2 %v7357_v11  ;;  %v3756_v11 = vmax.f32 %v11137_v36, 0.0  ;;  %v4103_v36 = vld [vmem:[#allocation4 + $0x268] sm:$0xff]  ;;  %v11423_v63 = vsel %vm461_vm1, %v4272_v26, %v4274_v5  ;;  %v3768_v54 = vmax.f32 %v11185_v27, 0.0  ;;  %v3769_v13 = vmax.f32 %v15542_v47, 0.0  ;;  %v11439_v12 = vld [vmem:[#allocation3 + $0x38] sm:$0xff] }
 0x749   :  { %3888 = vst [vmem:[#allocation3 + $0x1e1] sm:$0xff] %v3746_v24  ;;  %5421 = vmatpush.msrb.mxu0 %v4077_v42  ;;  %4994 = vmatpush.msrb.mxu2 %v4054_v18  ;;  %v11433_v31 = vsel %vm814_vm2, %v4496_v19, %v4498_v20  ;;  %v3770_v46 = vmax.f32 %v15543_v17, 0.0  ;;  %v15544_v62 = vld [vmem:[#allocation12_spill] sm:$0xff]  ;;  %v15545_v27 = vld [vmem:[#allocation13_spill] sm:$0xff]  ;;  %v4500_v21 = vrot.slane %v11437_v0, 2  ;;  %v4501_v48 = vrot.slane %v11439_v12, 2 }
 0x74a   :  { %3889 = vst [vmem:[#allocation3 + $0x1e9] sm:$0xff] %v3747_v61  ;;  %5620 = vmatpush.msrb.mxu1 %v4103_v36  ;;  %v3771_v16 = vmax.f32 %v15544_v62, 0.0  ;;  %v3772_v14 = vmax.f32 %v15545_v27, 0.0  ;;  %v3773_v61 = vmax.f32 %v11205_v55, 0.0  ;;  %v4053_v42 = vld [vmem:[#allocation4 + $0xd8] sm:$0xff]  ;;  %v11496_v19 = vld [vmem:[#allocation3 + $0x60] sm:$0xff] }
 0x74b   :  { %3890 = vst [vmem:[#allocation3 + $0x1f9] sm:$0xff] %v3748_v49  ;;  %5422 = vmatpush.msrb.mxu0 %v4076_v8  ;;  %v15546_v49 = vld [vmem:[#allocation14_spill] sm:$0xff]  ;;  %4995 = vmatpush.msrb.mxu2 %v4053_v42  ;;  %v4510_v26 = vrot.slane %v11496_v19, 2  ;;  %v4051_v18 = vld [vmem:[#allocation4 + $0xc8] sm:$0xff]  ;;  %v11552_v62 = vld [vmem:[#allocation3 + $0x98] sm:$0xff] }
 0x74c   :  { %3891 = vst [vmem:[#allocation3 + $0x201] sm:$0xff] %v3749_v15  ;;  %5219 = vmatmul.f32.gmra.mxu3 %v4494_v50  ;;  %v3774_v52 = vmax.f32 %v15546_v49, 0.0  ;;  %5621 = vmatpush.msrb.mxu1 %v4102_v43  ;;  %v11454_v15 = vsel %vm814_vm2, %v4500_v21, %v4501_v48  ;;  %v11457_v55 = vld [vmem:[#allocation3 + $0x40] sm:$0x3]  ;;  %v11469_v50 = vld [vmem:[#allocation3 + $0x48] sm:$0xff]  ;;  %v4049_v21 = vld [vmem:[#allocation4 + $0xb8] sm:$0xff] }
 0x74d   :  { %3892 = vst [vmem:[#allocation3 + $0x211] sm:$0xff] %v3750_v45  ;;  %5423 = vmatpush.msrb.mxu0 %v4075_v4  ;;  %v4503_v44 = vrot.slane %v11457_v55, 2  ;;  %v4505_v4 = vrot.slane %v11469_v50, 2  ;;  %v11525_v5 = vld [vmem:[#allocation3 + $0x80] sm:$0xff] }
 0x74e   :  { %3893 = vst [vmem:[#allocation3 + $0x219] sm:$0xff] %v3751_v56  ;;  %v11400_v9 = vld [vmem:[#allocation3 + $0x1c8] sm:$0xff]  ;;  %v4516_v20 = vrot.slane %v11525_v5, 2  ;;  %v11565_v42 = vld [vmem:[#allocation3 + $0xa0] sm:$0x3] }
 0x74f   :  { %3894 = vst [vmem:[#allocation3 + $0x229] sm:$0xff] %v3752_v30  ;;  %5424 = vmatpush.msrb.mxu0 %v4074_v7  ;;  %v11420_v3 = vld [vmem:[#allocation3 + $0x1d0] sm:$0xff]  ;;  %v11466_v45 = vsel %vm814_vm2, %v4501_v48, %v4503_v44  ;;  %v4101_v30 = vld [vmem:[#allocation4 + $0x258] sm:$0xff]  ;;  %v4098_v48 = vld [vmem:[#allocation4 + $0x240] sm:$0xff] }
 0x750   :  { %3895 = vst [vmem:[#allocation3 + $0x231] sm:$0xff] %v3753_v32  ;;  %4804 = vmatmul.f32.gmra.mxu1 %v3921_v58  ;;  %4900 = vmatmul.f32.gmra.mxu2 %v11400_v9  ;;  %v11444_v24 = vld [vmem:[#allocation3 + $0x1e0] sm:$0xff]  ;;  %v11484_v7 = vld [vmem:[#allocation3 + $0x58] sm:$0x3]  ;;  %v11577_v44 = vld [vmem:[#allocation3 + $0xa8] sm:$0xff] }
 0x751   :  { %3896 = vst [vmem:[#allocation3 + $0x241] sm:$0xff] %v3754_v51  ;;  %5425 = vmatmul.f32.vlgmr.msrb.gmra.mxu0 %v3921_v58  ;;  %v11459_v8 = vld [vmem:[#allocation3 + $0x1e8] sm:$0xff]  ;;  %v4506_v58 = vrot.slane %v11471_v37, 2  ;;  %5622 = vmatpush.msrb.mxu1 %v4101_v30  ;;  %v4508_v40 = vrot.slane %v11484_v7, 2 }
 0x752   :  { %15540 = vst [vmem:[#allocation16_spill] sm:$0xff] %v11408_v33  ;;  %v11473_v56 = vld [vmem:[#allocation3 + $0x1f8] sm:$0xff] }
 0x753   :  { %3897 = vst [vmem:[#allocation3 + $0x249] sm:$0xff] %v3755_v59  ;;  %v11481_v32 = vsel %vm814_vm2, %v4505_v4, %v4506_v58  ;;  %v11486_v51 = vld [vmem:[#allocation3 + $0x200] sm:$0xff]  ;;  %v11493_v22 = vsel %vm814_vm2, %v4506_v58, %v4508_v40  ;;  %v11498_v59 = vld [vmem:[#allocation3 + $0x68] sm:$0xff]  ;;  %v11579_v4 = vld [vmem:[#allocation3 + $0xb0] sm:$0xff] }
 0x754   :  { %3898 = vst [vmem:[#allocation3 + $0x259] sm:$0xff] %v3756_v11  ;;  %5222 = vmatmul.f32.gmra.mxu3 %v11408_v33  ;;  %v11500_v11 = vld [vmem:[#allocation3 + $0x210] sm:$0xff]  ;;  %v4526_v30 = vrot.slane %v11579_v4, 2  ;;  %v11686_v33 = vld [vmem:[#allocation3 + $0xf8] sm:$0xff] }
 0x755   :  { %3899 = vst [vmem:[#allocation3 + $0x261] sm:$0xff] %v3757_v6  ;;  %v4511_v6 = vrot.slane %v11498_v59, 2  ;;  %v11513_v60 = vld [vmem:[#allocation3 + $0x218] sm:$0xff]  ;;  %v4048_v40 = vld [vmem:[#allocation4 + $0xb0] sm:$0xff] }
 0x756   :  { %3900 = vst [vmem:[#allocation3 + $0x271] sm:$0xff] %v3758_v41  ;;  %v4100_v41 = vld [vmem:[#allocation4 + $0x250] sm:$0xff] }
 0x757   :  { %3901 = vst [vmem:[#allocation3 + $0x279] sm:$0xff] %v3759_v38  ;;  %5623 = vmatpush.msrb.mxu1 %v4100_v41  ;;  %v11508_v36 = vsel %vm814_vm2, %v4510_v26, %v4511_v6  ;;  %v11511_v38 = vld [vmem:[#allocation3 + $0x70] sm:$0x3]  ;;  %v4097_v26 = vld [vmem:[#allocation4 + $0x238] sm:$0xff] }
 0x758   :  { %3902 = vst [vmem:[#allocation3 + $0x289] sm:$0xff] %v3760_v2  ;;  %4807 = vmatmul.f32.gmra.mxu1 %v11393_v53  ;;  %4903 = vmatmul.f32.gmra.mxu2 %v11420_v3  ;;  %v4513_v2 = vrot.slane %v11511_v38, 2  ;;  %v11540_v47 = vld [vmem:[#allocation3 + $0x230] sm:$0xff] }
 0x759   :  { %3903 = vst [vmem:[#allocation3 + $0x291] sm:$0xff] %v3761_v25  ;;  %5428 = vmatmul.f32.gmra.mxu0 %v11393_v53  ;;  %v4052_v53 = vld [vmem:[#allocation4 + $0xd0] sm:$0xff] }
 0x75a   :  { %3904 = vst [vmem:[#allocation3 + $0x2a1] sm:$0xff] %v3762_v10  ;;  %4996 = vmatpush.msrb.mxu2 %v4052_v53  ;;  %v11520_v25 = vsel %vm814_vm2, %v4511_v6, %v4513_v2  ;;  %v11523_v10 = vld [vmem:[#allocation3 + $0x78] sm:$0xff]  ;;  %v11567_v49 = vld [vmem:[#allocation3 + $0x248] sm:$0xff]  ;;  %v4525_v53 = vrot.slane %v11577_v44, 2 }
 0x75b   :  { %3905 = vst [vmem:[#allocation3 + $0x2a9] sm:$0xff] %v3763_v28  ;;  %v11527_v28 = vld [vmem:[#allocation3 + $0x228] sm:$0xff]  ;;  %v11581_v58 = vld [vmem:[#allocation3 + $0x258] sm:$0xff] }
 0x75c   :  { %3906 = vst [vmem:[#allocation3 + $0x2b9] sm:$0xff] %v3764_v23  ;;  %5225 = vmatmul.f32.gmra.mxu3 %v11433_v31  ;;  %4997 = vmatpush.msrb.mxu2 %v4051_v18  ;;  %v4515_v23 = vrot.slane %v11523_v10, 2  ;;  %v11589_v6 = vsel %vm814_vm2, %v4525_v53, %v4526_v30  ;;  %v11592_v18 = vld [vmem:[#allocation3 + $0xb8] sm:$0x3]  ;;  %v11594_v41 = vld [vmem:[#allocation3 + $0x260] sm:$0xff] }
 0x75d   :  { %15541 = vst [vmem:[#allocation17_spill] sm:$0xff] %v11433_v31  ;;  %v4528_v2 = vrot.slane %v11592_v18, 2 }
 0x75e   :  { %3907 = vst [vmem:[#allocation3 + $0x2c1] sm:$0xff] %v3765_v1  ;;  %v4050_v1 = vld [vmem:[#allocation4 + $0xc0] sm:$0xff] }
 0x75f   :  { %3908 = vst [vmem:[#allocation3 + $0x2d1] sm:$0xff] %v3766_v35  ;;  %4998 = vmatpush.msrb.mxu2 %v4050_v1  ;;  %v4099_v35 = vld [vmem:[#allocation4 + $0x248] sm:$0xff] }
 0x760   :  { %3909 = vst [vmem:[#allocation3 + $0x2d9] sm:$0xff] %v3767_v34  ;;  %4810 = vmatmul.f32.gmra.mxu1 %v11437_v0  ;;  %4906 = vmatmul.f32.gmra.mxu2 %v11444_v24  ;;  %v11535_v34 = vsel %vm814_vm2, %v4515_v23, %v4516_v20  ;;  %v11601_v23 = vsel %vm814_vm2, %v4526_v30, %v4528_v2  ;;  %v11606_v1 = vld [vmem:[#allocation3 + $0xc8] sm:$0xff]  ;;  %v11623_v30 = vld [vmem:[#allocation3 + $0xd0] sm:$0x3]  ;;  %v11629_v2 = vld [vmem:[#allocation3 + $0x278] sm:$0xff] }
 0x761   :  { %3910 = vst [vmem:[#allocation3 + $0x2e9] sm:$0xff] %v3768_v54  ;;  %5431 = vmatmul.f32.gmra.mxu0 %v11437_v0  ;;  %5624 = vmatpush.msrb.mxu1 %v4099_v35  ;;  %v11538_v54 = vld [vmem:[#allocation3 + $0x88] sm:$0x3] }
 0x762   :  { %3911 = vst [vmem:[#allocation3 + $0x2f1] sm:$0xff] %v3769_v13  ;;  %v4518_v13 = vrot.slane %v11538_v54, 2  ;;  %4999 = vmatpush.msrb.mxu2 %v4049_v21  ;;  %v4047_v21 = vld [vmem:[#allocation4 + $0xa8] sm:$0xff] }
 0x763   :  { %3912 = vst [vmem:[#allocation3 + $0x301] sm:$0xff] %v3770_v46  ;;  %v11550_v46 = vld [vmem:[#allocation3 + $0x90] sm:$0xff]  ;;  %5625 = vmatpush.msrb.mxu1 %v4098_v48 }
 0x764   :  { %3913 = vst [vmem:[#allocation3 + $0x309] sm:$0xff] %v3771_v16  ;;  %5228 = vmatmul.f32.gmra.mxu3 %v11454_v15  ;;  %v11547_v17 = vsel %vm814_vm2, %v4516_v20, %v4518_v13  ;;  %v11554_v16 = vld [vmem:[#allocation3 + $0x240] sm:$0xff]  ;;  %v4520_v27 = vrot.slane %v11550_v46, 2  ;;  %5000 = vmatpush.msrb.mxu2 %v4048_v40  ;;  %v11610_v13 = vld [vmem:[#allocation3 + $0x270] sm:$0xff] }
 0x765   :  { %3914 = vst [vmem:[#allocation3 + $0x319] sm:$0xff] %v3772_v14  ;;  %v4521_v14 = vrot.slane %v11552_v62, 2  ;;  %5626 = vmatpush.msrb.mxu1 %v4097_v26  ;;  %v11604_v20 = vld [vmem:[#allocation3 + $0xc0] sm:$0xff]  ;;  %v4096_v48 = vld [vmem:[#allocation4 + $0x230] sm:$0xff] }
 0x766   :  { %15547 = vst [vmem:[#allocation18_spill] sm:$0xff] %v11454_v15  ;;  %5001 = vmatpush.msrb.mxu2 %v4047_v21  ;;  %v11672_v15 = vld [vmem:[#allocation3 + $0x290] sm:$0xff] }
 0x767   :  { %3915 = vst [vmem:[#allocation3 + $0x321] sm:$0xff] %v3773_v61  ;;  %v11562_v61 = vsel %vm814_vm2, %v4520_v27, %v4521_v14  ;;  %v4530_v27 = vrot.slane %v11604_v20, 2  ;;  %5627 = vmatpush.msrb.mxu1 %v4096_v48  ;;  %v11641_v48 = vld [vmem:[#allocation3 + $0xd8] sm:$0xff] }
 0x768   :  { %3916 = vst [vmem:[#allocation3 + $0x331] sm:$0xff] %v3774_v52  ;;  %4813 = vmatmul.f32.gmra.mxu1 %v11439_v12  ;;  %4909 = vmatmul.f32.gmra.mxu2 %v11459_v8  ;;  %v4523_v52 = vrot.slane %v11565_v42, 2 }
 0x769   :  { %5434 = vmatmul.f32.gmra.mxu0 %v11439_v12  ;;  %15548 = vst [vmem:[#allocation22_spill] sm:$0xff] %v11466_v45 }
 0x76a   :  { %15549 = vst [vmem:[#allocation23_spill] sm:$0xff] %v11481_v32  ;;  %v11574_v43 = vsel %vm814_vm2, %v4521_v14, %v4523_v52  ;;  %v4531_v14 = vrot.slane %v11606_v1, 2 }
 0x76b   :  { %15550 = vst [vmem:[#allocation24_spill] sm:$0xff] %v11493_v22 }
 0x76c   :  { %5231 = vmatmul.f32.gmra.mxu3 %v11466_v45  ;;  %15551 = vst [vmem:[#allocation25_spill] sm:$0xff] %v11508_v36  ;;  %v11620_v53 = vsel %vm814_vm2, %v4530_v27, %v4531_v14 }
 0x76d   :  { %15552 = vst [vmem:[#allocation26_spill] sm:$0xff] %v11520_v25 }
 0x76e   :  { %15553 = vst [vmem:[#allocation27_spill] sm:$0xff] %v11535_v34 }
 0x76f   :  { %15554 = vst [vmem:[#allocation28_spill] sm:$0xff] %v11547_v17 }
 0x770   :  { %4816 = vmatmul.f32.gmra.mxu1 %v11469_v50  ;;  %4912 = vmatmul.f32.gmra.mxu2 %v11473_v56  ;;  %15555 = vst [vmem:[#allocation29_spill] sm:$0xff] %v11562_v61 }
 0x771   :  { %5437 = vmatmul.f32.gmra.mxu0 %v11469_v50  ;;  %15556 = vst [vmem:[#allocation30_spill] sm:$0xff] %v11574_v43 }
 0x772   :  { %15557 = vst [vmem:[#allocation19_spill] sm:$0xff] %v11589_v6 }
 0x773   :  { %15558 = vst [vmem:[#allocation20_spill] sm:$0xff] %v11601_v23 }
 0x774   :  { %5234 = vmatmul.f32.gmra.mxu3 %v11481_v32  ;;  %15561 = vst [vmem:[#allocation15_spill] sm:$0xff] %v11620_v53 }
 0x778   :  { %4819 = vmatmul.f32.gmra.mxu1 %v11471_v37  ;;  %4915 = vmatmul.f32.gmra.mxu2 %v11486_v51 }
 0x779   :  { %5440 = vmatmul.f32.gmra.mxu0 %v11471_v37 }
 0x77c   :  { %5237 = vmatmul.f32.gmra.mxu3 %v11493_v22  ;;  %v11664_v22 = vld [vmem:[#allocation3 + $0xe8] sm:$0x3] }
 0x780   :  { %4822 = vmatmul.f32.gmra.mxu1 %v11496_v19  ;;  %4918 = vmatmul.f32.gmra.mxu2 %v11500_v11 }
 0x781   :  { %5443 = vmatmul.f32.gmra.mxu0 %v11496_v19 }
 0x784   :  { %5240 = vmatmul.f32.gmra.mxu3 %v11508_v36 }
 0x788   :  { %4825 = vmatmul.f32.gmra.mxu1 %v11498_v59  ;;  %4921 = vmatmul.f32.gmra.mxu2 %v11513_v60 }
 0x789   :  { %5446 = vmatmul.f32.gmra.mxu0 %v11498_v59 }
 0x78c   :  { %5243 = vmatmul.f32.gmra.mxu3 %v11520_v25 }
 0x790   :  { %4828 = vmatmul.f32.gmra.mxu1 %v11523_v10  ;;  %4924 = vmatmul.f32.gmra.mxu2 %v11527_v28 }
 0x791   :  { %5449 = vmatmul.f32.gmra.mxu0 %v11523_v10 }
 0x794   :  { %5246 = vmatmul.f32.gmra.mxu3 %v11535_v34  ;;  %v4535_v34 = vrot.slane %v11641_v48, 2 }
 0x798   :  { %4831 = vmatmul.f32.gmra.mxu1 %v11525_v5  ;;  %4927 = vmatmul.f32.gmra.mxu2 %v11540_v47 }
 0x799   :  { %5452 = vmatmul.f32.gmra.mxu0 %v11525_v5 }
 0x79c   :  { %5249 = vmatmul.f32.gmra.mxu3 %v11547_v17  ;;  %v11651_v17 = vld [vmem:[#allocation3 + $0x288] sm:$0xff] }
 0x7a0   :  { %4834 = vmatmul.f32.gmra.mxu1 %v11550_v46  ;;  %4930 = vmatmul.f32.gmra.mxu2 %v11554_v16 }
 0x7a1   :  { %5455 = vmatmul.f32.gmra.mxu0 %v11550_v46 }
 0x7a4   :  { %5252 = vmatmul.f32.gmra.mxu3 %v11562_v61 }
 0x7a8   :  { %4837 = vmatmul.f32.gmra.mxu1 %v11552_v62  ;;  %4933 = vmatmul.f32.gmra.mxu2 %v11567_v49 }
 0x7a9   :  { %5458 = vmatmul.f32.gmra.mxu0 %v11552_v62 }
 0x7ac   :  { %5255 = vmatmul.f32.gmra.mxu3 %v11574_v43 }
 0x7b0   :  { %4840 = vmatmul.f32.gmra.mxu1 %v11577_v44  ;;  %4936 = vmatmul.f32.gmra.mxu2 %v11581_v58 }
 0x7b1   :  { %5461 = vmatmul.f32.gmra.mxu0 %v11577_v44 }
 0x7b4   :  { %5258 = vmatmul.f32.gmra.mxu3 %v11589_v6 }
 0x7b8   :  { %4843 = vmatmul.f32.gmra.mxu1 %v11579_v4  ;;  %4939 = vmatmul.f32.gmra.mxu2 %v11594_v41 }
 0x7b9   :  { %5464 = vmatmul.f32.gmra.mxu0 %v11579_v4 }
 0x7bc   :  { %5261 = vmatmul.f32.gmra.mxu3 %v11601_v23  ;;  %v4533_v23 = vrot.slane %v11623_v30, 2 }
 0x7bd   :  { %v11608_v35 = vpop.f32.mrf.mxu1 }
 0x7be   :  { %15559 = vst [vmem:[#allocation21_spill] sm:$0xff] %v11608_v35  ;;  %v11638_v21 = vsel %vm814_vm2, %v4531_v14, %v4533_v23  ;;  %v4046_v23 = vld [vmem:[#allocation4 + $0xa0] sm:$0xff]  ;;  %v4095_v14 = vld [vmem:[#allocation4 + $0x228] sm:$0xff] }
 0x7bf   :  { %15565 = vst [vmem:[#allocation13_spill] sm:$0xff] %v11638_v21  ;;  %5002 = vmatpush.msrb.mxu2 %v4046_v23  ;;  %5628 = vmatpush.msrb.mxu1 %v4095_v14  ;;  %v4538_v23 = vrot.slane %v11664_v22, 2  ;;  %v11758_v35 = vld [vmem:[#allocation3 + $0x2c0] sm:$0xff] }
 0x7c0   :  { %4846 = vmatmul.f32.gmra.mxu1 %v11604_v20  ;;  %4942 = vmatmul.f32.gmra.mxu2 %v11610_v13  ;;  %15598 = vst [vmem:[#allocation63_spill] sm:$0xff] %v11758_v35 }
 0x7c1   :  { %5467 = vmatmul.f32.gmra.mxu0 %v11604_v20 }
 0x7c3   :  { %v11617_v52 = vpop.f32.mrf.mxu2 }
 0x7c4   :  { %15560 = vst [vmem:[#allocation31_spill] sm:$0xff] %v11617_v52  ;;  %5264 = vmatmul.f32.gmra.mxu3 %v11620_v53  ;;  %v11643_v53 = vld [vmem:[#allocation3 + $0xe0] sm:$0xff] }
 0x7c5   :  { %v11625_v40 = vpop.f32.mrf.mxu1  ;;  %v4536_v25 = vrot.slane %v11643_v53, 2 }
 0x7c6   :  { %15562 = vst [vmem:[#allocation10_spill] sm:$0xff] %v11625_v40 }
 0x7c7   :  { %v11627_v26 = vpop.f32.mrf.mxu3  ;;  %v11661_v36 = vsel %vm814_vm2, %v4535_v34, %v4536_v25  ;;  %v11681_v14 = vsel %vm814_vm2, %v4536_v25, %v4538_v23  ;;  %v4045_v25 = vld [vmem:[#allocation4 + $0x98] sm:$0xff]  ;;  %v4094_v23 = vld [vmem:[#allocation4 + $0x220] sm:$0xff] }
 0x7c8   :  { %15563 = vst [vmem:[#allocation11_spill] sm:$0xff] %v11627_v26  ;;  %4849 = vmatmul.f32.gmra.mxu1 %v11606_v1  ;;  %4945 = vmatmul.f32.gmra.mxu2 %v11629_v2 }
 0x7c9   :  { %5470 = vmatmul.f32.gmra.mxu0 %v11606_v1  ;;  %15570 = vst [vmem:[#allocation35_spill] sm:$0xff] %v11661_v36  ;;  %5003 = vmatpush.msrb.mxu2 %v4045_v25 }
 0x7ca   :  { %15575 = vst [vmem:[#allocation40_spill] sm:$0xff] %v11681_v14  ;;  %5629 = vmatpush.msrb.mxu1 %v4094_v23 }
 0x7cb   :  { %v11635_v27 = vpop.f32.mrf.mxu2 }
 0x7cc   :  { %15564 = vst [vmem:[#allocation12_spill] sm:$0xff] %v11635_v27  ;;  %5267 = vmatmul.f32.gmra.mxu3 %v11638_v21 }
 0x7cd   :  { %v11645_v6 = vpop.f32.mrf.mxu1 }
 0x7ce   :  { %15566 = vst [vmem:[#allocation14_spill] sm:$0xff] %v11645_v6  ;;  %v11647_v43 = vpop.f32.mrf.mxu0 }
 0x7cf   :  { %15567 = vst [vmem:[#allocation32_spill] sm:$0xff] %v11647_v43  ;;  %v11649_v61 = vpop.f32.mrf.mxu3  ;;  %v11737_v43 = vld [vmem:[#allocation3 + $0x2b8] sm:$0xff] }
 0x7d0   :  { %15568 = vst [vmem:[#allocation33_spill] sm:$0xff] %v11649_v61  ;;  %4852 = vmatmul.f32.gmra.mxu1 %v11641_v48  ;;  %4948 = vmatmul.f32.gmra.mxu2 %v11651_v17  ;;  %v11715_v61 = vld [vmem:[#allocation3 + $0x2a8] sm:$0xff] }
 0x7d1   :  { %5473 = vmatmul.f32.gmra.mxu0 %v11641_v48  ;;  %15585 = vst [vmem:[#allocation50_spill] sm:$0xff] %v11715_v61 }
 0x7d2   :  { %15591 = vst [vmem:[#allocation56_spill] sm:$0xff] %v11737_v43 }
 0x7d3   :  { %v11658_v21 = vpop.f32.mrf.mxu2 }
 0x7d4   :  { %15569 = vst [vmem:[#allocation34_spill] sm:$0xff] %v11658_v21  ;;  %5270 = vmatmul.f32.gmra.mxu3 %v11661_v36  ;;  %v11684_v36 = vld [vmem:[#allocation3 + $0xf0] sm:$0xff] }
 0x7d5   :  { %v11666_v32 = vpop.f32.mrf.mxu1 }
 0x7d6   :  { %15571 = vst [vmem:[#allocation36_spill] sm:$0xff] %v11666_v32  ;;  %v11668_v45 = vpop.f32.mrf.mxu0  ;;  %v11694_v32 = vld [vmem:[#allocation3 + $0x2a0] sm:$0xff] }
 0x7d7   :  { %15572 = vst [vmem:[#allocation37_spill] sm:$0xff] %v11668_v45  ;;  %v11670_v31 = vpop.f32.mrf.mxu3 }
 0x7d8   :  { %15573 = vst [vmem:[#allocation38_spill] sm:$0xff] %v11670_v31  ;;  %4855 = vmatmul.f32.gmra.mxu1 %v11643_v53  ;;  %4951 = vmatmul.f32.gmra.mxu2 %v11672_v15  ;;  %v4540_v31 = vrot.slane %v11684_v36, 2 }
 0x7d9   :  { %5476 = vmatmul.f32.gmra.mxu0 %v11643_v53  ;;  %15579 = vst [vmem:[#allocation44_spill] sm:$0xff] %v11694_v32 }
 0x7db   :  { %v11678_v34 = vpop.f32.mrf.mxu2 }
 0x7dc   :  { %15574 = vst [vmem:[#allocation39_spill] sm:$0xff] %v11678_v34  ;;  %5273 = vmatmul.f32.gmra.mxu3 %v11681_v14  ;;  %v4541_v34 = vrot.slane %v11686_v33, 2 }
 0x7dd   :  { %v11688_v21 = vpop.f32.mrf.mxu1 }
 0x7de   :  { %15576 = vst [vmem:[#allocation41_spill] sm:$0xff] %v11688_v21  ;;  %v11690_v27 = vpop.f32.mrf.mxu0  ;;  %v11704_v21 = vsel %vm814_vm2, %v4540_v31, %v4541_v34 }
 0x7df   :  { %15577 = vst [vmem:[#allocation42_spill] sm:$0xff] %v11690_v27  ;;  %v11692_v52 = vpop.f32.mrf.mxu3 }
 0x7e0   :  { %15578 = vst [vmem:[#allocation43_spill] sm:$0xff] %v11692_v52  ;;  %4858 = vmatmul.f32.gmra.mxu1 %v11684_v36  ;;  %4954 = vmatmul.f32.gmra.mxu2 %v11694_v32  ;;  %v11707_v52 = vld [vmem:[#allocation3 + $0x100] sm:$0x3]  ;;  %v11801_v32 = vld [vmem:[#allocation3 + $0x2d8] sm:$0xff] }
 0x7e1   :  { %5479 = vmatmul.f32.gmra.mxu0 %v11684_v36  ;;  %15581 = vst [vmem:[#allocation46_spill] sm:$0xff] %v11704_v21  ;;  %v4543_v25 = vrot.slane %v11707_v52, 2 }
 0x7e2   :  { %15613 = vst [vmem:[#allocation78_spill] sm:$0xff] %v11801_v32 }
 0x7e3   :  { %v11701_v14 = vpop.f32.mrf.mxu2  ;;  %v11724_v23 = vsel %vm814_vm2, %v4541_v34, %v4543_v25  ;;  %v4044_v34 = vld [vmem:[#allocation4 + $0x90] sm:$0xff]  ;;  %v4093_v25 = vld [vmem:[#allocation4 + $0x218] sm:$0xff] }
 0x7e4   :  { %15580 = vst [vmem:[#allocation45_spill] sm:$0xff] %v11701_v14  ;;  %5276 = vmatmul.f32.gmra.mxu3 %v11704_v21  ;;  %v11727_v21 = vld [vmem:[#allocation3 + $0x108] sm:$0xff]  ;;  %v11729_v14 = vld [vmem:[#allocation3 + $0x110] sm:$0xff]  ;;  %5004 = vmatpush.msrb.mxu2 %v4044_v34 }
 0x7e5   :  { %v11709_v27 = vpop.f32.mrf.mxu1  ;;  %15587 = vst [vmem:[#allocation52_spill] sm:$0xff] %v11724_v23  ;;  %v4545_v40 = vrot.slane %v11727_v21, 2  ;;  %5630 = vmatpush.msrb.mxu1 %v4093_v25 }
 0x7e6   :  { %15582 = vst [vmem:[#allocation47_spill] sm:$0xff] %v11709_v27  ;;  %v11711_v45 = vpop.f32.mrf.mxu0 }
 0x7e7   :  { %15583 = vst [vmem:[#allocation48_spill] sm:$0xff] %v11711_v45  ;;  %v11713_v6 = vpop.f32.mrf.mxu3 }
 0x7e8   :  { %15584 = vst [vmem:[#allocation49_spill] sm:$0xff] %v11713_v6  ;;  %4861 = vmatmul.f32.gmra.mxu1 %v11686_v33  ;;  %4957 = vmatmul.f32.gmra.mxu2 %v11715_v61 }
 0x7e9   :  { %5482 = vmatmul.f32.gmra.mxu0 %v11686_v33 }
 0x7eb   :  { %v11721_v31 = vpop.f32.mrf.mxu2 }
 0x7ec   :  { %15586 = vst [vmem:[#allocation51_spill] sm:$0xff] %v11721_v31  ;;  %5279 = vmatmul.f32.gmra.mxu3 %v11724_v23  ;;  %v4546_v31 = vrot.slane %v11729_v14, 2 }
 0x7ed   :  { %v11731_v27 = vpop.f32.mrf.mxu1 }
 0x7ee   :  { %15588 = vst [vmem:[#allocation53_spill] sm:$0xff] %v11731_v27  ;;  %v11733_v6 = vpop.f32.mrf.mxu0  ;;  %v11747_v27 = vsel %vm814_vm2, %v4545_v40, %v4546_v31 }
 0x7ef   :  { %15589 = vst [vmem:[#allocation54_spill] sm:$0xff] %v11733_v6  ;;  %v11735_v45 = vpop.f32.mrf.mxu3 }
 0x7f0   :  { %15590 = vst [vmem:[#allocation55_spill] sm:$0xff] %v11735_v45  ;;  %4864 = vmatmul.f32.gmra.mxu1 %v11727_v21  ;;  %4960 = vmatmul.f32.gmra.mxu2 %v11737_v43  ;;  %v11750_v45 = vld [vmem:[#allocation3 + $0x118] sm:$0x3] }
 0x7f1   :  { %5485 = vmatmul.f32.gmra.mxu0 %v11727_v21  ;;  %15593 = vst [vmem:[#allocation58_spill] sm:$0xff] %v11747_v27  ;;  %v4548_v34 = vrot.slane %v11750_v45, 2 }
 0x7f2   :  { %15594 = vst [vmem:[#allocation59_spill] sm:$0xff] %v11750_v45 }
 0x7f3   :  { %v11744_v23 = vpop.f32.mrf.mxu2  ;;  %v11767_v25 = vsel %vm814_vm2, %v4546_v31, %v4548_v34  ;;  %v4043_v31 = vld [vmem:[#allocation4 + $0x88] sm:$0xff]  ;;  %v4092_v34 = vld [vmem:[#allocation4 + $0x210] sm:$0xff] }
 0x7f4   :  { %15592 = vst [vmem:[#allocation57_spill] sm:$0xff] %v11744_v23  ;;  %5282 = vmatmul.f32.gmra.mxu3 %v11747_v27  ;;  %v11770_v27 = vld [vmem:[#allocation3 + $0x120] sm:$0xff]  ;;  %v11772_v23 = vld [vmem:[#allocation3 + $0x128] sm:$0xff]  ;;  %5005 = vmatpush.msrb.mxu2 %v4043_v31 }
 0x7f5   :  { %v11752_v6 = vpop.f32.mrf.mxu1  ;;  %15600 = vst [vmem:[#allocation65_spill] sm:$0xff] %v11767_v25  ;;  %v4550_v45 = vrot.slane %v11770_v27, 2  ;;  %5631 = vmatpush.msrb.mxu1 %v4092_v34 }
 0x7f6   :  { %15595 = vst [vmem:[#allocation60_spill] sm:$0xff] %v11752_v6  ;;  %v11754_v26 = vpop.f32.mrf.mxu0 }
 0x7f7   :  { %15596 = vst [vmem:[#allocation61_spill] sm:$0xff] %v11754_v26  ;;  %v11756_v43 = vpop.f32.mrf.mxu3 }
 0x7f8   :  { %15597 = vst [vmem:[#allocation62_spill] sm:$0xff] %v11756_v43  ;;  %4867 = vmatmul.f32.gmra.mxu1 %v11729_v14  ;;  %4963 = vmatmul.f32.gmra.mxu2 %v11758_v35  ;;  %v11780_v35 = vld [vmem:[#allocation3 + $0x2d0] sm:$0xff] }
 0x7f9   :  { %5488 = vmatmul.f32.gmra.mxu0 %v11729_v14  ;;  %15601 = vst [vmem:[#allocation66_spill] sm:$0xff] %v11770_v27 }
 0x7fa   :  { %15602 = vst [vmem:[#allocation67_spill] sm:$0xff] %v11772_v23 }
 0x7fb   :  { %v11764_v40 = vpop.f32.mrf.mxu2  ;;  %15606 = vst [vmem:[#allocation71_spill] sm:$0xff] %v11780_v35 }
 0x7fc   :  { %15599 = vst [vmem:[#allocation64_spill] sm:$0xff] %v11764_v40  ;;  %5285 = vmatmul.f32.gmra.mxu3 %v11767_v25  ;;  %v4551_v40 = vrot.slane %v11772_v23, 2 }
 0x7fd   :  { %v11774_v6 = vpop.f32.mrf.mxu1 }
 0x7fe   :  { %15603 = vst [vmem:[#allocation68_spill] sm:$0xff] %v11774_v6  ;;  %v11776_v43 = vpop.f32.mrf.mxu0  ;;  %v11790_v6 = vsel %vm814_vm2, %v4550_v45, %v4551_v40 }
 0x7ff   :  { %15604 = vst [vmem:[#allocation69_spill] sm:$0xff] %v11776_v43  ;;  %v11778_v26 = vpop.f32.mrf.mxu3 }
 0x800   :  { %15605 = vst [vmem:[#allocation70_spill] sm:$0xff] %v11778_v26  ;;  %4870 = vmatmul.f32.gmra.mxu1 %v11770_v27  ;;  %4966 = vmatmul.f32.gmra.mxu2 %v11780_v35  ;;  %v11793_v26 = vld [vmem:[#allocation3 + $0x130] sm:$0x3] }
 0x801   :  { %5491 = vmatmul.f32.gmra.mxu0 %v11770_v27  ;;  %15608 = vst [vmem:[#allocation73_spill] sm:$0xff] %v11790_v6  ;;  %v4553_v31 = vrot.slane %v11793_v26, 2  ;;  %v11841_v27 = vld [vmem:[#allocation3 + $0x2f0] sm:$0xff] }
 0x802   :  { %15609 = vst [vmem:[#allocation74_spill] sm:$0xff] %v11793_v26 }
 0x803   :  { %v11787_v25 = vpop.f32.mrf.mxu2  ;;  %v11810_v34 = vsel %vm814_vm2, %v4551_v40, %v4553_v31  ;;  %v4042_v40 = vld [vmem:[#allocation4 + $0x80] sm:$0xff]  ;;  %v4091_v31 = vld [vmem:[#allocation4 + $0x208] sm:$0xff]  ;;  %15627 = vst [vmem:[#allocation92_spill] sm:$0xff] %v11841_v27 }
 0x804   :  { %15607 = vst [vmem:[#allocation72_spill] sm:$0xff] %v11787_v25  ;;  %5288 = vmatmul.f32.gmra.mxu3 %v11790_v6  ;;  %v11813_v6 = vld [vmem:[#allocation3 + $0x138] sm:$0xff]  ;;  %v11815_v25 = vld [vmem:[#allocation3 + $0x140] sm:$0xff]  ;;  %5006 = vmatpush.msrb.mxu2 %v4042_v40 }
 0x805   :  { %v11795_v43 = vpop.f32.mrf.mxu1  ;;  %15615 = vst [vmem:[#allocation80_spill] sm:$0xff] %v11810_v34  ;;  %v4555_v26 = vrot.slane %v11813_v6, 2  ;;  %5632 = vmatpush.msrb.mxu1 %v4091_v31 }
 0x806   :  { %15610 = vst [vmem:[#allocation75_spill] sm:$0xff] %v11795_v43  ;;  %v11797_v61 = vpop.f32.mrf.mxu0 }
 0x807   :  { %15611 = vst [vmem:[#allocation76_spill] sm:$0xff] %v11797_v61  ;;  %v11799_v35 = vpop.f32.mrf.mxu3 }
 0x808   :  { %15612 = vst [vmem:[#allocation77_spill] sm:$0xff] %v11799_v35  ;;  %4873 = vmatmul.f32.gmra.mxu1 %v11772_v23  ;;  %4969 = vmatmul.f32.gmra.mxu2 %v11801_v32  ;;  %v4011_v32 = vld [vmem:[#allocation3 + $0x2e8] sm:$0xff] }
 0x809   :  { %5494 = vmatmul.f32.gmra.mxu0 %v11772_v23  ;;  %15616 = vst [vmem:[#allocation81_spill] sm:$0xff] %v11813_v6 }
 0x80a   :  { %15617 = vst [vmem:[#allocation82_spill] sm:$0xff] %v11815_v25 }
 0x80b   :  { %v11807_v45 = vpop.f32.mrf.mxu2 }
 0x80c   :  { %15614 = vst [vmem:[#allocation79_spill] sm:$0xff] %v11807_v45  ;;  %5291 = vmatmul.f32.gmra.mxu3 %v11810_v34  ;;  %v4556_v45 = vrot.slane %v11815_v25, 2 }
 0x80d   :  { %v11817_v43 = vpop.f32.mrf.mxu1 }
 0x80e   :  { %15618 = vst [vmem:[#allocation83_spill] sm:$0xff] %v11817_v43  ;;  %v11819_v35 = vpop.f32.mrf.mxu0  ;;  %v11830_v43 = vsel %vm814_vm2, %v4555_v26, %v4556_v45 }
 0x80f   :  { %15619 = vst [vmem:[#allocation84_spill] sm:$0xff] %v11819_v35  ;;  %v11821_v61 = vpop.f32.mrf.mxu3 }
 0x810   :  { %15620 = vst [vmem:[#allocation85_spill] sm:$0xff] %v11821_v61  ;;  %4876 = vmatmul.f32.gmra.mxu1 %v11813_v6  ;;  %4972 = vmatmul.f32.gmra.mxu2 %v4011_v32  ;;  %v11833_v61 = vld [vmem:[#allocation3 + $0x148] sm:$0x3] }
 0x811   :  { %5497 = vmatmul.f32.gmra.mxu0 %v11813_v6  ;;  %15622 = vst [vmem:[#allocation87_spill] sm:$0xff] %v11830_v43  ;;  %v4558_v40 = vrot.slane %v11833_v61, 2 }
 0x812   :  { %15623 = vst [vmem:[#allocation88_spill] sm:$0xff] %v11833_v61 }
 0x813   :  { %v11827_v34 = vpop.f32.mrf.mxu2  ;;  %v11850_v31 = vsel %vm814_vm2, %v4556_v45, %v4558_v40  ;;  %v4090_v45 = vld [vmem:[#allocation4 + $0x200] sm:$0xff]  ;;  %v4121_v40 = vld [vmem:[#allocation4 + $0x2f8] sm:$0xff] }
 0x814   :  { %15621 = vst [vmem:[#allocation86_spill] sm:$0xff] %v11827_v34  ;;  %5294 = vmatmul.f32.gmra.mxu3 %v11830_v43  ;;  %v11853_v43 = vld [vmem:[#allocation3 + $0x150] sm:$0xff]  ;;  %v11855_v34 = vld [vmem:[#allocation3 + $0x158] sm:$0xff]  ;;  %5633 = vmatpush.msrb.mxu1 %v4090_v45 }
 0x815   :  { %v11835_v35 = vpop.f32.mrf.mxu1  ;;  %15629 = vst [vmem:[#allocation94_spill] sm:$0xff] %v11850_v31  ;;  %v4560_v61 = vrot.slane %v11853_v43, 2  ;;  %5827 = vmatpush.msra.mxu2 %v4121_v40 }
 0x816   :  { %15624 = vst [vmem:[#allocation89_spill] sm:$0xff] %v11835_v35  ;;  %v11837_v23 = vpop.f32.mrf.mxu0 }
 0x817   :  { %15625 = vst [vmem:[#allocation90_spill] sm:$0xff] %v11837_v23  ;;  %v11839_v32 = vpop.f32.mrf.mxu3 }
 0x818   :  { %15626 = vst [vmem:[#allocation91_spill] sm:$0xff] %v11839_v32  ;;  %4879 = vmatmul.f32.gmra.mxu1 %v11815_v25  ;;  %4975 = vmatmul.f32.gmra.mxu2 %v11841_v27  ;;  %v4014_v27 = vld [vmem:[#allocation3 + $0x300] sm:$0xff] }
 0x819   :  { %5500 = vmatmul.f32.gmra.mxu0 %v11815_v25  ;;  %15630 = vst [vmem:[#allocation95_spill] sm:$0xff] %v11853_v43  ;;  %v4137_v25 = vld [vmem:[#allocation4 + $0x378] sm:$0xff] }
 0x81a   :  { %6036 = vmatpush.msra.mxu3 %v4137_v25 }
 0x81b   :  { %v11847_v26 = vpop.f32.mrf.mxu2 }
 0x81c   :  { %15628 = vst [vmem:[#allocation93_spill] sm:$0xff] %v11847_v26  ;;  %5297 = vmatmul.f32.gmra.mxu3 %v11850_v31  ;;  %v4561_v26 = vrot.slane %v11855_v34, 2 }
 0x81d   :  { %v11857_v35 = vpop.f32.mrf.mxu1 }
 0x81e   :  { %15631 = vst [vmem:[#allocation96_spill] sm:$0xff] %v11857_v35  ;;  %v11859_v32 = vpop.f32.mrf.mxu0  ;;  %v11870_v35 = vsel %vm814_vm2, %v4560_v61, %v4561_v26  ;;  %v4153_v61 = vld [vmem:[#allocation4 + $0x3f8] sm:$0xff] }
 0x81f   :  { %15632 = vst [vmem:[#allocation97_spill] sm:$0xff] %v11859_v32  ;;  %v11861_v23 = vpop.f32.mrf.mxu3  ;;  %6245 = vmatpush.msra.mxu0 %v4153_v61 }
 0x820   :  { %15633 = vst [vmem:[#allocation98_spill] sm:$0xff] %v11861_v23  ;;  %4882 = vmatmul.f32.gmra.mxu1 %v11853_v43  ;;  %4978 = vmatmul.f32.gmra.mxu2 %v4014_v27  ;;  %v11873_v23 = vld [vmem:[#allocation3 + $0x160] sm:$0x3] }
 0x821   :  { %5503 = vmatmul.f32.gmra.mxu0 %v11853_v43  ;;  %15635 = vst [vmem:[#allocation100_spill] sm:$0xff] %v11870_v35  ;;  %v11881_v43 = vld [vmem:[#allocation3 + $0x308] sm:$0xff]  ;;  %v4563_v25 = vrot.slane %v11873_v23, 2 }
 0x822   :  { %15636 = vst [vmem:[#allocation101_spill] sm:$0xff] %v11873_v23 }
 0x823   :  { %v11867_v31 = vpop.f32.mrf.mxu2  ;;  %15640 = vst [vmem:[#allocation105_spill] sm:$0xff] %v11881_v43  ;;  %v11890_v40 = vsel %vm814_vm2, %v4561_v26, %v4563_v25  ;;  %v4169_v26 = vld [vmem:[#allocation4 + $0x478] sm:$0xff] }
 0x824   :  { %15634 = vst [vmem:[#allocation99_spill] sm:$0xff] %v11867_v31  ;;  %5300 = vmatmul.f32.gmra.mxu3 %v11870_v35  ;;  %v11893_v35 = vld [vmem:[#allocation3 + $0x168] sm:$0xff]  ;;  %v11895_v31 = vld [vmem:[#allocation3 + $0x170] sm:$0xff]  ;;  %6454 = vmatpush.msra.mxu1 %v4169_v26  ;;  %v7358_v26 = vld [vmem:[#allocation3] sm:$0xff] }
 0x825   :  { %v11875_v32 = vpop.f32.mrf.mxu1  ;;  %15642 = vst [vmem:[#allocation107_spill] sm:$0xff] %v11890_v40  ;;  %v4565_v61 = vrot.slane %v11893_v35, 2 }
 0x826   :  { %15637 = vst [vmem:[#allocation102_spill] sm:$0xff] %v11875_v32  ;;  %v11877_v6 = vpop.f32.mrf.mxu0 }
 0x827   :  { %15638 = vst [vmem:[#allocation103_spill] sm:$0xff] %v11877_v6  ;;  %v11879_v27 = vpop.f32.mrf.mxu3 }
 0x828   :  { %15639 = vst [vmem:[#allocation104_spill] sm:$0xff] %v11879_v27  ;;  %4885 = vmatmul.f32.gmra.mxu1 %v11855_v34  ;;  %4981 = vmatmul.f32.gmra.mxu2 %v11881_v43  ;;  %v4017_v43 = vld [vmem:[#allocation3 + $0x318] sm:$0xff] }
 0x829   :  { %5506 = vmatmul.f32.gmra.mxu0 %v11855_v34  ;;  %15643 = vst [vmem:[#allocation108_spill] sm:$0xff] %v11893_v35 }
 0x82a   :  { %15644 = vst [vmem:[#allocation109_spill] sm:$0xff] %v11895_v31 }
 0x82b   :  { %v11887_v45 = vpop.f32.mrf.mxu2 }
 0x82c   :  { %15641 = vst [vmem:[#allocation106_spill] sm:$0xff] %v11887_v45  ;;  %5303 = vmatmul.f32.gmra.mxu3 %v11890_v40  ;;  %v4566_v45 = vrot.slane %v11895_v31, 2 }
 0x82d   :  { %v11897_v32 = vpop.f32.mrf.mxu1 }
 0x82e   :  { %15645 = vst [vmem:[#allocation110_spill] sm:$0xff] %v11897_v32  ;;  %v11899_v27 = vpop.f32.mrf.mxu0  ;;  %v11910_v40 = vsel %vm814_vm2, %v4565_v61, %v4566_v45  ;;  %v11913_v32 = vld [vmem:[#allocation3 + $0x178] sm:$0x3] }
 0x82f   :  { %15646 = vst [vmem:[#allocation111_spill] sm:$0xff] %v11899_v27  ;;  %v11901_v6 = vpop.f32.mrf.mxu3 }
 0x830   :  { %15647 = vst [vmem:[#allocation112_spill] sm:$0xff] %v11901_v6  ;;  %4888 = vmatmul.f32.gmra.mxu1 %v11893_v35  ;;  %4984 = vmatmul.f32.gmra.mxu2 %v4017_v43  ;;  %v4018_v43 = vld [vmem:[#allocation3 + $0x320] sm:$0xff] }
 0x831   :  { %5509 = vmatmul.f32.gmra.mxu0 %v11893_v35  ;;  %15649 = vst [vmem:[#allocation114_spill] sm:$0xff] %v11910_v40  ;;  %v4568_v35 = vrot.slane %v11913_v32, 2 }
 0x832   :  { %15650 = vst [vmem:[#allocation115_spill] sm:$0xff] %v11913_v32  ;;  %v4136_v32 = vld [vmem:[#allocation4 + $0x370] sm:$0xff] }
 0x833   :  { %v11907_v25 = vpop.f32.mrf.mxu2  ;;  %6037 = vmatpush.msra.mxu3 %v4136_v32 }
 0x834   :  { %15648 = vst [vmem:[#allocation113_spill] sm:$0xff] %v11907_v25  ;;  %5306 = vmatmul.f32.gmra.mxu3 %v11910_v40  ;;  %v11923_v25 = vrot.slane %v7358_v26, 1  ;;  %v11929_v40 = vsel %vm814_vm2, %v4566_v45, %v4568_v35  ;;  %v4269_v35 = vrot.slane %v11383_v39, 1  ;;  %v4120_v45 = vld [vmem:[#allocation4 + $0x2f0] sm:$0xff]  ;;  %v3974_v26 = vld [vmem:[#allocation3 + $0x1c0] sm:$0x3] }
 0x835   :  { %v11915_v6 = vpop.f32.mrf.mxu1  ;;  %15655 = vst [vmem:[#allocation120_spill] sm:$0xff] %v11929_v40  ;;  %5828 = vmatpush.msra.mxu2 %v4120_v45  ;;  %v11955_v39 = vld [vmem:[#allocation3 + $0x188] sm:$0xff]  ;;  %v4152_v45 = vld [vmem:[#allocation4 + $0x3f0] sm:$0xff] }
 0x836   :  { %15651 = vst [vmem:[#allocation116_spill] sm:$0xff] %v11915_v6  ;;  %v11917_v27 = vpop.f32.mrf.mxu0  ;;  %6246 = vmatpush.msra.mxu0 %v4152_v45  ;;  %v4279_v45 = vrot.slane %v11457_v55, 1 }
 0x837   :  { %15652 = vst [vmem:[#allocation117_spill] sm:$0xff] %v11917_v27  ;;  %v11919_v23 = vpop.f32.mrf.mxu3 }
 0x838   :  { %15653 = vst [vmem:[#allocation118_spill] sm:$0xff] %v11919_v23  ;;  %4891 = vmatmul.f32.gmra.mxu1 %v11895_v31  ;;  %4987 = vmatmul.f32.gmra.mxu2 %v4018_v43  ;;  %v11939_v43 = vld [vmem:[#allocation3 + $0x180] sm:$0xff] }
 0x839   :  { %5512 = vmatmul.f32.gmra.mxu0 %v11895_v31 }
 0x83b   :  { %v11926_v61 = vpop.f32.mrf.mxu2 }
 0x83c   :  { %15654 = vst [vmem:[#allocation119_spill] sm:$0xff] %v11926_v61  ;;  %5309 = vmatmul.f32.gmra.mxu3 %v11929_v40 }
 0x83d   :  { %v11932_v6 = vpop.f32.mrf.mxu1 }
 0x83e   :  { %15656 = vst [vmem:[#allocation121_spill] sm:$0xff] %v11932_v6  ;;  %v11934_v23 = vpop.f32.mrf.mxu0  ;;  %v4270_v6 = vsel %vm461_vm1, %v11923_v25, %v4269_v35  ;;  %v4276_v35 = vrot.slane %v11437_v0, 1  ;;  %v11979_v0 = vld [vmem:[#allocation4 + $0x470] sm:$0xff] }
 0x83f   :  { %15657 = vst [vmem:[#allocation122_spill] sm:$0xff] %v11934_v23  ;;  %v11936_v27 = vpop.f32.mrf.mxu3  ;;  %6455 = vmatpush.msra.mxu1 %v11979_v0 }
 0x840   :  { %15658 = vst [vmem:[#allocation123_spill] sm:$0xff] %v11936_v27  ;;  %5007 = vmatmul.f32.vlgmr.msrb.gmra.mxu2 %v11923_v25  ;;  %5634 = vmatmul.f32.vlgmr.msrb.gmra.mxu1 %v11411_v29  ;;  %v4573_v27 = vrot.slane %v3974_v26, 2  ;;  %v4277_v26 = vrot.slane %v11439_v12, 1 }
 0x841   :  { %5515 = vmatmul.f32.gmra.mxu0 %v11939_v43 }
 0x842   :  { %v4574_v32 = vsel %vm814_vm2, %v11376_v57, %v4573_v27  ;;  %v4576_v27 = vrot.slane %v11420_v3, 2 }
 0x843   :  { %v11944_v40 = vpop.f32.mrf.mxu2 }
 0x844   :  { %15659 = vst [vmem:[#allocation124_spill] sm:$0xff] %v11944_v40  ;;  %5312 = vmatmul.f32.gmra.mxu3 %v11376_v57  ;;  %v4575_v57 = vrot.slane %v11400_v9, 2 }
 0x845   :  { %v11947_v61 = vpop.f32.mrf.mxu1 }
 0x846   :  { %15660 = vst [vmem:[#allocation125_spill] sm:$0xff] %v11947_v61  ;;  %v11951_v23 = vpop.f32.mrf.mxu0 }
 0x847   :  { %15661 = vst [vmem:[#allocation126_spill] sm:$0xff] %v11951_v23  ;;  %v11953_v31 = vpop.f32.mrf.mxu3  ;;  %v11972_v23 = vsel %vm461_vm1, %v4276_v35, %v4277_v26  ;;  %v3977_v35 = vld [vmem:[#allocation3 + $0x1d8] sm:$0x3] }
 0x848   :  { %15662 = vst [vmem:[#allocation127_spill] sm:$0xff] %v11953_v31  ;;  %5010 = vmatmul.f32.gmra.mxu2 %v4270_v6  ;;  %5637 = vmatmul.f32.gmra.mxu1 %v11423_v63 }
 0x849   :  { %5518 = vmatmul.f32.gmra.mxu0 %v11955_v39 }
 0x84b   :  { %v11961_v40 = vpop.f32.mrf.mxu2 }
 0x84c   :  { %15663 = vst [vmem:[#allocation128_spill] sm:$0xff] %v11961_v40  ;;  %5315 = vmatmul.f32.gmra.mxu3 %v4574_v32  ;;  %v11985_v32 = vsel %vm814_vm2, %v4575_v57, %v4576_v27 }
 0x84d   :  { %v11965_v61 = vpop.f32.mrf.mxu1  ;;  %15667 = vst [vmem:[#allocation132_spill] sm:$0xff] %v11985_v32 }
 0x84e   :  { %15664 = vst [vmem:[#allocation129_spill] sm:$0xff] %v11965_v61  ;;  %v11967_v6 = vpop.f32.mrf.mxu0 }
 0x84f   :  { %v11969_v31 = vpop.f32.mrf.mxu3 }
 0x850   :  { %15665 = vst [vmem:[#allocation130_spill] sm:$0xff] %v11969_v31  ;;  %5013 = vmatmul.f32.gmra.mxu2 %v11411_v29  ;;  %5640 = vmatmul.f32.gmra.mxu1 %v11972_v23  ;;  %v4578_v31 = vrot.slane %v3977_v35, 2 }
 0x851   :  { %5521 = vmatmul.f32.gmra.mxu0 %v11400_v9  ;;  %v11996_v9 = vsel %vm461_vm1, %v4277_v26, %v4279_v45 }
 0x852   :  { %v12004_v57 = vsel %vm814_vm2, %v4576_v27, %v4578_v31  ;;  %v4581_v31 = vrot.slane %v11459_v8, 2  ;;  %v4135_v27 = vld [vmem:[#allocation4 + $0x368] sm:$0xff] }
 0x853   :  { %v11982_v12 = vpop.f32.mrf.mxu2  ;;  %15669 = vst [vmem:[#allocation134_spill] sm:$0xff] %v12004_v57  ;;  %6038 = vmatpush.msra.mxu3 %v4135_v27 }
 0x854   :  { %15666 = vst [vmem:[#allocation131_spill] sm:$0xff] %v11982_v12  ;;  %5318 = vmatmul.f32.gmra.mxu3 %v11985_v32  ;;  %v4281_v32 = vrot.slane %v11469_v50, 1  ;;  %v4282_v12 = vrot.slane %v11471_v37, 1  ;;  %v4119_v50 = vld [vmem:[#allocation4 + $0x2e8] sm:$0xff] }
 0x855   :  { %v11989_v40 = vpop.f32.mrf.mxu1  ;;  %5829 = vmatpush.msra.mxu2 %v4119_v50 }
 0x856   :  { %v11991_v29 = vpop.f32.mrf.mxu0  ;;  %v12016_v35 = vsel %vm461_vm1, %v4281_v32, %v4282_v12  ;;  %v4284_v32 = vrot.slane %v11484_v7, 1  ;;  %v4151_v7 = vld [vmem:[#allocation4 + $0x3e8] sm:$0xff] }
 0x857   :  { %v11993_v61 = vpop.f32.mrf.mxu3  ;;  %6247 = vmatpush.msra.mxu0 %v4151_v7  ;;  %v4585_v7 = vrot.slane %v11473_v56, 2 }
 0x858   :  { %5016 = vmatmul.f32.gmra.mxu2 %v11423_v63  ;;  %5643 = vmatmul.f32.gmra.mxu1 %v11996_v9 }
 0x859   :  { %5524 = vmatmul.f32.gmra.mxu0 %v11420_v3  ;;  %v4580_v3 = vrot.slane %v11444_v24, 2 }
 0x85b   :  { %v12001_v55 = vpop.f32.mrf.mxu2 }
 0x85c   :  { %15668 = vst [vmem:[#allocation133_spill] sm:$0xff] %v12001_v55  ;;  %5321 = vmatmul.f32.gmra.mxu3 %v12004_v57  ;;  %v12026_v57 = vsel %vm814_vm2, %v4580_v3, %v4581_v31  ;;  %v3980_v55 = vld [vmem:[#allocation3 + $0x1f0] sm:$0x3] }
 0x85d   :  { %v12009_v26 = vpop.f32.mrf.mxu1  ;;  %15674 = vst [vmem:[#allocation139_spill] sm:$0xff] %v12026_v57  ;;  %v4583_v27 = vrot.slane %v3980_v55, 2 }
 0x85e   :  { %15670 = vst [vmem:[#allocation135_spill] sm:$0xff] %v12009_v26  ;;  %v12011_v45 = vpop.f32.mrf.mxu0 }
 0x85f   :  { %15671 = vst [vmem:[#allocation136_spill] sm:$0xff] %v12011_v45  ;;  %v12013_v63 = vpop.f32.mrf.mxu3  ;;  %v12045_v50 = vsel %vm814_vm2, %v4581_v31, %v4583_v27  ;;  %v4586_v31 = vrot.slane %v11486_v51, 2 }
 0x860   :  { %15672 = vst [vmem:[#allocation137_spill] sm:$0xff] %v12013_v63  ;;  %5019 = vmatmul.f32.gmra.mxu2 %v11972_v23  ;;  %5646 = vmatmul.f32.gmra.mxu1 %v12016_v35 }
 0x861   :  { %5527 = vmatmul.f32.gmra.mxu0 %v11444_v24  ;;  %v12037_v24 = vsel %vm461_vm1, %v4282_v12, %v4284_v32  ;;  %15676 = vst [vmem:[#allocation141_spill] sm:$0xff] %v12045_v50  ;;  %v12070_v27 = vsel %vm814_vm2, %v4585_v7, %v4586_v31 }
 0x862   :  { %15681 = vst [vmem:[#allocation146_spill] sm:$0xff] %v12070_v27 }
 0x863   :  { %v12023_v37 = vpop.f32.mrf.mxu2 }
 0x864   :  { %15673 = vst [vmem:[#allocation138_spill] sm:$0xff] %v12023_v37  ;;  %5324 = vmatmul.f32.gmra.mxu3 %v12026_v57  ;;  %v4286_v57 = vrot.slane %v11496_v19, 1  ;;  %v4287_v37 = vrot.slane %v11498_v59, 1  ;;  %v12064_v19 = vld [vmem:[#allocation4 + $0x468] sm:$0xff] }
 0x865   :  { %v12030_v26 = vpop.f32.mrf.mxu1  ;;  %6456 = vmatpush.msra.mxu1 %v12064_v19 }
 0x866   :  { %v12032_v63 = vpop.f32.mrf.mxu0 }
 0x867   :  { %v12034_v45 = vpop.f32.mrf.mxu3 }
 0x868   :  { %5022 = vmatmul.f32.gmra.mxu2 %v11996_v9  ;;  %5649 = vmatmul.f32.gmra.mxu1 %v12037_v24 }
 0x869   :  { %5530 = vmatmul.f32.gmra.mxu0 %v11459_v8  ;;  %v12057_v8 = vsel %vm461_vm1, %v4286_v57, %v4287_v37  ;;  %v4289_v57 = vrot.slane %v11511_v38, 1 }
 0x86b   :  { %v12042_v3 = vpop.f32.mrf.mxu2 }
 0x86c   :  { %15675 = vst [vmem:[#allocation140_spill] sm:$0xff] %v12042_v3  ;;  %5327 = vmatmul.f32.gmra.mxu3 %v12045_v50  ;;  %v3983_v50 = vld [vmem:[#allocation3 + $0x208] sm:$0x3] }
 0x86d   :  { %v12050_v12 = vpop.f32.mrf.mxu1 }
 0x86e   :  { %15677 = vst [vmem:[#allocation142_spill] sm:$0xff] %v12050_v12  ;;  %v12052_v55 = vpop.f32.mrf.mxu0 }
 0x86f   :  { %15678 = vst [vmem:[#allocation143_spill] sm:$0xff] %v12052_v55  ;;  %v12054_v32 = vpop.f32.mrf.mxu3  ;;  %v4588_v55 = vrot.slane %v3983_v50, 2 }
 0x870   :  { %15679 = vst [vmem:[#allocation144_spill] sm:$0xff] %v12054_v32  ;;  %5025 = vmatmul.f32.gmra.mxu2 %v12016_v35  ;;  %5652 = vmatmul.f32.gmra.mxu1 %v12057_v8 }
 0x871   :  { %5533 = vmatmul.f32.gmra.mxu0 %v11473_v56  ;;  %v12081_v56 = vsel %vm461_vm1, %v4287_v37, %v4289_v57  ;;  %v12089_v7 = vsel %vm814_vm2, %v4586_v31, %v4588_v55  ;;  %v4591_v55 = vrot.slane %v11513_v60, 2  ;;  %v4134_v31 = vld [vmem:[#allocation4 + $0x360] sm:$0xff] }
 0x872   :  { %15684 = vst [vmem:[#allocation149_spill] sm:$0xff] %v12089_v7  ;;  %6039 = vmatpush.msra.mxu3 %v4134_v31 }
 0x873   :  { %v12067_v59 = vpop.f32.mrf.mxu2 }
 0x874   :  { %15680 = vst [vmem:[#allocation145_spill] sm:$0xff] %v12067_v59  ;;  %5330 = vmatmul.f32.gmra.mxu3 %v12070_v27  ;;  %v4291_v27 = vrot.slane %v11523_v10, 1  ;;  %v4292_v59 = vrot.slane %v11525_v5, 1  ;;  %v4118_v10 = vld [vmem:[#allocation4 + $0x2e0] sm:$0xff] }
 0x875   :  { %v12074_v3 = vpop.f32.mrf.mxu1  ;;  %5830 = vmatpush.msra.mxu2 %v4118_v10 }
 0x876   :  { %15682 = vst [vmem:[#allocation147_spill] sm:$0xff] %v12074_v3  ;;  %v12076_v12 = vpop.f32.mrf.mxu0  ;;  %v12101_v3 = vsel %vm461_vm1, %v4291_v27, %v4292_v59  ;;  %v4294_v27 = vrot.slane %v11538_v54, 1  ;;  %v4150_v54 = vld [vmem:[#allocation4 + $0x3e0] sm:$0xff] }
 0x877   :  { %v12078_v32 = vpop.f32.mrf.mxu3  ;;  %6248 = vmatpush.msra.mxu0 %v4150_v54  ;;  %v4595_v54 = vrot.slane %v11527_v28, 2 }
 0x878   :  { %5028 = vmatmul.f32.gmra.mxu2 %v12037_v24  ;;  %5655 = vmatmul.f32.gmra.mxu1 %v12081_v56 }
 0x879   :  { %5536 = vmatmul.f32.gmra.mxu0 %v11486_v51  ;;  %v4590_v51 = vrot.slane %v11500_v11, 2 }
 0x87b   :  { %v12086_v38 = vpop.f32.mrf.mxu2 }
 0x87c   :  { %15683 = vst [vmem:[#allocation148_spill] sm:$0xff] %v12086_v38  ;;  %5333 = vmatmul.f32.gmra.mxu3 %v12089_v7  ;;  %v12111_v7 = vsel %vm814_vm2, %v4590_v51, %v4591_v55  ;;  %v3986_v38 = vld [vmem:[#allocation3 + $0x220] sm:$0x3] }
 0x87d   :  { %v12094_v37 = vpop.f32.mrf.mxu1  ;;  %15689 = vst [vmem:[#allocation154_spill] sm:$0xff] %v12111_v7  ;;  %v4593_v31 = vrot.slane %v3986_v38, 2 }
 0x87e   :  { %15685 = vst [vmem:[#allocation150_spill] sm:$0xff] %v12094_v37  ;;  %v12096_v50 = vpop.f32.mrf.mxu0 }
 0x87f   :  { %15686 = vst [vmem:[#allocation151_spill] sm:$0xff] %v12096_v50  ;;  %v12098_v57 = vpop.f32.mrf.mxu3  ;;  %v12130_v10 = vsel %vm814_vm2, %v4591_v55, %v4593_v31  ;;  %v4596_v55 = vrot.slane %v11540_v47, 2 }
 0x880   :  { %15687 = vst [vmem:[#allocation152_spill] sm:$0xff] %v12098_v57  ;;  %5031 = vmatmul.f32.gmra.mxu2 %v12057_v8  ;;  %5658 = vmatmul.f32.gmra.mxu1 %v12101_v3 }
 0x881   :  { %5539 = vmatmul.f32.gmra.mxu0 %v11500_v11  ;;  %v12122_v11 = vsel %vm461_vm1, %v4292_v59, %v4294_v27  ;;  %15694 = vst [vmem:[#allocation159_spill] sm:$0xff] %v12130_v10  ;;  %v12155_v31 = vsel %vm814_vm2, %v4595_v54, %v4596_v55 }
 0x882   :  { %15699 = vst [vmem:[#allocation164_spill] sm:$0xff] %v12155_v31 }
 0x883   :  { %v12108_v5 = vpop.f32.mrf.mxu2 }
 0x884   :  { %15688 = vst [vmem:[#allocation153_spill] sm:$0xff] %v12108_v5  ;;  %5336 = vmatmul.f32.gmra.mxu3 %v12111_v7  ;;  %v4296_v7 = vrot.slane %v11550_v46, 1  ;;  %v4297_v5 = vrot.slane %v11552_v62, 1  ;;  %v12149_v46 = vld [vmem:[#allocation4 + $0x460] sm:$0xff] }
 0x885   :  { %v12115_v37 = vpop.f32.mrf.mxu1  ;;  %6457 = vmatpush.msra.mxu1 %v12149_v46 }
 0x886   :  { %15690 = vst [vmem:[#allocation155_spill] sm:$0xff] %v12115_v37  ;;  %v12117_v57 = vpop.f32.mrf.mxu0 }
 0x887   :  { %15691 = vst [vmem:[#allocation156_spill] sm:$0xff] %v12117_v57  ;;  %v12119_v50 = vpop.f32.mrf.mxu3  ;;  %v15770_v57 = vld [vmem:[#allocation33_spill] sm:$0xff] }
 0x888   :  { %15692 = vst [vmem:[#allocation157_spill] sm:$0xff] %v12119_v50  ;;  %5034 = vmatmul.f32.gmra.mxu2 %v12081_v56  ;;  %5661 = vmatmul.f32.gmra.mxu1 %v12122_v11 }
 0x889   :  { %5542 = vmatmul.f32.gmra.mxu0 %v11513_v60  ;;  %v12142_v60 = vsel %vm461_vm1, %v4296_v7, %v4297_v5  ;;  %v4299_v7 = vrot.slane %v11565_v42, 1 }
 0x88b   :  { %v12127_v51 = vpop.f32.mrf.mxu2 }
 0x88c   :  { %15693 = vst [vmem:[#allocation158_spill] sm:$0xff] %v12127_v51  ;;  %5339 = vmatmul.f32.gmra.mxu3 %v12130_v10  ;;  %v3989_v10 = vld [vmem:[#allocation3 + $0x238] sm:$0x3] }
 0x88d   :  { %v12135_v59 = vpop.f32.mrf.mxu1 }
 0x88e   :  { %15695 = vst [vmem:[#allocation160_spill] sm:$0xff] %v12135_v59  ;;  %v12137_v38 = vpop.f32.mrf.mxu0 }
 0x88f   :  { %15696 = vst [vmem:[#allocation161_spill] sm:$0xff] %v12137_v38  ;;  %v12139_v27 = vpop.f32.mrf.mxu3  ;;  %v4598_v38 = vrot.slane %v3989_v10, 2 }
 0x890   :  { %15697 = vst [vmem:[#allocation162_spill] sm:$0xff] %v12139_v27  ;;  %5037 = vmatmul.f32.gmra.mxu2 %v12101_v3  ;;  %5664 = vmatmul.f32.gmra.mxu1 %v12142_v60 }
 0x891   :  { %5545 = vmatmul.f32.gmra.mxu0 %v11527_v28  ;;  %v12166_v28 = vsel %vm461_vm1, %v4297_v5, %v4299_v7  ;;  %v12174_v54 = vsel %vm814_vm2, %v4596_v55, %v4598_v38  ;;  %v4601_v38 = vrot.slane %v11567_v49, 2  ;;  %v4133_v55 = vld [vmem:[#allocation4 + $0x358] sm:$0xff] }
 0x892   :  { %15704 = vst [vmem:[#allocation169_spill] sm:$0xff] %v12174_v54  ;;  %6040 = vmatpush.msra.mxu3 %v4133_v55 }
 0x893   :  { %v12152_v62 = vpop.f32.mrf.mxu2 }
 0x894   :  { %15698 = vst [vmem:[#allocation163_spill] sm:$0xff] %v12152_v62  ;;  %5342 = vmatmul.f32.gmra.mxu3 %v12155_v31  ;;  %v4301_v31 = vrot.slane %v11577_v44, 1  ;;  %v4302_v62 = vrot.slane %v11579_v4, 1  ;;  %v4117_v44 = vld [vmem:[#allocation4 + $0x2d8] sm:$0xff] }
 0x895   :  { %v12159_v51 = vpop.f32.mrf.mxu1  ;;  %5831 = vmatpush.msra.mxu2 %v4117_v44 }
 0x896   :  { %15700 = vst [vmem:[#allocation165_spill] sm:$0xff] %v12159_v51  ;;  %v12161_v59 = vpop.f32.mrf.mxu0  ;;  %v12186_v51 = vsel %vm461_vm1, %v4301_v31, %v4302_v62  ;;  %v4304_v31 = vrot.slane %v11592_v18, 1  ;;  %v4149_v18 = vld [vmem:[#allocation4 + $0x3d8] sm:$0xff] }
 0x897   :  { %15701 = vst [vmem:[#allocation166_spill] sm:$0xff] %v12161_v59  ;;  %v12163_v27 = vpop.f32.mrf.mxu3  ;;  %6249 = vmatpush.msra.mxu0 %v4149_v18  ;;  %v4605_v18 = vrot.slane %v11581_v58, 2  ;;  %v15762_v59 = vld [vmem:[#allocation11_spill] sm:$0xff] }
 0x898   :  { %15702 = vst [vmem:[#allocation167_spill] sm:$0xff] %v12163_v27  ;;  %5040 = vmatmul.f32.gmra.mxu2 %v12122_v11  ;;  %5667 = vmatmul.f32.gmra.mxu1 %v12166_v28  ;;  %v15761_v27 = vld [vmem:[#allocation63_spill] sm:$0xff] }
 0x899   :  { %5548 = vmatmul.f32.gmra.mxu0 %v11540_v47  ;;  %v4600_v47 = vrot.slane %v11554_v16, 2 }
 0x89b   :  { %v12171_v42 = vpop.f32.mrf.mxu2 }
 0x89c   :  { %15703 = vst [vmem:[#allocation168_spill] sm:$0xff] %v12171_v42  ;;  %5345 = vmatmul.f32.gmra.mxu3 %v12174_v54  ;;  %v12196_v54 = vsel %vm814_vm2, %v4600_v47, %v4601_v38  ;;  %v3992_v42 = vld [vmem:[#allocation3 + $0x250] sm:$0x3] }
 0x89d   :  { %v12179_v5 = vpop.f32.mrf.mxu1  ;;  %15709 = vst [vmem:[#allocation174_spill] sm:$0xff] %v12196_v54  ;;  %v4603_v55 = vrot.slane %v3992_v42, 2 }
 0x89e   :  { %15705 = vst [vmem:[#allocation170_spill] sm:$0xff] %v12179_v5  ;;  %v12181_v10 = vpop.f32.mrf.mxu0 }
 0x89f   :  { %15706 = vst [vmem:[#allocation171_spill] sm:$0xff] %v12181_v10  ;;  %v12183_v7 = vpop.f32.mrf.mxu3  ;;  %v12215_v44 = vsel %vm814_vm2, %v4601_v38, %v4603_v55  ;;  %v4606_v38 = vrot.slane %v11594_v41, 2 }
 0x8a0   :  { %15707 = vst [vmem:[#allocation172_spill] sm:$0xff] %v12183_v7  ;;  %5043 = vmatmul.f32.gmra.mxu2 %v12142_v60  ;;  %5670 = vmatmul.f32.gmra.mxu1 %v12186_v51 }
 0x8a1   :  { %5551 = vmatmul.f32.gmra.mxu0 %v11554_v16  ;;  %v12207_v16 = vsel %vm461_vm1, %v4302_v62, %v4304_v31  ;;  %15714 = vst [vmem:[#allocation179_spill] sm:$0xff] %v12215_v44  ;;  %v12240_v55 = vsel %vm814_vm2, %v4605_v18, %v4606_v38 }
 0x8a2   :  { %15720 = vst [vmem:[#allocation185_spill] sm:$0xff] %v12240_v55 }
 0x8a3   :  { %v12193_v4 = vpop.f32.mrf.mxu2 }
 0x8a4   :  { %15708 = vst [vmem:[#allocation173_spill] sm:$0xff] %v12193_v4  ;;  %5348 = vmatmul.f32.gmra.mxu3 %v12196_v54  ;;  %v4306_v54 = vrot.slane %v11604_v20, 1  ;;  %v4307_v4 = vrot.slane %v11606_v1, 1  ;;  %v12234_v20 = vld [vmem:[#allocation4 + $0x458] sm:$0xff] }
 0x8a5   :  { %v12200_v5 = vpop.f32.mrf.mxu1  ;;  %6458 = vmatpush.msra.mxu1 %v12234_v20 }
 0x8a6   :  { %15710 = vst [vmem:[#allocation175_spill] sm:$0xff] %v12200_v5  ;;  %v12202_v7 = vpop.f32.mrf.mxu0 }
 0x8a7   :  { %15711 = vst [vmem:[#allocation176_spill] sm:$0xff] %v12202_v7  ;;  %v12204_v10 = vpop.f32.mrf.mxu3 }
 0x8a8   :  { %15712 = vst [vmem:[#allocation177_spill] sm:$0xff] %v12204_v10  ;;  %5046 = vmatmul.f32.gmra.mxu2 %v12166_v28  ;;  %5673 = vmatmul.f32.gmra.mxu1 %v12207_v16  ;;  %v15747_v10 = vld [vmem:[#allocation50_spill] sm:$0xff] }
 0x8a9   :  { %5554 = vmatmul.f32.gmra.mxu0 %v11567_v49  ;;  %v12227_v49 = vsel %vm461_vm1, %v4306_v54, %v4307_v4  ;;  %v4309_v54 = vrot.slane %v11623_v30, 1 }
 0x8aa   :  { %15718 = vst [vmem:[#allocation183_spill] sm:$0xff] %v12227_v49 }
 0x8ab   :  { %v12212_v47 = vpop.f32.mrf.mxu2 }
 0x8ac   :  { %15713 = vst [vmem:[#allocation178_spill] sm:$0xff] %v12212_v47  ;;  %5351 = vmatmul.f32.gmra.mxu3 %v12215_v44  ;;  %v3995_v44 = vld [vmem:[#allocation3 + $0x268] sm:$0x3] }
 0x8ad   :  { %v12220_v62 = vpop.f32.mrf.mxu1 }
 0x8ae   :  { %15715 = vst [vmem:[#allocation180_spill] sm:$0xff] %v12220_v62  ;;  %v12222_v42 = vpop.f32.mrf.mxu0 }
 0x8af   :  { %15716 = vst [vmem:[#allocation181_spill] sm:$0xff] %v12222_v42  ;;  %v12224_v31 = vpop.f32.mrf.mxu3  ;;  %v4608_v42 = vrot.slane %v3995_v44, 2 }
 0x8b0   :  { %15717 = vst [vmem:[#allocation182_spill] sm:$0xff] %v12224_v31  ;;  %5049 = vmatmul.f32.gmra.mxu2 %v12186_v51  ;;  %5676 = vmatmul.f32.gmra.mxu1 %v12227_v49 }
 0x8b1   :  { %5557 = vmatmul.f32.gmra.mxu0 %v11581_v58  ;;  %v12251_v58 = vsel %vm461_vm1, %v4307_v4, %v4309_v54  ;;  %v12259_v18 = vsel %vm814_vm2, %v4606_v38, %v4608_v42  ;;  %v4611_v42 = vrot.slane %v11629_v2, 2  ;;  %v4132_v38 = vld [vmem:[#allocation4 + $0x350] sm:$0xff] }
 0x8b2   :  { %15724 = vst [vmem:[#allocation189_spill] sm:$0xff] %v12251_v58  ;;  %6041 = vmatpush.msra.mxu3 %v4132_v38 }
 0x8b3   :  { %v12237_v1 = vpop.f32.mrf.mxu2  ;;  %15726 = vst [vmem:[#allocation191_spill] sm:$0xff] %v12259_v18 }
 0x8b4   :  { %15719 = vst [vmem:[#allocation184_spill] sm:$0xff] %v12237_v1  ;;  %5354 = vmatmul.f32.gmra.mxu3 %v12240_v55  ;;  %v4311_v55 = vrot.slane %v11641_v48, 1  ;;  %v4312_v1 = vrot.slane %v11643_v53, 1  ;;  %v4116_v53 = vld [vmem:[#allocation4 + $0x2d0] sm:$0xff] }
 0x8b5   :  { %v12244_v47 = vpop.f32.mrf.mxu1  ;;  %5832 = vmatpush.msra.mxu2 %v4116_v53 }
 0x8b6   :  { %15721 = vst [vmem:[#allocation186_spill] sm:$0xff] %v12244_v47  ;;  %v12246_v62 = vpop.f32.mrf.mxu0  ;;  %v12271_v47 = vsel %vm461_vm1, %v4311_v55, %v4312_v1  ;;  %v4314_v55 = vrot.slane %v11664_v22, 1  ;;  %v4148_v22 = vld [vmem:[#allocation4 + $0x3d0] sm:$0xff] }
 0x8b7   :  { %15722 = vst [vmem:[#allocation187_spill] sm:$0xff] %v12246_v62  ;;  %v12248_v31 = vpop.f32.mrf.mxu3  ;;  %6250 = vmatpush.msra.mxu0 %v4148_v22  ;;  %v4615_v22 = vrot.slane %v11651_v17, 2 }
 0x8b8   :  { %15723 = vst [vmem:[#allocation188_spill] sm:$0xff] %v12248_v31  ;;  %5052 = vmatmul.f32.gmra.mxu2 %v12207_v16  ;;  %5679 = vmatmul.f32.gmra.mxu1 %v12251_v58 }
 0x8b9   :  { %5560 = vmatmul.f32.gmra.mxu0 %v11594_v41  ;;  %15729 = vst [vmem:[#allocation194_spill] sm:$0xff] %v12271_v47  ;;  %v4610_v41 = vrot.slane %v11610_v13, 2 }
 0x8bb   :  { %v12256_v30 = vpop.f32.mrf.mxu2 }
 0x8bc   :  { %15725 = vst [vmem:[#allocation190_spill] sm:$0xff] %v12256_v30  ;;  %5357 = vmatmul.f32.gmra.mxu3 %v12259_v18  ;;  %v12281_v18 = vsel %vm814_vm2, %v4610_v41, %v4611_v42  ;;  %v3998_v30 = vld [vmem:[#allocation3 + $0x280] sm:$0x3] }
 0x8bd   :  { %v12264_v4 = vpop.f32.mrf.mxu1  ;;  %15730 = vst [vmem:[#allocation195_spill] sm:$0xff] %v12281_v18  ;;  %v4613_v38 = vrot.slane %v3998_v30, 2 }
 0x8be   :  { %v12266_v44 = vpop.f32.mrf.mxu0 }
 0x8bf   :  { %15727 = vst [vmem:[#allocation192_spill] sm:$0xff] %v12266_v44  ;;  %v12268_v54 = vpop.f32.mrf.mxu3  ;;  %v12300_v53 = vsel %vm814_vm2, %v4611_v42, %v4613_v38  ;;  %v4616_v42 = vrot.slane %v11672_v15, 2 }
 0x8c0   :  { %15728 = vst [vmem:[#allocation193_spill] sm:$0xff] %v12268_v54  ;;  %5055 = vmatmul.f32.gmra.mxu2 %v12227_v49  ;;  %5682 = vmatmul.f32.gmra.mxu1 %v12271_v47 }
 0x8c1   :  { %5563 = vmatmul.f32.gmra.mxu0 %v11610_v13  ;;  %v12292_v13 = vsel %vm461_vm1, %v4312_v1, %v4314_v55  ;;  %15734 = vst [vmem:[#allocation199_spill] sm:$0xff] %v12300_v53  ;;  %v12325_v38 = vsel %vm814_vm2, %v4615_v22, %v4616_v42 }
 0x8c2   :  { %15733 = vst [vmem:[#allocation198_spill] sm:$0xff] %v12292_v13 }
 0x8c3   :  { %v12278_v48 = vpop.f32.mrf.mxu2  ;;  %15738 = vst [vmem:[#allocation203_spill] sm:$0xff] %v12325_v38 }
 0x8c4   :  { %5360 = vmatmul.f32.gmra.mxu3 %v12281_v18  ;;  %v4316_v18 = vrot.slane %v11684_v36, 1 }
 0x8c5   :  { %v12285_v54 = vpop.f32.mrf.mxu1 }
 0x8c6   :  { %v12287_v44 = vpop.f32.mrf.mxu0 }
 0x8c7   :  { %15731 = vst [vmem:[#allocation196_spill] sm:$0xff] %v12287_v44  ;;  %v12289_v31 = vpop.f32.mrf.mxu3 }
 0x8c8   :  { %15732 = vst [vmem:[#allocation197_spill] sm:$0xff] %v12289_v31  ;;  %5058 = vmatmul.f32.gmra.mxu2 %v12251_v58  ;;  %5685 = vmatmul.f32.gmra.mxu1 %v12292_v13  ;;  %v4317_v31 = vrot.slane %v11686_v33, 1  ;;  %v12319_v33 = vld [vmem:[#allocation4 + $0x450] sm:$0xff] }
 0x8c9   :  { %5566 = vmatmul.f32.gmra.mxu0 %v11629_v2  ;;  %6459 = vmatpush.msra.mxu1 %v12319_v33 }
 0x8ca   :  { %v12312_v2 = vsel %vm461_vm1, %v4316_v18, %v4317_v31  ;;  %v4319_v18 = vrot.slane %v11707_v52, 1 }
 0x8cb   :  { %v12297_v41 = vpop.f32.mrf.mxu2  ;;  %15737 = vst [vmem:[#allocation202_spill] sm:$0xff] %v12312_v2 }
 0x8cc   :  { %5363 = vmatmul.f32.gmra.mxu3 %v12300_v53  ;;  %v4001_v53 = vld [vmem:[#allocation3 + $0x298] sm:$0x3] }
 0x8cd   :  { %v12305_v1 = vpop.f32.mrf.mxu1  ;;  %v4618_v62 = vrot.slane %v4001_v53, 2 }
 0x8ce   :  { %v12307_v30 = vpop.f32.mrf.mxu0 }
 0x8cf   :  { %15735 = vst [vmem:[#allocation200_spill] sm:$0xff] %v12307_v30  ;;  %v12309_v55 = vpop.f32.mrf.mxu3  ;;  %v12344_v22 = vsel %vm814_vm2, %v4616_v42, %v4618_v62  ;;  %v4621_v62 = vrot.slane %v15747_v10, 2  ;;  %v4131_v42 = vld [vmem:[#allocation4 + $0x348] sm:$0xff] }
 0x8d0   :  { %15736 = vst [vmem:[#allocation201_spill] sm:$0xff] %v12309_v55  ;;  %5061 = vmatmul.f32.gmra.mxu2 %v12271_v47  ;;  %5688 = vmatmul.f32.gmra.mxu1 %v12312_v2 }
 0x8d1   :  { %5569 = vmatmul.f32.gmra.mxu0 %v11651_v17  ;;  %v12336_v17 = vsel %vm461_vm1, %v4317_v31, %v4319_v18  ;;  %15742 = vst [vmem:[#allocation207_spill] sm:$0xff] %v12344_v22  ;;  %6042 = vmatpush.msra.mxu3 %v4131_v42 }
 0x8d2   :  { %15741 = vst [vmem:[#allocation206_spill] sm:$0xff] %v12336_v17 }
 0x8d3   :  { %v12322_v36 = vpop.f32.mrf.mxu2 }
 0x8d4   :  { %5366 = vmatmul.f32.gmra.mxu3 %v12325_v38  ;;  %v4321_v38 = vrot.slane %v11727_v21, 1  ;;  %v4115_v21 = vld [vmem:[#allocation4 + $0x2c8] sm:$0xff] }
 0x8d5   :  { %v12329_v55 = vpop.f32.mrf.mxu1  ;;  %5833 = vmatpush.msra.mxu2 %v4115_v21 }
 0x8d6   :  { %v12331_v30 = vpop.f32.mrf.mxu0 }
 0x8d7   :  { %15739 = vst [vmem:[#allocation204_spill] sm:$0xff] %v12331_v30  ;;  %v12333_v44 = vpop.f32.mrf.mxu3  ;;  %v4322_v30 = vrot.slane %v11729_v14, 1 }
 0x8d8   :  { %15740 = vst [vmem:[#allocation205_spill] sm:$0xff] %v12333_v44  ;;  %5064 = vmatmul.f32.gmra.mxu2 %v12292_v13  ;;  %5691 = vmatmul.f32.gmra.mxu1 %v12336_v17 }
 0x8d9   :  { %5572 = vmatmul.f32.gmra.mxu0 %v11672_v15  ;;  %v12356_v44 = vsel %vm461_vm1, %v4321_v38, %v4322_v30  ;;  %v15746_v15 = vld [vmem:[#allocation44_spill] sm:$0xff]  ;;  %v15749_v38 = vld [vmem:[#allocation59_spill] sm:$0xff] }
 0x8da   :  { %15745 = vst [vmem:[#allocation210_spill] sm:$0xff] %v12356_v44  ;;  %v4620_v5 = vrot.slane %v15746_v15, 2 }
 0x8db   :  { %v12341_v52 = vpop.f32.mrf.mxu2 }
 0x8dc   :  { %5369 = vmatmul.f32.gmra.mxu3 %v12344_v22  ;;  %v12366_v22 = vsel %vm814_vm2, %v4620_v5, %v4621_v62  ;;  %v4147_v5 = vld [vmem:[#allocation4 + $0x3c8] sm:$0xff] }
 0x8dd   :  { %v12349_v31 = vpop.f32.mrf.mxu1  ;;  %15748 = vst [vmem:[#allocation44_spill] sm:$0xff] %v12366_v22  ;;  %6251 = vmatpush.msra.mxu0 %v4147_v5 }
 0x8de   :  { %v12351_v53 = vpop.f32.mrf.mxu0 }
 0x8df   :  { %15743 = vst [vmem:[#allocation208_spill] sm:$0xff] %v12351_v53  ;;  %v12353_v18 = vpop.f32.mrf.mxu3  ;;  %v4004_v53 = vld [vmem:[#allocation3 + $0x2b0] sm:$0x3] }
 0x8e0   :  { %15744 = vst [vmem:[#allocation209_spill] sm:$0xff] %v12353_v18  ;;  %5067 = vmatmul.f32.gmra.mxu2 %v12312_v2  ;;  %5694 = vmatmul.f32.gmra.mxu1 %v12356_v44  ;;  %v4324_v18 = vrot.slane %v15749_v38, 1  ;;  %v4623_v42 = vrot.slane %v4004_v53, 2 }
 0x8e1   :  { %5575 = vmatmul.f32.gmra.mxu0 %v15746_v15 }
 0x8e2   :  { %v12377_v15 = vsel %vm461_vm1, %v4322_v30, %v4324_v18  ;;  %v12385_v38 = vsel %vm814_vm2, %v4621_v62, %v4623_v42  ;;  %v15756_v30 = vld [vmem:[#allocation21_spill] sm:$0xff]  ;;  %v15760_v62 = vld [vmem:[#allocation56_spill] sm:$0xff] }
 0x8e3   :  { %v12363_v14 = vpop.f32.mrf.mxu2  ;;  %15752 = vst [vmem:[#allocation211_spill] sm:$0xff] %v12377_v15  ;;  %v5009_v53 = vadd.f32 %v12278_v48, %v15756_v30  ;;  %v4625_v42 = vrot.slane %v15760_v62, 2  ;;  %v12407_v48 = vld [vmem:[#allocation4 + $0x448] sm:$0xff] }
 0x8e4   :  { %5372 = vmatmul.f32.gmra.mxu3 %v12366_v22  ;;  %15753 = vst [vmem:[#allocation212_spill] sm:$0xff] %v12385_v38  ;;  %v15754_v22 = vld [vmem:[#allocation66_spill] sm:$0xff]  ;;  %6460 = vmatpush.msra.mxu1 %v12407_v48 }
 0x8e5   :  { %v12370_v7 = vpop.f32.mrf.mxu1 }
 0x8e6   :  { %v12372_v2 = vpop.f32.mrf.mxu0 }
 0x8e7   :  { %15750 = vst [vmem:[#allocation50_spill] sm:$0xff] %v12372_v2  ;;  %v12374_v13 = vpop.f32.mrf.mxu3  ;;  %v4326_v2 = vrot.slane %v15754_v22, 1  ;;  %v4626_v22 = vrot.slane %v15761_v27, 2 }
 0x8e8   :  { %15751 = vst [vmem:[#allocation59_spill] sm:$0xff] %v12374_v13  ;;  %5070 = vmatmul.f32.gmra.mxu2 %v12336_v17  ;;  %5697 = vmatmul.f32.gmra.mxu1 %v12377_v15  ;;  %v15755_v13 = vld [vmem:[#allocation67_spill] sm:$0xff] }
 0x8e9   :  { %5578 = vmatmul.f32.gmra.mxu0 %v15747_v10  ;;  %v4327_v47 = vrot.slane %v15755_v13, 1  ;;  %v5218_v13 = vadd.f32 %v15762_v59, %v5009_v53  ;;  %v4007_v53 = vld [vmem:[#allocation3 + $0x2c8] sm:$0x3] }
 0x8eb   :  { %v12382_v21 = vpop.f32.mrf.mxu2  ;;  %v12399_v5 = vsel %vm461_vm1, %v4326_v2, %v4327_v47  ;;  %v12413_v2 = vsel %vm814_vm2, %v4625_v42, %v4626_v22 }
 0x8ec   :  { %5375 = vmatmul.f32.gmra.mxu3 %v12385_v38  ;;  %15759 = vst [vmem:[#allocation21_spill] sm:$0xff] %v12399_v5  ;;  %v15764_v38 = vld [vmem:[#allocation74_spill] sm:$0xff] }
 0x8ed   :  { %v12392_v18 = vpop.f32.mrf.mxu1  ;;  %15763 = vst [vmem:[#allocation56_spill] sm:$0xff] %v12413_v2 }
 0x8ee   :  { %v12394_v17 = vpop.f32.mrf.mxu0 }
 0x8ef   :  { %15757 = vst [vmem:[#allocation66_spill] sm:$0xff] %v12394_v17  ;;  %v12396_v10 = vpop.f32.mrf.mxu3  ;;  %v15765_v17 = vld [vmem:[#allocation10_spill] sm:$0xff] }
 0x8f0   :  { %15758 = vst [vmem:[#allocation67_spill] sm:$0xff] %v12396_v10  ;;  %5073 = vmatmul.f32.gmra.mxu2 %v12356_v44  ;;  %5700 = vmatmul.f32.gmra.mxu1 %v12399_v5  ;;  %v4329_v10 = vrot.slane %v15764_v38, 1  ;;  %v5012_v59 = vadd.f32 %v12297_v41, %v15765_v17  ;;  %v15766_v44 = vld [vmem:[#allocation32_spill] sm:$0xff]  ;;  %v4628_v38 = vrot.slane %v4007_v53, 2 }
 0x8f1   :  { %5581 = vmatmul.f32.gmra.mxu0 %v15760_v62  ;;  %v5427_v58 = vadd.f32 %v15766_v44, %v5218_v13  ;;  %v15773_v13 = vld [vmem:[#allocation82_spill] sm:$0xff] }
 0x8f2   :  { %v12430_v42 = vsel %vm461_vm1, %v4327_v47, %v4329_v10  ;;  %v5221_v41 = vadd.f32 %v15770_v57, %v5012_v59  ;;  %v12439_v17 = vsel %vm814_vm2, %v4626_v22, %v4628_v38  ;;  %v15774_v47 = vld [vmem:[#allocation14_spill] sm:$0xff]  ;;  %v15775_v57 = vld [vmem:[#allocation37_spill] sm:$0xff] }
 0x8f3   :  { %v12410_v30 = vpop.f32.mrf.mxu2  ;;  %v12425_v49 = vadd.f32 %v12264_v4, %v5427_v58  ;;  %15771 = vst [vmem:[#allocation10_spill] sm:$0xff] %v12439_v17  ;;  %v15772_v58 = vld [vmem:[#allocation81_spill] sm:$0xff]  ;;  %v5015_v10 = vadd.f32 %v12322_v36, %v15774_v47  ;;  %v4130_v47 = vld [vmem:[#allocation4 + $0x340] sm:$0xff] }
 0x8f4   :  { %5378 = vmatmul.f32.gmra.mxu3 %v12413_v2  ;;  %v4331_v4 = vrot.slane %v15772_v58, 1  ;;  %v4332_v2 = vrot.slane %v15773_v13, 1  ;;  %v5430_v59 = vadd.f32 %v15775_v57, %v5221_v41  ;;  %v15780_v58 = vld [vmem:[#allocation71_spill] sm:$0xff]  ;;  %v15784_v57 = vld [vmem:[#allocation88_spill] sm:$0xff] }
 0x8f5   :  { %v12420_v62 = vpop.f32.mrf.mxu1  ;;  %15768 = vst [vmem:[#allocation11_spill] sm:$0xff] %v12425_v49  ;;  %v4630_v13 = vrot.slane %v15780_v58, 2  ;;  %6043 = vmatpush.msra.mxu3 %v4130_v47 }
 0x8f6   :  { %v12422_v37 = vpop.f32.mrf.mxu0  ;;  %v12457_v38 = vsel %vm461_vm1, %v4331_v4, %v4332_v2 }
 0x8f7   :  { %15767 = vst [vmem:[#allocation63_spill] sm:$0xff] %v12422_v37  ;;  %v12427_v50 = vpop.f32.mrf.mxu3 }
 0x8f8   :  { %15769 = vst [vmem:[#allocation74_spill] sm:$0xff] %v12427_v50  ;;  %5076 = vmatmul.f32.gmra.mxu2 %v12377_v15  ;;  %5703 = vmatmul.f32.gmra.mxu1 %v12430_v42  ;;  %v15781_v50 = vld [vmem:[#allocation78_spill] sm:$0xff]  ;;  %v15791_v15 = vld [vmem:[#allocation43_spill] sm:$0xff] }
 0x8f9   :  { %5584 = vmatmul.f32.gmra.mxu0 %v15761_v27  ;;  %v12452_v27 = vadd.f32 %v12285_v54, %v5430_v59  ;;  %15779 = vst [vmem:[#allocation82_spill] sm:$0xff] %v12457_v38  ;;  %v4631_v36 = vrot.slane %v15781_v50, 2  ;;  %v4114_v54 = vld [vmem:[#allocation4 + $0x2c0] sm:$0xff]  ;;  %v4334_v59 = vrot.slane %v15784_v57, 1 }
 0x8fa   :  { %5834 = vmatpush.msra.mxu2 %v4114_v54 }
 0x8fb   :  { %v12436_v44 = vpop.f32.mrf.mxu2  ;;  %15777 = vst [vmem:[#allocation33_spill] sm:$0xff] %v12452_v27  ;;  %v12468_v4 = vsel %vm814_vm2, %v4630_v13, %v4631_v36  ;;  %v15785_v27 = vld [vmem:[#allocation36_spill] sm:$0xff]  ;;  %v12485_v13 = vsel %vm461_vm1, %v4332_v2, %v4334_v59  ;;  %v4337_v2 = vrot.slane %v11855_v34, 1  ;;  %v15794_v59 = vld [vmem:[#allocation41_spill] sm:$0xff]  ;;  %v7359_v34 = vld [vmem:[#allocation3 + $0x2e8] sm:$0xff] }
 0x8fc   :  { %5381 = vmatmul.f32.gmra.mxu3 %v12439_v17  ;;  %v15782_v17 = vld [vmem:[#allocation38_spill] sm:$0xff]  ;;  %15783 = vst [vmem:[#allocation14_spill] sm:$0xff] %v12468_v4 }
 0x8fd   :  { %v12447_v53 = vpop.f32.mrf.mxu1  ;;  %v5224_v37 = vadd.f32 %v15782_v17, %v5015_v10  ;;  %v4010_v17 = vld [vmem:[#allocation3 + $0x2e0] sm:$0x3]  ;;  %15790 = vst [vmem:[#allocation38_spill] sm:$0xff] %v12485_v13 }
 0x8fe   :  { %v12449_v49 = vpop.f32.mrf.mxu0  ;;  %v15786_v10 = vld [vmem:[#allocation42_spill] sm:$0xff]  ;;  %v4633_v57 = vrot.slane %v4010_v17, 2 }
 0x8ff   :  { %15776 = vst [vmem:[#allocation32_spill] sm:$0xff] %v12449_v49  ;;  %v12454_v22 = vpop.f32.mrf.mxu3  ;;  %v5433_v49 = vadd.f32 %v15786_v10, %v5224_v37  ;;  %v4146_v37 = vld [vmem:[#allocation4 + $0x3c0] sm:$0xff] }
 0x900   :  { %15778 = vst [vmem:[#allocation81_spill] sm:$0xff] %v12454_v22  ;;  %5079 = vmatmul.f32.gmra.mxu2 %v12399_v5  ;;  %5706 = vmatmul.f32.gmra.mxu1 %v12457_v38  ;;  %v5018_v22 = vadd.f32 %v12341_v52, %v15785_v27 }
 0x901   :  { %5587 = vmatmul.f32.gmra.mxu0 %v15780_v58  ;;  %v12480_v47 = vadd.f32 %v12305_v1, %v5433_v49  ;;  %v12494_v49 = vsel %vm814_vm2, %v4631_v36, %v4633_v57  ;;  %v15793_v1 = vld [vmem:[#allocation95_spill] sm:$0xff] }
 0x902   :  { %v5227_v52 = vadd.f32 %v15791_v15, %v5018_v22  ;;  %6252 = vmatpush.msra.mxu0 %v4146_v37  ;;  %15792 = vst [vmem:[#allocation88_spill] sm:$0xff] %v12494_v49  ;;  %v4336_v10 = vrot.slane %v15793_v1, 1  ;;  %v5021_v15 = vadd.f32 %v12363_v14, %v15794_v59  ;;  %v15795_v22 = vld [vmem:[#allocation48_spill] sm:$0xff]  ;;  %v4635_v1 = vrot.slane %v7359_v34, 2  ;;  %v15801_v59 = vld [vmem:[#allocation49_spill] sm:$0xff] }
 0x903   :  { %v12465_v41 = vpop.f32.mrf.mxu2  ;;  %15788 = vst [vmem:[#allocation71_spill] sm:$0xff] %v12480_v47  ;;  %v15800_v47 = vld [vmem:[#allocation92_spill] sm:$0xff] }
 0x904   :  { %5384 = vmatmul.f32.gmra.mxu3 %v12468_v4  ;;  %v5436_v17 = vadd.f32 %v15795_v22, %v5227_v52  ;;  %v12512_v57 = vsel %vm461_vm1, %v4336_v10, %v4337_v2  ;;  %v4636_v14 = vrot.slane %v15800_v47, 2  ;;  %v12518_v52 = vld [vmem:[#allocation4 + $0x440] sm:$0xff]  ;;  %v15803_v22 = vld [vmem:[#allocation101_spill] sm:$0xff] }
 0x905   :  { %v12475_v5 = vpop.f32.mrf.mxu1  ;;  %15799 = vst [vmem:[#allocation95_spill] sm:$0xff] %v12512_v57  ;;  %6461 = vmatpush.msra.mxu1 %v12518_v52 }
 0x906   :  { %v12477_v58 = vpop.f32.mrf.mxu0  ;;  %v12507_v37 = vadd.f32 %v12329_v55, %v5436_v17  ;;  %v12524_v10 = vsel %vm814_vm2, %v4635_v1, %v4636_v14  ;;  %v4339_v17 = vrot.slane %v15803_v22, 1 }
 0x907   :  { %15787 = vst [vmem:[#allocation37_spill] sm:$0xff] %v12477_v58  ;;  %v12482_v54 = vpop.f32.mrf.mxu3 }
 0x908   :  { %15789 = vst [vmem:[#allocation78_spill] sm:$0xff] %v12482_v54  ;;  %5082 = vmatmul.f32.gmra.mxu2 %v12430_v42  ;;  %5709 = vmatmul.f32.gmra.mxu1 %v12485_v13  ;;  %v4129_v54 = vld [vmem:[#allocation4 + $0x338] sm:$0xff]  ;;  %v12541_v22 = vsel %vm461_vm1, %v4337_v2, %v4339_v17 }
 0x909   :  { %5590 = vmatmul.f32.gmra.mxu0 %v15781_v50  ;;  %15797 = vst [vmem:[#allocation42_spill] sm:$0xff] %v12507_v37  ;;  %v15804_v37 = vld [vmem:[#allocation47_spill] sm:$0xff]  ;;  %6044 = vmatpush.msra.mxu3 %v4129_v54  ;;  %v15812_v54 = vld [vmem:[#allocation108_spill] sm:$0xff] }
 0x90a   :  { %15802 = vst [vmem:[#allocation41_spill] sm:$0xff] %v12524_v10  ;;  %v5024_v47 = vadd.f32 %v12382_v21, %v15804_v37  ;;  %v4128_v21 = vld [vmem:[#allocation4 + $0x330] sm:$0xff]  ;;  %v15809_v37 = vld [vmem:[#allocation55_spill] sm:$0xff]  ;;  %v4341_v17 = vrot.slane %v15812_v54, 1  ;;  %v12572_v54 = vld [vmem:[#allocation3 + $0x300] sm:$0xff] }
 0x90b   :  { %v12491_v27 = vpop.f32.mrf.mxu2  ;;  %6045 = vmatpush.msra.mxu3 %v4128_v21 }
 0x90c   :  { %5387 = vmatmul.f32.gmra.mxu3 %v12494_v49  ;;  %v5230_v49 = vadd.f32 %v15801_v59, %v5021_v15  ;;  %v4013_v15 = vld [vmem:[#allocation3 + $0x2f8] sm:$0x3]  ;;  %v15805_v59 = vld [vmem:[#allocation54_spill] sm:$0xff] }
 0x90d   :  { %v12502_v4 = vpop.f32.mrf.mxu1 }
 0x90e   :  { %v12504_v50 = vpop.f32.mrf.mxu0 }
 0x90f   :  { %15796 = vst [vmem:[#allocation36_spill] sm:$0xff] %v12504_v50  ;;  %v12509_v36 = vpop.f32.mrf.mxu3 }
 0x910   :  { %15798 = vst [vmem:[#allocation43_spill] sm:$0xff] %v12509_v36  ;;  %5085 = vmatmul.f32.gmra.mxu2 %v12457_v38  ;;  %5712 = vmatmul.f32.gmra.mxu1 %v12512_v57  ;;  %v5439_v36 = vadd.f32 %v15805_v59, %v5230_v49  ;;  %v4638_v38 = vrot.slane %v4013_v15, 2  ;;  %v12546_v49 = vld [vmem:[#allocation3 + $0x2f0] sm:$0xff]  ;;  %v15813_v15 = vld [vmem:[#allocation109_spill] sm:$0xff] }
 0x911   :  { %5593 = vmatmul.f32.gmra.mxu0 %v7359_v34  ;;  %15810 = vst [vmem:[#allocation101_spill] sm:$0xff] %v12546_v49 }
 0x912   :  { %v12536_v58 = vadd.f32 %v12349_v31, %v5439_v36  ;;  %v4127_v31 = vld [vmem:[#allocation4 + $0x328] sm:$0xff]  ;;  %v4126_v36 = vld [vmem:[#allocation4 + $0x320] sm:$0xff]  ;;  %v12552_v2 = vsel %vm814_vm2, %v4636_v14, %v4638_v38  ;;  %15819 = vst [vmem:[#allocation109_spill] sm:$0xff] %v12572_v54 }
 0x913   :  { %v12521_v55 = vpop.f32.mrf.mxu2  ;;  %15811 = vst [vmem:[#allocation47_spill] sm:$0xff] %v12552_v2  ;;  %6046 = vmatpush.msra.mxu3 %v4127_v31 }
 0x914   :  { %5390 = vmatmul.f32.gmra.mxu3 %v12524_v10  ;;  %15807 = vst [vmem:[#allocation92_spill] sm:$0xff] %v12536_v58  ;;  %v5233_v10 = vadd.f32 %v15809_v37, %v5024_v47  ;;  %v4342_v47 = vrot.slane %v15813_v15, 1  ;;  %v15814_v37 = vld [vmem:[#allocation53_spill] sm:$0xff] }
 0x915   :  { %v12531_v34 = vpop.f32.mrf.mxu1  ;;  %v5027_v58 = vadd.f32 %v12410_v30, %v15814_v37  ;;  %6047 = vmatpush.msra.mxu3 %v4126_v36  ;;  %v4640_v30 = vrot.slane %v12572_v54, 2  ;;  %v15820_v15 = vld [vmem:[#allocation105_spill] sm:$0xff]  ;;  %v15821_v36 = vld [vmem:[#allocation62_spill] sm:$0xff] }
 0x916   :  { %v12533_v50 = vpop.f32.mrf.mxu0  ;;  %v12570_v31 = vsel %vm461_vm1, %v4341_v17, %v4342_v47  ;;  %v4145_v17 = vld [vmem:[#allocation4 + $0x3b8] sm:$0xff] }
 0x917   :  { %15806 = vst [vmem:[#allocation48_spill] sm:$0xff] %v12533_v50  ;;  %v12538_v1 = vpop.f32.mrf.mxu3  ;;  %v5236_v37 = vadd.f32 %v15821_v36, %v5027_v58  ;;  %6253 = vmatpush.msra.mxu0 %v4145_v17  ;;  %v15824_v36 = vld [vmem:[#allocation60_spill] sm:$0xff] }
 0x918   :  { %15808 = vst [vmem:[#allocation49_spill] sm:$0xff] %v12538_v1  ;;  %5088 = vmatmul.f32.gmra.mxu2 %v12485_v13  ;;  %5715 = vmatmul.f32.gmra.mxu1 %v12541_v22  ;;  %v15815_v1 = vld [vmem:[#allocation61_spill] sm:$0xff] }
 0x919   :  { %5596 = vmatmul.f32.gmra.mxu0 %v12546_v49  ;;  %v5442_v50 = vadd.f32 %v15815_v1, %v5233_v10  ;;  %v4125_v49 = vld [vmem:[#allocation4 + $0x318] sm:$0xff]  ;;  %v4641_v10 = vrot.slane %v15820_v15, 2  ;;  %v4124_v1 = vld [vmem:[#allocation4 + $0x310] sm:$0xff]  ;;  %v15823_v15 = vld [vmem:[#allocation115_spill] sm:$0xff] }
 0x91a   :  { %6048 = vmatpush.msra.mxu3 %v4125_v49  ;;  %v4344_v58 = vrot.slane %v15823_v15, 1 }
 0x91b   :  { %v12549_v59 = vpop.f32.mrf.mxu2  ;;  %v12565_v38 = vadd.f32 %v12370_v7, %v5442_v50  ;;  %v4113_v7 = vld [vmem:[#allocation4 + $0x2b8] sm:$0xff]  ;;  %v4123_v50 = vld [vmem:[#allocation4 + $0x308] sm:$0xff]  ;;  %v12583_v49 = vsel %vm814_vm2, %v4640_v30, %v4641_v10 }
 0x91c   :  { %5393 = vmatmul.f32.gmra.mxu3 %v12552_v2  ;;  %5835 = vmatpush.msra.mxu2 %v4113_v7  ;;  %v4122_v2 = vld [vmem:[#allocation4 + $0x300] sm:$0xff]  ;;  %15822 = vst [vmem:[#allocation53_spill] sm:$0xff] %v12583_v49  ;;  %v7362_v30 = vld [vmem:[#allocation4 + $0x478] sm:$0xff] }
 0x91d   :  { %v12560_v21 = vpop.f32.mrf.mxu1  ;;  %15817 = vst [vmem:[#allocation55_spill] sm:$0xff] %v12565_v38  ;;  %6049 = vmatpush.msra.mxu3 %v4124_v1  ;;  %v12589_v1 = vld [vmem:[#allocation3 + $0x310] sm:$0x3] }
 0x91e   :  { %v12562_v13 = vpop.f32.mrf.mxu0 }
 0x91f   :  { %15816 = vst [vmem:[#allocation54_spill] sm:$0xff] %v12562_v13  ;;  %v12567_v14 = vpop.f32.mrf.mxu3  ;;  %6050 = vmatpush.msra.mxu3 %v4123_v50  ;;  %v15825_v13 = vld [vmem:[#allocation69_spill] sm:$0xff] }
 0x920   :  { %15818 = vst [vmem:[#allocation108_spill] sm:$0xff] %v12567_v14  ;;  %5091 = vmatmul.f32.gmra.mxu2 %v12512_v57  ;;  %5718 = vmatmul.f32.gmra.mxu1 %v12570_v31  ;;  %v5030_v14 = vadd.f32 %v12436_v44, %v15824_v36  ;;  %v5445_v57 = vadd.f32 %v15825_v13, %v5236_v37  ;;  %v4643_v36 = vrot.slane %v12589_v1, 2  ;;  %v4143_v13 = vld [vmem:[#allocation4 + $0x3a8] sm:$0xff]  ;;  %v15829_v37 = vld [vmem:[#allocation70_spill] sm:$0xff] }
 0x921   :  { %5599 = vmatmul.f32.gmra.mxu0 %v12572_v54  ;;  %6051 = vmatpush.msra.mxu3 %v4122_v2  ;;  %v4144_v54 = vld [vmem:[#allocation4 + $0x3b0] sm:$0xff]  ;;  %v12602_v44 = vsel %vm461_vm1, %v4342_v47, %v4344_v58  ;;  %v12608_v2 = vld [vmem:[#allocation3 + $0x308] sm:$0xff]  ;;  %v4141_v58 = vld [vmem:[#allocation4 + $0x398] sm:$0xff] }
 0x922   :  { %v12597_v15 = vadd.f32 %v12392_v18, %v5445_v57  ;;  %6254 = vmatpush.msra.mxu0 %v4144_v54  ;;  %v4142_v18 = vld [vmem:[#allocation4 + $0x3a0] sm:$0xff]  ;;  %v12615_v47 = vsel %vm814_vm2, %v4641_v10, %v4643_v36  ;;  %v4720_v54 = vrot.slane %v11939_v43, 1 }
 0x923   :  { %v12580_v38 = vpop.f32.mrf.mxu2  ;;  %7312 = vmatpush.msrb.mxu3 %v7362_v30  ;;  %15830 = vst [vmem:[#allocation115_spill] sm:$0xff] %v12615_v47  ;;  %v15831_v30 = vld [vmem:[#allocation68_spill] sm:$0xff] }
 0x924   :  { %5396 = vmatmul.f32.gmra.mxu3 %v12583_v49  ;;  %15827 = vst [vmem:[#allocation105_spill] sm:$0xff] %v12597_v15  ;;  %v5239_v49 = vadd.f32 %v15829_v37, %v5030_v14  ;;  %6255 = vmatpush.msra.mxu0 %v4143_v13  ;;  %v4721_v14 = vrot.slane %v11955_v39, 1  ;;  %v5033_v37 = vadd.f32 %v12465_v41, %v15831_v30  ;;  %v12637_v41 = vld [vmem:[#allocation3 + $0x318] sm:$0xff] }
 0x925   :  { %v12592_v7 = vpop.f32.mrf.mxu1  ;;  %7313 = vmatpush.msrb.mxu3 %v11979_v0  ;;  %v15832_v0 = vld [vmem:[#allocation76_spill] sm:$0xff]  ;;  %v4645_v36 = vrot.slane %v12637_v41, 2 }
 0x926   :  { %v12594_v17 = vpop.f32.mrf.mxu0  ;;  %6256 = vmatpush.msra.mxu0 %v4142_v18  ;;  %v5448_v13 = vadd.f32 %v15832_v0, %v5239_v49  ;;  %v12640_v49 = vld [vmem:[#allocation3 + $0x320] sm:$0xff]  ;;  %v4161_v0 = vld [vmem:[#allocation4 + $0x438] sm:$0xff] }
 0x927   :  { %15826 = vst [vmem:[#allocation61_spill] sm:$0xff] %v12594_v17  ;;  %v12599_v50 = vpop.f32.mrf.mxu3  ;;  %7314 = vmatpush.msrb.mxu3 %v12064_v19  ;;  %v12635_v19 = vsel %vm461_vm1, %v4720_v54, %v4721_v14  ;;  %v4646_v18 = vrot.slane %v12640_v49, 2  ;;  %v4139_v54 = vld [vmem:[#allocation4 + $0x388] sm:$0xff]  ;;  %6462 = vmatpush.msra.mxu1 %v4161_v0  ;;  %v15856_v17 = vld [vmem:[#allocation98_spill] sm:$0xff] }
 0x928   :  { %15828 = vst [vmem:[#allocation62_spill] sm:$0xff] %v12599_v50  ;;  %5094 = vmatmul.f32.gmra.mxu2 %v12541_v22  ;;  %5721 = vmatmul.f32.gmra.mxu1 %v12602_v44  ;;  %v12630_v43 = vadd.f32 %v12420_v62, %v5448_v13  ;;  %v3968_v62 = vld [vmem:[#allocation3 + $0x190] sm:$0x3] }
 0x929   :  { %5602 = vmatmul.f32.gmra.mxu0 %v12608_v2  ;;  %7315 = vmatpush.msrb.mxu3 %v12149_v46  ;;  %v4140_v46 = vld [vmem:[#allocation4 + $0x390] sm:$0xff] }
 0x92a   :  { %6257 = vmatpush.msra.mxu0 %v4141_v58  ;;  %15834 = vst [vmem:[#allocation69_spill] sm:$0xff] %v12630_v43  ;;  %v15836_v58 = vld [vmem:[#allocation77_spill] sm:$0xff] }
 0x92b   :  { %v12612_v57 = vpop.f32.mrf.mxu2  ;;  %7316 = vmatpush.msrb.mxu3 %v12234_v20  ;;  %v5242_v30 = vadd.f32 %v15836_v58, %v5033_v37  ;;  %v4723_v20 = vrot.slane %v3968_v62, 1  ;;  %v4138_v37 = vld [vmem:[#allocation4 + $0x380] sm:$0xff]  ;;  %v15838_v58 = vld [vmem:[#allocation75_spill] sm:$0xff] }
 0x92c   :  { %5399 = vmatmul.f32.gmra.mxu3 %v12615_v47  ;;  %6258 = vmatpush.msra.mxu0 %v4140_v46  ;;  %v12652_v47 = vsel %vm814_vm2, %v4645_v36, %v4646_v18  ;;  %v5036_v43 = vadd.f32 %v12491_v27, %v15838_v58 }
 0x92d   :  { %v12624_v15 = vpop.f32.mrf.mxu1  ;;  %7317 = vmatpush.msrb.mxu3 %v12319_v33  ;;  %15837 = vst [vmem:[#allocation68_spill] sm:$0xff] %v12652_v47  ;;  %v15839_v33 = vld [vmem:[#allocation84_spill] sm:$0xff]  ;;  %v12672_v27 = vsel %vm461_vm1, %v4721_v14, %v4723_v20 }
 0x92e   :  { %v12627_v10 = vpop.f32.mrf.mxu0  ;;  %6259 = vmatpush.msra.mxu0 %v4139_v54  ;;  %v5451_v46 = vadd.f32 %v15839_v33, %v5242_v30  ;;  %v15843_v54 = vld [vmem:[#allocation85_spill] sm:$0xff]  ;;  %v7367_v14 = vld [vmem:[#allocation3 + $0x1d0] sm:$0xff] }
 0x92f   :  { %15833 = vst [vmem:[#allocation60_spill] sm:$0xff] %v12627_v10  ;;  %v12632_v39 = vpop.f32.mrf.mxu3  ;;  %7318 = vmatpush.msrb.mxu3 %v12407_v48  ;;  %v5245_v30 = vadd.f32 %v15843_v54, %v5036_v43  ;;  %v4352_v20 = vrot.slane %v7367_v14, 1  ;;  %v15846_v43 = vld [vmem:[#allocation90_spill] sm:$0xff] }
 0x930   :  { %15835 = vst [vmem:[#allocation70_spill] sm:$0xff] %v12632_v39  ;;  %5097 = vmatmul.f32.gmra.mxu2 %v12570_v31  ;;  %5724 = vmatmul.f32.gmra.mxu1 %v12635_v19  ;;  %v12658_v39 = vld [vmem:[#allocation3 + $0x328] sm:$0x3]  ;;  %v12667_v62 = vadd.f32 %v12447_v53, %v5451_v46 }
 0x931   :  { %5605 = vmatmul.f32.gmra.mxu0 %v12637_v41  ;;  %7319 = vmatpush.msrb.mxu3 %v12518_v52  ;;  %v4648_v58 = vrot.slane %v12658_v39, 2  ;;  %v15845_v46 = vld [vmem:[#allocation83_spill] sm:$0xff]  ;;  %v5454_v54 = vadd.f32 %v15846_v43, %v5245_v30  ;;  %v7368_v30 = vld [vmem:[#allocation3 + $0x1c0] sm:$0x3] }
 0x932   :  { %6260 = vmatpush.msra.mxu0 %v4138_v37  ;;  %15841 = vst [vmem:[#allocation77_spill] sm:$0xff] %v12667_v62  ;;  %v7366_v37 = vld [vmem:[#allocation3 + $0x1c8] sm:$0xff]  ;;  %v4349_v43 = vrot.slane %v7368_v30, 1 }
 0x933   :  { %v12649_v13 = vpop.f32.mrf.mxu2  ;;  %7320 = vmatpush.msrb.mxu3 %v4161_v0  ;;  %v12682_v53 = vsel %vm814_vm2, %v4646_v18, %v4648_v58  ;;  %v4351_v33 = vrot.slane %v7366_v37, 1  ;;  %v5039_v0 = vadd.f32 %v12521_v55, %v15845_v46  ;;  %v15850_v37 = vld [vmem:[#allocation91_spill] sm:$0xff]  ;;  %v12700_v55 = vld [vmem:[#allocation3 + $0x330] sm:$0xff] }
 0x934   :  { %5402 = vmatmul.f32.gmra.mxu3 %v12652_v47  ;;  %15844 = vst [vmem:[#allocation84_spill] sm:$0xff] %v12682_v53  ;;  %v4112_v46 = vld [vmem:[#allocation4 + $0x2b0] sm:$0xff] }
 0x935   :  { %v12661_v10 = vpop.f32.mrf.mxu1  ;;  %v4353_v58 = vsel %vm461_vm1, %v4351_v33, %v4352_v20  ;;  %v5248_v14 = vadd.f32 %v15850_v37, %v5039_v0  ;;  %5836 = vmatpush.msra.mxu2 %v4112_v46  ;;  %v15852_v0 = vld [vmem:[#allocation97_spill] sm:$0xff] }
 0x936   :  { %v12664_v36 = vpop.f32.mrf.mxu0 }
 0x937   :  { %15840 = vst [vmem:[#allocation76_spill] sm:$0xff] %v12664_v36  ;;  %v12669_v48 = vpop.f32.mrf.mxu3  ;;  %v5457_v37 = vadd.f32 %v15852_v0, %v5248_v14  ;;  %v4350_v36 = vsel %vm461_vm1, %v11923_v25, %v4349_v43  ;;  %v7373_v0 = vld [vmem:[#allocation3 + $0x38] sm:$0xff] }
 0x938   :  { %15842 = vst [vmem:[#allocation75_spill] sm:$0xff] %v12669_v48  ;;  %5100 = vmatmul.f32.gmra.mxu2 %v12602_v44  ;;  %5727 = vmatmul.f32.gmra.mxu1 %v12672_v27  ;;  %v12693_v48 = vadd.f32 %v12475_v5, %v5454_v54  ;;  %v7369_v5 = vld [vmem:[#allocation3 + $0x1d8] sm:$0x3] }
 0x939   :  { %5608 = vmatmul.f32.gmra.mxu0 %v12640_v49  ;;  %v4354_v54 = vrot.slane %v7369_v5, 1  ;;  %v12715_v46 = vadd.f32 %v12502_v4, %v5457_v37  ;;  %v12729_v4 = vld [vmem:[#allocation3 + $0x1e8] sm:$0xff] }
 0x93a   :  { %15848 = vst [vmem:[#allocation83_spill] sm:$0xff] %v12693_v48  ;;  %v15851_v48 = vld [vmem:[#allocation89_spill] sm:$0xff]  ;;  %v4357_v43 = vrot.slane %v12729_v4, 1 }
 0x93b   :  { %v12679_v52 = vpop.f32.mrf.mxu2  ;;  %v5042_v33 = vadd.f32 %v12549_v59, %v15851_v48  ;;  %15854 = vst [vmem:[#allocation89_spill] sm:$0xff] %v12715_v46  ;;  %v4355_v5 = vsel %vm461_vm1, %v4352_v20, %v4354_v54  ;;  %v12721_v48 = vld [vmem:[#allocation3 + $0x338] sm:$0xff]  ;;  %v15858_v20 = vld [vmem:[#allocation103_spill] sm:$0xff] }
 0x93c   :  { %5405 = vmatmul.f32.gmra.mxu3 %v12682_v53  ;;  %15857 = vst [vmem:[#allocation98_spill] sm:$0xff] %v12729_v4 }
 0x93d   :  { %v12688_v47 = vpop.f32.mrf.mxu1  ;;  %v5251_v59 = vadd.f32 %v15856_v17, %v5042_v33 }
 0x93e   :  { %v12690_v62 = vpop.f32.mrf.mxu0 }
 0x93f   :  { %15847 = vst [vmem:[#allocation85_spill] sm:$0xff] %v12690_v62  ;;  %v12695_v18 = vpop.f32.mrf.mxu3  ;;  %v5460_v17 = vadd.f32 %v15858_v20, %v5251_v59 }
 0x940   :  { %15849 = vst [vmem:[#allocation90_spill] sm:$0xff] %v12695_v18  ;;  %5103 = vmatmul.f32.gmra.mxu2 %v11923_v25  ;;  %5730 = vmatmul.f32.gmra.mxu1 %v4353_v58  ;;  %v7370_v18 = vld [vmem:[#allocation3 + $0x30] sm:$0xff]  ;;  %v12726_v25 = vld [vmem:[#allocation3 + $0x1e0] sm:$0xff] }
 0x941   :  { %5611 = vmatmul.f32.gmra.mxu0 %v12700_v55  ;;  %v4356_v14 = vrot.slane %v12726_v25, 1  ;;  %v12740_v46 = vadd.f32 %v12531_v34, %v5460_v17  ;;  %v7375_v17 = vld [vmem:[#allocation3 + $0x48] sm:$0xff] }
 0x943   :  { %v12703_v53 = vpop.f32.mrf.mxu2 }
 0x944   :  { %6052 = vmatmul.f32.vlgmr.msra.gmra.mxu3 %v7370_v18 }
 0x945   :  { %v12708_v62 = vpop.f32.mrf.mxu1 }
 0x946   :  { %v12712_v50 = vpop.f32.mrf.mxu0 }
 0x947   :  { %15853 = vst [vmem:[#allocation91_spill] sm:$0xff] %v12712_v50  ;;  %v12717_v30 = vpop.f32.mrf.mxu3  ;;  %v12745_v50 = vsel %vm461_vm1, %v4356_v14, %v4357_v43 }
 0x948   :  { %15855 = vst [vmem:[#allocation97_spill] sm:$0xff] %v12717_v30  ;;  %5106 = vmatmul.f32.gmra.mxu2 %v4350_v36  ;;  %5733 = vmatmul.f32.gmra.mxu1 %v4355_v5  ;;  %v15859_v36 = vld [vmem:[#allocation96_spill] sm:$0xff] }
 0x949   :  { %5614 = vmatmul.f32.gmra.mxu0 %v12721_v48  ;;  %v5045_v54 = vadd.f32 %v12580_v38, %v15859_v36  ;;  %15861 = vst [vmem:[#allocation96_spill] sm:$0xff] %v12740_v46  ;;  %v4160_v38 = vld [vmem:[#allocation4 + $0x430] sm:$0xff]  ;;  %v15864_v46 = vld [vmem:[#allocation102_spill] sm:$0xff] }
 0x94a   :  { %6463 = vmatpush.msra.mxu1 %v4160_v38  ;;  %7321 = vmatpush.msrb.mxu3 %v4160_v38  ;;  %v7374_v36 = vld [vmem:[#allocation3 + $0x1f0] sm:$0x3]  ;;  %v5048_v14 = vadd.f32 %v12612_v57, %v15864_v46  ;;  %v12772_v46 = vld [vmem:[#allocation3 + $0x1f8] sm:$0xff] }
 0x94b   :  { %v12724_v18 = vpop.f32.mrf.mxu2  ;;  %v4359_v34 = vrot.slane %v7374_v36, 1  ;;  %v15869_v38 = vld [vmem:[#allocation112_spill] sm:$0xff] }
 0x94c   :  { %6055 = vmatmul.f32.gmra.mxu3 %v7373_v0  ;;  %v15863_v0 = vld [vmem:[#allocation104_spill] sm:$0xff]  ;;  %v5257_v36 = vadd.f32 %v15869_v38, %v5048_v14  ;;  %15870 = vst [vmem:[#allocation112_spill] sm:$0xff] %v12772_v46  ;;  %v15873_v14 = vld [vmem:[#allocation117_spill] sm:$0xff] }
 0x94d   :  { %v12735_v33 = vpop.f32.mrf.mxu1  ;;  %v5254_v59 = vadd.f32 %v15863_v0, %v5045_v54 }
 0x94e   :  { %v12737_v37 = vpop.f32.mrf.mxu0 }
 0x94f   :  { %15860 = vst [vmem:[#allocation103_spill] sm:$0xff] %v12737_v37  ;;  %v12742_v30 = vpop.f32.mrf.mxu3 }
 0x950   :  { %15862 = vst [vmem:[#allocation213_spill] sm:$0xff] %v12742_v30  ;;  %5109 = vmatmul.f32.gmra.mxu2 %v4353_v58  ;;  %5736 = vmatmul.f32.gmra.mxu1 %v12745_v50  ;;  %v15865_v58 = vld [vmem:[#allocation111_spill] sm:$0xff] }
 0x951   :  { %6261 = vmatmul.f32.vlgmr.msra.gmra.mxu0 %v11972_v23  ;;  %v5463_v37 = vadd.f32 %v15865_v58, %v5254_v59  ;;  %v12762_v23 = vsel %vm461_vm1, %v4357_v43, %v4359_v34  ;;  %v4361_v59 = vrot.slane %v12772_v46, 1  ;;  %v7378_v34 = vld [vmem:[#allocation3 + $0x50] sm:$0xff]  ;;  %v5466_v58 = vadd.f32 %v15873_v14, %v5257_v36  ;;  %v7379_v14 = vld [vmem:[#allocation3 + $0x208] sm:$0x3] }
 0x953   :  { %v12750_v20 = vpop.f32.mrf.mxu2  ;;  %v12765_v0 = vadd.f32 %v12560_v21, %v5463_v37  ;;  %v15872_v21 = vld [vmem:[#allocation110_spill] sm:$0xff] }
 0x954   :  { %6058 = vmatmul.f32.gmra.mxu3 %v7375_v17  ;;  %v12775_v17 = vld [vmem:[#allocation3 + $0x200] sm:$0xff] }
 0x955   :  { %v12754_v30 = vpop.f32.mrf.mxu1  ;;  %15868 = vst [vmem:[#allocation111_spill] sm:$0xff] %v12765_v0  ;;  %v4362_v43 = vrot.slane %v12775_v17, 1 }
 0x956   :  { %v12757_v4 = vpop.f32.mrf.mxu0  ;;  %15871 = vst [vmem:[#allocation214_spill] sm:$0xff] %v12775_v17 }
 0x957   :  { %15866 = vst [vmem:[#allocation104_spill] sm:$0xff] %v12757_v4  ;;  %v12759_v54 = vpop.f32.mrf.mxu3  ;;  %v12788_v0 = vsel %vm461_vm1, %v4361_v59, %v4362_v43  ;;  %v15878_v59 = vld [vmem:[#allocation116_spill] sm:$0xff] }
 0x958   :  { %15867 = vst [vmem:[#allocation102_spill] sm:$0xff] %v12759_v54  ;;  %5112 = vmatmul.f32.gmra.mxu2 %v4355_v5  ;;  %5739 = vmatmul.f32.gmra.mxu1 %v12762_v23  ;;  %v5051_v5 = vadd.f32 %v12649_v13, %v15872_v21  ;;  %v12791_v54 = vadd.f32 %v12592_v7, %v5466_v58  ;;  %v15877_v13 = vld [vmem:[#allocation118_spill] sm:$0xff] }
 0x959   :  { %6264 = vmatmul.f32.gmra.mxu0 %v11996_v9  ;;  %v5054_v7 = vadd.f32 %v12679_v52, %v15878_v59  ;;  %v15885_v59 = vld [vmem:[#allocation126_spill] sm:$0xff] }
 0x95a   :  { %15876 = vst [vmem:[#allocation215_spill] sm:$0xff] %v12791_v54  ;;  %v5260_v21 = vadd.f32 %v15877_v13, %v5051_v5  ;;  %v15879_v54 = vld [vmem:[#allocation122_spill] sm:$0xff] }
 0x95b   :  { %v12770_v57 = vpop.f32.mrf.mxu2 }
 0x95c   :  { %6061 = vmatmul.f32.gmra.mxu3 %v7378_v34  ;;  %v4111_v34 = vld [vmem:[#allocation4 + $0x2a8] sm:$0xff]  ;;  %v5469_v4 = vadd.f32 %v15879_v54, %v5260_v21  ;;  %v12820_v54 = vld [vmem:[#allocation3 + $0x210] sm:$0xff]  ;;  %v12823_v21 = vld [vmem:[#allocation3 + $0x218] sm:$0xff] }
 0x95d   :  { %v12780_v37 = vpop.f32.mrf.mxu1  ;;  %5837 = vmatpush.msra.mxu2 %v4111_v34  ;;  %v4366_v13 = vrot.slane %v12820_v54, 1 }
 0x95e   :  { %v12783_v9 = vpop.f32.mrf.mxu0  ;;  %v12812_v5 = vadd.f32 %v12624_v15, %v5469_v4  ;;  %v7383_v15 = vld [vmem:[#allocation3 + $0x68] sm:$0xff]  ;;  %v15884_v4 = vld [vmem:[#allocation121_spill] sm:$0xff] }
 0x95f   :  { %15874 = vst [vmem:[#allocation110_spill] sm:$0xff] %v12783_v9  ;;  %v12785_v38 = vpop.f32.mrf.mxu3  ;;  %v7380_v9 = vld [vmem:[#allocation3 + $0x60] sm:$0xff] }
 0x960   :  { %15875 = vst [vmem:[#allocation117_spill] sm:$0xff] %v12785_v38  ;;  %5115 = vmatmul.f32.gmra.mxu2 %v12745_v50  ;;  %5742 = vmatmul.f32.gmra.mxu1 %v12788_v0  ;;  %v4364_v38 = vrot.slane %v7379_v14, 1 }
 0x961   :  { %6267 = vmatmul.f32.gmra.mxu0 %v12016_v35  ;;  %15882 = vst [vmem:[#allocation122_spill] sm:$0xff] %v12812_v5 }
 0x962   :  { %v12809_v35 = vsel %vm461_vm1, %v4362_v43, %v4364_v38  ;;  %v4367_v43 = vrot.slane %v12823_v21, 1  ;;  %v5057_v38 = vadd.f32 %v12703_v53, %v15884_v4  ;;  %v4159_v4 = vld [vmem:[#allocation4 + $0x428] sm:$0xff] }
 0x963   :  { %v12797_v36 = vpop.f32.mrf.mxu2  ;;  %6464 = vmatpush.msra.mxu1 %v4159_v4  ;;  %7322 = vmatpush.msrb.mxu3 %v4159_v4  ;;  %v15894_v4 = vld [vmem:[#allocation130_spill] sm:$0xff] }
 0x964   :  { %6064 = vmatmul.f32.gmra.mxu3 %v7380_v9  ;;  %v15883_v9 = vld [vmem:[#allocation123_spill] sm:$0xff]  ;;  %v12836_v5 = vsel %vm461_vm1, %v4366_v13, %v4367_v43  ;;  %v7385_v13 = vld [vmem:[#allocation3 + $0x78] sm:$0xff] }
 0x965   :  { %v12801_v58 = vpop.f32.mrf.mxu1  ;;  %v5263_v52 = vadd.f32 %v15883_v9, %v5054_v7 }
 0x966   :  { %v12804_v17 = vpop.f32.mrf.mxu0 }
 0x967   :  { %15880 = vst [vmem:[#allocation118_spill] sm:$0xff] %v12804_v17  ;;  %v12806_v46 = vpop.f32.mrf.mxu3  ;;  %v5472_v7 = vadd.f32 %v15885_v59, %v5263_v52  ;;  %v7384_v59 = vld [vmem:[#allocation3 + $0x220] sm:$0x3] }
 0x968   :  { %15881 = vst [vmem:[#allocation116_spill] sm:$0xff] %v12806_v46  ;;  %5118 = vmatmul.f32.gmra.mxu2 %v12762_v23  ;;  %5745 = vmatmul.f32.gmra.mxu1 %v12809_v35 }
 0x969   :  { %6270 = vmatmul.f32.gmra.mxu0 %v12037_v24  ;;  %v12839_v46 = vadd.f32 %v12661_v10, %v5472_v7 }
 0x96b   :  { %v12818_v34 = vpop.f32.mrf.mxu2  ;;  %15888 = vst [vmem:[#allocation126_spill] sm:$0xff] %v12839_v46 }
 0x96c   :  { %6067 = vmatmul.f32.gmra.mxu3 %v7383_v15  ;;  %v15889_v15 = vld [vmem:[#allocation127_spill] sm:$0xff] }
 0x96d   :  { %v12828_v14 = vpop.f32.mrf.mxu1  ;;  %v5266_v53 = vadd.f32 %v15889_v15, %v5057_v38 }
 0x96e   :  { %v12831_v24 = vpop.f32.mrf.mxu0 }
 0x96f   :  { %15886 = vst [vmem:[#allocation123_spill] sm:$0xff] %v12831_v24  ;;  %v12833_v9 = vpop.f32.mrf.mxu3  ;;  %v15890_v24 = vld [vmem:[#allocation125_spill] sm:$0xff]  ;;  %v5475_v46 = vadd.f32 %v11967_v6, %v5266_v53  ;;  %v12868_v6 = vld [vmem:[#allocation3 + $0x228] sm:$0xff] }
 0x970   :  { %15887 = vst [vmem:[#allocation121_spill] sm:$0xff] %v12833_v9  ;;  %5121 = vmatmul.f32.gmra.mxu2 %v12788_v0  ;;  %5748 = vmatmul.f32.gmra.mxu1 %v12836_v5  ;;  %v4369_v9 = vrot.slane %v7384_v59, 1  ;;  %v5060_v10 = vadd.f32 %v12724_v18, %v15890_v24  ;;  %v4371_v53 = vrot.slane %v12868_v6, 1  ;;  %v12871_v59 = vld [vmem:[#allocation3 + $0x230] sm:$0xff] }
 0x971   :  { %6273 = vmatmul.f32.gmra.mxu0 %v12057_v8  ;;  %v12860_v15 = vadd.f32 %v12688_v47, %v5475_v46  ;;  %v7388_v47 = vld [vmem:[#allocation3 + $0x80] sm:$0xff]  ;;  %v15895_v46 = vld [vmem:[#allocation129_spill] sm:$0xff] }
 0x972   :  { %v12857_v8 = vsel %vm461_vm1, %v4367_v43, %v4369_v9  ;;  %v5269_v18 = vadd.f32 %v15894_v4, %v5060_v10  ;;  %v4372_v43 = vrot.slane %v12871_v59, 1  ;;  %v5063_v9 = vadd.f32 %v12750_v20, %v15895_v46 }
 0x973   :  { %v12845_v52 = vpop.f32.mrf.mxu2  ;;  %15893 = vst [vmem:[#allocation216_spill] sm:$0xff] %v12860_v15 }
 0x974   :  { %6070 = vmatmul.f32.gmra.mxu3 %v7385_v13  ;;  %v5478_v10 = vadd.f32 %v11991_v29, %v5269_v18  ;;  %v12884_v15 = vsel %vm461_vm1, %v4371_v53, %v4372_v43  ;;  %v5272_v20 = vadd.f32 %v11993_v61, %v5063_v9  ;;  %v7389_v18 = vld [vmem:[#allocation3 + $0x238] sm:$0x3] }
 0x975   :  { %v12849_v7 = vpop.f32.mrf.mxu1  ;;  %v4374_v46 = vrot.slane %v7389_v18, 1  ;;  %v15903_v9 = vld [vmem:[#allocation137_spill] sm:$0xff] }
 0x976   :  { %v12852_v17 = vpop.f32.mrf.mxu0 }
 0x977   :  { %15891 = vst [vmem:[#allocation127_spill] sm:$0xff] %v12852_v17  ;;  %v12854_v38 = vpop.f32.mrf.mxu3  ;;  %v12905_v61 = vsel %vm461_vm1, %v4372_v43, %v4374_v46 }
 0x978   :  { %15892 = vst [vmem:[#allocation125_spill] sm:$0xff] %v12854_v38  ;;  %5124 = vmatmul.f32.gmra.mxu2 %v12809_v35  ;;  %5751 = vmatmul.f32.gmra.mxu1 %v12857_v8  ;;  %v12887_v38 = vadd.f32 %v12708_v62, %v5478_v10  ;;  %v5066_v62 = vadd.f32 %v12770_v57, %v11989_v40  ;;  %v15899_v10 = vld [vmem:[#allocation136_spill] sm:$0xff] }
 0x979   :  { %6276 = vmatmul.f32.gmra.mxu0 %v12081_v56 }
 0x97a   :  { %15898 = vst [vmem:[#allocation217_spill] sm:$0xff] %v12887_v38  ;;  %v5481_v38 = vadd.f32 %v15899_v10, %v5272_v20  ;;  %v5275_v40 = vadd.f32 %v15903_v9, %v5066_v62  ;;  %v12919_v20 = vld [vmem:[#allocation3 + $0x248] sm:$0xff] }
 0x97b   :  { %v12866_v24 = vpop.f32.mrf.mxu2  ;;  %v4377_v43 = vrot.slane %v12919_v20, 1 }
 0x97c   :  { %6073 = vmatmul.f32.gmra.mxu3 %v7388_v47  ;;  %v4110_v47 = vld [vmem:[#allocation4 + $0x2a0] sm:$0xff]  ;;  %v5484_v62 = vadd.f32 %v12032_v63, %v5275_v40  ;;  %v7394_v40 = vld [vmem:[#allocation3 + $0x250] sm:$0x3] }
 0x97d   :  { %v12876_v13 = vpop.f32.mrf.mxu1  ;;  %5838 = vmatpush.msra.mxu2 %v4110_v47 }
 0x97e   :  { %v12879_v56 = vpop.f32.mrf.mxu0 }
 0x97f   :  { %15896 = vst [vmem:[#allocation130_spill] sm:$0xff] %v12879_v56  ;;  %v12881_v4 = vpop.f32.mrf.mxu3 }
 0x980   :  { %15897 = vst [vmem:[#allocation129_spill] sm:$0xff] %v12881_v4  ;;  %5127 = vmatmul.f32.gmra.mxu2 %v12836_v5  ;;  %5754 = vmatmul.f32.gmra.mxu1 %v12884_v15  ;;  %v7390_v4 = vld [vmem:[#allocation3 + $0x90] sm:$0xff] }
 0x981   :  { %6279 = vmatmul.f32.gmra.mxu0 %v12101_v3  ;;  %v12908_v3 = vadd.f32 %v12735_v33, %v5481_v38  ;;  %v7393_v33 = vld [vmem:[#allocation3 + $0x98] sm:$0xff]  ;;  %v15904_v38 = vld [vmem:[#allocation135_spill] sm:$0xff] }
 0x982   :  { %v5069_v18 = vadd.f32 %v12797_v36, %v15904_v38  ;;  %v4379_v38 = vrot.slane %v7394_v40, 1  ;;  %v12967_v40 = vld [vmem:[#allocation3 + $0x260] sm:$0xff] }
 0x983   :  { %v12893_v29 = vpop.f32.mrf.mxu2  ;;  %15902 = vst [vmem:[#allocation219_spill] sm:$0xff] %v12908_v3  ;;  %v12935_v3 = vadd.f32 %v12754_v30, %v5484_v62  ;;  %v5072_v30 = vadd.f32 %v12818_v34, %v12030_v26 }
 0x984   :  { %6076 = vmatmul.f32.gmra.mxu3 %v7390_v4  ;;  %v12916_v4 = vld [vmem:[#allocation3 + $0x240] sm:$0xff]  ;;  %v5278_v36 = vadd.f32 %v12034_v45, %v5069_v18 }
 0x985   :  { %v12897_v53 = vpop.f32.mrf.mxu1  ;;  %v4376_v47 = vrot.slane %v12916_v4, 1  ;;  %15907 = vst [vmem:[#allocation220_spill] sm:$0xff] %v12935_v3  ;;  %v15908_v3 = vld [vmem:[#allocation143_spill] sm:$0xff] }
 0x986   :  { %v12900_v56 = vpop.f32.mrf.mxu0 }
 0x987   :  { %15900 = vst [vmem:[#allocation136_spill] sm:$0xff] %v12900_v56  ;;  %v12902_v17 = vpop.f32.mrf.mxu3  ;;  %v12932_v9 = vsel %vm461_vm1, %v4376_v47, %v4377_v43  ;;  %v7395_v47 = vld [vmem:[#allocation3 + $0xa8] sm:$0xff] }
 0x988   :  { %15901 = vst [vmem:[#allocation218_spill] sm:$0xff] %v12902_v17  ;;  %5130 = vmatmul.f32.gmra.mxu2 %v12857_v8  ;;  %5757 = vmatmul.f32.gmra.mxu1 %v12905_v61 }
 0x989   :  { %6282 = vmatmul.f32.gmra.mxu0 %v12122_v11 }
 0x98b   :  { %v12914_v57 = vpop.f32.mrf.mxu2 }
 0x98c   :  { %6079 = vmatmul.f32.gmra.mxu3 %v7393_v33  ;;  %v4158_v33 = vld [vmem:[#allocation4 + $0x420] sm:$0xff] }
 0x98d   :  { %v12924_v46 = vpop.f32.mrf.mxu1  ;;  %6465 = vmatpush.msra.mxu1 %v4158_v33  ;;  %7323 = vmatpush.msrb.mxu3 %v4158_v33  ;;  %v15912_v33 = vld [vmem:[#allocation144_spill] sm:$0xff] }
 0x98e   :  { %v12927_v11 = vpop.f32.mrf.mxu0  ;;  %v5281_v26 = vadd.f32 %v15912_v33, %v5072_v30 }
 0x98f   :  { %15905 = vst [vmem:[#allocation137_spill] sm:$0xff] %v12927_v11  ;;  %v12929_v10 = vpop.f32.mrf.mxu3 }
 0x990   :  { %15906 = vst [vmem:[#allocation135_spill] sm:$0xff] %v12929_v10  ;;  %5133 = vmatmul.f32.gmra.mxu2 %v12884_v15  ;;  %5760 = vmatmul.f32.gmra.mxu1 %v12932_v9  ;;  %v5487_v10 = vadd.f32 %v15908_v3, %v5278_v36  ;;  %v12964_v3 = vld [vmem:[#allocation3 + $0x258] sm:$0xff]  ;;  %v5490_v30 = vadd.f32 %v12076_v12, %v5281_v26  ;;  %v7399_v26 = vld [vmem:[#allocation3 + $0x268] sm:$0x3] }
 0x991   :  { %6285 = vmatmul.f32.gmra.mxu0 %v12142_v60  ;;  %v12953_v60 = vsel %vm461_vm1, %v4377_v43, %v4379_v38  ;;  %v4381_v36 = vrot.slane %v12964_v3, 1  ;;  %v4382_v43 = vrot.slane %v12967_v40, 1 }
 0x992   :  { %v12956_v18 = vadd.f32 %v12780_v37, %v5487_v10  ;;  %v7398_v37 = vld [vmem:[#allocation3 + $0xb0] sm:$0xff]  ;;  %v15913_v10 = vld [vmem:[#allocation142_spill] sm:$0xff] }
 0x993   :  { %v12941_v63 = vpop.f32.mrf.mxu2  ;;  %v5075_v38 = vadd.f32 %v12845_v52, %v15913_v10  ;;  %v4384_v10 = vrot.slane %v7399_v26, 1 }
 0x994   :  { %6082 = vmatmul.f32.gmra.mxu3 %v7395_v47  ;;  %15911 = vst [vmem:[#allocation222_spill] sm:$0xff] %v12956_v18  ;;  %v12980_v18 = vsel %vm461_vm1, %v4381_v36, %v4382_v43  ;;  %v15917_v36 = vld [vmem:[#allocation147_spill] sm:$0xff] }
 0x995   :  { %v12945_v62 = vpop.f32.mrf.mxu1  ;;  %v5284_v52 = vadd.f32 %v12078_v32, %v5075_v38  ;;  %v13001_v32 = vsel %vm461_vm1, %v4382_v43, %v4384_v10  ;;  %v15923_v38 = vld [vmem:[#allocation152_spill] sm:$0xff] }
 0x996   :  { %v12948_v11 = vpop.f32.mrf.mxu0  ;;  %15921 = vst [vmem:[#allocation224_spill] sm:$0xff] %v13001_v32 }
 0x997   :  { %15909 = vst [vmem:[#allocation143_spill] sm:$0xff] %v12948_v11  ;;  %v12950_v45 = vpop.f32.mrf.mxu3 }
 0x998   :  { %15910 = vst [vmem:[#allocation221_spill] sm:$0xff] %v12950_v45  ;;  %5136 = vmatmul.f32.gmra.mxu2 %v12905_v61  ;;  %5763 = vmatmul.f32.gmra.mxu1 %v12953_v60  ;;  %v12983_v45 = vadd.f32 %v12801_v58, %v5490_v30  ;;  %v5078_v58 = vadd.f32 %v12866_v24, %v15917_v36  ;;  %v15927_v36 = vld [vmem:[#allocation156_spill] sm:$0xff] }
 0x999   :  { %6288 = vmatmul.f32.gmra.mxu0 %v12166_v28 }
 0x99a   :  { %15916 = vst [vmem:[#allocation223_spill] sm:$0xff] %v12983_v45  ;;  %v15918_v45 = vld [vmem:[#allocation151_spill] sm:$0xff]  ;;  %v5287_v24 = vadd.f32 %v15923_v38, %v5078_v58 }
 0x99b   :  { %v12962_v34 = vpop.f32.mrf.mxu2 }
 0x99c   :  { %6085 = vmatmul.f32.gmra.mxu3 %v7398_v37  ;;  %v4109_v37 = vld [vmem:[#allocation4 + $0x298] sm:$0xff]  ;;  %v5496_v58 = vadd.f32 %v15927_v36, %v5287_v24  ;;  %v7404_v36 = vld [vmem:[#allocation3 + $0x280] sm:$0x3] }
 0x99d   :  { %v12972_v47 = vpop.f32.mrf.mxu1  ;;  %5839 = vmatpush.msra.mxu2 %v4109_v37 }
 0x99e   :  { %v12975_v28 = vpop.f32.mrf.mxu0 }
 0x99f   :  { %15914 = vst [vmem:[#allocation144_spill] sm:$0xff] %v12975_v28  ;;  %v12977_v33 = vpop.f32.mrf.mxu3  ;;  %v5493_v28 = vadd.f32 %v15918_v45, %v5284_v52  ;;  %v13012_v45 = vld [vmem:[#allocation3 + $0x270] sm:$0xff]  ;;  %v13015_v52 = vld [vmem:[#allocation3 + $0x278] sm:$0xff] }
 0x9a0   :  { %15915 = vst [vmem:[#allocation142_spill] sm:$0xff] %v12977_v33  ;;  %5139 = vmatmul.f32.gmra.mxu2 %v12932_v9  ;;  %5766 = vmatmul.f32.gmra.mxu1 %v12980_v18  ;;  %v7400_v33 = vld [vmem:[#allocation3 + $0xc0] sm:$0xff]  ;;  %v4386_v37 = vrot.slane %v13012_v45, 1  ;;  %v4387_v43 = vrot.slane %v13015_v52, 1 }
 0x9a1   :  { %6291 = vmatmul.f32.gmra.mxu0 %v12186_v51  ;;  %v13004_v51 = vadd.f32 %v12828_v14, %v5493_v28  ;;  %15924 = vst [vmem:[#allocation152_spill] sm:$0xff] %v13012_v45  ;;  %v7403_v14 = vld [vmem:[#allocation3 + $0xc8] sm:$0xff]  ;;  %v15926_v28 = vld [vmem:[#allocation150_spill] sm:$0xff] }
 0x9a2   :  { %15925 = vst [vmem:[#allocation226_spill] sm:$0xff] %v13015_v52  ;;  %v5081_v26 = vadd.f32 %v12893_v29, %v15926_v28  ;;  %v15933_v28 = vld [vmem:[#allocation183_spill] sm:$0xff] }
 0x9a3   :  { %v12989_v12 = vpop.f32.mrf.mxu2  ;;  %15922 = vst [vmem:[#allocation225_spill] sm:$0xff] %v13004_v51  ;;  %v13028_v51 = vsel %vm461_vm1, %v4386_v37, %v4387_v43  ;;  %v7405_v37 = vld [vmem:[#allocation3 + $0xd8] sm:$0xff] }
 0x9a4   :  { %6088 = vmatmul.f32.gmra.mxu3 %v7400_v33  ;;  %15930 = vst [vmem:[#allocation227_spill] sm:$0xff] %v13028_v51 }
 0x9a5   :  { %v12993_v30 = vpop.f32.mrf.mxu1 }
 0x9a6   :  { %v12996_v11 = vpop.f32.mrf.mxu0 }
 0x9a7   :  { %15919 = vst [vmem:[#allocation147_spill] sm:$0xff] %v12996_v11  ;;  %v12998_v17 = vpop.f32.mrf.mxu3  ;;  %v4157_v11 = vld [vmem:[#allocation4 + $0x418] sm:$0xff] }
 0x9a8   :  { %15920 = vst [vmem:[#allocation151_spill] sm:$0xff] %v12998_v17  ;;  %5142 = vmatmul.f32.gmra.mxu2 %v12953_v60  ;;  %5769 = vmatmul.f32.gmra.mxu1 %v13001_v32  ;;  %v13031_v17 = vadd.f32 %v12849_v7, %v5496_v58 }
 0x9a9   :  { %6294 = vmatmul.f32.gmra.mxu0 %v12207_v16  ;;  %6466 = vmatpush.msra.mxu1 %v4157_v11 }
 0x9aa   :  { %15931 = vst [vmem:[#allocation228_spill] sm:$0xff] %v13031_v17  ;;  %7324 = vmatpush.msrb.mxu3 %v4157_v11  ;;  %v15935_v17 = vld [vmem:[#allocation161_spill] sm:$0xff] }
 0x9ab   :  { %v13010_v33 = vpop.f32.mrf.mxu2 }
 0x9ac   :  { %6091 = vmatmul.f32.gmra.mxu3 %v7403_v14  ;;  %v15932_v14 = vld [vmem:[#allocation157_spill] sm:$0xff] }
 0x9ad   :  { %v13020_v10 = vpop.f32.mrf.mxu1  ;;  %v5290_v29 = vadd.f32 %v15932_v14, %v5081_v26 }
 0x9ae   :  { %v13023_v16 = vpop.f32.mrf.mxu0 }
 0x9af   :  { %15928 = vst [vmem:[#allocation150_spill] sm:$0xff] %v13023_v16  ;;  %v13025_v38 = vpop.f32.mrf.mxu3  ;;  %v15934_v16 = vld [vmem:[#allocation155_spill] sm:$0xff]  ;;  %v5499_v56 = vadd.f32 %v15935_v17, %v5290_v29 }
 0x9b0   :  { %15929 = vst [vmem:[#allocation156_spill] sm:$0xff] %v13025_v38  ;;  %5145 = vmatmul.f32.gmra.mxu2 %v12980_v18  ;;  %5772 = vmatmul.f32.gmra.mxu1 %v13028_v51  ;;  %v4389_v38 = vrot.slane %v7404_v36, 1  ;;  %v5084_v7 = vadd.f32 %v12914_v57, %v15934_v16  ;;  %v15941_v16 = vld [vmem:[#allocation189_spill] sm:$0xff]  ;;  %v13060_v17 = vld [vmem:[#allocation3 + $0x288] sm:$0xff] }
 0x9b1   :  { %6297 = vmatmul.f32.gmra.mxu0 %v15933_v28  ;;  %v13052_v11 = vadd.f32 %v12876_v13, %v5499_v56  ;;  %v15940_v28 = vld [vmem:[#allocation162_spill] sm:$0xff]  ;;  %v4391_v29 = vrot.slane %v13060_v17, 1  ;;  %v15944_v56 = vld [vmem:[#allocation160_spill] sm:$0xff] }
 0x9b2   :  { %v13049_v14 = vsel %vm461_vm1, %v4387_v43, %v4389_v38  ;;  %v5293_v57 = vadd.f32 %v15940_v28, %v5084_v7  ;;  %15942 = vst [vmem:[#allocation162_spill] sm:$0xff] %v13060_v17  ;;  %v7408_v13 = vld [vmem:[#allocation3 + $0xe0] sm:$0xff]  ;;  %v5087_v38 = vadd.f32 %v12941_v63, %v15944_v56  ;;  %v15950_v63 = vld [vmem:[#allocation167_spill] sm:$0xff] }
 0x9b3   :  { %v13037_v24 = vpop.f32.mrf.mxu2  ;;  %15938 = vst [vmem:[#allocation155_spill] sm:$0xff] %v13049_v14  ;;  %v15945_v7 = vld [vmem:[#allocation166_spill] sm:$0xff] }
 0x9b4   :  { %6094 = vmatmul.f32.gmra.mxu3 %v7405_v37  ;;  %15939 = vst [vmem:[#allocation161_spill] sm:$0xff] %v13052_v11  ;;  %v13063_v37 = vld [vmem:[#allocation3 + $0x290] sm:$0xff]  ;;  %v5502_v28 = vadd.f32 %v15945_v7, %v5293_v57  ;;  %v5296_v56 = vadd.f32 %v15950_v63, %v5087_v38  ;;  %v7409_v7 = vld [vmem:[#allocation3 + $0x298] sm:$0x3] }
 0x9b5   :  { %v13041_v58 = vpop.f32.mrf.mxu1  ;;  %15943 = vst [vmem:[#allocation189_spill] sm:$0xff] %v13063_v37  ;;  %v4392_v43 = vrot.slane %v13063_v37, 1  ;;  %v15951_v37 = vld [vmem:[#allocation194_spill] sm:$0xff] }
 0x9b6   :  { %v13044_v52 = vpop.f32.mrf.mxu0  ;;  %v13079_v17 = vadd.f32 %v12897_v53, %v5502_v28 }
 0x9b7   :  { %15936 = vst [vmem:[#allocation157_spill] sm:$0xff] %v13044_v52  ;;  %v13046_v26 = vpop.f32.mrf.mxu3  ;;  %v13076_v52 = vsel %vm461_vm1, %v4391_v29, %v4392_v43  ;;  %v15952_v29 = vld [vmem:[#allocation165_spill] sm:$0xff] }
 0x9b8   :  { %15937 = vst [vmem:[#allocation183_spill] sm:$0xff] %v13046_v26  ;;  %5148 = vmatmul.f32.gmra.mxu2 %v13001_v32  ;;  %5775 = vmatmul.f32.gmra.mxu1 %v13049_v14  ;;  %v5090_v53 = vadd.f32 %v12962_v34, %v15952_v29 }
 0x9b9   :  { %6300 = vmatmul.f32.gmra.mxu0 %v15941_v16  ;;  %15948 = vst [vmem:[#allocation229_spill] sm:$0xff] %v13076_v52 }
 0x9ba   :  { %15949 = vst [vmem:[#allocation230_spill] sm:$0xff] %v13079_v17  ;;  %v15953_v17 = vld [vmem:[#allocation171_spill] sm:$0xff] }
 0x9bb   :  { %v13058_v36 = vpop.f32.mrf.mxu2 }
 0x9bc   :  { %6097 = vmatmul.f32.gmra.mxu3 %v7408_v13  ;;  %v4108_v13 = vld [vmem:[#allocation4 + $0x290] sm:$0xff] }
 0x9bd   :  { %v13068_v11 = vpop.f32.mrf.mxu1  ;;  %5840 = vmatpush.msra.mxu2 %v4108_v13  ;;  %v15959_v13 = vld [vmem:[#allocation198_spill] sm:$0xff] }
 0x9be   :  { %v13071_v16 = vpop.f32.mrf.mxu0 }
 0x9bf   :  { %15946 = vst [vmem:[#allocation160_spill] sm:$0xff] %v13071_v16  ;;  %v13073_v26 = vpop.f32.mrf.mxu3  ;;  %v7410_v16 = vld [vmem:[#allocation3 + $0xf0] sm:$0xff] }
 0x9c0   :  { %15947 = vst [vmem:[#allocation166_spill] sm:$0xff] %v13073_v26  ;;  %5151 = vmatmul.f32.gmra.mxu2 %v13028_v51  ;;  %5778 = vmatmul.f32.gmra.mxu1 %v13076_v52  ;;  %v4394_v26 = vrot.slane %v7409_v7, 1  ;;  %v5505_v51 = vadd.f32 %v15953_v17, %v5296_v56  ;;  %v13108_v17 = vld [vmem:[#allocation3 + $0x2a0] sm:$0xff]  ;;  %v13111_v7 = vld [vmem:[#allocation3 + $0x2a8] sm:$0xff] }
 0x9c1   :  { %6303 = vmatmul.f32.gmra.mxu0 %v15951_v37  ;;  %v4396_v56 = vrot.slane %v13108_v17, 1  ;;  %15961 = vst [vmem:[#allocation198_spill] sm:$0xff] %v13111_v7 }
 0x9c2   :  { %v13097_v37 = vsel %vm461_vm1, %v4392_v43, %v4394_v26  ;;  %v13100_v38 = vadd.f32 %v12924_v46, %v5505_v51  ;;  %v4397_v26 = vrot.slane %v13111_v7, 1  ;;  %v7413_v46 = vld [vmem:[#allocation3 + $0xf8] sm:$0xff]  ;;  %v15962_v51 = vld [vmem:[#allocation170_spill] sm:$0xff]  ;;  %v4156_v7 = vld [vmem:[#allocation4 + $0x410] sm:$0xff] }
 0x9c3   :  { %v13085_v57 = vpop.f32.mrf.mxu2  ;;  %15956 = vst [vmem:[#allocation165_spill] sm:$0xff] %v13097_v37  ;;  %v5093_v43 = vadd.f32 %v12989_v12, %v15962_v51  ;;  %v15969_v51 = vld [vmem:[#allocation202_spill] sm:$0xff]  ;;  %6467 = vmatpush.msra.mxu1 %v4156_v7  ;;  %7325 = vmatpush.msrb.mxu3 %v4156_v7 }
 0x9c4   :  { %6100 = vmatmul.f32.gmra.mxu3 %v7410_v16  ;;  %15957 = vst [vmem:[#allocation171_spill] sm:$0xff] %v13100_v38  ;;  %v15958_v16 = vld [vmem:[#allocation172_spill] sm:$0xff] }
 0x9c5   :  { %v13089_v28 = vpop.f32.mrf.mxu1  ;;  %v5299_v34 = vadd.f32 %v15958_v16, %v5090_v53  ;;  %15960 = vst [vmem:[#allocation172_spill] sm:$0xff] %v13108_v17  ;;  %v15963_v53 = vld [vmem:[#allocation176_spill] sm:$0xff] }
 0x9c6   :  { %v13092_v32 = vpop.f32.mrf.mxu0 }
 0x9c7   :  { %15954 = vst [vmem:[#allocation167_spill] sm:$0xff] %v13092_v32  ;;  %v13094_v45 = vpop.f32.mrf.mxu3  ;;  %v5508_v16 = vadd.f32 %v15963_v53, %v5299_v34  ;;  %v13124_v32 = vsel %vm461_vm1, %v4396_v56, %v4397_v26  ;;  %v7414_v53 = vld [vmem:[#allocation3 + $0x2b0] sm:$0x3]  ;;  %v7415_v56 = vld [vmem:[#allocation3 + $0x108] sm:$0xff] }
 0x9c8   :  { %15955 = vst [vmem:[#allocation194_spill] sm:$0xff] %v13094_v45  ;;  %5154 = vmatmul.f32.gmra.mxu2 %v13049_v14  ;;  %5781 = vmatmul.f32.gmra.mxu1 %v13097_v37 }
 0x9c9   :  { %6306 = vmatmul.f32.gmra.mxu0 %v15959_v13  ;;  %15966 = vst [vmem:[#allocation231_spill] sm:$0xff] %v13124_v32  ;;  %v13127_v45 = vadd.f32 %v12945_v62, %v5508_v16 }
 0x9cb   :  { %v13106_v63 = vpop.f32.mrf.mxu2  ;;  %15967 = vst [vmem:[#allocation232_spill] sm:$0xff] %v13127_v45  ;;  %v15971_v45 = vld [vmem:[#allocation181_spill] sm:$0xff] }
 0x9cc   :  { %6103 = vmatmul.f32.gmra.mxu3 %v7413_v46  ;;  %v15968_v46 = vld [vmem:[#allocation177_spill] sm:$0xff] }
 0x9cd   :  { %v13116_v29 = vpop.f32.mrf.mxu1  ;;  %v5302_v12 = vadd.f32 %v15968_v46, %v5093_v43 }
 0x9ce   :  { %v13119_v13 = vpop.f32.mrf.mxu0 }
 0x9cf   :  { %15964 = vst [vmem:[#allocation170_spill] sm:$0xff] %v13119_v13  ;;  %v13121_v38 = vpop.f32.mrf.mxu3  ;;  %v15970_v13 = vld [vmem:[#allocation175_spill] sm:$0xff]  ;;  %v5511_v17 = vadd.f32 %v15971_v45, %v5302_v12  ;;  %v13156_v45 = vld [vmem:[#allocation3 + $0x2b8] sm:$0xff] }
 0x9d0   :  { %15965 = vst [vmem:[#allocation176_spill] sm:$0xff] %v13121_v38  ;;  %5157 = vmatmul.f32.gmra.mxu2 %v13076_v52  ;;  %5784 = vmatmul.f32.gmra.mxu1 %v13124_v32  ;;  %v4399_v38 = vrot.slane %v7414_v53, 1  ;;  %v5096_v62 = vadd.f32 %v13010_v33, %v15970_v13  ;;  %v15976_v13 = vld [vmem:[#allocation206_spill] sm:$0xff]  ;;  %v4401_v12 = vrot.slane %v13156_v45, 1 }
 0x9d1   :  { %6309 = vmatmul.f32.gmra.mxu0 %v15969_v51  ;;  %v13148_v7 = vadd.f32 %v12972_v47, %v5511_v17  ;;  %v15975_v51 = vld [vmem:[#allocation182_spill] sm:$0xff]  ;;  %15977 = vst [vmem:[#allocation181_spill] sm:$0xff] %v13156_v45  ;;  %v7418_v47 = vld [vmem:[#allocation3 + $0x110] sm:$0xff] }
 0x9d2   :  { %v13145_v46 = vsel %vm461_vm1, %v4397_v26, %v4399_v38  ;;  %v5305_v33 = vadd.f32 %v15975_v51, %v5096_v62  ;;  %v15979_v17 = vld [vmem:[#allocation180_spill] sm:$0xff]  ;;  %v15980_v62 = vld [vmem:[#allocation187_spill] sm:$0xff] }
 0x9d3   :  { %v13133_v34 = vpop.f32.mrf.mxu2  ;;  %15974 = vst [vmem:[#allocation175_spill] sm:$0xff] %v13148_v7  ;;  %v5099_v26 = vadd.f32 %v13037_v24, %v15979_v17  ;;  %v15985_v24 = vld [vmem:[#allocation188_spill] sm:$0xff] }
 0x9d4   :  { %6106 = vmatmul.f32.gmra.mxu3 %v7415_v56  ;;  %v13159_v56 = vld [vmem:[#allocation3 + $0x2c0] sm:$0xff]  ;;  %v5514_v51 = vadd.f32 %v15980_v62, %v5305_v33  ;;  %v7419_v62 = vld [vmem:[#allocation3 + $0x2c8] sm:$0x3] }
 0x9d5   :  { %v13137_v16 = vpop.f32.mrf.mxu1  ;;  %15978 = vst [vmem:[#allocation182_spill] sm:$0xff] %v13159_v56  ;;  %v4402_v38 = vrot.slane %v13159_v56, 1  ;;  %v5308_v17 = vadd.f32 %v15985_v24, %v5099_v26  ;;  %v15986_v56 = vld [vmem:[#allocation210_spill] sm:$0xff] }
 0x9d6   :  { %v13140_v52 = vpop.f32.mrf.mxu0  ;;  %v13175_v45 = vadd.f32 %v12993_v30, %v5514_v51 }
 0x9d7   :  { %15972 = vst [vmem:[#allocation177_spill] sm:$0xff] %v13140_v52  ;;  %v13142_v43 = vpop.f32.mrf.mxu3  ;;  %v13172_v52 = vsel %vm461_vm1, %v4401_v12, %v4402_v38  ;;  %v15987_v12 = vld [vmem:[#allocation186_spill] sm:$0xff] }
 0x9d8   :  { %15973 = vst [vmem:[#allocation202_spill] sm:$0xff] %v13142_v43  ;;  %5160 = vmatmul.f32.gmra.mxu2 %v13097_v37  ;;  %5787 = vmatmul.f32.gmra.mxu1 %v13145_v46  ;;  %v5102_v30 = vadd.f32 %v13058_v36, %v15987_v12 }
 0x9d9   :  { %6312 = vmatmul.f32.gmra.mxu0 %v15976_v13  ;;  %15983 = vst [vmem:[#allocation187_spill] sm:$0xff] %v13172_v52 }
 0x9da   :  { %15984 = vst [vmem:[#allocation233_spill] sm:$0xff] %v13175_v45  ;;  %v15988_v45 = vld [vmem:[#allocation192_spill] sm:$0xff] }
 0x9db   :  { %v13154_v53 = vpop.f32.mrf.mxu2 }
 0x9dc   :  { %6109 = vmatmul.f32.gmra.mxu3 %v7418_v47  ;;  %v4107_v47 = vld [vmem:[#allocation4 + $0x288] sm:$0xff] }
 0x9dd   :  { %v13164_v7 = vpop.f32.mrf.mxu1  ;;  %5841 = vmatpush.msra.mxu2 %v4107_v47  ;;  %v15994_v47 = vld [vmem:[#allocation211_spill] sm:$0xff] }
 0x9de   :  { %v13167_v13 = vpop.f32.mrf.mxu0 }
 0x9df   :  { %15981 = vst [vmem:[#allocation206_spill] sm:$0xff] %v13167_v13  ;;  %v13169_v43 = vpop.f32.mrf.mxu3  ;;  %v7420_v13 = vld [vmem:[#allocation3 + $0x120] sm:$0xff] }
 0x9e0   :  { %15982 = vst [vmem:[#allocation180_spill] sm:$0xff] %v13169_v43  ;;  %5163 = vmatmul.f32.gmra.mxu2 %v13124_v32  ;;  %5790 = vmatmul.f32.gmra.mxu1 %v13172_v52  ;;  %v4404_v43 = vrot.slane %v7419_v62, 1  ;;  %v5517_v32 = vadd.f32 %v15988_v45, %v5308_v17  ;;  %v13204_v45 = vld [vmem:[#allocation3 + $0x2d0] sm:$0xff]  ;;  %v13207_v62 = vld [vmem:[#allocation3 + $0x2d8] sm:$0xff] }
 0x9e1   :  { %6315 = vmatmul.f32.gmra.mxu0 %v15986_v56  ;;  %v4406_v17 = vrot.slane %v13204_v45, 1  ;;  %15996 = vst [vmem:[#allocation211_spill] sm:$0xff] %v13207_v62 }
 0x9e2   :  { %v13193_v56 = vsel %vm461_vm1, %v4402_v38, %v4404_v43  ;;  %v13196_v26 = vadd.f32 %v13020_v10, %v5517_v32  ;;  %v4407_v43 = vrot.slane %v13207_v62, 1  ;;  %v7423_v32 = vld [vmem:[#allocation3 + $0x128] sm:$0xff] }
 0x9e3   :  { %v13181_v33 = vpop.f32.mrf.mxu2  ;;  %15991 = vst [vmem:[#allocation186_spill] sm:$0xff] %v13193_v56  ;;  %v15997_v10 = vld [vmem:[#allocation31_spill] sm:$0xff] }
 0x9e4   :  { %6112 = vmatmul.f32.gmra.mxu3 %v7420_v13  ;;  %15992 = vst [vmem:[#allocation192_spill] sm:$0xff] %v13196_v26  ;;  %v15993_v13 = vld [vmem:[#allocation193_spill] sm:$0xff]  ;;  %v5105_v38 = vadd.f32 %v13085_v57, %v15997_v10  ;;  %v4155_v62 = vld [vmem:[#allocation4 + $0x408] sm:$0xff] }
 0x9e5   :  { %v13185_v51 = vpop.f32.mrf.mxu1  ;;  %v5311_v36 = vadd.f32 %v15993_v13, %v5102_v30  ;;  %15995 = vst [vmem:[#allocation193_spill] sm:$0xff] %v13204_v45  ;;  %v15998_v30 = vld [vmem:[#allocation196_spill] sm:$0xff]  ;;  %v16004_v10 = vld [vmem:[#allocation21_spill] sm:$0xff]  ;;  %6468 = vmatpush.msra.mxu1 %v4155_v62  ;;  %7326 = vmatpush.msrb.mxu3 %v4155_v62 }
 0x9e6   :  { %v13188_v37 = vpop.f32.mrf.mxu0 }
 0x9e7   :  { %15989 = vst [vmem:[#allocation188_spill] sm:$0xff] %v13188_v37  ;;  %v13190_v14 = vpop.f32.mrf.mxu3  ;;  %v5520_v13 = vadd.f32 %v15998_v30, %v5311_v36  ;;  %v7424_v30 = vld [vmem:[#allocation3 + $0x2e0] sm:$0x3] }
 0x9e8   :  { %15990 = vst [vmem:[#allocation210_spill] sm:$0xff] %v13190_v14  ;;  %5166 = vmatmul.f32.gmra.mxu2 %v13145_v46  ;;  %5793 = vmatmul.f32.gmra.mxu1 %v13193_v56  ;;  %v13220_v14 = vsel %vm461_vm1, %v4406_v17, %v4407_v43  ;;  %v7425_v17 = vld [vmem:[#allocation3 + $0x138] sm:$0xff] }
 0x9e9   :  { %6318 = vmatmul.f32.gmra.mxu0 %v15994_v47  ;;  %16001 = vst [vmem:[#allocation234_spill] sm:$0xff] %v13220_v14  ;;  %v13223_v45 = vadd.f32 %v13041_v58, %v5520_v13 }
 0x9eb   :  { %v13202_v24 = vpop.f32.mrf.mxu2  ;;  %16002 = vst [vmem:[#allocation235_spill] sm:$0xff] %v13223_v45  ;;  %v16006_v45 = vld [vmem:[#allocation200_spill] sm:$0xff] }
 0x9ec   :  { %6115 = vmatmul.f32.gmra.mxu3 %v7423_v32  ;;  %v16003_v32 = vld [vmem:[#allocation197_spill] sm:$0xff] }
 0x9ed   :  { %v13212_v12 = vpop.f32.mrf.mxu1  ;;  %v5314_v57 = vadd.f32 %v16003_v32, %v5105_v38  ;;  %v16009_v32 = vld [vmem:[#allocation201_spill] sm:$0xff] }
 0x9ee   :  { %v13215_v47 = vpop.f32.mrf.mxu0 }
 0x9ef   :  { %15999 = vst [vmem:[#allocation31_spill] sm:$0xff] %v13215_v47  ;;  %v13217_v26 = vpop.f32.mrf.mxu3  ;;  %v16005_v47 = vld [vmem:[#allocation12_spill] sm:$0xff] }
 0x9f0   :  { %16000 = vst [vmem:[#allocation196_spill] sm:$0xff] %v13217_v26  ;;  %5169 = vmatmul.f32.gmra.mxu2 %v13172_v52  ;;  %5796 = vmatmul.f32.gmra.mxu1 %v13220_v14  ;;  %v4409_v26 = vrot.slane %v7424_v30, 1  ;;  %v5108_v58 = vadd.f32 %v13106_v63, %v16005_v47  ;;  %v5523_v52 = vadd.f32 %v16006_v45, %v5314_v57  ;;  %v13252_v45 = vld [vmem:[#allocation3 + $0x2e8] sm:$0xff] }
 0x9f1   :  { %6321 = vmatmul.f32.gmra.mxu0 %v16004_v10  ;;  %16011 = vst [vmem:[#allocation200_spill] sm:$0xff] %v13252_v45 }
 0x9f2   :  { %v13239_v38 = vsel %vm461_vm1, %v4407_v43, %v4409_v26  ;;  %v13242_v62 = vadd.f32 %v13068_v11, %v5523_v52  ;;  %v5317_v10 = vadd.f32 %v16009_v32, %v5108_v58  ;;  %v4411_v26 = vrot.slane %v13252_v45, 1  ;;  %v16012_v43 = vld [vmem:[#allocation101_spill] sm:$0xff]  ;;  %v7427_v52 = vld [vmem:[#allocation3 + $0x140] sm:$0xff]  ;;  %v16014_v58 = vld [vmem:[#allocation204_spill] sm:$0xff] }
 0x9f3   :  { %v13229_v36 = vpop.f32.mrf.mxu2  ;;  %v4412_v47 = vrot.slane %v16012_v43, 1  ;;  %v16013_v11 = vld [vmem:[#allocation34_spill] sm:$0xff] }
 0x9f4   :  { %6118 = vmatmul.f32.gmra.mxu3 %v7425_v17  ;;  %16008 = vst [vmem:[#allocation21_spill] sm:$0xff] %v13242_v62  ;;  %v5111_v57 = vadd.f32 %v13133_v34, %v16013_v11  ;;  %v5526_v32 = vadd.f32 %v16014_v58, %v5317_v10  ;;  %v4106_v43 = vld [vmem:[#allocation4 + $0x280] sm:$0xff]  ;;  %v7428_v58 = vld [vmem:[#allocation3 + $0x2f8] sm:$0x3] }
 0x9f5   :  { %v13233_v13 = vpop.f32.mrf.mxu1  ;;  %v16019_v34 = vld [vmem:[#allocation82_spill] sm:$0xff]  ;;  %5842 = vmatpush.msra.mxu2 %v4106_v43 }
 0x9f6   :  { %v13247_v30 = vpop.f32.mrf.mxu0 }
 0x9f7   :  { %v13236_v37 = vpop.f32.mrf.mxu3  ;;  %16010 = vst [vmem:[#allocation12_spill] sm:$0xff] %v13247_v30 }
 0x9f8   :  { %16007 = vst [vmem:[#allocation197_spill] sm:$0xff] %v13236_v37  ;;  %5172 = vmatmul.f32.gmra.mxu2 %v13193_v56  ;;  %5799 = vmatmul.f32.gmra.mxu1 %v13239_v38  ;;  %v13267_v37 = vadd.f32 %v13089_v28, %v5526_v32  ;;  %v16020_v28 = vld [vmem:[#allocation39_spill] sm:$0xff] }
 0x9f9   :  { %6324 = vmatmul.f32.gmra.mxu0 %v12430_v42  ;;  %v13264_v42 = vsel %vm461_vm1, %v4411_v26, %v4412_v47  ;;  %v4414_v26 = vrot.slane %v7428_v58, 1  ;;  %v5114_v32 = vadd.f32 %v13154_v53, %v16020_v28  ;;  %v16026_v58 = vld [vmem:[#allocation109_spill] sm:$0xff] }
 0x9fa   :  { %16016 = vst [vmem:[#allocation101_spill] sm:$0xff] %v13264_v42  ;;  %v7430_v28 = vld [vmem:[#allocation3 + $0x158] sm:$0xff] }
 0x9fb   :  { %v13250_v63 = vpop.f32.mrf.mxu2  ;;  %16017 = vst [vmem:[#allocation34_spill] sm:$0xff] %v13267_v37 }
 0x9fc   :  { %6121 = vmatmul.f32.gmra.mxu3 %v7427_v52  ;;  %v16018_v52 = vld [vmem:[#allocation205_spill] sm:$0xff] }
 0x9fd   :  { %v13258_v17 = vpop.f32.mrf.mxu1  ;;  %v5320_v45 = vadd.f32 %v16018_v52, %v5111_v57  ;;  %v13285_v57 = vsel %vm461_vm1, %v4412_v47, %v4414_v26  ;;  %v16027_v47 = vld [vmem:[#allocation45_spill] sm:$0xff] }
 0x9fe   :  { %v13273_v11 = vpop.f32.mrf.mxu0 }
 0x9ff   :  { %v13261_v62 = vpop.f32.mrf.mxu3 }
 0xa00   :  { %16015 = vst [vmem:[#allocation201_spill] sm:$0xff] %v13261_v62  ;;  %5175 = vmatmul.f32.gmra.mxu2 %v13220_v14  ;;  %5802 = vmatmul.f32.gmra.mxu1 %v13264_v42  ;;  %v7429_v62 = vld [vmem:[#allocation3 + $0x150] sm:$0xff] }
 0xa01   :  { %6327 = vmatmul.f32.gmra.mxu0 %v16019_v34  ;;  %v16021_v14 = vld [vmem:[#allocation208_spill] sm:$0xff]  ;;  %v16025_v34 = vld [vmem:[#allocation38_spill] sm:$0xff] }
 0xa02   :  { %v5529_v30 = vadd.f32 %v16021_v14, %v5320_v45  ;;  %v4416_v14 = vrot.slane %v16026_v58, 1  ;;  %v4417_v45 = vrot.slane %v12608_v2, 1  ;;  %v16031_v2 = vld [vmem:[#allocation59_spill] sm:$0xff] }
 0xa03   :  { %v13275_v10 = vpop.f32.mrf.mxu2  ;;  %v16032_v58 = vld [vmem:[#allocation95_spill] sm:$0xff] }
 0xa04   :  { %6124 = vmatmul.f32.gmra.mxu3 %v7429_v62  ;;  %v13288_v43 = vadd.f32 %v13116_v29, %v5529_v30  ;;  %v16024_v62 = vld [vmem:[#allocation209_spill] sm:$0xff]  ;;  %v5117_v29 = vadd.f32 %v13181_v33, %v16027_v47 }
 0xa05   :  { %v13279_v37 = vpop.f32.mrf.mxu1  ;;  %v5323_v52 = vadd.f32 %v16024_v62, %v5114_v32  ;;  %v13306_v32 = vsel %vm461_vm1, %v4416_v14, %v4417_v45  ;;  %v7431_v14 = vld [vmem:[#allocation3 + $0x168] sm:$0xff] }
 0xa06   :  { %16023 = vst [vmem:[#allocation205_spill] sm:$0xff] %v13288_v43  ;;  %v13300_v30 = vpop.f32.mrf.mxu0  ;;  %v16028_v43 = vld [vmem:[#allocation50_spill] sm:$0xff]  ;;  %v5326_v33 = vadd.f32 %v16031_v2, %v5117_v29 }
 0xa07   :  { %v13282_v56 = vpop.f32.mrf.mxu3 }
 0xa08   :  { %16022 = vst [vmem:[#allocation204_spill] sm:$0xff] %v13282_v56  ;;  %5178 = vmatmul.f32.gmra.mxu2 %v13239_v38  ;;  %5805 = vmatmul.f32.gmra.mxu1 %v13285_v57  ;;  %v5532_v56 = vadd.f32 %v16028_v43, %v5323_v52  ;;  %v4419_v52 = vrot.slane %v12589_v1, 1  ;;  %v16036_v1 = vld [vmem:[#allocation67_spill] sm:$0xff] }
 0xa09   :  { %6330 = vmatmul.f32.gmra.mxu0 %v16025_v34 }
 0xa0a   :  { %v13309_v62 = vadd.f32 %v13137_v16, %v5532_v56  ;;  %v16033_v16 = vld [vmem:[#allocation51_spill] sm:$0xff]  ;;  %v13328_v29 = vsel %vm461_vm1, %v4417_v45, %v4419_v52  ;;  %v4422_v45 = vrot.slane %v12640_v49, 1 }
 0xa0b   :  { %v13294_v53 = vpop.f32.mrf.mxu2  ;;  %v5120_v56 = vadd.f32 %v13202_v24, %v16033_v16 }
 0xa0c   :  { %6127 = vmatmul.f32.gmra.mxu3 %v7430_v28  ;;  %16029 = vst [vmem:[#allocation82_spill] sm:$0xff] %v13309_v62  ;;  %v4154_v28 = vld [vmem:[#allocation4 + $0x400] sm:$0xff] }
 0xa0d   :  { %v13302_v26 = vpop.f32.mrf.mxu1  ;;  %6469 = vmatpush.msra.mxu1 %v4154_v28  ;;  %7327 = vmatpush.msrb.mxu3 %v4154_v28  ;;  %v16034_v62 = vld [vmem:[#allocation66_spill] sm:$0xff] }
 0xa0f   :  { %v13311_v34 = vpop.f32.mrf.mxu3 }
 0xa10   :  { %16030 = vst [vmem:[#allocation39_spill] sm:$0xff] %v13311_v34  ;;  %5181 = vmatmul.f32.gmra.mxu2 %v13264_v42  ;;  %5808 = vmatmul.f32.gmra.mxu1 %v13306_v32  ;;  %v5535_v34 = vadd.f32 %v16034_v62, %v5326_v33  ;;  %v13325_v42 = vpop.f32.mrf.mxu0  ;;  %v4421_v62 = vrot.slane %v12637_v41, 1  ;;  %v7432_v33 = vld [vmem:[#allocation3 + $0x170] sm:$0xff]  ;;  %v16040_v41 = vld [vmem:[#allocation74_spill] sm:$0xff] }
 0xa11   :  { %6333 = vmatmul.f32.gmra.mxu0 %v16032_v58  ;;  %v5329_v58 = vadd.f32 %v16036_v1, %v5120_v56 }
 0xa12   :  { %v13331_v2 = vadd.f32 %v13164_v7, %v5535_v34  ;;  %v16037_v7 = vld [vmem:[#allocation57_spill] sm:$0xff]  ;;  %v13349_v56 = vsel %vm461_vm1, %v4421_v62, %v4422_v45  ;;  %v13365_v62 = vld [vmem:[#allocation3 + $0x180] sm:$0xff] }
 0xa13   :  { %v13317_v43 = vpop.f32.mrf.mxu2  ;;  %v5123_v34 = vadd.f32 %v13229_v36, %v16037_v7 }
 0xa14   :  { %6130 = vmatmul.f32.gmra.mxu3 %v7431_v14  ;;  %16035 = vst [vmem:[#allocation208_spill] sm:$0xff] %v13331_v2  ;;  %v16038_v14 = vld [vmem:[#allocation63_spill] sm:$0xff] }
 0xa15   :  { %v13322_v47 = vpop.f32.mrf.mxu1  ;;  %v5538_v16 = vadd.f32 %v16038_v14, %v5329_v58  ;;  %v5332_v49 = vadd.f32 %v16040_v41, %v5123_v34  ;;  %v4424_v58 = vrot.slane %v12658_v39, 1  ;;  %v16043_v34 = vld [vmem:[#allocation32_spill] sm:$0xff]  ;;  %v16046_v39 = vld [vmem:[#allocation81_spill] sm:$0xff] }
 0xa17   :  { %v13337_v24 = vpop.f32.mrf.mxu3  ;;  %v13374_v41 = vsel %vm461_vm1, %v4422_v45, %v4424_v58  ;;  %v4726_v45 = vrot.slane %v12721_v48, 1  ;;  %v13389_v58 = vld [vmem:[#allocation3 + $0x188] sm:$0xff]  ;;  %v4022_v48 = vld [vmem:[#allocation3 + $0x340] sm:$0x3] }
 0xa18   :  { %5184 = vmatmul.f32.gmra.mxu2 %v13285_v57  ;;  %5811 = vmatmul.f32.gmra.mxu1 %v13328_v29  ;;  %v13357_v1 = vpop.f32.mrf.mxu0  ;;  %16044 = vst [vmem:[#allocation109_spill] sm:$0xff] %v13374_v41 }
 0xa19   :  { %6336 = vmatmul.f32.gmra.mxu0 %v12541_v22  ;;  %v13352_v22 = vadd.f32 %v13185_v51, %v5538_v16  ;;  %v16042_v51 = vld [vmem:[#allocation64_spill] sm:$0xff]  ;;  %v5541_v16 = vadd.f32 %v16043_v34, %v5332_v49  ;;  %v4725_v49 = vrot.slane %v12700_v55, 1 }
 0xa1a   :  { %v5126_v7 = vadd.f32 %v13250_v63, %v16042_v51 }
 0xa1b   :  { %v13339_v28 = vpop.f32.mrf.mxu2  ;;  %16039 = vst [vmem:[#allocation209_spill] sm:$0xff] %v13352_v22 }
 0xa1c   :  { %6133 = vmatmul.f32.gmra.mxu3 %v7432_v33  ;;  %v5335_v22 = vadd.f32 %v16046_v39, %v5126_v7  ;;  %v16048_v7 = vld [vmem:[#allocation37_spill] sm:$0xff]  ;;  %v13400_v39 = vsel %vm461_vm1, %v4725_v49, %v4726_v45  ;;  %v16054_v49 = vld [vmem:[#allocation79_spill] sm:$0xff] }
 0xa1d   :  { %v13345_v52 = vpop.f32.mrf.mxu1  ;;  %16050 = vst [vmem:[#allocation59_spill] sm:$0xff] %v13400_v39 }
 0xa1f   :  { %v13363_v33 = vpop.f32.mrf.mxu3 }
 0xa20   :  { %5187 = vmatmul.f32.gmra.mxu2 %v13306_v32  ;;  %5814 = vmatmul.f32.gmra.mxu1 %v13349_v56  ;;  %16041 = vst [vmem:[#allocation38_spill] sm:$0xff] %v13363_v33  ;;  %v13383_v2 = vpop.f32.mrf.mxu0 }
 0xa21   :  { %6339 = vmatmul.f32.gmra.mxu0 %v12570_v31  ;;  %v13377_v31 = vadd.f32 %v13212_v12, %v5541_v16  ;;  %v16047_v12 = vld [vmem:[#allocation72_spill] sm:$0xff]  ;;  %v5544_v16 = vadd.f32 %v16048_v7, %v5335_v22  ;;  %v4728_v22 = vrot.slane %v4022_v48, 1  ;;  %v16059_v48 = vld [vmem:[#allocation43_spill] sm:$0xff] }
 0xa22   :  { %v5129_v51 = vadd.f32 %v13275_v10, %v16047_v12  ;;  %v13411_v12 = vld [vmem:[#allocation3] sm:$0xff] }
 0xa23   :  { %v13360_v36 = vpop.f32.mrf.mxu2  ;;  %16045 = vst [vmem:[#allocation45_spill] sm:$0xff] %v13377_v31  ;;  %v13403_v55 = vadd.f32 %v13233_v13, %v5544_v16  ;;  %v16052_v31 = vld [vmem:[#allocation78_spill] sm:$0xff]  ;;  %v5132_v13 = vadd.f32 %v13294_v53, %v16054_v49  ;;  %v4754_v49 = vrot.slane %v13411_v12, 1 }
 0xa24   :  { %6136 = vmatmul.f32.gmra.mxu3 %v13365_v62  ;;  %v5338_v33 = vadd.f32 %v16052_v31, %v5129_v51  ;;  %16053 = vst [vmem:[#allocation51_spill] sm:$0xff] %v13411_v12  ;;  %v13422_v31 = vsel %vm461_vm1, %v4726_v45, %v4728_v22 }
 0xa25   :  { %v13370_v14 = vpop.f32.mrf.mxu1  ;;  %16051 = vst [vmem:[#allocation95_spill] sm:$0xff] %v13403_v55  ;;  %v16055_v55 = vld [vmem:[#allocation36_spill] sm:$0xff]  ;;  %v5341_v53 = vadd.f32 %v16059_v48, %v5132_v13  ;;  %v16066_v48 = vld [vmem:[#allocation18_spill] sm:$0xff] }
 0xa26   :  { %16056 = vst [vmem:[#allocation66_spill] sm:$0xff] %v13422_v31 }
 0xa28   :  { %5190 = vmatmul.f32.gmra.mxu2 %v13328_v29  ;;  %5817 = vmatmul.f32.gmra.mxu1 %v13374_v41  ;;  %v13416_v7 = vpop.f32.mrf.mxu0 }
 0xa29   :  { %6342 = vmatmul.f32.gmra.mxu0 %v12602_v44  ;;  %v13397_v44 = vpop.f32.mrf.mxu3 }
 0xa2a   :  { %16049 = vst [vmem:[#allocation50_spill] sm:$0xff] %v13397_v44 }
 0xa2b   :  { %v13385_v63 = vpop.f32.mrf.mxu2 }
 0xa2c   :  { %6139 = vmatmul.f32.gmra.mxu3 %v13389_v58 }
 0xa2d   :  { %v13394_v34 = vpop.f32.mrf.mxu1 }
 0xa30   :  { %5193 = vmatmul.f32.gmra.mxu2 %v13349_v56  ;;  %5820 = vmatmul.f32.gmra.mxu1 %v13400_v39  ;;  %v5547_v39 = vadd.f32 %v16055_v55, %v5338_v33  ;;  %v16060_v33 = vld [vmem:[#allocation86_spill] sm:$0xff]  ;;  %v13442_v22 = vpop.f32.mrf.mxu0 }
 0xa31   :  { %6345 = vmatmul.f32.gmra.mxu0 %v12635_v19  ;;  %v13427_v51 = vpop.f32.mrf.mxu3  ;;  %16062 = vst [vmem:[#allocation63_spill] sm:$0xff] %v13442_v22 }
 0xa32   :  { %v13425_v19 = vadd.f32 %v13258_v17, %v5547_v39  ;;  %16058 = vst [vmem:[#allocation57_spill] sm:$0xff] %v13427_v51  ;;  %v5135_v17 = vadd.f32 %v13317_v43, %v16060_v33  ;;  %v16061_v39 = vld [vmem:[#allocation48_spill] sm:$0xff] }
 0xa33   :  { %v13409_v10 = vpop.f32.mrf.mxu2  ;;  %v5550_v55 = vadd.f32 %v16061_v39, %v5341_v53  ;;  %v16069_v53 = vld [vmem:[#allocation93_spill] sm:$0xff] }
 0xa34   :  { %6142 = vmatmul.f32.gmra.mxu3 %v13411_v12  ;;  %16057 = vst [vmem:[#allocation67_spill] sm:$0xff] %v13425_v19  ;;  %v13444_v19 = vld [vmem:[#allocation3 + $0x1a8] sm:$0x3]  ;;  %v5138_v39 = vadd.f32 %v13339_v28, %v16069_v53  ;;  %v16076_v53 = vld [vmem:[#allocation98_spill] sm:$0xff] }
 0xa35   :  { %v13418_v16 = vpop.f32.mrf.mxu1  ;;  %16063 = vst [vmem:[#allocation74_spill] sm:$0xff] %v13444_v19  ;;  %v13447_v13 = vadd.f32 %v13279_v37, %v5550_v55  ;;  %v4757_v43 = vrot.slane %v13444_v19, 1  ;;  %v16070_v37 = vld [vmem:[#allocation54_spill] sm:$0xff] }
 0xa37   :  { %16064 = vst [vmem:[#allocation64_spill] sm:$0xff] %v13447_v13 }
 0xa38   :  { %5196 = vmatmul.f32.gmra.mxu2 %v13374_v41  ;;  %5823 = vmatmul.f32.gmra.mxu1 %v13422_v31  ;;  %v16067_v31 = vld [vmem:[#allocation49_spill] sm:$0xff]  ;;  %v13468_v22 = vpop.f32.mrf.mxu0 }
 0xa39   :  { %6348 = vmatmul.f32.gmra.mxu0 %v12672_v27  ;;  %v16065_v27 = vld [vmem:[#allocation16_spill] sm:$0xff]  ;;  %v5344_v51 = vadd.f32 %v16067_v31, %v5135_v17  ;;  %v13452_v41 = vpop.f32.mrf.mxu3  ;;  %v16072_v31 = vld [vmem:[#allocation17_spill] sm:$0xff]  ;;  %v16073_v17 = vld [vmem:[#allocation22_spill] sm:$0xff] }
 0xa3a   :  { %16068 = vst [vmem:[#allocation32_spill] sm:$0xff] %v13452_v41  ;;  %v16074_v41 = vld [vmem:[#allocation108_spill] sm:$0xff] }
 0xa3b   :  { %v13434_v44 = vpop.f32.mrf.mxu2  ;;  %v5553_v55 = vadd.f32 %v16070_v37, %v5344_v51  ;;  %v5347_v19 = vadd.f32 %v16074_v41, %v5138_v39  ;;  %v16080_v41 = vld [vmem:[#allocation23_spill] sm:$0xff]  ;;  %v16081_v39 = vld [vmem:[#allocation62_spill] sm:$0xff] }
 0xa3c   :  { %6145 = vmatmul.f32.gmra.mxu3 %v13411_v12 }
 0xa3d   :  { %v13439_v45 = vpop.f32.mrf.mxu1  ;;  %v13463_v13 = vadd.f32 %v13302_v26, %v5553_v55  ;;  %v16078_v26 = vld [vmem:[#allocation99_spill] sm:$0xff] }
 0xa3e   :  { %v5141_v37 = vadd.f32 %v13360_v36, %v16078_v26  ;;  %v16084_v36 = vld [vmem:[#allocation60_spill] sm:$0xff] }
 0xa3f   :  { %16071 = vst [vmem:[#allocation81_spill] sm:$0xff] %v13463_v13  ;;  %v16082_v13 = vld [vmem:[#allocation112_spill] sm:$0xff] }
 0xa40   :  { %5843 = vmatmul.f32.vlgmr.msra.gmra.mxu2 %v16065_v27  ;;  %6470 = vmatmul.f32.vlgmr.msra.gmra.mxu1 %v16066_v48  ;;  %v4758_v27 = vsel %vm461_vm1, %v4754_v49, %v4757_v43  ;;  %v16086_v26 = vld [vmem:[#allocation24_spill] sm:$0xff] }
 0xa41   :  { %6351 = vmatmul.f32.gmra.mxu0 %v4754_v49  ;;  %v13470_v28 = vpop.f32.mrf.mxu3  ;;  %v16077_v49 = vld [vmem:[#allocation61_spill] sm:$0xff] }
 0xa42   :  { %16075 = vst [vmem:[#allocation72_spill] sm:$0xff] %v13470_v28  ;;  %v5556_v43 = vadd.f32 %v16077_v49, %v5347_v19 }
 0xa43   :  { %v5152_v33 = vpop.f32.mrf.mxu2 }
 0xa44   :  { %6148 = vmatmul.f32.gmra.mxu3 %v12726_v25  ;;  %v13479_v55 = vadd.f32 %v13322_v47, %v5556_v43  ;;  %v16085_v43 = vld [vmem:[#allocation106_spill] sm:$0xff] }
 0xa45   :  { %v13458_v12 = vpop.f32.mrf.mxu1 }
 0xa46   :  { %16079 = vst [vmem:[#allocation37_spill] sm:$0xff] %v13479_v55  ;;  %v16089_v55 = vld [vmem:[#allocation214_spill] sm:$0xff] }
 0xa48   :  { %5846 = vmatmul.f32.gmra.mxu2 %v16072_v31  ;;  %6473 = vmatmul.f32.gmra.mxu1 %v16073_v17  ;;  %v13485_v31 = vpop.f32.mrf.mxu0 }
 0xa49   :  { %6354 = vmatmul.f32.gmra.mxu0 %v4758_v27  ;;  %v5350_v27 = vadd.f32 %v16081_v39, %v5141_v37  ;;  %v13490_v49 = vpop.f32.mrf.mxu3  ;;  %v16088_v37 = vld [vmem:[#allocation70_spill] sm:$0xff] }
 0xa4a   :  { %16083 = vst [vmem:[#allocation78_spill] sm:$0xff] %v13490_v49 }
 0xa4b   :  { %v5155_v25 = vpop.f32.mrf.mxu2  ;;  %v5559_v47 = vadd.f32 %v16084_v36, %v5350_v27  ;;  %v16090_v36 = vld [vmem:[#allocation113_spill] sm:$0xff] }
 0xa4c   :  { %6151 = vmatmul.f32.gmra.mxu3 %v16076_v53 }
 0xa4d   :  { %v13473_v51 = vpop.f32.mrf.mxu1 }
 0xa50   :  { %5849 = vmatmul.f32.gmra.mxu2 %v16066_v48  ;;  %6476 = vmatmul.f32.gmra.mxu1 %v16080_v41  ;;  %v5144_v48 = vadd.f32 %v13385_v63, %v16085_v43  ;;  %v13503_v49 = vpop.f32.mrf.mxu0  ;;  %v5147_v63 = vadd.f32 %v13409_v10, %v16090_v36  ;;  %v16095_v10 = vld [vmem:[#allocation119_spill] sm:$0xff] }
 0xa51   :  { %6357 = vmatmul.f32.gmra.mxu0 %v12745_v50  ;;  %v13498_v50 = vadd.f32 %v13345_v52, %v5559_v47  ;;  %v13510_v28 = vpop.f32.mrf.mxu3  ;;  %v16092_v52 = vld [vmem:[#allocation25_spill] sm:$0xff] }
 0xa53   :  { %v5158_v53 = vpop.f32.mrf.mxu2  ;;  %16087 = vst [vmem:[#allocation79_spill] sm:$0xff] %v13498_v50 }
 0xa54   :  { %6154 = vmatmul.f32.gmra.mxu3 %v16082_v13  ;;  %v5353_v13 = vadd.f32 %v16088_v37, %v5144_v48 }
 0xa55   :  { %v13488_v19 = vpop.f32.mrf.mxu1 }
 0xa58   :  { %5852 = vmatmul.f32.gmra.mxu2 %v16073_v17  ;;  %6479 = vmatmul.f32.gmra.mxu1 %v16086_v26  ;;  %v16091_v17 = vld [vmem:[#allocation76_spill] sm:$0xff]  ;;  %v13524_v36 = vpop.f32.mrf.mxu0 }
 0xa59   :  { %6360 = vmatmul.f32.gmra.mxu0 %v12762_v23  ;;  %v5562_v43 = vadd.f32 %v16091_v17, %v5353_v13  ;;  %v5150_v13 = vadd.f32 %v13434_v44, %v16095_v10  ;;  %v16100_v10 = vld [vmem:[#allocation124_spill] sm:$0xff] }
 0xa5b   :  { %v5161_v39 = vpop.f32.mrf.mxu2  ;;  %v13516_v23 = vadd.f32 %v13370_v14, %v5562_v43 }
 0xa5c   :  { %6157 = vmatmul.f32.gmra.mxu3 %v16089_v55  ;;  %v16094_v55 = vld [vmem:[#allocation75_spill] sm:$0xff] }
 0xa5d   :  { %v13505_v27 = vpop.f32.mrf.mxu1  ;;  %16093 = vst [vmem:[#allocation36_spill] sm:$0xff] %v13516_v23  ;;  %v5356_v47 = vadd.f32 %v16094_v55, %v5147_v63  ;;  %v13533_v63 = vpop.f32.mrf.mxu3  ;;  %v16102_v23 = vld [vmem:[#allocation27_spill] sm:$0xff] }
 0xa60   :  { %5855 = vmatmul.f32.gmra.mxu2 %v16080_v41  ;;  %6482 = vmatmul.f32.gmra.mxu1 %v16092_v52  ;;  %v16096_v41 = vld [vmem:[#allocation85_spill] sm:$0xff] }
 0xa61   :  { %6363 = vmatmul.f32.gmra.mxu0 %v12788_v0  ;;  %v5565_v17 = vadd.f32 %v16096_v41, %v5356_v47  ;;  %v16097_v0 = vld [vmem:[#allocation26_spill] sm:$0xff]  ;;  %v5153_v47 = vadd.f32 %v5152_v33, %v16100_v10  ;;  %v16101_v41 = vld [vmem:[#allocation91_spill] sm:$0xff] }
 0xa62   :  { %v16106_v10 = vld [vmem:[#allocation103_spill] sm:$0xff] }
 0xa63   :  { %v5164_v48 = vpop.f32.mrf.mxu2  ;;  %v13531_v14 = vadd.f32 %v13394_v34, %v5565_v17 }
 0xa64   :  { %6160 = vmatmul.f32.gmra.mxu3 %v12820_v54  ;;  %v16099_v54 = vld [vmem:[#allocation90_spill] sm:$0xff] }
 0xa65   :  { %v13520_v37 = vpop.f32.mrf.mxu1  ;;  %16098 = vst [vmem:[#allocation43_spill] sm:$0xff] %v13531_v14  ;;  %v5359_v43 = vadd.f32 %v16099_v54, %v5150_v13  ;;  %v16104_v13 = vld [vmem:[#allocation97_spill] sm:$0xff]  ;;  %v13550_v54 = vpop.f32.mrf.mxu3  ;;  %v16107_v14 = vld [vmem:[#allocation28_spill] sm:$0xff] }
 0xa66   :  { %v5362_v17 = vadd.f32 %v16104_v13, %v5153_v47 }
 0xa68   :  { %5858 = vmatmul.f32.gmra.mxu2 %v16086_v26  ;;  %6485 = vmatmul.f32.gmra.mxu1 %v16097_v0  ;;  %v5568_v26 = vadd.f32 %v16101_v41, %v5359_v43  ;;  %v16105_v43 = vld [vmem:[#allocation128_spill] sm:$0xff]  ;;  %v5571_v41 = vadd.f32 %v16106_v10, %v5362_v17  ;;  %v16110_v17 = vld [vmem:[#allocation131_spill] sm:$0xff] }
 0xa69   :  { %6366 = vmatmul.f32.gmra.mxu0 %v12809_v35  ;;  %v13543_v35 = vpop.f32.mrf.mxu0 }
 0xa6a   :  { %v13547_v34 = vadd.f32 %v13418_v16, %v5568_v26  ;;  %v16109_v16 = vld [vmem:[#allocation213_spill] sm:$0xff] }
 0xa6b   :  { %v5167_v55 = vpop.f32.mrf.mxu2 }
 0xa6c   :  { %6163 = vmatmul.f32.gmra.mxu3 %v12823_v21  ;;  %16103 = vst [vmem:[#allocation86_spill] sm:$0xff] %v13547_v34 }
 0xa6d   :  { %v13537_v44 = vpop.f32.mrf.mxu1 }
 0xa70   :  { %5861 = vmatmul.f32.gmra.mxu2 %v16092_v52  ;;  %6488 = vmatmul.f32.gmra.mxu1 %v16102_v23  ;;  %v5156_v52 = vadd.f32 %v5155_v25, %v16105_v43  ;;  %v13569_v25 = vpop.f32.mrf.mxu3  ;;  %v16111_v43 = vld [vmem:[#allocation104_spill] sm:$0xff] }
 0xa71   :  { %6369 = vmatmul.f32.gmra.mxu0 %v12836_v5  ;;  %v13561_v5 = vadd.f32 %v13439_v45, %v5571_v41  ;;  %v13564_v26 = vpop.f32.mrf.mxu0 }
 0xa72   :  { %v5365_v47 = vadd.f32 %v16109_v16, %v5156_v52  ;;  %v16114_v52 = vld [vmem:[#allocation102_spill] sm:$0xff] }
 0xa73   :  { %v5170_v21 = vpop.f32.mrf.mxu2  ;;  %16108 = vst [vmem:[#allocation48_spill] sm:$0xff] %v13561_v5 }
 0xa74   :  { %6166 = vmatmul.f32.gmra.mxu3 %v12868_v6  ;;  %v5574_v10 = vadd.f32 %v16111_v43, %v5365_v47 }
 0xa75   :  { %v13553_v33 = vpop.f32.mrf.mxu1 }
 0xa76   :  { %v13577_v45 = vadd.f32 %v13458_v12, %v5574_v10 }
 0xa78   :  { %5864 = vmatmul.f32.gmra.mxu2 %v16097_v0  ;;  %6491 = vmatmul.f32.gmra.mxu1 %v16107_v14  ;;  %v5159_v0 = vadd.f32 %v5158_v53, %v16110_v17  ;;  %16113 = vst [vmem:[#allocation16_spill] sm:$0xff] %v13577_v45  ;;  %v16115_v53 = vld [vmem:[#allocation133_spill] sm:$0xff]  ;;  %v16116_v17 = vld [vmem:[#allocation110_spill] sm:$0xff]  ;;  %v13587_v43 = vpop.f32.mrf.mxu3  ;;  %v16122_v45 = vld [vmem:[#allocation19_spill] sm:$0xff] }
 0xa79   :  { %6372 = vmatmul.f32.gmra.mxu0 %v12857_v8  ;;  %v16112_v8 = vld [vmem:[#allocation29_spill] sm:$0xff]  ;;  %v13581_v16 = vpop.f32.mrf.mxu0  ;;  %v5162_v47 = vadd.f32 %v5161_v39, %v16115_v53  ;;  %v16120_v39 = vld [vmem:[#allocation138_spill] sm:$0xff] }
 0xa7a   :  { %v5368_v41 = vadd.f32 %v16114_v52, %v5159_v0 }
 0xa7b   :  { %v5173_v6 = vpop.f32.mrf.mxu2 }
 0xa7c   :  { %6169 = vmatmul.f32.gmra.mxu3 %v12871_v59 }
 0xa7d   :  { %v13567_v13 = vpop.f32.mrf.mxu1 }
 0xa80   :  { %5867 = vmatmul.f32.gmra.mxu2 %v16102_v23  ;;  %6494 = vmatmul.f32.gmra.mxu1 %v16112_v8  ;;  %v5577_v23 = vadd.f32 %v16116_v17, %v5368_v41  ;;  %v5165_v41 = vadd.f32 %v5164_v48, %v16120_v39  ;;  %v16121_v17 = vld [vmem:[#allocation118_spill] sm:$0xff]  ;;  %v16126_v39 = vld [vmem:[#allocation123_spill] sm:$0xff] }
 0xa81   :  { %6375 = vmatmul.f32.gmra.mxu0 %v12884_v15  ;;  %v16117_v15 = vld [vmem:[#allocation30_spill] sm:$0xff]  ;;  %v13600_v53 = vpop.f32.mrf.mxu0 }
 0xa82   :  { %v13593_v12 = vadd.f32 %v13473_v51, %v5577_v23  ;;  %v13609_v51 = vpop.f32.mrf.mxu3 }
 0xa83   :  { %v5176_v59 = vpop.f32.mrf.mxu2 }
 0xa84   :  { %6172 = vmatmul.f32.gmra.mxu3 %v12916_v4  ;;  %16118 = vst [vmem:[#allocation18_spill] sm:$0xff] %v13593_v12  ;;  %v16119_v4 = vld [vmem:[#allocation117_spill] sm:$0xff] }
 0xa85   :  { %v13583_v5 = vpop.f32.mrf.mxu1  ;;  %v5371_v0 = vadd.f32 %v16119_v4, %v5162_v47  ;;  %v16125_v4 = vld [vmem:[#allocation140_spill] sm:$0xff] }
 0xa88   :  { %5870 = vmatmul.f32.gmra.mxu2 %v16107_v14  ;;  %6497 = vmatmul.f32.gmra.mxu1 %v16117_v15  ;;  %v5580_v14 = vadd.f32 %v16121_v17, %v5371_v0  ;;  %v5168_v0 = vadd.f32 %v5167_v55, %v16125_v4  ;;  %v16127_v17 = vld [vmem:[#allocation20_spill] sm:$0xff]  ;;  %v16132_v4 = vld [vmem:[#allocation127_spill] sm:$0xff] }
 0xa89   :  { %6378 = vmatmul.f32.gmra.mxu0 %v12905_v61 }
 0xa8a   :  { %v13607_v61 = vadd.f32 %v13488_v19, %v5580_v14 }
 0xa8b   :  { %v5179_v10 = vpop.f32.mrf.mxu2 }
 0xa8c   :  { %6175 = vmatmul.f32.gmra.mxu3 %v12919_v20  ;;  %16123 = vst [vmem:[#allocation49_spill] sm:$0xff] %v13607_v61  ;;  %v16124_v20 = vld [vmem:[#allocation116_spill] sm:$0xff] }
 0xa8d   :  { %v13597_v52 = vpop.f32.mrf.mxu1  ;;  %v5374_v47 = vadd.f32 %v16124_v20, %v5165_v41  ;;  %v16129_v41 = vld [vmem:[#allocation121_spill] sm:$0xff]  ;;  %v13628_v20 = vpop.f32.mrf.mxu3 }
 0xa8e   :  { %v5377_v14 = vadd.f32 %v16129_v41, %v5168_v0  ;;  %16130 = vst [vmem:[#allocation54_spill] sm:$0xff] %v13628_v20  ;;  %v16135_v0 = vld [vmem:[#allocation125_spill] sm:$0xff]  ;;  %v16175_v20 = vld [vmem:[#allocation170_spill] sm:$0xff] }
 0xa90   :  { %5873 = vmatmul.f32.gmra.mxu2 %v16112_v8  ;;  %6500 = vmatmul.f32.gmra.mxu1 %v16122_v45  ;;  %v5583_v8 = vadd.f32 %v16126_v39, %v5374_v47  ;;  %v5586_v39 = vadd.f32 %v16132_v4, %v5377_v14  ;;  %v16139_v4 = vld [vmem:[#allocation130_spill] sm:$0xff] }
 0xa91   :  { %6381 = vmatmul.f32.gmra.mxu0 %v12932_v9  ;;  %v13619_v9 = vpop.f32.mrf.mxu0 }
 0xa92   :  { %v13623_v19 = vadd.f32 %v13505_v27, %v5583_v8  ;;  %v13639_v27 = vadd.f32 %v13520_v37, %v5586_v39  ;;  %v16141_v37 = vld [vmem:[#allocation224_spill] sm:$0xff]  ;;  %v16143_v39 = vld [vmem:[#allocation129_spill] sm:$0xff] }
 0xa93   :  { %v5182_v23 = vpop.f32.mrf.mxu2 }
 0xa94   :  { %6178 = vmatmul.f32.gmra.mxu3 %v12964_v3  ;;  %16128 = vst [vmem:[#allocation93_spill] sm:$0xff] %v13623_v19  ;;  %v16136_v19 = vld [vmem:[#allocation152_spill] sm:$0xff] }
 0xa95   :  { %v13613_v48 = vpop.f32.mrf.mxu1  ;;  %16134 = vst [vmem:[#allocation17_spill] sm:$0xff] %v13639_v27  ;;  %v13649_v14 = vpop.f32.mrf.mxu3  ;;  %v16144_v27 = vld [vmem:[#allocation226_spill] sm:$0xff] }
 0xa96   :  { %16137 = vst [vmem:[#allocation22_spill] sm:$0xff] %v13649_v14  ;;  %v16173_v14 = vld [vmem:[#allocation168_spill] sm:$0xff] }
 0xa98   :  { %5876 = vmatmul.f32.gmra.mxu2 %v16117_v15  ;;  %6503 = vmatmul.f32.gmra.mxu1 %v16127_v17  ;;  %v16131_v15 = vld [vmem:[#allocation145_spill] sm:$0xff] }
 0xa99   :  { %6384 = vmatmul.f32.gmra.mxu0 %v12953_v60  ;;  %v5171_v47 = vadd.f32 %v5170_v21, %v16131_v15  ;;  %v16133_v60 = vld [vmem:[#allocation15_spill] sm:$0xff]  ;;  %v13642_v41 = vpop.f32.mrf.mxu0 }
 0xa9b   :  { %v13626_v3 = vpop.f32.mrf.mxu2  ;;  %v5380_v8 = vadd.f32 %v16135_v0, %v5171_v47 }
 0xa9c   :  { %6181 = vmatmul.f32.gmra.mxu3 %v12967_v40 }
 0xa9d   :  { %v13631_v55 = vpop.f32.mrf.mxu1  ;;  %v5589_v61 = vadd.f32 %v16139_v4, %v5380_v8  ;;  %v16146_v8 = vld [vmem:[#allocation153_spill] sm:$0xff]  ;;  %v13669_v34 = vpop.f32.mrf.mxu3 }
 0xa9e   :  { %16148 = vst [vmem:[#allocation61_spill] sm:$0xff] %v13669_v34  ;;  %v16163_v34 = vld [vmem:[#allocation163_spill] sm:$0xff] }
 0xa9f   :  { %v13657_v47 = vadd.f32 %v13537_v44, %v5589_v61  ;;  %v16149_v44 = vld [vmem:[#allocation35_spill] sm:$0xff] }
 0xaa0   :  { %5879 = vmatmul.f32.gmra.mxu2 %v16122_v45  ;;  %6506 = vmatmul.f32.gmra.mxu1 %v16133_v60  ;;  %v16138_v45 = vld [vmem:[#allocation148_spill] sm:$0xff]  ;;  %v16150_v61 = vld [vmem:[#allocation227_spill] sm:$0xff] }
 0xaa1   :  { %6387 = vmatmul.f32.gmra.mxu0 %v12980_v18  ;;  %v5174_v15 = vadd.f32 %v5173_v6, %v16138_v45  ;;  %v16140_v18 = vld [vmem:[#allocation13_spill] sm:$0xff]  ;;  %16142 = vst [vmem:[#allocation108_spill] sm:$0xff] %v13657_v47  ;;  %v13663_v12 = vpop.f32.mrf.mxu0  ;;  %v5177_v45 = vadd.f32 %v5176_v59, %v16146_v8  ;;  %v16153_v47 = vld [vmem:[#allocation162_spill] sm:$0xff] }
 0xaa2   :  { %16145 = vst [vmem:[#allocation98_spill] sm:$0xff] %v13663_v12  ;;  %v16174_v12 = vld [vmem:[#allocation144_spill] sm:$0xff] }
 0xaa3   :  { %v13644_v40 = vpop.f32.mrf.mxu2  ;;  %v5383_v0 = vadd.f32 %v16143_v39, %v5174_v15 }
 0xaa4   :  { %6184 = vmatmul.f32.gmra.mxu3 %v16136_v19 }
 0xaa5   :  { %v13647_v21 = vpop.f32.mrf.mxu1 }
 0xaa8   :  { %5882 = vmatmul.f32.gmra.mxu2 %v16127_v17  ;;  %6509 = vmatmul.f32.gmra.mxu1 %v16140_v18  ;;  %v16147_v17 = vld [vmem:[#allocation136_spill] sm:$0xff] }
 0xaa9   :  { %6390 = vmatmul.f32.gmra.mxu0 %v16141_v37  ;;  %v5592_v4 = vadd.f32 %v16147_v17, %v5383_v0  ;;  %v16154_v0 = vld [vmem:[#allocation158_spill] sm:$0xff]  ;;  %v13684_v17 = vpop.f32.mrf.mxu0 }
 0xaaa   :  { %v5180_v8 = vadd.f32 %v5179_v10, %v16154_v0  ;;  %16155 = vst [vmem:[#allocation23_spill] sm:$0xff] %v13684_v17  ;;  %v16162_v10 = vld [vmem:[#allocation189_spill] sm:$0xff]  ;;  %v16165_v17 = vld [vmem:[#allocation46_spill] sm:$0xff] }
 0xaab   :  { %v13660_v19 = vpop.f32.mrf.mxu2  ;;  %v13675_v15 = vadd.f32 %v13553_v33, %v5592_v4  ;;  %v16158_v33 = vld [vmem:[#allocation155_spill] sm:$0xff]  ;;  %v13693_v4 = vpop.f32.mrf.mxu3 }
 0xaac   :  { %6187 = vmatmul.f32.gmra.mxu3 %v16144_v27  ;;  %v16152_v27 = vld [vmem:[#allocation218_spill] sm:$0xff]  ;;  %16160 = vst [vmem:[#allocation112_spill] sm:$0xff] %v13693_v4  ;;  %v16170_v4 = vld [vmem:[#allocation11_spill] sm:$0xff] }
 0xaad   :  { %v13665_v6 = vpop.f32.mrf.mxu1  ;;  %16151 = vst [vmem:[#allocation99_spill] sm:$0xff] %v13675_v15  ;;  %v5386_v37 = vadd.f32 %v16152_v27, %v5177_v45 }
 0xab0   :  { %5885 = vmatmul.f32.gmra.mxu2 %v16133_v60  ;;  %6512 = vmatmul.f32.gmra.mxu1 %v16149_v44  ;;  %v16156_v60 = vld [vmem:[#allocation137_spill] sm:$0xff] }
 0xab1   :  { %6393 = vmatmul.f32.gmra.mxu0 %v16150_v61  ;;  %v5595_v50 = vadd.f32 %v16156_v60, %v5386_v37  ;;  %v16157_v61 = vld [vmem:[#allocation40_spill] sm:$0xff]  ;;  %v5183_v37 = vadd.f32 %v5182_v23, %v16163_v34  ;;  %v16164_v60 = vld [vmem:[#allocation143_spill] sm:$0xff] }
 0xab2   :  { %v16171_v23 = vld [vmem:[#allocation172_spill] sm:$0xff] }
 0xab3   :  { %v13678_v39 = vpop.f32.mrf.mxu2  ;;  %v13691_v45 = vadd.f32 %v13567_v13, %v5595_v50  ;;  %v16167_v50 = vld [vmem:[#allocation229_spill] sm:$0xff] }
 0xab4   :  { %6190 = vmatmul.f32.gmra.mxu3 %v16153_v47  ;;  %v16161_v47 = vld [vmem:[#allocation135_spill] sm:$0xff] }
 0xab5   :  { %v13681_v59 = vpop.f32.mrf.mxu1  ;;  %16159 = vst [vmem:[#allocation62_spill] sm:$0xff] %v13691_v45  ;;  %v5389_v27 = vadd.f32 %v16161_v47, %v5180_v8  ;;  %v16169_v8 = vld [vmem:[#allocation221_spill] sm:$0xff] }
 0xab6   :  { %v5392_v47 = vadd.f32 %v16169_v8, %v5183_v37  ;;  %v16176_v37 = vld [vmem:[#allocation52_spill] sm:$0xff]  ;;  %v16180_v8 = vld [vmem:[#allocation142_spill] sm:$0xff] }
 0xab8   :  { %5888 = vmatmul.f32.gmra.mxu2 %v16140_v18  ;;  %6515 = vmatmul.f32.gmra.mxu1 %v16157_v61  ;;  %v5598_v18 = vadd.f32 %v16164_v60, %v5389_v27 }
 0xab9   :  { %6396 = vmatmul.f32.gmra.mxu0 %v16158_v33  ;;  %v13703_v33 = vpop.f32.mrf.mxu0 }
 0xaba   :  { %16166 = vst [vmem:[#allocation60_spill] sm:$0xff] %v13703_v33  ;;  %v13707_v13 = vadd.f32 %v13583_v5, %v5598_v18  ;;  %v5186_v33 = vadd.f32 %v13626_v3, %v16173_v14  ;;  %v16177_v18 = vld [vmem:[#allocation165_spill] sm:$0xff] }
 0xabb   :  { %v13696_v15 = vpop.f32.mrf.mxu2  ;;  %v16181_v14 = vld [vmem:[#allocation33_spill] sm:$0xff] }
 0xabc   :  { %6193 = vmatmul.f32.gmra.mxu3 %v16162_v10  ;;  %16168 = vst [vmem:[#allocation106_spill] sm:$0xff] %v13707_v13  ;;  %v13710_v10 = vpop.f32.mrf.mxu3  ;;  %v16192_v13 = vld [vmem:[#allocation71_spill] sm:$0xff] }
 0xabd   :  { %v6471_v0 = vpop.f32.mrf.mxu1 }
 0xac0   :  { %5891 = vmatmul.f32.gmra.mxu2 %v16149_v44  ;;  %6518 = vmatmul.f32.gmra.mxu1 %v16165_v17  ;;  %v16172_v44 = vld [vmem:[#allocation194_spill] sm:$0xff] }
 0xac1   :  { %6399 = vmatmul.f32.gmra.mxu0 %v16167_v50  ;;  %v5601_v50 = vadd.f32 %v16174_v12, %v5392_v47  ;;  %v16182_v47 = vld [vmem:[#allocation198_spill] sm:$0xff] }
 0xac3   :  { %v5844_v45 = vpop.f32.mrf.mxu2 }
 0xac4   :  { %v5845_v34 = vadd.f32 %v5844_v45, %v16170_v4  ;;  %6196 = vmatmul.f32.gmra.mxu3 %v16171_v23  ;;  %v13723_v45 = vadd.f32 %v13597_v52, %v5601_v50  ;;  %v13728_v23 = vpop.f32.mrf.mxu0  ;;  %v16185_v50 = vld [vmem:[#allocation147_spill] sm:$0xff] }
 0xac5   :  { %v6474_v27 = vpop.f32.mrf.mxu1 }
 0xac6   :  { %v6054_v60 = vadd.f32 %v16172_v44, %v5845_v34  ;;  %16178 = vst [vmem:[#allocation24_spill] sm:$0xff] %v13723_v45  ;;  %v5395_v34 = vadd.f32 %v16180_v8, %v5186_v33  ;;  %v16183_v44 = vld [vmem:[#allocation176_spill] sm:$0xff]  ;;  %v16187_v33 = vld [vmem:[#allocation58_spill] sm:$0xff]  ;;  %v16188_v8 = vld [vmem:[#allocation231_spill] sm:$0xff] }
 0xac8   :  { %v6263_v5 = vadd.f32 %v16175_v20, %v6054_v60  ;;  %5894 = vmatmul.f32.gmra.mxu2 %v16157_v61  ;;  %6521 = vmatmul.f32.gmra.mxu1 %v16176_v37  ;;  %v13732_v61 = vpop.f32.mrf.mxu3 }
 0xac9   :  { %6402 = vmatmul.f32.gmra.mxu0 %v16177_v18  ;;  %v16184_v18 = vld [vmem:[#allocation173_spill] sm:$0xff] }
 0xaca   :  { %v13725_v4 = vadd.f32 %v6471_v0, %v6263_v5  ;;  %v5189_v52 = vadd.f32 %v13644_v40, %v16184_v18  ;;  %v5604_v0 = vadd.f32 %v16185_v50, %v5395_v34  ;;  %v16186_v5 = vld [vmem:[#allocation177_spill] sm:$0xff] }
 0xacb   :  { %v5847_v3 = vpop.f32.mrf.mxu2  ;;  %v16193_v18 = vld [vmem:[#allocation181_spill] sm:$0xff] }
 0xacc   :  { %16179 = vst [vmem:[#allocation70_spill] sm:$0xff] %v13725_v4  ;;  %v5848_v12 = vadd.f32 %v5847_v3, %v16181_v14  ;;  %6199 = vmatmul.f32.gmra.mxu3 %v16182_v47  ;;  %v13743_v3 = vadd.f32 %v13613_v48, %v5604_v0  ;;  %v16191_v47 = vld [vmem:[#allocation151_spill] sm:$0xff]  ;;  %v13750_v34 = vpop.f32.mrf.mxu0  ;;  %v16196_v4 = vld [vmem:[#allocation150_spill] sm:$0xff] }
 0xacd   :  { %v6477_v20 = vpop.f32.mrf.mxu1 }
 0xace   :  { %v6057_v60 = vadd.f32 %v16183_v44, %v5848_v12  ;;  %16189 = vst [vmem:[#allocation214_spill] sm:$0xff] %v13743_v3  ;;  %v5398_v12 = vadd.f32 %v16191_v47, %v5189_v52  ;;  %v16198_v52 = vld [vmem:[#allocation65_spill] sm:$0xff] }
 0xacf   :  { %v16206_v3 = vld [vmem:[#allocation157_spill] sm:$0xff] }
 0xad0   :  { %v6266_v45 = vadd.f32 %v16186_v5, %v6057_v60  ;;  %5897 = vmatmul.f32.gmra.mxu2 %v16165_v17  ;;  %6524 = vmatmul.f32.gmra.mxu1 %v16187_v33  ;;  %v16194_v17 = vld [vmem:[#allocation202_spill] sm:$0xff]  ;;  %v5607_v48 = vadd.f32 %v16196_v4, %v5398_v12  ;;  %v13756_v0 = vpop.f32.mrf.mxu3 }
 0xad1   :  { %6405 = vmatmul.f32.gmra.mxu0 %v16188_v8  ;;  %v16195_v5 = vld [vmem:[#allocation178_spill] sm:$0xff] }
 0xad2   :  { %v13745_v14 = vadd.f32 %v6474_v27, %v6266_v45  ;;  %v5192_v8 = vadd.f32 %v13660_v19, %v16195_v5  ;;  %v16197_v27 = vld [vmem:[#allocation206_spill] sm:$0xff] }
 0xad3   :  { %v5850_v44 = vpop.f32.mrf.mxu2  ;;  %v16203_v12 = vld [vmem:[#allocation182_spill] sm:$0xff] }
 0xad4   :  { %16190 = vst [vmem:[#allocation113_spill] sm:$0xff] %v13745_v14  ;;  %v5851_v40 = vadd.f32 %v5850_v44, %v16192_v13  ;;  %6202 = vmatmul.f32.gmra.mxu3 %v16193_v18  ;;  %v13763_v13 = vadd.f32 %v13631_v55, %v5607_v48  ;;  %v16201_v44 = vld [vmem:[#allocation156_spill] sm:$0xff]  ;;  %v16202_v18 = vld [vmem:[#allocation42_spill] sm:$0xff] }
 0xad5   :  { %v6480_v60 = vpop.f32.mrf.mxu1  ;;  %v16207_v48 = vld [vmem:[#allocation188_spill] sm:$0xff] }
 0xad6   :  { %v6060_v50 = vadd.f32 %v16194_v17, %v5851_v40  ;;  %16199 = vst [vmem:[#allocation76_spill] sm:$0xff] %v13763_v13  ;;  %v5401_v40 = vadd.f32 %v16201_v44, %v5192_v8  ;;  %v16208_v8 = vld [vmem:[#allocation73_spill] sm:$0xff]  ;;  %v16217_v13 = vld [vmem:[#allocation160_spill] sm:$0xff] }
 0xad8   :  { %v6269_v45 = vadd.f32 %v16197_v27, %v6060_v50  ;;  %5900 = vmatmul.f32.gmra.mxu2 %v16176_v37  ;;  %6527 = vmatmul.f32.gmra.mxu1 %v16198_v52  ;;  %v16204_v50 = vld [vmem:[#allocation180_spill] sm:$0xff]  ;;  %v13771_v37 = vpop.f32.mrf.mxu0  ;;  %v5610_v55 = vadd.f32 %v16206_v3, %v5401_v40  ;;  %v16214_v40 = vld [vmem:[#allocation193_spill] sm:$0xff] }
 0xad9   :  { %6408 = vmatmul.f32.gmra.mxu0 %v13145_v46  ;;  %v16205_v27 = vld [vmem:[#allocation184_spill] sm:$0xff] }
 0xada   :  { %v13765_v47 = vadd.f32 %v6477_v20, %v6269_v45  ;;  %v5195_v46 = vadd.f32 %v13678_v39, %v16205_v27  ;;  %v16209_v45 = vld [vmem:[#allocation187_spill] sm:$0xff]  ;;  %v13781_v44 = vadd.f32 %v13647_v21, %v5610_v55 }
 0xadb   :  { %v5853_v19 = vpop.f32.mrf.mxu2  ;;  %v16218_v55 = vld [vmem:[#allocation31_spill] sm:$0xff] }
 0xadc   :  { %16200 = vst [vmem:[#allocation25_spill] sm:$0xff] %v13765_v47  ;;  %v5854_v4 = vadd.f32 %v5853_v19, %v16202_v18  ;;  %6205 = vmatmul.f32.gmra.mxu3 %v16203_v12  ;;  %v13783_v19 = vpop.f32.mrf.mxu3 }
 0xadd   :  { %v6483_v17 = vpop.f32.mrf.mxu1  ;;  %16210 = vst [vmem:[#allocation75_spill] sm:$0xff] %v13781_v44 }
 0xade   :  { %v6063_v5 = vadd.f32 %v16204_v50, %v5854_v4  ;;  %v16212_v4 = vld [vmem:[#allocation183_spill] sm:$0xff]  ;;  %v16213_v50 = vld [vmem:[#allocation92_spill] sm:$0xff] }
 0xadf   :  { %v5404_v12 = vadd.f32 %v16212_v4, %v5195_v46 }
 0xae0   :  { %v6272_v20 = vadd.f32 %v16207_v48, %v6063_v5  ;;  %5903 = vmatmul.f32.gmra.mxu2 %v16187_v33  ;;  %6530 = vmatmul.f32.gmra.mxu1 %v16208_v8  ;;  %v16215_v33 = vld [vmem:[#allocation210_spill] sm:$0xff]  ;;  %v13797_v46 = vpop.f32.mrf.mxu0 }
 0xae1   :  { %6411 = vmatmul.f32.gmra.mxu0 %v16209_v45  ;;  %v16216_v48 = vld [vmem:[#allocation190_spill] sm:$0xff]  ;;  %v5613_v21 = vadd.f32 %v16217_v13, %v5404_v12  ;;  %v16224_v13 = vld [vmem:[#allocation55_spill] sm:$0xff] }
 0xae2   :  { %v13785_v18 = vadd.f32 %v6480_v60, %v6272_v20  ;;  %v5198_v45 = vadd.f32 %v13696_v15, %v16216_v48  ;;  %v16219_v60 = vld [vmem:[#allocation80_spill] sm:$0xff]  ;;  %v16220_v20 = vld [vmem:[#allocation186_spill] sm:$0xff] }
 0xae3   :  { %v5856_v39 = vpop.f32.mrf.mxu2  ;;  %v13801_v4 = vadd.f32 %v13665_v6, %v5613_v21  ;;  %v16229_v6 = vld [vmem:[#allocation87_spill] sm:$0xff] }
 0xae4   :  { %16211 = vst [vmem:[#allocation119_spill] sm:$0xff] %v13785_v18  ;;  %v5857_v3 = vadd.f32 %v5856_v39, %v16213_v50  ;;  %6208 = vmatmul.f32.gmra.mxu3 %v16214_v40  ;;  %v16223_v50 = vld [vmem:[#allocation166_spill] sm:$0xff]  ;;  %v13806_v40 = vpop.f32.mrf.mxu3 }
 0xae5   :  { %v6486_v5 = vpop.f32.mrf.mxu1  ;;  %16221 = vst [vmem:[#allocation85_spill] sm:$0xff] %v13801_v4 }
 0xae6   :  { %v6066_v27 = vadd.f32 %v16215_v33, %v5857_v3  ;;  %v5407_v3 = vadd.f32 %v16223_v50, %v5198_v45  ;;  %v16225_v33 = vld [vmem:[#allocation211_spill] sm:$0xff] }
 0xae8   :  { %v6275_v44 = vadd.f32 %v16218_v55, %v6066_v27  ;;  %5906 = vmatmul.f32.gmra.mxu2 %v16198_v52  ;;  %6533 = vmatmul.f32.gmra.mxu1 %v16219_v60  ;;  %v16226_v27 = vld [vmem:[#allocation196_spill] sm:$0xff]  ;;  %v16227_v55 = vld [vmem:[#allocation167_spill] sm:$0xff]  ;;  %v13821_v21 = vpop.f32.mrf.mxu0 }
 0xae9   :  { %6414 = vmatmul.f32.gmra.mxu0 %v16220_v20  ;;  %v5616_v18 = vadd.f32 %v16227_v55, %v5407_v3  ;;  %v16228_v20 = vld [vmem:[#allocation12_spill] sm:$0xff] }
 0xaea   :  { %v13803_v39 = vadd.f32 %v6483_v17, %v6275_v44  ;;  %v16230_v17 = vld [vmem:[#allocation234_spill] sm:$0xff] }
 0xaeb   :  { %v5859_v15 = vpop.f32.mrf.mxu2  ;;  %v13817_v44 = vadd.f32 %v13681_v59, %v5616_v18  ;;  %v16236_v59 = vld [vmem:[#allocation94_spill] sm:$0xff] }
 0xaec   :  { %16222 = vst [vmem:[#allocation26_spill] sm:$0xff] %v13803_v39  ;;  %v5860_v12 = vadd.f32 %v5859_v15, %v16224_v13  ;;  %6211 = vmatmul.f32.gmra.mxu3 %v16225_v33  ;;  %v16233_v15 = vld [vmem:[#allocation105_spill] sm:$0xff]  ;;  %v13825_v33 = vpop.f32.mrf.mxu3 }
 0xaed   :  { %v6489_v52 = vpop.f32.mrf.mxu1  ;;  %16231 = vst [vmem:[#allocation90_spill] sm:$0xff] %v13817_v44  ;;  %v13893_v44 = vld [vmem:[#allocation3 + $0x330] sm:$0xff] }
 0xaee   :  { %v6069_v48 = vadd.f32 %v16226_v27, %v5860_v12  ;;  %v16234_v12 = vld [vmem:[#allocation200_spill] sm:$0xff] }
 0xaf0   :  { %v6278_v47 = vadd.f32 %v16228_v20, %v6069_v48  ;;  %5909 = vmatmul.f32.gmra.mxu2 %v16208_v8  ;;  %6536 = vmatmul.f32.gmra.mxu1 %v16229_v6  ;;  %v16235_v8 = vld [vmem:[#allocation197_spill] sm:$0xff]  ;;  %v7436_v20 = vld [vmem:[#allocation3 + $0x2f0] sm:$0xff] }
 0xaf1   :  { %6417 = vmatmul.f32.gmra.mxu0 %v16230_v17  ;;  %v13835_v17 = vpop.f32.mrf.mxu0 }
 0xaf2   :  { %v13819_v45 = vadd.f32 %v6486_v5, %v6278_v47  ;;  %v16238_v5 = vld [vmem:[#allocation69_spill] sm:$0xff] }
 0xaf3   :  { %v5862_v50 = vpop.f32.mrf.mxu2 }
 0xaf4   :  { %16232 = vst [vmem:[#allocation124_spill] sm:$0xff] %v13819_v45  ;;  %v5863_v13 = vadd.f32 %v5862_v50, %v16233_v15  ;;  %6214 = vmatmul.f32.gmra.mxu3 %v16234_v12  ;;  %v16239_v15 = vld [vmem:[#allocation201_spill] sm:$0xff]  ;;  %v13838_v12 = vpop.f32.mrf.mxu3 }
 0xaf5   :  { %v6492_v3 = vpop.f32.mrf.mxu1 }
 0xaf6   :  { %v6072_v27 = vadd.f32 %v16235_v8, %v5863_v13 }
 0xaf8   :  { %v6281_v48 = vadd.f32 %v13273_v11, %v6072_v27  ;;  %5912 = vmatmul.f32.gmra.mxu2 %v16219_v60  ;;  %6539 = vmatmul.f32.gmra.mxu1 %v16236_v59  ;;  %v16240_v60 = vld [vmem:[#allocation100_spill] sm:$0xff]  ;;  %v16243_v27 = vld [vmem:[#allocation77_spill] sm:$0xff] }
 0xaf9   :  { %6420 = vmatmul.f32.gmra.mxu0 %v13239_v38  ;;  %v16241_v38 = vld [vmem:[#allocation101_spill] sm:$0xff] }
 0xafa   :  { %v13832_v47 = vadd.f32 %v6489_v52, %v6281_v48 }
 0xafb   :  { %v5865_v18 = vpop.f32.mrf.mxu2 }
 0xafc   :  { %16237 = vst [vmem:[#allocation91_spill] sm:$0xff] %v13832_v47  ;;  %v5866_v55 = vadd.f32 %v5865_v18, %v16238_v5  ;;  %6217 = vmatmul.f32.gmra.mxu3 %v7436_v20  ;;  %v7437_v18 = vld [vmem:[#allocation3 + $0x300] sm:$0xff]  ;;  %v16244_v20 = vld [vmem:[#allocation204_spill] sm:$0xff] }
 0xafd   :  { %v6495_v50 = vpop.f32.mrf.mxu1 }
 0xafe   :  { %v6075_v13 = vadd.f32 %v16239_v15, %v5866_v55  ;;  %v13848_v15 = vpop.f32.mrf.mxu0 }
 0xb00   :  { %v6284_v11 = vadd.f32 %v13300_v30, %v6075_v13  ;;  %5915 = vmatmul.f32.gmra.mxu2 %v16229_v6  ;;  %6542 = vmatmul.f32.gmra.mxu1 %v16240_v60  ;;  %v16245_v6 = vld [vmem:[#allocation107_spill] sm:$0xff] }
 0xb01   :  { %6423 = vmatmul.f32.gmra.mxu0 %v16241_v38  ;;  %v16247_v38 = vld [vmem:[#allocation83_spill] sm:$0xff] }
 0xb02   :  { %v13844_v52 = vadd.f32 %v6492_v3, %v6284_v11  ;;  %v13854_v3 = vpop.f32.mrf.mxu3 }
 0xb03   :  { %v5868_v8 = vpop.f32.mrf.mxu2 }
 0xb04   :  { %16242 = vst [vmem:[#allocation27_spill] sm:$0xff] %v13844_v52  ;;  %v5869_v48 = vadd.f32 %v5868_v8, %v16243_v27  ;;  %6220 = vmatmul.f32.gmra.mxu3 %v7437_v18  ;;  %v7438_v27 = vld [vmem:[#allocation3 + $0x308] sm:$0xff] }
 0xb05   :  { %v6498_v5 = vpop.f32.mrf.mxu1  ;;  %v16248_v18 = vld [vmem:[#allocation39_spill] sm:$0xff] }
 0xb06   :  { %v6078_v55 = vadd.f32 %v16244_v20, %v5869_v48 }
 0xb08   :  { %v6287_v30 = vadd.f32 %v13325_v42, %v6078_v55  ;;  %5918 = vmatmul.f32.gmra.mxu2 %v16236_v59  ;;  %6545 = vmatmul.f32.gmra.mxu1 %v16245_v6  ;;  %v16249_v59 = vld [vmem:[#allocation114_spill] sm:$0xff]  ;;  %v13863_v55 = vpop.f32.mrf.mxu0 }
 0xb09   :  { %6426 = vmatmul.f32.gmra.mxu0 %v13285_v57 }
 0xb0a   :  { %v13856_v13 = vadd.f32 %v6495_v50, %v6287_v30  ;;  %v13868_v30 = vpop.f32.mrf.mxu3 }
 0xb0b   :  { %v5871_v11 = vpop.f32.mrf.mxu2 }
 0xb0c   :  { %16246 = vst [vmem:[#allocation97_spill] sm:$0xff] %v13856_v13  ;;  %v5872_v8 = vadd.f32 %v5871_v11, %v16247_v38  ;;  %6223 = vmatmul.f32.gmra.mxu3 %v7438_v27  ;;  %v16251_v11 = vld [vmem:[#allocation89_spill] sm:$0xff]  ;;  %v16269_v13 = vld [vmem:[#allocation32_spill] sm:$0xff] }
 0xb0d   :  { %v6501_v48 = vpop.f32.mrf.mxu1  ;;  %v7439_v27 = vld [vmem:[#allocation3 + $0x318] sm:$0xff] }
 0xb0e   :  { %v6081_v20 = vadd.f32 %v16248_v18, %v5872_v8  ;;  %v16252_v18 = vld [vmem:[#allocation120_spill] sm:$0xff] }
 0xb10   :  { %v6290_v42 = vadd.f32 %v13357_v1, %v6081_v20  ;;  %5921 = vmatmul.f32.gmra.mxu2 %v16240_v60  ;;  %6548 = vmatmul.f32.gmra.mxu1 %v16249_v59 }
 0xb11   :  { %6429 = vmatmul.f32.gmra.mxu0 %v13306_v32 }
 0xb12   :  { %v13866_v57 = vadd.f32 %v6498_v5, %v6290_v42  ;;  %v13878_v5 = vpop.f32.mrf.mxu0  ;;  %v4734_v42 = vrot.slane %v13365_v62, 2 }
 0xb13   :  { %v5874_v50 = vpop.f32.mrf.mxu2 }
 0xb14   :  { %16250 = vst [vmem:[#allocation128_spill] sm:$0xff] %v13866_v57  ;;  %v5875_v38 = vadd.f32 %v5874_v50, %v16251_v11  ;;  %6226 = vmatmul.f32.gmra.mxu3 %v7439_v27  ;;  %v4735_v50 = vrot.slane %v13389_v58, 2  ;;  %v16254_v11 = vld [vmem:[#allocation96_spill] sm:$0xff]  ;;  %v13909_v57 = vld [vmem:[#allocation3 + $0x338] sm:$0xff] }
 0xb15   :  { %v6504_v8 = vpop.f32.mrf.mxu1 }
 0xb16   :  { %v6084_v1 = vadd.f32 %v13337_v24, %v5875_v38  ;;  %v7440_v24 = vld [vmem:[#allocation3 + $0x320] sm:$0xff]  ;;  %v13883_v38 = vpop.f32.mrf.mxu3 }
 0xb18   :  { %v6293_v60 = vadd.f32 %v13383_v2, %v6084_v1  ;;  %5924 = vmatmul.f32.gmra.mxu2 %v16245_v6  ;;  %6551 = vmatmul.f32.gmra.mxu1 %v16252_v18  ;;  %v16255_v6 = vld [vmem:[#allocation38_spill] sm:$0xff] }
 0xb19   :  { %6432 = vmatmul.f32.gmra.mxu0 %v13328_v29  ;;  %v4736_v29 = vsel %vm814_vm2, %v4734_v42, %v4735_v50 }
 0xb1a   :  { %v13876_v32 = vadd.f32 %v6501_v48, %v6293_v60  ;;  %v7441_v60 = vld [vmem:[#allocation3 + $0x190] sm:$0x3] }
 0xb1b   :  { %v5877_v20 = vpop.f32.mrf.mxu2 }
 0xb1c   :  { %16253 = vst [vmem:[#allocation103_spill] sm:$0xff] %v13876_v32  ;;  %v5878_v27 = vadd.f32 %v5877_v20, %v16254_v11  ;;  %6229 = vmatmul.f32.gmra.mxu3 %v7440_v24  ;;  %v4737_v20 = vrot.slane %v7441_v60, 2  ;;  %v16257_v11 = vld [vmem:[#allocation111_spill] sm:$0xff]  ;;  %v16261_v60 = vld [vmem:[#allocation109_spill] sm:$0xff] }
 0xb1d   :  { %v6507_v2 = vpop.f32.mrf.mxu1 }
 0xb1e   :  { %v6087_v1 = vadd.f32 %v16255_v6, %v5878_v27  ;;  %v13896_v27 = vpop.f32.mrf.mxu0 }
 0xb20   :  { %v6296_v48 = vadd.f32 %v13416_v7, %v6087_v1  ;;  %5927 = vmatmul.f32.gmra.mxu2 %v16249_v59  ;;  %6554 = vmatmul.f32.gmra.mxu1 %v4736_v29  ;;  %v16258_v7 = vld [vmem:[#allocation50_spill] sm:$0xff]  ;;  %v4738_v59 = vsel %vm814_vm2, %v4735_v50, %v4737_v20  ;;  %v13900_v1 = vpop.f32.mrf.mxu3  ;;  %v16264_v20 = vld [vmem:[#allocation57_spill] sm:$0xff] }
 0xb21   :  { %6435 = vmatmul.f32.gmra.mxu0 %v13349_v56  ;;  %v16259_v56 = vld [vmem:[#allocation63_spill] sm:$0xff] }
 0xb22   :  { %v13890_v62 = vadd.f32 %v6504_v8, %v6296_v48  ;;  %v16260_v48 = vld [vmem:[#allocation51_spill] sm:$0xff] }
 0xb23   :  { %v5880_v58 = vpop.f32.mrf.mxu2 }
 0xb24   :  { %16256 = vst [vmem:[#allocation28_spill] sm:$0xff] %v13890_v62  ;;  %v5881_v24 = vadd.f32 %v5880_v58, %v16257_v11  ;;  %6232 = vmatmul.f32.gmra.mxu3 %v13893_v44  ;;  %v4768_v58 = vrot.slane %v16260_v48, 2  ;;  %v16263_v62 = vld [vmem:[#allocation215_spill] sm:$0xff] }
 0xb25   :  { %v6510_v42 = vpop.f32.mrf.mxu1 }
 0xb26   :  { %v6090_v6 = vadd.f32 %v16258_v7, %v5881_v24  ;;  %v13913_v7 = vpop.f32.mrf.mxu0 }
 0xb28   :  { %v6299_v8 = vadd.f32 %v16259_v56, %v6090_v6  ;;  %5930 = vmatmul.f32.gmra.mxu2 %v16252_v18  ;;  %6557 = vmatmul.f32.gmra.mxu1 %v4738_v59  ;;  %v16265_v6 = vld [vmem:[#allocation59_spill] sm:$0xff] }
 0xb29   :  { %6438 = vmatmul.f32.gmra.mxu0 %v16261_v60  ;;  %v16268_v60 = vld [vmem:[#allocation122_spill] sm:$0xff] }
 0xb2a   :  { %v13906_v11 = vadd.f32 %v6507_v2, %v6299_v8  ;;  %v16266_v2 = vld [vmem:[#allocation74_spill] sm:$0xff]  ;;  %v13918_v8 = vpop.f32.mrf.mxu3 }
 0xb2b   :  { %v5883_v4 = vpop.f32.mrf.mxu2  ;;  %v4771_v56 = vrot.slane %v16266_v2, 2 }
 0xb2c   :  { %16262 = vst [vmem:[#allocation213_spill] sm:$0xff] %v13906_v11  ;;  %v5884_v32 = vadd.f32 %v5883_v4, %v16263_v62  ;;  %6235 = vmatmul.f32.gmra.mxu3 %v13909_v57 }
 0xb2d   :  { %v6513_v50 = vpop.f32.mrf.mxu1 }
 0xb2e   :  { %v6093_v24 = vadd.f32 %v16264_v20, %v5884_v32  ;;  %v4772_v20 = vsel %vm814_vm2, %v4768_v58, %v4771_v56  ;;  %v16273_v56 = vld [vmem:[#allocation72_spill] sm:$0xff] }
 0xb30   :  { %v6302_v18 = vadd.f32 %v13468_v22, %v6093_v24  ;;  %5933 = vmatmul.f32.gmra.mxu2 %v4736_v29  ;;  %6560 = vmatmul.f32.gmra.mxu1 %v4768_v58  ;;  %v13927_v24 = vpop.f32.mrf.mxu0 }
 0xb31   :  { %6441 = vmatmul.f32.gmra.mxu0 %v16265_v6  ;;  %v16270_v6 = vld [vmem:[#allocation66_spill] sm:$0xff] }
 0xb32   :  { %v13920_v4 = vadd.f32 %v6510_v42, %v6302_v18  ;;  %v13932_v2 = vpop.f32.mrf.mxu3 }
 0xb33   :  { %v5886_v62 = vpop.f32.mrf.mxu2 }
 0xb34   :  { %16267 = vst [vmem:[#allocation131_spill] sm:$0xff] %v13920_v4  ;;  %v5887_v11 = vadd.f32 %v5886_v62, %v16268_v60  ;;  %6238 = vmatmul.f32.gmra.mxu3 %v16260_v48  ;;  %v16272_v62 = vld [vmem:[#allocation126_spill] sm:$0xff] }
 0xb35   :  { %v6516_v32 = vpop.f32.mrf.mxu1 }
 0xb36   :  { %v6096_v22 = vadd.f32 %v16269_v13, %v5887_v11  ;;  %v16275_v11 = vld [vmem:[#allocation139_spill] sm:$0xff] }
 0xb38   :  { %v6305_v29 = vadd.f32 %v13485_v31, %v6096_v22  ;;  %5936 = vmatmul.f32.gmra.mxu2 %v4738_v59  ;;  %6563 = vmatmul.f32.gmra.mxu1 %v4772_v20  ;;  %v16274_v59 = vld [vmem:[#allocation132_spill] sm:$0xff] }
 0xb39   :  { %6444 = vmatmul.f32.gmra.mxu0 %v16270_v6  ;;  %v16276_v22 = vld [vmem:[#allocation216_spill] sm:$0xff] }
 0xb3a   :  { %v13930_v42 = vadd.f32 %v6513_v50, %v6305_v29 }
 0xb3b   :  { %v5889_v18 = vpop.f32.mrf.mxu2 }
 0xb3c   :  { %16271 = vst [vmem:[#allocation104_spill] sm:$0xff] %v13930_v42  ;;  %v5890_v60 = vadd.f32 %v5889_v18, %v16272_v62  ;;  %6241 = vmatmul.f32.gmra.mxu3 %v16260_v48  ;;  %v16277_v42 = vld [vmem:[#allocation78_spill] sm:$0xff]  ;;  %v16279_v62 = vld [vmem:[#allocation141_spill] sm:$0xff] }
 0xb3d   :  { %v6519_v58 = vpop.f32.mrf.mxu1  ;;  %v16278_v48 = vld [vmem:[#allocation134_spill] sm:$0xff] }
 0xb3e   :  { %v6099_v13 = vadd.f32 %v16273_v56, %v5890_v60  ;;  %v16280_v56 = vld [vmem:[#allocation217_spill] sm:$0xff] }
 0xb40   :  { %v6308_v31 = vadd.f32 %v13503_v49, %v6099_v13  ;;  %5939 = vmatmul.f32.gmra.mxu2 %v16274_v59  ;;  %6566 = vmatmul.f32.gmra.mxu1 %v16275_v11 }
 0xb42   :  { %v13940_v20 = vadd.f32 %v6516_v32, %v6308_v31 }
 0xb43   :  { %v5892_v50 = vpop.f32.mrf.mxu2 }
 0xb44   :  { %v5893_v29 = vadd.f32 %v5892_v50, %v16276_v22  ;;  %v16281_v50 = vld [vmem:[#allocation146_spill] sm:$0xff] }
 0xb45   :  { %v6522_v6 = vpop.f32.mrf.mxu1 }
 0xb46   :  { %v6102_v4 = vadd.f32 %v16277_v42, %v5893_v29 }
 0xb48   :  { %v6311_v18 = vadd.f32 %v13524_v36, %v6102_v4  ;;  %5942 = vmatmul.f32.gmra.mxu2 %v16278_v48  ;;  %6569 = vmatmul.f32.gmra.mxu1 %v16279_v62  ;;  %v16282_v4 = vld [vmem:[#allocation219_spill] sm:$0xff]  ;;  %v16283_v48 = vld [vmem:[#allocation149_spill] sm:$0xff] }
 0xb4a   :  { %v13947_v60 = vadd.f32 %v6519_v58, %v6311_v18 }
 0xb4b   :  { %v5895_v49 = vpop.f32.mrf.mxu2 }
 0xb4c   :  { %v5896_v13 = vadd.f32 %v5895_v49, %v16280_v56 }
 0xb4d   :  { %v6525_v59 = vpop.f32.mrf.mxu1 }
 0xb4e   :  { %v6105_v32 = vadd.f32 %v13510_v28, %v5896_v13 }
 0xb50   :  { %v6314_v31 = vadd.f32 %v13543_v35, %v6105_v32  ;;  %5945 = vmatmul.f32.gmra.mxu2 %v16275_v11  ;;  %6572 = vmatmul.f32.gmra.mxu1 %v16281_v50  ;;  %v16285_v11 = vld [vmem:[#allocation220_spill] sm:$0xff]  ;;  %v16286_v32 = vld [vmem:[#allocation154_spill] sm:$0xff] }
 0xb52   :  { %v13954_v42 = vadd.f32 %v6522_v6, %v6314_v31 }
 0xb53   :  { %v5898_v36 = vpop.f32.mrf.mxu2 }
 0xb54   :  { %v5899_v22 = vadd.f32 %v5898_v36, %v16282_v4 }
 0xb55   :  { %v6528_v29 = vpop.f32.mrf.mxu1 }
 0xb56   :  { %v6108_v58 = vadd.f32 %v13533_v63, %v5899_v22  ;;  %v16288_v22 = vld [vmem:[#allocation159_spill] sm:$0xff] }
 0xb58   :  { %v6317_v18 = vadd.f32 %v13564_v26, %v6108_v58  ;;  %5948 = vmatmul.f32.gmra.mxu2 %v16279_v62  ;;  %6575 = vmatmul.f32.gmra.mxu1 %v16283_v48  ;;  %v16287_v62 = vld [vmem:[#allocation222_spill] sm:$0xff] }
 0xb5a   :  { %v13961_v28 = vadd.f32 %v6525_v59, %v6317_v18 }
 0xb5b   :  { %v5901_v35 = vpop.f32.mrf.mxu2 }
 0xb5c   :  { %16284 = vst [vmem:[#allocation29_spill] sm:$0xff] %v13961_v28  ;;  %v5902_v49 = vadd.f32 %v5901_v35, %v16285_v11  ;;  %v16290_v11 = vld [vmem:[#allocation164_spill] sm:$0xff] }
 0xb5d   :  { %v6531_v56 = vpop.f32.mrf.mxu1 }
 0xb5e   :  { %v6111_v6 = vadd.f32 %v13550_v54, %v5902_v49 }
 0xb60   :  { %v6320_v13 = vadd.f32 %v13581_v16, %v6111_v6  ;;  %5951 = vmatmul.f32.gmra.mxu2 %v16281_v50  ;;  %6578 = vmatmul.f32.gmra.mxu1 %v16286_v32  ;;  %v16289_v50 = vld [vmem:[#allocation223_spill] sm:$0xff] }
 0xb62   :  { %v13968_v63 = vadd.f32 %v6528_v29, %v6320_v13 }
 0xb63   :  { %v5904_v26 = vpop.f32.mrf.mxu2 }
 0xb64   :  { %v5905_v31 = vadd.f32 %v5904_v26, %v16287_v62  ;;  %v16292_v26 = vld [vmem:[#allocation169_spill] sm:$0xff] }
 0xb65   :  { %v6534_v36 = vpop.f32.mrf.mxu1 }
 0xb66   :  { %v6114_v59 = vadd.f32 %v13569_v25, %v5905_v31 }
 0xb68   :  { %v6323_v4 = vadd.f32 %v13600_v53, %v6114_v59  ;;  %5954 = vmatmul.f32.gmra.mxu2 %v16283_v48  ;;  %6581 = vmatmul.f32.gmra.mxu1 %v16288_v22  ;;  %v16291_v48 = vld [vmem:[#allocation225_spill] sm:$0xff] }
 0xb6a   :  { %v13975_v54 = vadd.f32 %v6531_v56, %v6323_v4  ;;  %v16295_v4 = vld [vmem:[#allocation98_spill] sm:$0xff] }
 0xb6b   :  { %v5907_v16 = vpop.f32.mrf.mxu2 }
 0xb6c   :  { %v5908_v58 = vadd.f32 %v5907_v16, %v16289_v50  ;;  %v16296_v50 = vld [vmem:[#allocation174_spill] sm:$0xff] }
 0xb6d   :  { %v6537_v18 = vpop.f32.mrf.mxu1 }
 0xb6e   :  { %v6117_v29 = vadd.f32 %v13587_v43, %v5908_v58 }
 0xb70   :  { %v6326_v35 = vadd.f32 %v13619_v9, %v6117_v29  ;;  %5957 = vmatmul.f32.gmra.mxu2 %v16286_v32  ;;  %6584 = vmatmul.f32.gmra.mxu1 %v16290_v11  ;;  %v16293_v32 = vld [vmem:[#allocation228_spill] sm:$0xff] }
 0xb72   :  { %v13982_v25 = vadd.f32 %v6534_v36, %v6326_v35  ;;  %v16294_v36 = vld [vmem:[#allocation54_spill] sm:$0xff] }
 0xb73   :  { %v5910_v53 = vpop.f32.mrf.mxu2 }
 0xb74   :  { %v5911_v49 = vadd.f32 %v5910_v53, %v16291_v48  ;;  %v16300_v53 = vld [vmem:[#allocation23_spill] sm:$0xff] }
 0xb75   :  { %v6540_v6 = vpop.f32.mrf.mxu1 }
 0xb76   :  { %v6120_v56 = vadd.f32 %v13609_v51, %v5911_v49  ;;  %v16301_v49 = vld [vmem:[#allocation179_spill] sm:$0xff] }
 0xb78   :  { %v6329_v13 = vadd.f32 %v13642_v41, %v6120_v56  ;;  %5960 = vmatmul.f32.gmra.mxu2 %v16288_v22  ;;  %6587 = vmatmul.f32.gmra.mxu1 %v16292_v26  ;;  %v16298_v22 = vld [vmem:[#allocation161_spill] sm:$0xff] }
 0xb7a   :  { %v13989_v43 = vadd.f32 %v6537_v18, %v6329_v13  ;;  %v16299_v18 = vld [vmem:[#allocation22_spill] sm:$0xff] }
 0xb7b   :  { %v5913_v9 = vpop.f32.mrf.mxu2 }
 0xb7c   :  { %v5914_v62 = vadd.f32 %v5913_v9, %v16293_v32 }
 0xb7d   :  { %v6543_v31 = vpop.f32.mrf.mxu1 }
 0xb7e   :  { %v6123_v59 = vadd.f32 %v16294_v36, %v5914_v62  ;;  %v16304_v36 = vld [vmem:[#allocation60_spill] sm:$0xff] }
 0xb80   :  { %v6332_v16 = vadd.f32 %v16295_v4, %v6123_v59  ;;  %5963 = vmatmul.f32.gmra.mxu2 %v16290_v11  ;;  %6590 = vmatmul.f32.gmra.mxu1 %v16296_v50  ;;  %v16302_v11 = vld [vmem:[#allocation230_spill] sm:$0xff]  ;;  %v16305_v4 = vld [vmem:[#allocation185_spill] sm:$0xff] }
 0xb82   :  { %v13996_v51 = vadd.f32 %v6540_v6, %v6332_v16  ;;  %v16303_v6 = vld [vmem:[#allocation61_spill] sm:$0xff] }
 0xb83   :  { %v5916_v41 = vpop.f32.mrf.mxu2 }
 0xb84   :  { %16297 = vst [vmem:[#allocation102_spill] sm:$0xff] %v13996_v51  ;;  %v5917_v58 = vadd.f32 %v5916_v41, %v16298_v22 }
 0xb85   :  { %v6546_v29 = vpop.f32.mrf.mxu1 }
 0xb86   :  { %v6126_v35 = vadd.f32 %v16299_v18, %v5917_v58 }
 0xb88   :  { %v6335_v48 = vadd.f32 %v16300_v53, %v6126_v35  ;;  %5966 = vmatmul.f32.gmra.mxu2 %v16292_v26  ;;  %6593 = vmatmul.f32.gmra.mxu1 %v16301_v49  ;;  %v16307_v26 = vld [vmem:[#allocation171_spill] sm:$0xff] }
 0xb89   :  { %v16309_v53 = vld [vmem:[#allocation191_spill] sm:$0xff] }
 0xb8a   :  { %v14003_v56 = vadd.f32 %v6543_v31, %v6335_v48  ;;  %v16308_v31 = vld [vmem:[#allocation112_spill] sm:$0xff] }
 0xb8b   :  { %v5919_v13 = vpop.f32.mrf.mxu2 }
 0xb8c   :  { %v5920_v9 = vadd.f32 %v5919_v13, %v16302_v11 }
 0xb8d   :  { %v6549_v32 = vpop.f32.mrf.mxu1 }
 0xb8e   :  { %v6129_v62 = vadd.f32 %v16303_v6, %v5920_v9 }
 0xb90   :  { %v6338_v59 = vadd.f32 %v16304_v36, %v6129_v62  ;;  %5969 = vmatmul.f32.gmra.mxu2 %v16296_v50  ;;  %6596 = vmatmul.f32.gmra.mxu1 %v16305_v4  ;;  %v16311_v50 = vld [vmem:[#allocation232_spill] sm:$0xff]  ;;  %v16312_v62 = vld [vmem:[#allocation195_spill] sm:$0xff] }
 0xb92   :  { %v14010_v16 = vadd.f32 %v6546_v29, %v6338_v59 }
 0xb93   :  { %v5922_v41 = vpop.f32.mrf.mxu2 }
 0xb94   :  { %16306 = vst [vmem:[#allocation133_spill] sm:$0xff] %v14010_v16  ;;  %v5923_v22 = vadd.f32 %v5922_v41, %v16307_v26 }
 0xb95   :  { %v6552_v58 = vpop.f32.mrf.mxu1 }
 0xb96   :  { %v6132_v18 = vadd.f32 %v16308_v31, %v5923_v22  ;;  %v16315_v22 = vld [vmem:[#allocation199_spill] sm:$0xff] }
 0xb98   :  { %v6341_v35 = vadd.f32 %v13728_v23, %v6132_v18  ;;  %5972 = vmatmul.f32.gmra.mxu2 %v16301_v49  ;;  %6599 = vmatmul.f32.gmra.mxu1 %v16309_v53  ;;  %v16314_v49 = vld [vmem:[#allocation175_spill] sm:$0xff] }
 0xb9a   :  { %v14017_v48 = vadd.f32 %v6549_v32, %v6341_v35 }
 0xb9b   :  { %v5925_v13 = vpop.f32.mrf.mxu2 }
 0xb9c   :  { %16310 = vst [vmem:[#allocation110_spill] sm:$0xff] %v14017_v48  ;;  %v5926_v11 = vadd.f32 %v5925_v13, %v16311_v50  ;;  %v16318_v13 = vld [vmem:[#allocation203_spill] sm:$0xff] }
 0xb9d   :  { %v6555_v9 = vpop.f32.mrf.mxu1 }
 0xb9e   :  { %v6135_v29 = vadd.f32 %v13710_v10, %v5926_v11 }
 0xba0   :  { %v6344_v6 = vadd.f32 %v13750_v34, %v6135_v29  ;;  %5975 = vmatmul.f32.gmra.mxu2 %v16305_v4  ;;  %6602 = vmatmul.f32.gmra.mxu1 %v16312_v62  ;;  %v16317_v4 = vld [vmem:[#allocation233_spill] sm:$0xff] }
 0xba2   :  { %v14024_v36 = vadd.f32 %v6552_v58, %v6344_v6  ;;  %v16321_v6 = vld [vmem:[#allocation207_spill] sm:$0xff] }
 0xba3   :  { %v5928_v23 = vpop.f32.mrf.mxu2 }
 0xba4   :  { %16313 = vst [vmem:[#allocation30_spill] sm:$0xff] %v14024_v36  ;;  %v5929_v59 = vadd.f32 %v5928_v23, %v16314_v49 }
 0xba5   :  { %v6558_v41 = vpop.f32.mrf.mxu1 }
 0xba6   :  { %v6138_v32 = vadd.f32 %v13732_v61, %v5929_v59 }
 0xba8   :  { %v6347_v26 = vadd.f32 %v13771_v37, %v6138_v32  ;;  %5978 = vmatmul.f32.gmra.mxu2 %v16309_v53  ;;  %6605 = vmatmul.f32.gmra.mxu1 %v16315_v22  ;;  %v16320_v53 = vld [vmem:[#allocation192_spill] sm:$0xff] }
 0xba9   :  { %v16324_v32 = vld [vmem:[#allocation44_spill] sm:$0xff] }
 0xbaa   :  { %v14031_v10 = vadd.f32 %v6555_v9, %v6347_v26  ;;  %v6376_v26 = vpop.f32.mrf.mxu0 }
 0xbab   :  { %v5931_v34 = vpop.f32.mrf.mxu2 }
 0xbac   :  { %16316 = vst [vmem:[#allocation117_spill] sm:$0xff] %v14031_v10  ;;  %v5932_v31 = vadd.f32 %v5931_v34, %v16317_v4 }
 0xbad   :  { %v6561_v18 = vpop.f32.mrf.mxu1 }
 0xbae   :  { %v6141_v58 = vadd.f32 %v13756_v0, %v5932_v31 }
 0xbb0   :  { %v6350_v35 = vadd.f32 %v13797_v46, %v6141_v58  ;;  %5981 = vmatmul.f32.gmra.mxu2 %v16312_v62  ;;  %6608 = vmatmul.f32.gmra.mxu1 %v16318_v13  ;;  %v16323_v62 = vld [vmem:[#allocation235_spill] sm:$0xff] }
 0xbb2   :  { %v14038_v61 = vadd.f32 %v6558_v41, %v6350_v35  ;;  %v16329_v35 = vld [vmem:[#allocation34_spill] sm:$0xff] }
 0xbb3   :  { %v5934_v37 = vpop.f32.mrf.mxu2 }
 0xbb4   :  { %16319 = vst [vmem:[#allocation138_spill] sm:$0xff] %v14038_v61  ;;  %v5935_v50 = vadd.f32 %v5934_v37, %v16320_v53  ;;  %v6379_v53 = vpop.f32.mrf.mxu0 }
 0xbb5   :  { %v6564_v11 = vpop.f32.mrf.mxu1 }
 0xbb6   :  { %v6144_v9 = vadd.f32 %v13783_v19, %v5935_v50 }
 0xbb8   :  { %v6353_v29 = vadd.f32 %v13821_v21, %v6144_v9  ;;  %5984 = vmatmul.f32.gmra.mxu2 %v16315_v22  ;;  %6611 = vmatmul.f32.gmra.mxu1 %v16321_v6  ;;  %v16326_v22 = vld [vmem:[#allocation21_spill] sm:$0xff] }
 0xbba   :  { %v14045_v0 = vadd.f32 %v6561_v18, %v6353_v29 }
 0xbbb   :  { %v5937_v46 = vpop.f32.mrf.mxu2 }
 0xbbc   :  { %16322 = vst [vmem:[#allocation118_spill] sm:$0xff] %v14045_v0  ;;  %v5938_v23 = vadd.f32 %v5937_v46, %v16323_v62 }
 0xbbd   :  { %v6567_v49 = vpop.f32.mrf.mxu1 }
 0xbbe   :  { %v6147_v59 = vadd.f32 %v13806_v40, %v5938_v23  ;;  %v16327_v40 = vld [vmem:[#allocation212_spill] sm:$0xff] }
 0xbc0   :  { %v6356_v41 = vadd.f32 %v13835_v17, %v6147_v59  ;;  %5987 = vmatmul.f32.gmra.mxu2 %v16318_v13  ;;  %6614 = vmatmul.f32.gmra.mxu1 %v16324_v32 }
 0xbc2   :  { %v14052_v19 = vadd.f32 %v6564_v11, %v6356_v41 }
 0xbc3   :  { %v5940_v21 = vpop.f32.mrf.mxu2 }
 0xbc4   :  { %16325 = vst [vmem:[#allocation19_spill] sm:$0xff] %v14052_v19  ;;  %v5941_v34 = vadd.f32 %v5940_v21, %v16326_v22  ;;  %v16335_v21 = vld [vmem:[#allocation82_spill] sm:$0xff] }
 0xbc5   :  { %v6570_v4 = vpop.f32.mrf.mxu1 }
 0xbc6   :  { %v6150_v31 = vadd.f32 %v13825_v33, %v5941_v34  ;;  %v16330_v33 = vld [vmem:[#allocation56_spill] sm:$0xff] }
 0xbc8   :  { %v6359_v18 = vadd.f32 %v13848_v15, %v6150_v31  ;;  %5990 = vmatmul.f32.gmra.mxu2 %v16321_v6  ;;  %6617 = vmatmul.f32.gmra.mxu1 %v16327_v40  ;;  %v14066_v15 = vpop.f32.mrf.mxu3  ;;  %v16332_v6 = vld [vmem:[#allocation205_spill] sm:$0xff] }
 0xbca   :  { %v14059_v17 = vadd.f32 %v6567_v49, %v6359_v18  ;;  %v6382_v49 = vpop.f32.mrf.mxu0 }
 0xbcb   :  { %v5943_v58 = vpop.f32.mrf.mxu2 }
 0xbcc   :  { %16328 = vst [vmem:[#allocation116_spill] sm:$0xff] %v14059_v17  ;;  %v5944_v13 = vadd.f32 %v5943_v58, %v16329_v35  ;;  %v16338_v58 = vld [vmem:[#allocation208_spill] sm:$0xff] }
 0xbcd   :  { %v6573_v37 = vpop.f32.mrf.mxu1 }
 0xbce   :  { %v6153_v50 = vadd.f32 %v13838_v12, %v5944_v13  ;;  %v16333_v12 = vld [vmem:[#allocation10_spill] sm:$0xff] }
 0xbd0   :  { %v6362_v11 = vadd.f32 %v13863_v55, %v6153_v50  ;;  %5993 = vmatmul.f32.gmra.mxu2 %v16324_v32  ;;  %6620 = vmatmul.f32.gmra.mxu1 %v16330_v33  ;;  %v6176_v41 = vpop.f32.mrf.mxu3 }
 0xbd2   :  { %v14068_v9 = vadd.f32 %v6570_v4, %v6362_v11 }
 0xbd3   :  { %v5946_v29 = vpop.f32.mrf.mxu2 }
 0xbd4   :  { %16331 = vst [vmem:[#allocation140_spill] sm:$0xff] %v14068_v9  ;;  %v5947_v46 = vadd.f32 %v5946_v29, %v16332_v6  ;;  %v16341_v6 = vld [vmem:[#allocation209_spill] sm:$0xff] }
 0xbd5   :  { %v6576_v62 = vpop.f32.mrf.mxu1 }
 0xbd6   :  { %v6156_v23 = vadd.f32 %v13854_v3, %v5947_v46  ;;  %v16336_v3 = vld [vmem:[#allocation14_spill] sm:$0xff] }
 0xbd8   :  { %v6365_v59 = vadd.f32 %v13878_v5, %v6156_v23  ;;  %5996 = vmatmul.f32.gmra.mxu2 %v16327_v40  ;;  %6623 = vmatmul.f32.gmra.mxu1 %v16333_v12  ;;  %v6385_v5 = vpop.f32.mrf.mxu0  ;;  %v6179_v13 = vpop.f32.mrf.mxu3 }
 0xbda   :  { %v14075_v55 = vadd.f32 %v6573_v37, %v6365_v59 }
 0xbdb   :  { %v5949_v32 = vpop.f32.mrf.mxu2 }
 0xbdc   :  { %16334 = vst [vmem:[#allocation123_spill] sm:$0xff] %v14075_v55  ;;  %v5950_v22 = vadd.f32 %v5949_v32, %v16335_v21  ;;  %v16344_v21 = vld [vmem:[#allocation45_spill] sm:$0xff] }
 0xbdd   :  { %v6579_v34 = vpop.f32.mrf.mxu1 }
 0xbde   :  { %v6159_v4 = vadd.f32 %v13868_v30, %v5950_v22  ;;  %v16339_v30 = vld [vmem:[#allocation88_spill] sm:$0xff] }
 0xbe0   :  { %v6368_v31 = vadd.f32 %v13896_v27, %v6159_v4  ;;  %5999 = vmatmul.f32.gmra.mxu2 %v16330_v33  ;;  %6626 = vmatmul.f32.gmra.mxu1 %v16336_v3  ;;  %v6388_v29 = vpop.f32.mrf.mxu0  ;;  %v6182_v59 = vpop.f32.mrf.mxu3 }
 0xbe2   :  { %v14082_v18 = vadd.f32 %v6576_v62, %v6368_v31 }
 0xbe3   :  { %v5952_v40 = vpop.f32.mrf.mxu2 }
 0xbe4   :  { %16337 = vst [vmem:[#allocation20_spill] sm:$0xff] %v14082_v18  ;;  %v5953_v35 = vadd.f32 %v5952_v40, %v16338_v58 }
 0xbe5   :  { %v6582_v37 = vpop.f32.mrf.mxu1 }
 0xbe6   :  { %v6162_v50 = vadd.f32 %v13883_v38, %v5953_v35  ;;  %v16342_v38 = vld [vmem:[#allocation41_spill] sm:$0xff]  ;;  %v16347_v35 = vld [vmem:[#allocation95_spill] sm:$0xff] }
 0xbe8   :  { %v6371_v11 = vadd.f32 %v13913_v7, %v6162_v50  ;;  %6002 = vmatmul.f32.gmra.mxu2 %v16333_v12  ;;  %6629 = vmatmul.f32.gmra.mxu1 %v16339_v30  ;;  %v6391_v4 = vpop.f32.mrf.mxu0  ;;  %v6185_v58 = vpop.f32.mrf.mxu3 }
 0xbea   :  { %v14089_v27 = vadd.f32 %v6579_v34, %v6371_v11 }
 0xbeb   :  { %v5955_v33 = vpop.f32.mrf.mxu2 }
 0xbec   :  { %16340 = vst [vmem:[#allocation121_spill] sm:$0xff] %v14089_v27  ;;  %v5956_v46 = vadd.f32 %v5955_v33, %v16341_v6 }
 0xbed   :  { %v6585_v62 = vpop.f32.mrf.mxu1 }
 0xbee   :  { %v6165_v23 = vadd.f32 %v13900_v1, %v5956_v46  ;;  %v16345_v1 = vld [vmem:[#allocation47_spill] sm:$0xff]  ;;  %v16348_v46 = vld [vmem:[#allocation53_spill] sm:$0xff] }
 0xbf0   :  { %v6374_v32 = vadd.f32 %v13927_v24, %v6165_v23  ;;  %6005 = vmatmul.f32.gmra.mxu2 %v16336_v3  ;;  %6632 = vmatmul.f32.gmra.mxu1 %v16342_v38  ;;  %v6394_v33 = vpop.f32.mrf.mxu0  ;;  %v16350_v23 = vld [vmem:[#allocation67_spill] sm:$0xff] }
 0xbf2   :  { %v14096_v7 = vadd.f32 %v6582_v37, %v6374_v32 }
 0xbf3   :  { %v5958_v12 = vpop.f32.mrf.mxu2 }
 0xbf4   :  { %16343 = vst [vmem:[#allocation145_spill] sm:$0xff] %v14096_v7  ;;  %v5959_v22 = vadd.f32 %v5958_v12, %v16344_v21 }
 0xbf5   :  { %v6588_v34 = vpop.f32.mrf.mxu1 }
 0xbf6   :  { %v6168_v31 = vadd.f32 %v13918_v8, %v5959_v22 }
 0xbf8   :  { %v6377_v40 = vadd.f32 %v6376_v26, %v6168_v31  ;;  %6008 = vmatmul.f32.gmra.mxu2 %v16339_v30  ;;  %6635 = vmatmul.f32.gmra.mxu1 %v16345_v1  ;;  %v14110_v26 = vpop.f32.mrf.mxu3  ;;  %v16353_v31 = vld [vmem:[#allocation64_spill] sm:$0xff] }
 0xbfa   :  { %v14102_v24 = vadd.f32 %v6585_v62, %v6377_v40 }
 0xbfb   :  { %v5961_v3 = vpop.f32.mrf.mxu2 }
 0xbfc   :  { %16346 = vst [vmem:[#allocation127_spill] sm:$0xff] %v14102_v24  ;;  %v5962_v50 = vadd.f32 %v5961_v3, %v16347_v35 }
 0xbfd   :  { %v6591_v37 = vpop.f32.mrf.mxu1 }
 0xbfe   :  { %v6171_v11 = vadd.f32 %v13932_v2, %v5962_v50  ;;  %v16351_v2 = vld [vmem:[#allocation115_spill] sm:$0xff] }
 0xc00   :  { %v6380_v6 = vadd.f32 %v6379_v53, %v6171_v11  ;;  %6011 = vmatmul.f32.gmra.mxu2 %v16342_v38  ;;  %6638 = vmatmul.f32.gmra.mxu1 %v16348_v46  ;;  %v6397_v53 = vpop.f32.mrf.mxu0  ;;  %v14119_v40 = vpop.f32.mrf.mxu3  ;;  %v16354_v11 = vld [vmem:[#allocation68_spill] sm:$0xff] }
 0xc02   :  { %v14108_v8 = vadd.f32 %v6588_v34, %v6380_v6  ;;  %v16356_v6 = vld [vmem:[#allocation81_spill] sm:$0xff] }
 0xc03   :  { %v5964_v30 = vpop.f32.mrf.mxu2 }
 0xc04   :  { %16349 = vst [vmem:[#allocation15_spill] sm:$0xff] %v14108_v8  ;;  %v5965_v62 = vadd.f32 %v5964_v30, %v16350_v23 }
 0xc05   :  { %v6594_v32 = vpop.f32.mrf.mxu1 }
 0xc06   :  { %v6174_v12 = vadd.f32 %v14066_v15, %v5965_v62 }
 0xc08   :  { %v6383_v21 = vadd.f32 %v6382_v49, %v6174_v12  ;;  %6014 = vmatmul.f32.gmra.mxu2 %v16345_v1  ;;  %6641 = vmatmul.f32.gmra.mxu1 %v16351_v2  ;;  %v6400_v1 = vpop.f32.mrf.mxu0  ;;  %v14126_v62 = vpop.f32.mrf.mxu3 }
 0xc0a   :  { %v14116_v22 = vadd.f32 %v6591_v37, %v6383_v21  ;;  %v16357_v21 = vld [vmem:[#allocation84_spill] sm:$0xff] }
 0xc0b   :  { %v5967_v38 = vpop.f32.mrf.mxu2 }
 0xc0c   :  { %16352 = vst [vmem:[#allocation125_spill] sm:$0xff] %v14116_v22  ;;  %v5968_v34 = vadd.f32 %v5967_v38, %v16353_v31  ;;  %v4740_v31 = vrot.slane %v13909_v57, 2 }
 0xc0d   :  { %v6597_v3 = vpop.f32.mrf.mxu1 }
 0xc0e   :  { %v6177_v35 = vadd.f32 %v6176_v41, %v5968_v34  ;;  %v16359_v34 = vld [vmem:[#allocation37_spill] sm:$0xff] }
 0xc10   :  { %v6386_v50 = vadd.f32 %v6385_v5, %v6177_v35  ;;  %6017 = vmatmul.f32.gmra.mxu2 %v16348_v46  ;;  %6644 = vmatmul.f32.gmra.mxu1 %v16354_v11  ;;  %v7444_v5 = vld [vmem:[#allocation3] sm:$0xff] }
 0xc11   :  { %v4759_v46 = vrot.slane %v7444_v5, 1 }
 0xc12   :  { %v14123_v15 = vadd.f32 %v6594_v32, %v6386_v50  ;;  %v4739_v32 = vrot.slane %v13893_v44, 2 }
 0xc13   :  { %v5970_v49 = vpop.f32.mrf.mxu2  ;;  %6447 = vmatmul.f32.gmra.mxu0 %v4759_v46 }
 0xc14   :  { %16355 = vst [vmem:[#allocation152_spill] sm:$0xff] %v14123_v15  ;;  %v5971_v30 = vadd.f32 %v5970_v49, %v16356_v6 }
 0xc15   :  { %v6600_v37 = vpop.f32.mrf.mxu1 }
 0xc16   :  { %v6180_v23 = vadd.f32 %v6179_v13, %v5971_v30  ;;  %v14135_v13 = vpop.f32.mrf.mxu0  ;;  %v7445_v30 = vld [vmem:[#allocation3 + $0x340] sm:$0x3] }
 0xc17   :  { %v4742_v57 = vrot.slane %v7445_v30, 2 }
 0xc18   :  { %v6389_v12 = vadd.f32 %v6388_v29, %v6180_v23  ;;  %6020 = vmatmul.f32.gmra.mxu2 %v16351_v2  ;;  %6647 = vmatmul.f32.gmra.mxu1 %v16357_v21  ;;  %v4741_v29 = vsel %vm814_vm2, %v4739_v32, %v4740_v31  ;;  %v16361_v23 = vld [vmem:[#allocation79_spill] sm:$0xff]  ;;  %v4773_v32 = vrot.slane %v7444_v5, 2  ;;  %v16362_v5 = vld [vmem:[#allocation36_spill] sm:$0xff] }
 0xc1a   :  { %v14130_v41 = vadd.f32 %v6597_v3, %v6389_v12  ;;  %v14139_v3 = vpop.f32.mrf.mxu3 }
 0xc1b   :  { %v5973_v38 = vpop.f32.mrf.mxu2 }
 0xc1c   :  { %16358 = vst [vmem:[#allocation148_spill] sm:$0xff] %v14130_v41  ;;  %v5974_v35 = vadd.f32 %v5973_v38, %v16359_v34  ;;  %v4025_v41 = vld [vmem:[#allocation3 + $0x358] sm:$0x3] }
 0xc1d   :  { %v6603_v50 = vpop.f32.mrf.mxu1 }
 0xc1e   :  { %v6183_v49 = vadd.f32 %v6182_v59, %v5974_v35  ;;  %v4743_v59 = vsel %vm814_vm2, %v4740_v31, %v4742_v57  ;;  %v4776_v35 = vrot.slane %v4025_v41, 2 }
 0xc20   :  { %v6392_v2 = vadd.f32 %v6391_v4, %v6183_v49  ;;  %6023 = vmatmul.f32.gmra.mxu2 %v16354_v11  ;;  %6650 = vmatmul.f32.gmra.mxu1 %v4741_v29  ;;  %v4762_v4 = vrot.slane %v4025_v41, 1  ;;  %v14145_v49 = vpop.f32.mrf.mxu0 }
 0xc22   :  { %v14141_v6 = vadd.f32 %v6600_v37, %v6392_v2  ;;  %v4777_v37 = vsel %vm814_vm2, %v4773_v32, %v4776_v35  ;;  %v4763_v2 = vsel %vm461_vm1, %v4759_v46, %v4762_v4 }
 0xc23   :  { %v5976_v44 = vpop.f32.mrf.mxu2  ;;  %6659 = vmatmul.f32.vlgmr.msrb.gmra.mxu3 %v4777_v37  ;;  %6450 = vmatmul.f32.gmra.mxu0 %v4763_v2 }
 0xc24   :  { %16360 = vst [vmem:[#allocation130_spill] sm:$0xff] %v14141_v6  ;;  %v5977_v12 = vadd.f32 %v5976_v44, %v16361_v23 }
 0xc25   :  { %v6606_v38 = vpop.f32.mrf.mxu1 }
 0xc26   :  { %v6186_v34 = vadd.f32 %v6185_v58, %v5977_v12  ;;  %v14152_v58 = vpop.f32.mrf.mxu3 }
 0xc28   :  { %v6395_v11 = vadd.f32 %v6394_v33, %v6186_v34  ;;  %6026 = vmatmul.f32.gmra.mxu2 %v16357_v21  ;;  %6653 = vmatmul.f32.gmra.mxu1 %v4743_v59  ;;  %v14156_v21 = vpop.f32.mrf.mxu0 }
 0xc2a   :  { %v14150_v30 = vadd.f32 %v6603_v50, %v6395_v11  ;;  %v16363_v50 = vld [vmem:[#allocation43_spill] sm:$0xff]  ;;  %v6735_v11 = vmul.f32 %v13745_v14, %v13745_v14 }
 0xc2b   :  { %v5979_v31 = vpop.f32.mrf.mxu2 }
 0xc2c   :  { %v5980_v44 = vadd.f32 %v5979_v31, %v16362_v5 }
 0xc2d   :  { %v6609_v41 = vpop.f32.mrf.mxu1 }
 0xc2e   :  { %v6189_v57 = vadd.f32 %v14110_v26, %v5980_v44  ;;  %v14161_v34 = vpop.f32.mrf.mxu3  ;;  %v16364_v26 = vld [vmem:[#allocation70_spill] sm:$0xff]  ;;  %v16367_v44 = vld [vmem:[#allocation119_spill] sm:$0xff] }
 0xc2f   :  { %v6665_v31 = vadd.f32 %v13745_v14, %v16364_v26 }
 0xc30   :  { %v6398_v33 = vadd.f32 %v6397_v53, %v6189_v57  ;;  %6029 = vmatmul.f32.gmra.mxu2 %v4741_v29  ;;  %6656 = vmatmul.f32.gmra.mxu1 %v4773_v32  ;;  %v6734_v53 = vmul.f32 %v16364_v26, %v16364_v26  ;;  %v16365_v29 = vld [vmem:[#allocation25_spill] sm:$0xff]  ;;  %v14176_v57 = vpop.f32.mrf.mxu0 }
 0xc32   :  { %v14158_v23 = vadd.f32 %v6606_v38, %v6398_v33  ;;  %v6736_v38 = vmul.f32 %v16365_v29, %v16365_v29  ;;  %v6798_v5 = vadd.f32 %v6735_v11, %v6734_v53  ;;  %v6739_v53 = vmul.f32 %v13819_v45, %v13819_v45 }
 0xc33   :  { %v5982_v46 = vpop.f32.mrf.mxu2 }
 0xc34   :  { %v5983_v12 = vadd.f32 %v5982_v46, %v16363_v50  ;;  %v6666_v46 = vadd.f32 %v6665_v31, %v16365_v29  ;;  %v6799_v50 = vadd.f32 %v6798_v5, %v6736_v38  ;;  %v6740_v38 = vmul.f32 %v13832_v47, %v13832_v47 }
 0xc35   :  { %v6612_v35 = vpop.f32.mrf.mxu1 }
 0xc36   :  { %v6192_v4 = vadd.f32 %v14119_v40, %v5983_v12  ;;  %v6737_v40 = vmul.f32 %v16367_v44, %v16367_v44  ;;  %v6667_v11 = vadd.f32 %v6666_v46, %v16367_v44  ;;  %v16369_v46 = vld [vmem:[#allocation48_spill] sm:$0xff] }
 0xc38   :  { %v6401_v37 = vadd.f32 %v6400_v1, %v6192_v4  ;;  %6032 = vmatmul.f32.gmra.mxu2 %v4743_v59  ;;  %v16368_v1 = vld [vmem:[#allocation86_spill] sm:$0xff]  ;;  %v14183_v4 = vpop.f32.mrf.mxu3 }
 0xc3a   :  { %v14170_v32 = vadd.f32 %v6609_v41, %v6401_v37  ;;  %v6738_v41 = vmul.f32 %v13803_v39, %v13803_v39  ;;  %v6800_v37 = vadd.f32 %v6799_v50, %v6737_v40  ;;  %v6741_v40 = vmul.f32 %v13844_v52, %v13844_v52 }
 0xc3b   :  { %v5985_v2 = vpop.f32.mrf.mxu2 }
 0xc3c   :  { %16366 = vst [vmem:[#allocation13_spill] sm:$0xff] %v14170_v32  ;;  %v5986_v59 = vadd.f32 %v5985_v2, %v16368_v1  ;;  %v6668_v2 = vadd.f32 %v6667_v11, %v13803_v39  ;;  %v6801_v1 = vadd.f32 %v6800_v37, %v6738_v41  ;;  %v16370_v11 = vld [vmem:[#allocation97_spill] sm:$0xff]  ;;  %v14201_v37 = vpop.f32.mrf.mxu0 }
 0xc3d   :  { %v6615_v33 = vpop.f32.mrf.mxu1  ;;  %v6742_v41 = vmul.f32 %v16370_v11, %v16370_v11 }
 0xc3e   :  { %v6195_v12 = vadd.f32 %v14126_v62, %v5986_v59  ;;  %v6669_v62 = vadd.f32 %v6668_v2, %v13819_v45  ;;  %v6802_v59 = vadd.f32 %v6801_v1, %v6739_v53  ;;  %v16371_v53 = vld [vmem:[#allocation128_spill] sm:$0xff] }
 0xc3f   :  { %v6743_v1 = vmul.f32 %v16371_v53, %v16371_v53 }
 0xc40   :  { %v6404_v14 = vadd.f32 %v14135_v13, %v6195_v12  ;;  %v6670_v13 = vadd.f32 %v6669_v62, %v13832_v47  ;;  %v6803_v12 = vadd.f32 %v6802_v59, %v6740_v38  ;;  %v16372_v59 = vld [vmem:[#allocation103_spill] sm:$0xff] }
 0xc42   :  { %v14192_v31 = vadd.f32 %v6612_v35, %v6404_v14  ;;  %v6671_v35 = vadd.f32 %v6670_v13, %v13844_v52  ;;  %v6804_v2 = vadd.f32 %v6803_v12, %v6741_v40  ;;  %v16373_v40 = vld [vmem:[#allocation28_spill] sm:$0xff] }
 0xc43   :  { %v5988_v5 = vpop.f32.mrf.mxu2  ;;  %v6745_v13 = vmul.f32 %v16373_v40, %v16373_v40  ;;  %v16374_v12 = vld [vmem:[#allocation16_spill] sm:$0xff] }
 0xc44   :  { %v5989_v50 = vadd.f32 %v5988_v5, %v16369_v46  ;;  %v14208_v5 = vpop.f32.mrf.mxu3  ;;  %v6672_v62 = vadd.f32 %v6671_v35, %v16370_v11  ;;  %v6805_v38 = vadd.f32 %v6804_v2, %v6742_v41  ;;  %v6744_v46 = vmul.f32 %v16372_v59, %v16372_v59  ;;  %v16375_v35 = vld [vmem:[#allocation213_spill] sm:$0xff]  ;;  %v16376_v11 = vld [vmem:[#allocation131_spill] sm:$0xff] }
 0xc45   :  { %v6618_v44 = vpop.f32.mrf.mxu1  ;;  %v6746_v41 = vmul.f32 %v16375_v35, %v16375_v35 }
 0xc46   :  { %v6198_v14 = vadd.f32 %v14139_v3, %v5989_v50  ;;  %v6673_v3 = vadd.f32 %v6672_v62, %v16371_v53  ;;  %v6806_v50 = vadd.f32 %v6805_v38, %v6743_v1  ;;  %v6747_v1 = vmul.f32 %v16376_v11, %v16376_v11  ;;  %v6418_v62 = vpop.f32.mrf.mxu0  ;;  %v16377_v53 = vld [vmem:[#allocation104_spill] sm:$0xff] }
 0xc48   :  { %v6407_v45 = vadd.f32 %v14145_v49, %v6198_v14  ;;  %v6674_v14 = vadd.f32 %v6673_v3, %v16372_v59  ;;  %v6807_v29 = vadd.f32 %v6806_v50, %v6744_v46  ;;  %v6748_v46 = vmul.f32 %v16377_v53, %v16377_v53 }
 0xc4a   :  { %v14213_v47 = vadd.f32 %v6615_v33, %v6407_v45  ;;  %v6675_v45 = vadd.f32 %v6674_v14, %v16373_v40  ;;  %v6808_v33 = vadd.f32 %v6807_v29, %v6745_v13  ;;  %v6749_v13 = vmul.f32 %v13940_v20, %v13940_v20  ;;  %v16378_v14 = vld [vmem:[#allocation18_spill] sm:$0xff] }
 0xc4b   :  { %v5991_v39 = vpop.f32.mrf.mxu2 }
 0xc4c   :  { %v5992_v52 = vadd.f32 %v5991_v39, %v16374_v12  ;;  %v6676_v39 = vadd.f32 %v6675_v45, %v16375_v35  ;;  %v6809_v12 = vadd.f32 %v6808_v33, %v6746_v41  ;;  %v14232_v50 = vpop.f32.mrf.mxu3  ;;  %v6750_v45 = vmul.f32 %v13947_v60, %v13947_v60 }
 0xc4d   :  { %v6621_v49 = vpop.f32.mrf.mxu1 }
 0xc4e   :  { %v6201_v2 = vadd.f32 %v14152_v58, %v5992_v52  ;;  %v6677_v58 = vadd.f32 %v6676_v39, %v16376_v11  ;;  %v6810_v29 = vadd.f32 %v6809_v12, %v6747_v1  ;;  %v6751_v1 = vmul.f32 %v13954_v42, %v13954_v42 }
 0xc50   :  { %v6410_v38 = vadd.f32 %v14156_v21, %v6201_v2  ;;  %v6678_v2 = vadd.f32 %v6677_v58, %v16377_v53  ;;  %v6811_v41 = vadd.f32 %v6810_v29, %v6748_v46  ;;  %v6752_v58 = vmul.f32 %v13961_v28, %v13961_v28  ;;  %v14249_v46 = vpop.f32.mrf.mxu0 }
 0xc52   :  { %v14230_v3 = vadd.f32 %v6618_v44, %v6410_v38  ;;  %v6679_v33 = vadd.f32 %v6678_v2, %v13940_v20  ;;  %v6812_v38 = vadd.f32 %v6811_v41, %v6749_v13  ;;  %v6753_v13 = vmul.f32 %v13968_v63, %v13968_v63  ;;  %v16379_v2 = vld [vmem:[#allocation49_spill] sm:$0xff] }
 0xc53   :  { %v5994_v52 = vpop.f32.mrf.mxu2 }
 0xc54   :  { %v5995_v40 = vadd.f32 %v5994_v52, %v16378_v14  ;;  %v6680_v12 = vadd.f32 %v6679_v33, %v13947_v60  ;;  %v6813_v52 = vadd.f32 %v6812_v38, %v6750_v45 }
 0xc55   :  { %v6624_v21 = vpop.f32.mrf.mxu1 }
 0xc56   :  { %v6204_v44 = vadd.f32 %v14161_v34, %v5995_v40  ;;  %v6681_v34 = vadd.f32 %v6680_v12, %v13954_v42  ;;  %v6814_v40 = vadd.f32 %v6813_v52, %v6751_v1  ;;  %v6755_v12 = vmul.f32 %v13982_v25, %v13982_v25 }
 0xc58   :  { %v6413_v39 = vadd.f32 %v14176_v57, %v6204_v44  ;;  %v14257_v57 = vpop.f32.mrf.mxu3  ;;  %v6682_v45 = vadd.f32 %v6681_v34, %v13961_v28  ;;  %v6815_v33 = vadd.f32 %v6814_v40, %v6752_v58  ;;  %v6756_v34 = vmul.f32 %v13989_v43, %v13989_v43 }
 0xc5a   :  { %v14251_v29 = vadd.f32 %v6621_v49, %v6413_v39  ;;  %v6754_v49 = vmul.f32 %v13975_v54, %v13975_v54  ;;  %v6683_v39 = vadd.f32 %v6682_v45, %v13968_v63  ;;  %v6816_v1 = vadd.f32 %v6815_v33, %v6753_v13  ;;  %v16380_v45 = vld [vmem:[#allocation93_spill] sm:$0xff] }
 0xc5b   :  { %v5997_v14 = vpop.f32.mrf.mxu2  ;;  %v6757_v13 = vmul.f32 %v13996_v51, %v13996_v51 }
 0xc5c   :  { %v5998_v41 = vadd.f32 %v5997_v14, %v16379_v2  ;;  %v6684_v14 = vadd.f32 %v6683_v39, %v13975_v54  ;;  %v6817_v2 = vadd.f32 %v6816_v1, %v6754_v49 }
 0xc5d   :  { %v14259_v44 = vpop.f32.mrf.mxu1 }
 0xc5e   :  { %v6207_v38 = vadd.f32 %v14183_v4, %v5998_v41  ;;  %v6685_v28 = vadd.f32 %v6684_v14, %v13982_v25  ;;  %v6818_v4 = vadd.f32 %v6817_v2, %v6755_v12  ;;  %v14277_v41 = vpop.f32.mrf.mxu0  ;;  %v6759_v14 = vmul.f32 %v14010_v16, %v14010_v16 }
 0xc60   :  { %v6416_v52 = vadd.f32 %v14201_v37, %v6207_v38  ;;  %v6686_v49 = vadd.f32 %v6685_v28, %v13989_v43  ;;  %v6819_v38 = vadd.f32 %v6818_v4, %v6756_v34  ;;  %v14286_v1 = vpop.f32.mrf.mxu3  ;;  %v6760_v28 = vmul.f32 %v14017_v48, %v14017_v48 }
 0xc62   :  { %v14272_v58 = vadd.f32 %v6624_v21, %v6416_v52  ;;  %v6758_v21 = vmul.f32 %v14003_v56, %v14003_v56  ;;  %v6687_v12 = vadd.f32 %v6686_v49, %v13996_v51  ;;  %v6820_v52 = vadd.f32 %v6819_v38, %v6757_v13  ;;  %v16381_v49 = vld [vmem:[#allocation17_spill] sm:$0xff] }
 0xc63   :  { %v6000_v40 = vpop.f32.mrf.mxu2 }
 0xc64   :  { %v6001_v33 = vadd.f32 %v6000_v40, %v16380_v45  ;;  %v6688_v40 = vadd.f32 %v6687_v12, %v14003_v56  ;;  %v6821_v45 = vadd.f32 %v6820_v52, %v6758_v21  ;;  %v6762_v21 = vmul.f32 %v14031_v10, %v14031_v10 }
 0xc65   :  { %v14280_v37 = vpop.f32.mrf.mxu1 }
 0xc66   :  { %v6210_v39 = vadd.f32 %v14208_v5, %v6001_v33  ;;  %v6689_v4 = vadd.f32 %v6688_v40, %v14010_v16  ;;  %v6822_v5 = vadd.f32 %v6821_v45, %v6759_v14  ;;  %v6761_v33 = vmul.f32 %v14024_v36, %v14024_v36  ;;  %v14302_v51 = vpop.f32.mrf.mxu0 }
 0xc67   :  { %v6763_v40 = vmul.f32 %v14038_v61, %v14038_v61 }
 0xc68   :  { %v14291_v2 = vadd.f32 %v6418_v62, %v6210_v39  ;;  %v6690_v62 = vadd.f32 %v6689_v4, %v14017_v48  ;;  %v6823_v39 = vadd.f32 %v6822_v5, %v6760_v28  ;;  %v14313_v45 = vpop.f32.mrf.mxu3  ;;  %v6764_v28 = vmul.f32 %v14045_v0, %v14045_v0 }
 0xc6a   :  { %v6691_v52 = vadd.f32 %v6690_v62, %v14024_v36  ;;  %v6824_v14 = vadd.f32 %v6823_v39, %v6761_v33  ;;  %v6766_v39 = vmul.f32 %v14059_v17, %v14059_v17 }
 0xc6b   :  { %v6003_v34 = vpop.f32.mrf.mxu2 }
 0xc6c   :  { %v6004_v13 = vadd.f32 %v6003_v34, %v16381_v49  ;;  %v6692_v34 = vadd.f32 %v6691_v52, %v14031_v10  ;;  %v6825_v49 = vadd.f32 %v6824_v14, %v6762_v21 }
 0xc6d   :  { %v14300_v38 = vpop.f32.mrf.mxu1 }
 0xc6e   :  { %v14308_v12 = vadd.f32 %v14232_v50, %v6004_v13  ;;  %v6693_v5 = vadd.f32 %v6692_v34, %v14038_v61  ;;  %v6826_v48 = vadd.f32 %v6825_v49, %v6763_v40  ;;  %v6765_v50 = vmul.f32 %v14052_v19, %v14052_v19  ;;  %v14326_v52 = vpop.f32.mrf.mxu0 }
 0xc6f   :  { %v6767_v34 = vmul.f32 %v14068_v9, %v14068_v9  ;;  %v6768_v61 = vmul.f32 %v14075_v55, %v14075_v55 }
 0xc70   :  { %v6694_v33 = vadd.f32 %v6693_v5, %v14045_v0  ;;  %v6827_v62 = vadd.f32 %v6826_v48, %v6764_v28  ;;  %v14334_v10 = vpop.f32.mrf.mxu3  ;;  %v6769_v0 = vmul.f32 %v14082_v18, %v14082_v18 }
 0xc72   :  { %v6695_v21 = vadd.f32 %v6694_v33, %v14052_v19  ;;  %v6828_v14 = vadd.f32 %v6827_v62, %v6765_v50 }
 0xc73   :  { %v6006_v4 = vpop.f32.mrf.mxu2 }
 0xc74   :  { %v6696_v40 = vadd.f32 %v6695_v21, %v14059_v17  ;;  %v6829_v49 = vadd.f32 %v6828_v14, %v6766_v39  ;;  %v6770_v39 = vmul.f32 %v14089_v27, %v14089_v27  ;;  %v6771_v17 = vmul.f32 %v14096_v7, %v14096_v7 }
 0xc75   :  { %v14321_v13 = vpop.f32.mrf.mxu1 }
 0xc76   :  { %v6697_v28 = vadd.f32 %v6696_v40, %v14068_v9  ;;  %v6830_v5 = vadd.f32 %v6829_v49, %v6767_v34  ;;  %v14347_v19 = vpop.f32.mrf.mxu0  ;;  %v6772_v49 = vmul.f32 %v14102_v24, %v14102_v24 }
 0xc78   :  { %v6698_v50 = vadd.f32 %v6697_v28, %v14075_v55  ;;  %v6831_v62 = vadd.f32 %v6830_v5, %v6768_v61  ;;  %v6773_v5 = vmul.f32 %v14108_v8, %v14108_v8 }
 0xc7a   :  { %v6699_v21 = vadd.f32 %v6698_v50, %v14082_v18  ;;  %v6832_v14 = vadd.f32 %v6831_v62, %v6769_v0  ;;  %v14355_v50 = vpop.f32.mrf.mxu3  ;;  %v6774_v18 = vmul.f32 %v14116_v22, %v14116_v22 }
 0xc7b   :  { %v6009_v48 = vpop.f32.mrf.mxu2 }
 0xc7c   :  { %v6700_v34 = vadd.f32 %v6699_v21, %v14089_v27  ;;  %v6833_v40 = vadd.f32 %v6832_v14, %v6770_v39 }
 0xc7d   :  { %v14339_v33 = vpop.f32.mrf.mxu1 }
 0xc7e   :  { %v6701_v61 = vadd.f32 %v6700_v34, %v14096_v7  ;;  %v6834_v28 = vadd.f32 %v6833_v40, %v6771_v17  ;;  %v6775_v34 = vmul.f32 %v14123_v15, %v14123_v15  ;;  %v16382_v7 = vld [vmem:[#allocation148_spill] sm:$0xff] }
 0xc7f   :  { %v6776_v27 = vmul.f32 %v16382_v7, %v16382_v7 }
 0xc80   :  { %v6702_v0 = vadd.f32 %v6701_v61, %v14102_v24  ;;  %v6835_v62 = vadd.f32 %v6834_v28, %v6772_v49  ;;  %v14368_v61 = vpop.f32.mrf.mxu0  ;;  %v6777_v24 = vmul.f32 %v14141_v6, %v14141_v6 }
 0xc82   :  { %v6703_v39 = vadd.f32 %v6702_v0, %v14108_v8  ;;  %v6836_v14 = vadd.f32 %v6835_v62, %v6773_v5  ;;  %v6778_v62 = vmul.f32 %v14150_v30, %v14150_v30 }
 0xc83   :  { %v6012_v9 = vpop.f32.mrf.mxu2 }
 0xc84   :  { %v6704_v17 = vadd.f32 %v6703_v39, %v14116_v22  ;;  %v6837_v40 = vadd.f32 %v6836_v14, %v6774_v18  ;;  %v6230_v39 = vpop.f32.mrf.mxu3  ;;  %v6779_v22 = vmul.f32 %v14158_v23, %v14158_v23 }
 0xc85   :  { %v14360_v21 = vpop.f32.mrf.mxu1 }
 0xc86   :  { %v6705_v49 = vadd.f32 %v6704_v17, %v14123_v15  ;;  %v6838_v28 = vadd.f32 %v6837_v40, %v6775_v34  ;;  %v6780_v40 = vmul.f32 %v14170_v32, %v14170_v32 }
 0xc88   :  { %v6706_v5 = vadd.f32 %v6705_v49, %v16382_v7  ;;  %v6839_v0 = vadd.f32 %v6838_v28, %v6776_v27  ;;  %v16383_v49 = vld [vmem:[#allocation108_spill] sm:$0xff] }
 0xc89   :  { %v6007_v27 = vadd.f32 %v6006_v4, %v16383_v49 }
 0xc8a   :  { %v6707_v18 = vadd.f32 %v6706_v5, %v14141_v6  ;;  %v6840_v14 = vadd.f32 %v6839_v0, %v6777_v24  ;;  %v6781_v24 = vmul.f32 %v14192_v31, %v14192_v31  ;;  %v16384_v5 = vld [vmem:[#allocation99_spill] sm:$0xff]  ;;  %v6439_v6 = vpop.f32.mrf.mxu0 }
 0xc8b   :  { %v6015_v55 = vpop.f32.mrf.mxu2  ;;  %v6010_v0 = vadd.f32 %v6009_v48, %v16384_v5  ;;  %v6422_v48 = vadd.f32 %v14249_v46, %v14308_v12  ;;  %v16386_v5 = vld [vmem:[#allocation106_spill] sm:$0xff]  ;;  %v16387_v12 = vld [vmem:[#allocation24_spill] sm:$0xff] }
 0xc8c   :  { %v6708_v34 = vadd.f32 %v6707_v18, %v14150_v30  ;;  %v6841_v17 = vadd.f32 %v6840_v14, %v6778_v62  ;;  %v6782_v62 = vmul.f32 %v14213_v47, %v14213_v47  ;;  %v6216_v18 = vadd.f32 %v14257_v57, %v6007_v27  ;;  %v16385_v14 = vld [vmem:[#allocation62_spill] sm:$0xff] }
 0xc8d   :  { %v14379_v8 = vpop.f32.mrf.mxu1  ;;  %v6013_v4 = vadd.f32 %v6012_v9, %v16385_v14  ;;  %v6784_v9 = vmul.f32 %v14251_v29, %v14251_v29 }
 0xc8e   :  { %v6709_v7 = vadd.f32 %v6708_v34, %v14158_v23  ;;  %v6842_v15 = vadd.f32 %v6841_v17, %v6779_v22  ;;  %v6233_v22 = vpop.f32.mrf.mxu3  ;;  %v6783_v17 = vmul.f32 %v14230_v3, %v14230_v3 }
 0xc8f   :  { %v6222_v57 = vadd.f32 %v14313_v45, %v6013_v4  ;;  %v16388_v45 = vld [vmem:[#allocation214_spill] sm:$0xff] }
 0xc90   :  { %v6710_v36 = vadd.f32 %v6709_v7, %v14170_v32  ;;  %v6843_v16 = vadd.f32 %v6842_v15, %v6780_v40  ;;  %v6219_v7 = vadd.f32 %v14286_v1, %v6010_v0  ;;  %v6016_v32 = vadd.f32 %v6015_v55, %v16386_v5 }
 0xc91   :  { %v6785_v55 = vmul.f32 %v14272_v58, %v14272_v58 }
 0xc92   :  { %v6711_v49 = vadd.f32 %v6710_v36, %v14192_v31  ;;  %v6844_v34 = vadd.f32 %v6843_v16, %v6781_v24  ;;  %v14406_v16 = vadd.f32 %v14259_v44, %v14291_v2  ;;  %v6425_v36 = vadd.f32 %v14277_v41, %v6216_v18 }
 0xc93   :  { %v6018_v28 = vpop.f32.mrf.mxu2  ;;  %v6428_v44 = vadd.f32 %v14302_v51, %v6219_v7  ;;  %v6225_v41 = vadd.f32 %v14334_v10, %v6016_v32 }
 0xc94   :  { %v6712_v15 = vadd.f32 %v6711_v49, %v14213_v47  ;;  %v6845_v40 = vadd.f32 %v6844_v34, %v6782_v62  ;;  %v6019_v24 = vadd.f32 %v6018_v28, %v16387_v12  ;;  %v14415_v62 = vadd.f32 %v14280_v37, %v6422_v48  ;;  %v6442_v34 = vpop.f32.mrf.mxu0 }
 0xc95   :  { %v6648_v27 = vpop.f32.mrf.mxu1  ;;  %v6786_v4 = vmul.f32 %v14406_v16, %v14406_v16  ;;  %v14424_v28 = vadd.f32 %v14300_v38, %v6425_v36  ;;  %v6431_v49 = vadd.f32 %v14326_v52, %v6222_v57  ;;  %v14432_v32 = vadd.f32 %v14321_v13, %v6428_v44  ;;  %v16389_v13 = vld [vmem:[#allocation76_spill] sm:$0xff] }
 0xc96   :  { %v6713_v1 = vadd.f32 %v6712_v15, %v14230_v3  ;;  %v6846_v0 = vadd.f32 %v6845_v40, %v6783_v17  ;;  %v6228_v51 = vadd.f32 %v14355_v50, %v6019_v24  ;;  %v6787_v10 = vmul.f32 %v14415_v62, %v14415_v62  ;;  %v6236_v15 = vpop.f32.mrf.mxu3 }
 0xc97   :  { %v6434_v7 = vadd.f32 %v14347_v19, %v6225_v41  ;;  %v6788_v52 = vmul.f32 %v14424_v28, %v14424_v28  ;;  %v14439_v5 = vadd.f32 %v14339_v33, %v6431_v49  ;;  %v6789_v19 = vmul.f32 %v14432_v32, %v14432_v32 }
 0xc98   :  { %v6714_v2 = vadd.f32 %v6713_v1, %v14251_v29  ;;  %v6847_v14 = vadd.f32 %v6846_v0, %v6784_v9  ;;  %v6437_v36 = vadd.f32 %v14368_v61, %v6228_v51 }
 0xc99   :  { %v14448_v12 = vadd.f32 %v14360_v21, %v6434_v7 }
 0xc9a   :  { %v6715_v37 = vadd.f32 %v6714_v2, %v14272_v58  ;;  %v6848_v17 = vadd.f32 %v6847_v14, %v6785_v55  ;;  %v6790_v55 = vmul.f32 %v14439_v5, %v14439_v5  ;;  %v14454_v44 = vadd.f32 %v14379_v8, %v6437_v36 }
 0xc9b   :  { %v6021_v46 = vpop.f32.mrf.mxu2  ;;  %v6791_v21 = vmul.f32 %v14448_v12, %v14448_v12 }
 0xc9c   :  { %v6022_v18 = vadd.f32 %v6021_v46, %v16388_v45  ;;  %v6716_v48 = vadd.f32 %v6715_v37, %v14406_v16  ;;  %v6849_v40 = vadd.f32 %v6848_v17, %v6786_v4  ;;  %v6445_v45 = vpop.f32.mrf.mxu0  ;;  %v6792_v37 = vmul.f32 %v14454_v44, %v14454_v44 }
 0xc9e   :  { %v6231_v38 = vadd.f32 %v6230_v39, %v6022_v18  ;;  %v6717_v9 = vadd.f32 %v6716_v48, %v14415_v62  ;;  %v6850_v46 = vadd.f32 %v6849_v40, %v6787_v10  ;;  %v6651_v39 = vpop.f32.mrf.mxu1  ;;  %v6239_v4 = vpop.f32.mrf.mxu3 }
 0xca0   :  { %v6718_v1 = vadd.f32 %v6717_v9, %v14424_v28  ;;  %v6440_v24 = vadd.f32 %v6439_v6, %v6231_v38  ;;  %v6851_v0 = vadd.f32 %v6850_v46, %v6788_v52 }
 0xca2   :  { %v6719_v61 = vadd.f32 %v6718_v1, %v14432_v32  ;;  %v6852_v41 = vadd.f32 %v6851_v0, %v6789_v19  ;;  %v14459_v14 = vadd.f32 %v6648_v27, %v6440_v24  ;;  %v16393_v19 = vld [vmem:[#allocation85_spill] sm:$0xff] }
 0xca3   :  { %v6024_v50 = vpop.f32.mrf.mxu2 }
 0xca4   :  { %v6025_v57 = vadd.f32 %v6024_v50, %v16389_v13  ;;  %v6720_v18 = vadd.f32 %v6719_v61, %v14439_v5  ;;  %v6853_v6 = vadd.f32 %v6852_v41, %v6790_v55  ;;  %v6793_v48 = vmul.f32 %v14459_v14, %v14459_v14  ;;  %v6448_v46 = vpop.f32.mrf.mxu0 }
 0xca6   :  { %v6234_v33 = vadd.f32 %v6233_v22, %v6025_v57  ;;  %v6721_v49 = vadd.f32 %v6720_v18, %v14448_v12  ;;  %v6854_v17 = vadd.f32 %v6853_v6, %v6791_v21  ;;  %v6654_v7 = vpop.f32.mrf.mxu1  ;;  %v16395_v6 = vld [vmem:[#allocation90_spill] sm:$0xff] }
 0xca8   :  { %v6443_v2 = vadd.f32 %v6442_v34, %v6234_v33  ;;  %v16391_v34 = vld [vmem:[#allocation75_spill] sm:$0xff]  ;;  %v6722_v10 = vadd.f32 %v6721_v49, %v14454_v44  ;;  %v6855_v38 = vadd.f32 %v6854_v17, %v6792_v37  ;;  %v6242_v33 = vpop.f32.mrf.mxu3 }
 0xcaa   :  { %v14464_v8 = vadd.f32 %v6651_v39, %v6443_v2  ;;  %v6723_v50 = vadd.f32 %v6722_v10, %v14459_v14  ;;  %v6856_v13 = vadd.f32 %v6855_v38, %v6793_v48 }
 0xcab   :  { %v6027_v22 = vpop.f32.mrf.mxu2 }
 0xcac   :  { %16390 = vst [vmem:[#allocation224_spill] sm:$0xff] %v14464_v8  ;;  %v6028_v51 = vadd.f32 %v6027_v22, %v16391_v34  ;;  %v6794_v40 = vmul.f32 %v14464_v8, %v14464_v8  ;;  %v6724_v36 = vadd.f32 %v6723_v50, %v14464_v8  ;;  %v6451_v49 = vpop.f32.mrf.mxu0  ;;  %v16421_v8 = vld [vmem:[#allocation127_spill] sm:$0xff] }
 0xcae   :  { %v6237_v27 = vadd.f32 %v6236_v15, %v6028_v51  ;;  %v6857_v24 = vadd.f32 %v6856_v13, %v6794_v40  ;;  %v6657_v61 = vpop.f32.mrf.mxu1 }
 0xcb0   :  { %v6446_v52 = vadd.f32 %v6445_v45, %v6237_v27  ;;  %v6660_v51 = vpop.f32.mrf.mxu3 }
 0xcb2   :  { %v14473_v9 = vadd.f32 %v6654_v7, %v6446_v52 }
 0xcb3   :  { %v6030_v57 = vpop.f32.mrf.mxu2 }
 0xcb4   :  { %16392 = vst [vmem:[#allocation129_spill] sm:$0xff] %v14473_v9  ;;  %v6031_v39 = vadd.f32 %v6030_v57, %v16393_v19  ;;  %v6725_v1 = vadd.f32 %v6724_v36, %v14473_v9  ;;  %v6795_v15 = vmul.f32 %v14473_v9, %v14473_v9 }
 0xcb6   :  { %v6240_v0 = vadd.f32 %v6239_v4, %v6031_v39  ;;  %v6858_v55 = vadd.f32 %v6857_v24, %v6795_v15 }
 0xcb8   :  { %v6449_v2 = vadd.f32 %v6448_v46, %v6240_v0  ;;  %v16426_v0 = vld [vmem:[#allocation130_spill] sm:$0xff] }
 0xcba   :  { %v14480_v41 = vadd.f32 %v6657_v61, %v6449_v2 }
 0xcbb   :  { %v6033_v45 = vpop.f32.mrf.mxu2 }
 0xcbc   :  { %16394 = vst [vmem:[#allocation226_spill] sm:$0xff] %v14480_v41  ;;  %v6726_v18 = vadd.f32 %v6725_v1, %v14480_v41  ;;  %v6796_v21 = vmul.f32 %v14480_v41, %v14480_v41  ;;  %v6034_v22 = vadd.f32 %v6033_v45, %v16395_v6  ;;  %v16396_v45 = vld [vmem:[#allocation113_spill] sm:$0xff] }
 0xcbd   :  { %v16427_v6 = vld [vmem:[#allocation13_spill] sm:$0xff] }
 0xcbe   :  { %v6859_v37 = vadd.f32 %v6858_v55, %v6796_v21  ;;  %v6243_v34 = vadd.f32 %v6242_v33, %v6034_v22  ;;  %v16397_v21 = vld [vmem:[#allocation25_spill] sm:$0xff]  ;;  %v16398_v22 = vld [vmem:[#allocation119_spill] sm:$0xff] }
 0xcc0   :  { %v6452_v17 = vadd.f32 %v6451_v49, %v6243_v34  ;;  %v16425_v49 = vld [vmem:[#allocation148_spill] sm:$0xff] }
 0xcc2   :  { %v14486_v10 = vadd.f32 %v6660_v51, %v6452_v17  ;;  %v16400_v51 = vld [vmem:[#allocation124_spill] sm:$0xff]  ;;  %v6663_v17 = vld [vmem:[%s15155_s5] sm:$0x1] }
 0xcc4   :  { %v6727_v4 = vadd.f32 %v6726_v18, %v14486_v10  ;;  %v6797_v48 = vmul.f32 %v14486_v10, %v14486_v10  ;;  %v16414_v18 = vld [vmem:[#allocation19_spill] sm:$0xff] }
 0xcc6   :  { %v6728_v27 = vrot.slane %v6727_v4, 4  ;;  %v6860_v7 = vadd.f32 %v6859_v37, %v6797_v48  ;;  %v16399_v37 = vld [vmem:[#allocation26_spill] sm:$0xff] }
 0xcc8   :  { %v6729_v38 = vadd.f32 %v6728_v27, %v6727_v4  ;;  %v6861_v40 = vrot.slane %v6860_v7, 4  ;;  %v16401_v4 = vld [vmem:[#allocation91_spill] sm:$0xff] }
 0xcc9   :  { %v16402_v27 = vld [vmem:[#allocation27_spill] sm:$0xff] }
 0xcca   :  { %v6730_v52 = vrot.slane %v6729_v38, 2  ;;  %v6862_v50 = vadd.f32 %v6861_v40, %v6860_v7  ;;  %v16409_v40 = vld [vmem:[#allocation110_spill] sm:$0xff] }
 0xccc   :  { %v6731_v36 = vadd.f32 %v6730_v52, %v6729_v38  ;;  %v6863_v13 = vrot.slane %v6862_v50, 2  ;;  %v16403_v38 = vld [vmem:[#allocation97_spill] sm:$0xff] }
 0xcce   :  { %v6732_v57 = vrot.slane %v6731_v36, 1  ;;  %v6864_v46 = vadd.f32 %v6863_v13, %v6862_v50  ;;  %v16404_v50 = vld [vmem:[#allocation128_spill] sm:$0xff]  ;;  %v16406_v13 = vld [vmem:[#allocation29_spill] sm:$0xff] }
 0xcd0   :  { %v6733_v19 = vadd.f32 %v6732_v57, %v6731_v36  ;;  %v6865_v39 = vrot.slane %v6864_v46, 1  ;;  %v16405_v57 = vld [vmem:[#allocation28_spill] sm:$0xff] }
 0xcd2   :  { %v6866_v1 = vadd.f32 %v6865_v39, %v6864_v46  ;;  %v14491_v15 = vmul.f32 0.001953125, %v6733_v19 }
 0xcd4   :  { %v6868_v24 = vmul.f32 0.001953125, %v6866_v1  ;;  %v6869_v33 = vmul.f32 %v14491_v15, %v14491_v15  ;;  %v16410_v1 = vld [vmem:[#allocation30_spill] sm:$0xff]  ;;  %v16428_v9 = vsub.f32 %v14486_v10, %v14491_v15  ;;  %v16433_v10 = vsub.f32 %v16399_v37, %v14491_v15 }
 0xcd5   :  { %v16436_v37 = vsub.f32 %v16402_v27, %v14491_v15 }
 0xcd6   :  { %v6870_v55 = vsub.f32 %v6868_v24, %v6869_v33  ;;  %v16411_v24 = vld [vmem:[#allocation117_spill] sm:$0xff] }
 0xcd8   :  { %v6871_v61 = vadd.f32 1e-05, %v6870_v55  ;;  %v16407_v55 = vld [vmem:[#allocation102_spill] sm:$0xff] }
 0xcda   :  { %7344 = vrsqrt.f32 %v6871_v61  ;;  %vm6878_vm1 = vweird.f32 %v6871_v61 }
 0xce0   :  { %v7345_v52 = vpop.eup %7344 }
 0xce1   :  { %v6873_v39 = vmul.f32 %v7345_v52, %v6871_v61  ;;  %vm6879_vm2 = vweird.f32 %v7345_v52 }
 0xce2   :  { %vm6880_vm3 = vmor %vm6878_vm1, %vm6879_vm2 }
 0xce3   :  { %v6874_v36 = vmul.f32 %v7345_v52, %v6873_v39  ;;  %v16408_v39 = vld [vmem:[#allocation133_spill] sm:$0xff] }
 0xce5   :  { %v6875_v48 = vmul.f32 0.5, %v6874_v36 }
 0xce7   :  { %v6876_v36 = vsub.f32 1.5, %v6875_v48  ;;  %v16423_v48 = vld [vmem:[#allocation125_spill] sm:$0xff] }
 0xce9   :  { %v6877_v34 = vmul.f32 %v7345_v52, %v6876_v36  ;;  %v16424_v36 = vld [vmem:[#allocation152_spill] sm:$0xff] }
 0xceb   :  { %v6881_v2 = vsel %vm6880_vm3, %v7345_v52, %v6877_v34  ;;  %v16429_v52 = vsub.f32 %v16364_v26, %v14491_v15 }
 0xcec   :  { %v6882_v19 = vmul.f32 %v6881_v2, %v6663_v17  ;;  %v14617_v17 = vld [vmem:[%s15156_s6] ss:$0 sm:$0xff]  ;;  %v16430_v2 = vsub.f32 %v16396_v45, %v14491_v15  ;;  %s7509_s6 = smov [#allocation7]  }
 0xced   :  { %s7211_s23 = sshll.u32 %s7509_s6, 4  ;;  %s7212_s23 = int_to_ptr.vmem [resolvable:$true] %s7211_s23 }
 0xcee   :  { %v14619_v7 = vperm.slane %v6882_v19, 0  ;;  %v16431_v19 = vsub.f32 %v16397_v21, %v14491_v15 }
 0xcf0   :  { %v7011_v34 = vmul.f32 %v14619_v7, %v16428_v9  ;;  %v14643_v33 = vmul.f32 %v14619_v7, %v16429_v52  ;;  %v14649_v61 = vmul.f32 %v14619_v7, %v16430_v2  ;;  %v14655_v46 = vmul.f32 %v14619_v7, %v16431_v19 }
 0xcf1   :  { %v16432_v9 = vsub.f32 %v16398_v22, %v14491_v15  ;;  %v14667_v45 = vmul.f32 %v14619_v7, %v16433_v10  ;;  %v16434_v52 = vsub.f32 %v16400_v51, %v14491_v15  ;;  %v16435_v2 = vsub.f32 %v16401_v4, %v14491_v15 }
 0xcf2   :  { %v7078_v19 = vadd.f32 %v14617_v17, %v7011_v34  ;;  %v16437_v51 = vsub.f32 %v16403_v38, %v14491_v15  ;;  %v16438_v4 = vsub.f32 %v16404_v50, %v14491_v15  ;;  %v16439_v34 = vsub.f32 %v16372_v59, %v14491_v15 }
 0xcf3   :  { %v14661_v26 = vmul.f32 %v14619_v7, %v16432_v9  ;;  %v14673_v21 = vmul.f32 %v14619_v7, %v16434_v52  ;;  %v14679_v22 = vmul.f32 %v14619_v7, %v16435_v2  ;;  %v14686_v9 = vmul.f32 %v14619_v7, %v16436_v37 }
 0xcf4   :  { %v14692_v10 = vmul.f32 %v14619_v7, %v16437_v51  ;;  %v14698_v52 = vmul.f32 %v14619_v7, %v16438_v4  ;;  %v14704_v27 = vmul.f32 %v14619_v7, %v16439_v34  ;;  %v16440_v2 = vsub.f32 %v16405_v57, %v14491_v15 }
 0xcf5   :  { %v16441_v37 = vsub.f32 %v16375_v35, %v14491_v15  ;;  %v16442_v51 = vsub.f32 %v16376_v11, %v14491_v15  ;;  %v7142_v4 = vmax.f32 %v7078_v19, 0.0  ;;  %v16443_v34 = vsub.f32 %v16377_v53, %v14491_v15 }
 0xcf6   :  { %v14710_v38 = vmul.f32 %v14619_v7, %v16440_v2  ;;  %v16444_v2 = vsub.f32 %v13940_v20, %v14491_v15  ;;  %v16446_v19 = vsub.f32 %v13954_v42, %v14491_v15 }
 0xcf7   :  { %v14716_v50 = vmul.f32 %v14619_v7, %v16441_v37  ;;  %v14722_v59 = vmul.f32 %v14619_v7, %v16442_v51  ;;  %v14728_v57 = vmul.f32 %v14619_v7, %v16443_v34  ;;  %v16445_v37 = vsub.f32 %v13947_v60, %v14491_v15  ;;  %7206 = vst [vmem:[#allocation7 + $0x1f8] sm:$0xff] %v7142_v4 }
 0xcf8   :  { %v14734_v35 = vmul.f32 %v14619_v7, %v16444_v2  ;;  %v14746_v53 = vmul.f32 %v14619_v7, %v16446_v19  ;;  %v16447_v51 = vsub.f32 %v16406_v13, %v14491_v15  ;;  %v16448_v34 = vsub.f32 %v13968_v63, %v14491_v15 }
 0xcf9   :  { %v14740_v11 = vmul.f32 %v14619_v7, %v16445_v37  ;;  %v16449_v2 = vsub.f32 %v13975_v54, %v14491_v15  ;;  %v16450_v37 = vsub.f32 %v13982_v25, %v14491_v15  ;;  %v16451_v19 = vsub.f32 %v13989_v43, %v14491_v15 }
 0xcfa   :  { %v14752_v20 = vmul.f32 %v14619_v7, %v16447_v51  ;;  %v14758_v60 = vmul.f32 %v14619_v7, %v16448_v34  ;;  %v16452_v51 = vsub.f32 %v16407_v55, %v14491_v15  ;;  %v16453_v4 = vsub.f32 %v14003_v56, %v14491_v15 }
 0xcfb   :  { %v14764_v42 = vmul.f32 %v14619_v7, %v16449_v2  ;;  %v14770_v13 = vmul.f32 %v14619_v7, %v16450_v37  ;;  %v14776_v63 = vmul.f32 %v14619_v7, %v16451_v19  ;;  %v16454_v34 = vsub.f32 %v16408_v39, %v14491_v15 }
 0xcfc   :  { %v14782_v54 = vmul.f32 %v14619_v7, %v16452_v51  ;;  %v14788_v25 = vmul.f32 %v14619_v7, %v16453_v4  ;;  %v16456_v2 = vsub.f32 %v16409_v40, %v14491_v15  ;;  %v16458_v37 = vsub.f32 %v16410_v1, %v14491_v15  ;;  %v16462_v51 = vld [vmem:[#allocation138_spill] sm:$0xff] }
 0xcfd   :  { %v14794_v43 = vmul.f32 %v14619_v7, %v16454_v34  ;;  %v16460_v19 = vsub.f32 %v16411_v24, %v14491_v15  ;;  %v16463_v4 = vsub.f32 %v16462_v51, %v14491_v15  ;;  %v16465_v34 = vld [vmem:[#allocation118_spill] sm:$0xff] }
 0xcfe   :  { %v14800_v55 = vmul.f32 %v14619_v7, %v16456_v2  ;;  %v14806_v56 = vmul.f32 %v14619_v7, %v16458_v37  ;;  %v16466_v2 = vsub.f32 %v16465_v34, %v14491_v15  ;;  %v16468_v37 = vsub.f32 %v16414_v18, %v14491_v15 }
 0xcff   :  { %16455 = vst [vmem:[#allocation153_spill] sm:$0xff] %v14794_v43  ;;  %v14812_v39 = vmul.f32 %v14619_v7, %v16460_v19  ;;  %v14818_v40 = vmul.f32 %v14619_v7, %v16463_v4  ;;  %v16470_v19 = vld [vmem:[#allocation116_spill] sm:$0xff]  ;;  %v16512_v43 = vld [vmem:[#allocation226_spill] sm:$0xff] }
 0xd00   :  { %16457 = vst [vmem:[#allocation136_spill] sm:$0xff] %v14800_v55  ;;  %v14824_v1 = vmul.f32 %v14619_v7, %v16466_v2  ;;  %v14830_v24 = vmul.f32 %v14619_v7, %v16468_v37  ;;  %v16471_v41 = vsub.f32 %v16470_v19, %v14491_v15  ;;  %v16473_v4 = vld [vmem:[#allocation140_spill] sm:$0xff]  ;;  %v16476_v2 = vld [vmem:[#allocation123_spill] sm:$0xff]  ;;  %v16510_v55 = vld [vmem:[#allocation129_spill] sm:$0xff] }
 0xd01   :  { %16459 = vst [vmem:[#allocation35_spill] sm:$0xff] %v14806_v56  ;;  %v16479_v37 = vld [vmem:[#allocation20_spill] sm:$0xff] }
 0xd02   :  { %16461 = vst [vmem:[#allocation227_spill] sm:$0xff] %v14812_v39  ;;  %v14836_v51 = vmul.f32 %v14619_v7, %v16471_v41  ;;  %v16481_v39 = vld [vmem:[#allocation121_spill] sm:$0xff]  ;;  %v16508_v56 = vld [vmem:[#allocation224_spill] sm:$0xff] }
 0xd03   :  { %16464 = vst [vmem:[#allocation218_spill] sm:$0xff] %v14818_v40  ;;  %v16474_v40 = vsub.f32 %v16473_v4, %v14491_v15  ;;  %v16482_v41 = vsub.f32 %v16481_v39, %v14491_v15  ;;  %v16483_v4 = vld [vmem:[#allocation145_spill] sm:$0xff]  ;;  %v16488_v39 = vsub.f32 %v16423_v48, %v14491_v15  ;;  %v16492_v48 = vsub.f32 %v14150_v30, %v14491_v15 }
 0xd04   :  { %16467 = vst [vmem:[#allocation162_spill] sm:$0xff] %v14824_v1  ;;  %v16477_v1 = vsub.f32 %v16476_v2, %v14491_v15  ;;  %v16485_v2 = vsub.f32 %v16421_v8, %v14491_v15  ;;  %v16490_v8 = vsub.f32 %v16425_v49, %v14491_v15  ;;  %v16494_v49 = vsub.f32 %v16427_v6, %v14491_v15 }
 0xd05   :  { %16469 = vst [vmem:[#allocation158_spill] sm:$0xff] %v14830_v24  ;;  %v14842_v34 = vmul.f32 %v14619_v7, %v16474_v40  ;;  %v16480_v24 = vsub.f32 %v16479_v37, %v14491_v15  ;;  %v16484_v40 = vsub.f32 %v16483_v4, %v14491_v15  ;;  %v16489_v4 = vsub.f32 %v16424_v36, %v14491_v15 }
 0xd06   :  { %16472 = vst [vmem:[#allocation137_spill] sm:$0xff] %v14836_v51  ;;  %v14848_v18 = vmul.f32 %v14619_v7, %v16477_v1  ;;  %v6984_v51 = vmul.f32 %v14619_v7, %v16482_v41  ;;  %v6986_v1 = vmul.f32 %v14619_v7, %v16485_v2  ;;  %v6988_v41 = vmul.f32 %v14619_v7, %v16488_v39 }
 0xd07   :  { %16475 = vst [vmem:[#allocation40_spill] sm:$0xff] %v14842_v34  ;;  %v6983_v19 = vmul.f32 %v14619_v7, %v16480_v24  ;;  %v6985_v34 = vmul.f32 %v14619_v7, %v16484_v40  ;;  %v6989_v40 = vmul.f32 %v14619_v7, %v16489_v4  ;;  %v6990_v2 = vmul.f32 %v14619_v7, %v16490_v8 }
 0xd08   :  { %16478 = vst [vmem:[#allocation155_spill] sm:$0xff] %v14848_v18  ;;  %v16486_v18 = vld [vmem:[#allocation15_spill] sm:$0xff]  ;;  %v6992_v39 = vmul.f32 %v14619_v7, %v16492_v48  ;;  %v16493_v36 = vsub.f32 %v14158_v23, %v14491_v15  ;;  %v6994_v8 = vmul.f32 %v14619_v7, %v16494_v49  ;;  %v16496_v30 = vsub.f32 %v14213_v47, %v14491_v15 }
 0xd09   :  { %v16487_v37 = vsub.f32 %v16486_v18, %v14491_v15  ;;  %v16491_v18 = vsub.f32 %v16426_v0, %v14491_v15  ;;  %v16495_v0 = vsub.f32 %v14192_v31, %v14491_v15  ;;  %v16497_v23 = vsub.f32 %v14230_v3, %v14491_v15 }
 0xd0a   :  { %v6993_v4 = vmul.f32 %v14619_v7, %v16493_v36  ;;  %v6996_v48 = vmul.f32 %v14619_v7, %v16496_v30  ;;  %v16498_v6 = vsub.f32 %v14251_v29, %v14491_v15  ;;  %v16499_v31 = vsub.f32 %v14272_v58, %v14491_v15 }
 0xd0b   :  { %v6987_v24 = vmul.f32 %v14619_v7, %v16487_v37  ;;  %v6991_v37 = vmul.f32 %v14619_v7, %v16491_v18  ;;  %v6995_v18 = vmul.f32 %v14619_v7, %v16495_v0  ;;  %v6997_v36 = vmul.f32 %v14619_v7, %v16497_v23 }
 0xd0c   :  { %v6998_v49 = vmul.f32 %v14619_v7, %v16498_v6  ;;  %v6999_v0 = vmul.f32 %v14619_v7, %v16499_v31  ;;  %v16500_v47 = vsub.f32 %v14406_v16, %v14491_v15  ;;  %v16501_v3 = vsub.f32 %v14415_v62, %v14491_v15 }
 0xd0d   :  { %v16502_v29 = vsub.f32 %v14424_v28, %v14491_v15  ;;  %v16503_v58 = vsub.f32 %v14432_v32, %v14491_v15  ;;  %v16504_v16 = vsub.f32 %v14439_v5, %v14491_v15  ;;  %v16505_v62 = vsub.f32 %v14448_v12, %v14491_v15 }
 0xd0e   :  { %v7000_v30 = vmul.f32 %v14619_v7, %v16500_v47  ;;  %v7001_v23 = vmul.f32 %v14619_v7, %v16501_v3  ;;  %v16506_v28 = vsub.f32 %v14454_v44, %v14491_v15  ;;  %v16507_v32 = vsub.f32 %v14459_v14, %v14491_v15 }
 0xd0f   :  { %v7002_v6 = vmul.f32 %v14619_v7, %v16502_v29  ;;  %v7003_v31 = vmul.f32 %v14619_v7, %v16503_v58  ;;  %v7004_v47 = vmul.f32 %v14619_v7, %v16504_v16  ;;  %v7005_v3 = vmul.f32 %v14619_v7, %v16505_v62 }
 0xd10   :  { %v7006_v29 = vmul.f32 %v14619_v7, %v16506_v28  ;;  %v7007_v58 = vmul.f32 %v14619_v7, %v16507_v32  ;;  %v16509_v5 = vsub.f32 %v16508_v56, %v14491_v15  ;;  %v16511_v12 = vsub.f32 %v16510_v55, %v14491_v15 }
 0xd11   :  { %v16513_v44 = vsub.f32 %v16512_v43, %v14491_v15  ;;  %v7015_v14 = vadd.f32 %v14617_v17, %v14643_v33  ;;  %v7016_v32 = vadd.f32 %v14617_v17, %v14649_v61  ;;  %v7017_v56 = vadd.f32 %v14617_v17, %v14655_v46 }
 0xd12   :  { %v7008_v16 = vmul.f32 %v14619_v7, %v16509_v5  ;;  %v7009_v62 = vmul.f32 %v14619_v7, %v16511_v12  ;;  %v7018_v5 = vadd.f32 %v14617_v17, %v14661_v26  ;;  %v7019_v55 = vadd.f32 %v14617_v17, %v14667_v45 }
 0xd13   :  { %v7010_v28 = vmul.f32 %v14619_v7, %v16513_v44  ;;  %v7020_v15 = vadd.f32 %v14617_v17, %v14673_v21  ;;  %v7021_v7 = vadd.f32 %v14617_v17, %v14679_v22  ;;  %v14977_v33 = vadd.f32 %v14617_v17, %v6983_v19 }
 0xd14   :  { %v14980_v61 = vadd.f32 %v14617_v17, %v6984_v51  ;;  %v14983_v46 = vadd.f32 %v14617_v17, %v6985_v34  ;;  %v14986_v26 = vadd.f32 %v14617_v17, %v6986_v1  ;;  %v14989_v45 = vadd.f32 %v14617_v17, %v6987_v24 }
 0xd15   :  { %v14992_v21 = vadd.f32 %v14617_v17, %v6988_v41  ;;  %v14995_v22 = vadd.f32 %v14617_v17, %v6989_v40  ;;  %v14998_v43 = vadd.f32 %v14617_v17, %v6990_v2  ;;  %v15001_v51 = vadd.f32 %v14617_v17, %v6991_v37 }
 0xd16   :  { %v15004_v34 = vadd.f32 %v14617_v17, %v6992_v39  ;;  %v15007_v19 = vadd.f32 %v14617_v17, %v6993_v4  ;;  %v15010_v1 = vadd.f32 %v14617_v17, %v6994_v8  ;;  %v15013_v24 = vadd.f32 %v14617_v17, %v6995_v18 }
 0xd17   :  { %v15016_v41 = vadd.f32 %v14617_v17, %v6996_v48  ;;  %v15019_v40 = vadd.f32 %v14617_v17, %v6997_v36  ;;  %v15022_v2 = vadd.f32 %v14617_v17, %v6998_v49  ;;  %v15025_v37 = vadd.f32 %v14617_v17, %v6999_v0 }
 0xd18   :  { %v15028_v39 = vadd.f32 %v14617_v17, %v7000_v30  ;;  %v15031_v4 = vadd.f32 %v14617_v17, %v7001_v23  ;;  %v15034_v8 = vadd.f32 %v14617_v17, %v7002_v6  ;;  %v15037_v18 = vadd.f32 %v14617_v17, %v7003_v31 }
 0xd19   :  { %v15040_v48 = vadd.f32 %v14617_v17, %v7004_v47  ;;  %v15043_v36 = vadd.f32 %v14617_v17, %v7005_v3  ;;  %v15046_v49 = vadd.f32 %v14617_v17, %v7006_v29  ;;  %v15049_v0 = vadd.f32 %v14617_v17, %v7007_v58 }
 0xd1a   :  { %v15052_v30 = vadd.f32 %v14617_v17, %v7008_v16  ;;  %v15055_v23 = vadd.f32 %v14617_v17, %v7009_v62  ;;  %v15058_v6 = vadd.f32 %v14617_v17, %v7010_v28  ;;  %v7079_v31 = vmax.f32 %v7015_v14, 0.0 }
 0xd1b   :  { %v7080_v47 = vmax.f32 %v7016_v32, 0.0  ;;  %v7081_v12 = vmax.f32 %v7017_v56, 0.0  ;;  %v7022_v3 = vadd.f32 %v14617_v17, %v14686_v9  ;;  %v7082_v29 = vmax.f32 %v7018_v5, 0.0 }
 0xd1c   :  { %v7023_v58 = vadd.f32 %v14617_v17, %v14692_v10  ;;  %v7083_v44 = vmax.f32 %v7019_v55, 0.0  ;;  %7143 = vst [vmem:[#allocation7] sm:$0xff] %v7079_v31  ;;  %v7024_v16 = vadd.f32 %v14617_v17, %v14698_v52  ;;  %v7084_v62 = vmax.f32 %v7020_v15, 0.0 }
 0xd1d   :  { %7144 = vst [vmem:[#allocation7 + $0x8] sm:$0xff] %v7080_v47  ;;  %v7025_v28 = vadd.f32 %v14617_v17, %v14704_v27  ;;  %v7085_v14 = vmax.f32 %v7021_v7, 0.0  ;;  %v7026_v32 = vadd.f32 %v14617_v17, %v14710_v38  ;;  %v7086_v9 = vmax.f32 %v7022_v3, 0.0 }
 0xd1e   :  { %7145 = vst [vmem:[#allocation7 + $0x10] sm:$0xff] %v7081_v12  ;;  %v7027_v10 = vadd.f32 %v14617_v17, %v14716_v50  ;;  %v7087_v56 = vmax.f32 %v7023_v58, 0.0  ;;  %v7028_v52 = vadd.f32 %v14617_v17, %v14722_v59  ;;  %v7088_v5 = vmax.f32 %v7024_v16, 0.0 }
 0xd1f   :  { %7146 = vst [vmem:[#allocation7 + $0x18] sm:$0xff] %v7082_v29  ;;  %v7029_v27 = vadd.f32 %v14617_v17, %v14728_v57  ;;  %v7089_v55 = vmax.f32 %v7025_v28, 0.0  ;;  %v7030_v38 = vadd.f32 %v14617_v17, %v14734_v35  ;;  %v7090_v15 = vmax.f32 %v7026_v32, 0.0 }
 0xd20   :  { %7147 = vst [vmem:[#allocation7 + $0x20] sm:$0xff] %v7083_v44  ;;  %v7031_v50 = vadd.f32 %v14617_v17, %v14740_v11  ;;  %v7091_v7 = vmax.f32 %v7027_v10, 0.0  ;;  %v7032_v59 = vadd.f32 %v14617_v17, %v14746_v53  ;;  %v7092_v31 = vmax.f32 %v7028_v52, 0.0 }
 0xd21   :  { %7148 = vst [vmem:[#allocation7 + $0x28] sm:$0xff] %v7084_v62  ;;  %v7033_v57 = vadd.f32 %v14617_v17, %v14752_v20  ;;  %v7093_v47 = vmax.f32 %v7029_v27, 0.0  ;;  %v7034_v35 = vadd.f32 %v14617_v17, %v14758_v60  ;;  %v7094_v12 = vmax.f32 %v7030_v38, 0.0  ;;  %v16514_v62 = vld [vmem:[#allocation153_spill] sm:$0xff]  ;;  %v16519_v38 = vld [vmem:[#allocation162_spill] sm:$0xff] }
 0xd22   :  { %7149 = vst [vmem:[#allocation7 + $0x30] sm:$0xff] %v7085_v14  ;;  %v7035_v11 = vadd.f32 %v14617_v17, %v14764_v42  ;;  %v7095_v3 = vmax.f32 %v7031_v50, 0.0  ;;  %v7036_v53 = vadd.f32 %v14617_v17, %v14770_v13  ;;  %v7096_v29 = vmax.f32 %v7032_v59, 0.0  ;;  %v16515_v14 = vld [vmem:[#allocation136_spill] sm:$0xff] }
 0xd23   :  { %7150 = vst [vmem:[#allocation7 + $0x38] sm:$0xff] %v7086_v9  ;;  %v7037_v20 = vadd.f32 %v14617_v17, %v14776_v63  ;;  %v7097_v58 = vmax.f32 %v7033_v57, 0.0  ;;  %v7038_v60 = vadd.f32 %v14617_v17, %v14782_v54  ;;  %v7098_v44 = vmax.f32 %v7034_v35, 0.0  ;;  %v16516_v9 = vld [vmem:[#allocation35_spill] sm:$0xff]  ;;  %v16521_v57 = vld [vmem:[#allocation137_spill] sm:$0xff] }
 0xd24   :  { %7151 = vst [vmem:[#allocation7 + $0x40] sm:$0xff] %v7087_v56  ;;  %v7039_v42 = vadd.f32 %v14617_v17, %v14788_v25  ;;  %v7099_v16 = vmax.f32 %v7035_v11, 0.0  ;;  %v7040_v13 = vadd.f32 %v14617_v17, %v16514_v62  ;;  %v7100_v28 = vmax.f32 %v7036_v53, 0.0  ;;  %v16517_v56 = vld [vmem:[#allocation227_spill] sm:$0xff] }
 0xd25   :  { %7152 = vst [vmem:[#allocation7 + $0x48] sm:$0xff] %v7088_v5  ;;  %v7041_v63 = vadd.f32 %v14617_v17, %v16515_v14  ;;  %v7101_v32 = vmax.f32 %v7037_v20, 0.0  ;;  %v7042_v54 = vadd.f32 %v14617_v17, %v16516_v9  ;;  %v7102_v10 = vmax.f32 %v7038_v60, 0.0  ;;  %v16518_v5 = vld [vmem:[#allocation218_spill] sm:$0xff]  ;;  %v16523_v53 = vld [vmem:[#allocation155_spill] sm:$0xff] }
 0xd26   :  { %7153 = vst [vmem:[#allocation7 + $0x50] sm:$0xff] %v7089_v55  ;;  %v7043_v25 = vadd.f32 %v14617_v17, %v16517_v56  ;;  %v7103_v52 = vmax.f32 %v7039_v42, 0.0  ;;  %v7044_v27 = vadd.f32 %v14617_v17, %v16518_v5  ;;  %v7104_v55 = vmax.f32 %v7040_v13, 0.0 }
 0xd27   :  { %7154 = vst [vmem:[#allocation7 + $0x58] sm:$0xff] %v7090_v15  ;;  %v7045_v15 = vadd.f32 %v14617_v17, %v16519_v38  ;;  %v7105_v50 = vmax.f32 %v7041_v63, 0.0  ;;  %v7115_v62 = vmax.f32 %v14980_v61, 0.0  ;;  %v7116_v13 = vmax.f32 %v14983_v46, 0.0 }
 0xd28   :  { %7155 = vst [vmem:[#allocation7 + $0x60] sm:$0xff] %v7091_v7  ;;  %v16520_v7 = vld [vmem:[#allocation158_spill] sm:$0xff]  ;;  %v7107_v35 = vmax.f32 %v7043_v25, 0.0  ;;  %v7119_v14 = vmax.f32 %v14992_v21, 0.0  ;;  %v7120_v63 = vmax.f32 %v14995_v22, 0.0  ;;  %v7122_v61 = vmax.f32 %v15001_v51, 0.0 }
 0xd29   :  { %7156 = vst [vmem:[#allocation7 + $0x68] sm:$0xff] %v7092_v31  ;;  %v7046_v59 = vadd.f32 %v14617_v17, %v16520_v7  ;;  %v7106_v31 = vmax.f32 %v7042_v54, 0.0  ;;  %v7109_v20 = vmax.f32 %v7045_v15, 0.0  ;;  %v7123_v46 = vmax.f32 %v15004_v34, 0.0 }
 0xd2a   :  { %7157 = vst [vmem:[#allocation7 + $0x70] sm:$0xff] %v7093_v47  ;;  %v7047_v47 = vadd.f32 %v14617_v17, %v16521_v57  ;;  %v7126_v21 = vmax.f32 %v15013_v24, 0.0  ;;  %v7127_v22 = vmax.f32 %v15016_v41, 0.0  ;;  %v7129_v51 = vmax.f32 %v15022_v2, 0.0 }
 0xd2b   :  { %7158 = vst [vmem:[#allocation7 + $0x78] sm:$0xff] %v7094_v12  ;;  %v16522_v12 = vld [vmem:[#allocation40_spill] sm:$0xff]  ;;  %v7130_v34 = vmax.f32 %v15025_v37, 0.0  ;;  %v7133_v24 = vmax.f32 %v15034_v8, 0.0  ;;  %v7134_v41 = vmax.f32 %v15037_v18, 0.0  ;;  %v7136_v2 = vmax.f32 %v15043_v36, 0.0 }
 0xd2c   :  { %7159 = vst [vmem:[#allocation7 + $0x80] sm:$0xff] %v7095_v3  ;;  %v7048_v11 = vadd.f32 %v14617_v17, %v16522_v12  ;;  %v7108_v3 = vmax.f32 %v7044_v27, 0.0  ;;  %v7111_v60 = vmax.f32 %v7047_v47, 0.0  ;;  %v7137_v37 = vmax.f32 %v15046_v49, 0.0 }
 0xd2d   :  { %7160 = vst [vmem:[#allocation7 + $0x88] sm:$0xff] %v7096_v29  ;;  %v7049_v29 = vadd.f32 %v14617_v17, %v16523_v53  ;;  %v7117_v17 = vmax.f32 %v14986_v26, 0.0  ;;  %v7124_v26 = vmax.f32 %v15007_v19, 0.0  ;;  %v7131_v19 = vmax.f32 %v15028_v39, 0.0 }
 0xd2e   :  { %7161 = vst [vmem:[#allocation7 + $0x90] sm:$0xff] %v7097_v58  ;;  %v7110_v58 = vmax.f32 %v7046_v59, 0.0  ;;  %v7138_v39 = vmax.f32 %v15049_v0, 0.0  ;;  %v7140_v8 = vmax.f32 %v15055_v23, 0.0  ;;  %v7141_v18 = vmax.f32 %v15058_v6, 0.0 }
 0xd2f   :  { %7162 = vst [vmem:[#allocation7 + $0x98] sm:$0xff] %v7098_v44  ;;  %v7112_v44 = vmax.f32 %v7048_v11, 0.0  ;;  %v7113_v42 = vmax.f32 %v7049_v29, 0.0 }
 0xd30   :  { %7163 = vst [vmem:[#allocation7 + $0xa0] sm:$0xff] %v7099_v16  ;;  %v7114_v16 = vmax.f32 %v14977_v33, 0.0  ;;  %v7121_v33 = vmax.f32 %v14998_v43, 0.0  ;;  %v7128_v43 = vmax.f32 %v15019_v40, 0.0  ;;  %v7135_v40 = vmax.f32 %v15040_v48, 0.0 }
 0xd31   :  { %7164 = vst [vmem:[#allocation7 + $0xa8] sm:$0xff] %v7100_v28  ;;  %v7118_v28 = vmax.f32 %v14989_v45, 0.0  ;;  %v7125_v45 = vmax.f32 %v15010_v1, 0.0  ;;  %v7132_v1 = vmax.f32 %v15031_v4, 0.0  ;;  %v7139_v4 = vmax.f32 %v15052_v30, 0.0 }
 0xd32   :  { %7165 = vst [vmem:[#allocation7 + $0xb0] sm:$0xff] %v7101_v32 }
 0xd33   :  { %7166 = vst [vmem:[#allocation7 + $0xb8] sm:$0xff] %v7102_v10 }
 0xd34   :  { %7167 = vst [vmem:[#allocation7 + $0xc0] sm:$0xff] %v7103_v52 }
 0xd35   :  { %7168 = vst [vmem:[#allocation7 + $0xc8] sm:$0xff] %v7104_v55 }
 0xd36   :  { %7169 = vst [vmem:[#allocation7 + $0xd0] sm:$0xff] %v7105_v50 }
 0xd37   :  { %7170 = vst [vmem:[#allocation7 + $0xd8] sm:$0xff] %v7106_v31 }
 0xd38   :  { %7171 = vst [vmem:[#allocation7 + $0xe0] sm:$0xff] %v7107_v35 }
 0xd39   :  { %7172 = vst [vmem:[#allocation7 + $0xe8] sm:$0xff] %v7108_v3 }
 0xd3a   :  { %7173 = vst [vmem:[#allocation7 + $0xf0] sm:$0xff] %v7109_v20 }
 0xd3b   :  { %7174 = vst [vmem:[#allocation7 + $0xf8] sm:$0xff] %v7110_v58 }
 0xd3c   :  { %7175 = vst [vmem:[#allocation7 + $0x100] sm:$0xff] %v7111_v60 }
 0xd3d   :  { %7176 = vst [vmem:[#allocation7 + $0x108] sm:$0xff] %v7112_v44 }
 0xd3e   :  { %7177 = vst [vmem:[#allocation7 + $0x110] sm:$0xff] %v7113_v42 }
 0xd3f   :  { %7178 = vst [vmem:[#allocation7 + $0x118] sm:$0xff] %v7114_v16 }
 0xd40   :  { %7179 = vst [vmem:[#allocation7 + $0x120] sm:$0xff] %v7115_v62 }
 0xd41   :  { %7180 = vst [vmem:[#allocation7 + $0x128] sm:$0xff] %v7116_v13 }
 0xd42   :  { %7181 = vst [vmem:[#allocation7 + $0x130] sm:$0xff] %v7117_v17 }
 0xd43   :  { %7182 = vst [vmem:[#allocation7 + $0x138] sm:$0xff] %v7118_v28 }
 0xd44   :  { %7183 = vst [vmem:[#allocation7 + $0x140] sm:$0xff] %v7119_v14 }
 0xd45   :  { %7184 = vst [vmem:[#allocation7 + $0x148] sm:$0xff] %v7120_v63 }
 0xd46   :  { %7185 = vst [vmem:[#allocation7 + $0x150] sm:$0xff] %v7121_v33 }
 0xd47   :  { %7186 = vst [vmem:[#allocation7 + $0x158] sm:$0xff] %v7122_v61 }
 0xd48   :  { %7187 = vst [vmem:[#allocation7 + $0x160] sm:$0xff] %v7123_v46 }
 0xd49   :  { %7188 = vst [vmem:[#allocation7 + $0x168] sm:$0xff] %v7124_v26 }
 0xd4a   :  { %7189 = vst [vmem:[#allocation7 + $0x170] sm:$0xff] %v7125_v45 }
 0xd4b   :  { %7190 = vst [vmem:[#allocation7 + $0x178] sm:$0xff] %v7126_v21 }
 0xd4c   :  { %7191 = vst [vmem:[#allocation7 + $0x180] sm:$0xff] %v7127_v22 }
 0xd4d   :  { %7192 = vst [vmem:[#allocation7 + $0x188] sm:$0xff] %v7128_v43 }
 0xd4e   :  { %7193 = vst [vmem:[#allocation7 + $0x190] sm:$0xff] %v7129_v51 }
 0xd4f   :  { %7194 = vst [vmem:[#allocation7 + $0x198] sm:$0xff] %v7130_v34 }
 0xd50   :  { %7195 = vst [vmem:[#allocation7 + $0x1a0] sm:$0xff] %v7131_v19 }
 0xd51   :  { %7196 = vst [vmem:[#allocation7 + $0x1a8] sm:$0xff] %v7132_v1 }
 0xd52   :  { %7197 = vst [vmem:[#allocation7 + $0x1b0] sm:$0xff] %v7133_v24 }
 0xd53   :  { %7198 = vst [vmem:[#allocation7 + $0x1b8] sm:$0xff] %v7134_v41 }
 0xd54   :  { %7199 = vst [vmem:[#allocation7 + $0x1c0] sm:$0xff] %v7135_v40 }
 0xd55   :  { %7200 = vst [vmem:[#allocation7 + $0x1c8] sm:$0xff] %v7136_v2 }
 0xd56   :  { %7201 = vst [vmem:[#allocation7 + $0x1d0] sm:$0xff] %v7137_v37 }
 0xd57   :  { %7202 = vst [vmem:[#allocation7 + $0x1d8] sm:$0xff] %v7138_v39 }
 0xd58   :  { %7203 = vst [vmem:[#allocation7 + $0x1e0] sm:$0xff] %v7139_v4 }
 0xd59   :  { %7204 = vst [vmem:[#allocation7 + $0x1e8] sm:$0xff] %v7140_v8 }
 0xd5a   :  { %7205 = vst [vmem:[#allocation7 + $0x1f0] sm:$0xff] %v7141_v18 }
 0xd5b   :  { %7219 = dma.vmem_to_hbm [thread:$0]  %s7212_s23, 8192, %s7214_s22, [#allocation6], %s7499_s29, %s7499_s29, %s7500_s30  }
 0xd5c   :  { %7496 = dma.done.wait [#allocation6], 8192  }
 0xd5d   :  { %7497 = vsyncadd [#allocation6], 4294959104 }
 0xd5e   :  { %7224 = vsyncpa [#allocation5], 1 }
 0xd5f   :  { %7225 = vsyncpa [#allocation6], 1 }

</bundles_post_ra>
